<compile_context>
chip_gen: v7x
topology: tpu7x:2x2x1
jax: 0.10.0
libtpu: 0.0.40
codegen_flags: <defaults>
</compile_context>

<pallas_src>
import math
from functools import partial

import jax
import jax.numpy as jnp
from jax.experimental import pallas as pl
from jax.experimental.pallas import tpu as pltpu

# ----------------------------- configuration ------------------------------
CFG = dict(
    B=2, T=32, J=4, D=2,                    # input_dim = J*D = 8
    hidden=32, conv_ch=32, mlp_hidden=32,   # hidden_dim / conv_channels / mlp_hidden
    nhead=4, ff=64,                         # decoder_num_heads, mlp_hidden*dec_mlp_ratio(=2)
    num_classes=12, eos_id=0, bos_id=10, pad_id=11,
    gnn_hidden=16, gnn_feat=8,
    max_output_len=8, refine_iters=2, max_input_len=64,
)
BN_SCALE = 1.0 / math.sqrt(1.0 + 1e-5)      # eval-mode BatchNorm1d, default stats
SQRT_HALF = 1.0 / math.sqrt(2.0)
NEG_MASK = -1e9                             # additive mask (exp underflows to exactly 0)
CPAD = 128                                  # lane-dense logits width (12 classes -> 128)


class Tokenizer:
    def __init__(self, eos_id, bos_id, pad_id):
        self.eos_id, self.bos_id, self.pad_id = eos_id, bos_id, pad_id


# --------------------------- in-kernel helpers -----------------------------
def _gelu(x):
    return 0.5 * x * (1.0 + jax.lax.erf(x * SQRT_HALF))


def _layer_norm(x, w, b, eps=1e-5):
    mu = jnp.mean(x, axis=-1, keepdims=True)
    var = jnp.mean((x - mu) ** 2, axis=-1, keepdims=True)
    return (x - mu) * jax.lax.rsqrt(var + eps) * w + b


# ------------------------------ encoder kernel -----------------------------
def _encoder_kernel(x_ref, gw1, gb1, gw2, gb2, pw, pb,
                    sa1, se1, so1, c1w, c1b,
                    sa2, se2, so2, c2w, c2b,
                    pe_ref, mw, mb, o_ref, *, B, K, Lm):
    """GNN frame features + 2x(Conv1d+BN+GELU+MaxPool) + PE + MLP in one launch.
    Stride-2 taps / pools are matmuls with constant selection matrices (rows that
    would read padding are all-zero), so no strided or dynamic addressing is used."""
    f32 = jnp.float32

    def conv(x, sel_ref, w_ref, b_ref):
        g = jnp.dot(sel_ref[...], x, preferred_element_type=f32)   # gather taps via matmul
        w = w_ref[...]
        l_out = sel_ref.shape[0] // K
        c_in = w_ref.shape[0] // K
        acc = jnp.zeros((l_out, w.shape[1]), f32)
        for k in range(K):
            acc = acc + jnp.dot(g[k * l_out:(k + 1) * l_out, :],
                                w[k * c_in:(k + 1) * c_in, :],
                                preferred_element_type=f32)
        return _gelu(acc + b_ref[...])                              # BN folded into w/b

    def pool(x, se_ref, so_ref):
        return jnp.maximum(jnp.dot(se_ref[...], x, preferred_element_type=f32),
                           jnp.dot(so_ref[...], x, preferred_element_type=f32))

    for b in range(B):
        xb = x_ref[b]                                               # (T, J*D)
        # uniform-adjacency GCN == mean over joints; the mean is pre-folded into gw1
        h = jnp.maximum(jnp.dot(xb, gw1[...], preferred_element_type=f32) + gb1[...], 0.0)
        h = jnp.dot(h, gw2[...], preferred_element_type=f32) + gb2[...]
        frame = jnp.dot(h, pw[...], preferred_element_type=f32) + pb[...]   # (T, hidden)
        x1 = pool(conv(frame, sa1, c1w, c1b), se1, so1)             # (T/4, conv_ch)
        x2 = pool(conv(x1, sa2, c2w, c2b), se2, so2)                # (Lm, conv_ch)
        mem = _gelu(jnp.dot(x2 + pe_ref[...], mw[...], preferred_element_type=f32) + mb[...])
        o_ref[b * Lm:(b + 1) * Lm, :] = mem                         # row-stacked memory


# --------------------- fused AR-decode + refine kernel ----------------------
def _decode_kernel(mem_ref, posq_ref, emb_ref, saw_ref, caw_ref, fow_ref, ff2_ref, bsl_ref,
                   out_ref, cont_ref, *,
                   B, S, Lm, d, H, ff, n_refine, bos_id, eos_id):
    """grid=(S + refine_iters,).  Steps t<S are AR steps (one query row, greedy next
    token written into the resident content scratch); steps t>=S are cloze-refine
    passes that rebuild content / pad-mask from the logits already sitting in the
    (resident) output block and overwrite it."""
    f32 = jnp.float32
    t = pl.program_id(0)
    hd = d // H
    scale = 1.0 / math.sqrt(hd)

    # ---- resident operands (DMA'd once; constant index maps) ----
    mem_all = mem_ref[...]                  # (B*Lm, d)
    pq = posq_ref[...]                      # (S, d)
    emb = emb_ref[...]                      # (CPAD, d), pre-scaled by sqrt(d)
    saw = saw_ref[...]                      # (d, 4d)  [Wq|Wk|Wv|Wo]
    caw = caw_ref[...]                      # (d, 4d)
    fow = fow_ref[...]                      # (d, 2*CPAD) [W_ff1 | pad | W_out]
    ff2w = ff2_ref[...]                     # (ff, d)
    bsl = bsl_ref[...]                      # (21, CPAD) packed biases / LN params

    def brow(r, w):
        return bsl[r:r + 1, :w]

    sa_wq, sa_wk, sa_wv, sa_wo = saw[:, :d], saw[:, d:2 * d], saw[:, 2 * d:3 * d], saw[:, 3 * d:4 * d]
    ca_wq, ca_wk, ca_wv, ca_wo = caw[:, :d], caw[:, d:2 * d], caw[:, 2 * d:3 * d], caw[:, 3 * d:4 * d]
    ff1_w = fow[:, :ff]
    out_w = fow[:, CPAD:2 * CPAD]
    sa_b = [brow(r, d) for r in range(4)]           # bq, bk, bv, bo
    ca_b = [brow(r, d) for r in range(4, 8)]
    nq_w, nq_b, nc_w, nc_b = brow(8, d), brow(9, d), brow(10, d), brow(11, d)
    n1_w, n1_b, n2_w, n2_b = brow(12, d), brow(13, d), brow(14, d), brow(15, d)
    nd_w, nd_b = brow(16, d), brow(17, d)
    ff1_b, ff2_b, out_b = brow(18, ff), brow(19, d), brow(20, CPAD)

    def mha(xq, lq, xkv, lkv, wq, wk, wv, wo, bq, bk, bvv, bo, bias_bt):
        # full-width, batch-folded projections; heads sliced only for score/softmax
        q = jnp.dot(xq, wq, preferred_element_type=f32) + bq
        k = jnp.dot(xkv, wk, preferred_element_type=f32) + bk
        v = jnp.dot(xkv, wv, preferred_element_type=f32) + bvv
        rows = []
        for b in range(B):
            qb = q[b * lq:(b + 1) * lq, :]
            kb = k[b * lkv:(b + 1) * lkv, :]
            vb = v[b * lkv:(b + 1) * lkv, :]
            heads = []
            for h in range(H):
                sl = slice(h * hd, (h + 1) * hd)
                s = jnp.dot(qb[:, sl], kb[:, sl].T, preferred_element_type=f32) * scale
                if bias_bt is not None:
                    s = s + bias_bt[b]
                s = s - jnp.max(s, axis=-1, keepdims=True)
                p = jnp.exp(s)
                p = p / jnp.sum(p, axis=-1, keepdims=True)   # exact div (argmax feedback)
                heads.append(jnp.dot(p, vb[:, sl], preferred_element_type=f32))
            rows.append(jnp.concatenate(heads, axis=1))
        ctx = jnp.concatenate(rows, axis=0)
        return jnp.dot(ctx, wo, preferred_element_type=f32) + bo

    def dec_layer(q_all, lq, cont_all, bias_bt):
        qn = _layer_norm(q_all, nq_w, nq_b)
        cn = _layer_norm(cont_all, nc_w, nc_b)
        tgt = q_all + mha(qn, lq, cn, S, sa_wq, sa_wk, sa_wv, sa_wo, *sa_b, bias_bt)
        tgt = tgt + mha(_layer_norm(tgt, n1_w, n1_b), lq, mem_all, Lm,
                        ca_wq, ca_wk, ca_wv, ca_wo, *ca_b, None)
        t2 = _layer_norm(tgt, n2_w, n2_b)
        hmid = _gelu(jnp.dot(t2, ff1_w, preferred_element_type=f32) + ff1_b)
        tgt = tgt + jnp.dot(hmid, ff2w, preferred_element_type=f32) + ff2_b
        tgt = _layer_norm(tgt, nd_w, nd_b)
        return jnp.dot(tgt, out_w, preferred_element_type=f32) + out_b   # (B*lq, CPAD)

    def argmax_onehot(x):                   # vectorized first-index argmax, no dyn addressing
        lane = jax.lax.broadcasted_iota(jnp.int32, x.shape, 1)
        m = jnp.max(x, axis=-1, keepdims=True)
        idx = jnp.min(jnp.where(x >= m, lane, CPAD), axis=-1, keepdims=True)
        return (lane == idx).astype(f32), idx

    row_o = jax.lax.broadcasted_iota(jnp.int32, (B * S, 1), 0)      # row ids of out/content

    # -------- step 0: initialise the content stream (bos at position 0) --------
    @pl.when(t == 0)
    def _():
        cont_ref[...] = jnp.zeros_like(cont_ref)
        bos_row = emb[bos_id:bos_id + 1, :]
        for b in range(B):
            cont_ref[b * S:b * S + 1, :] = bos_row

    # -------- autoregressive steps (t < S): one query row per batch --------
    @pl.when(t < S)
    def _():
        i = t
        sel = (jax.lax.broadcasted_iota(jnp.int32, (1, S), 1) == i).astype(f32)
        q_row = jnp.dot(sel, pq, preferred_element_type=f32)         # pos_queries[i], (1, d)
        q_all = jnp.concatenate([q_row] * B, axis=0)                 # (B, d)
        col = jax.lax.broadcasted_iota(jnp.int32, (1, S), 1)
        bias = jnp.where(col > i, NEG_MASK, 0.0).astype(f32)         # mask content cols > i
        logits = dec_layer(q_all, 1, cont_ref[...], [bias] * B)      # (B, CPAD)

        cur = out_ref[...]                                           # resident logits block
        for b in range(B):
            cur = jnp.where(row_o == b * S + i, logits[b:b + 1, :], cur)
        out_ref[...] = cur

        # greedy next token -> content row i+1 (masked off on the last AR step)
        oh, _ = argmax_onehot(logits)
        nxt = jnp.dot(oh, emb, preferred_element_type=f32)           # (B, d)
        cc = cont_ref[...]
        for b in range(B):
            hit = jnp.logical_and(row_o == b * S + i + 1, i + 1 < S)
            cc = jnp.where(hit, q_row + nxt[b:b + 1, :], cc)
        cont_ref[...] = cc

    # -------- cloze refinement steps (t >= S) --------
    if n_refine > 0:
        @pl.when(t >= S)
        def _():
            prev = out_ref[...]                                      # current logits (B*S, CPAD)
            oh, idx = argmax_onehot(prev)
            embs = jnp.dot(oh, emb, preferred_element_type=f32)      # (B*S, d)
            is_eos = (idx == eos_id).astype(f32)                     # (B*S, 1)
            bos_row = emb[bos_id:bos_id + 1, :]

            ri = jax.lax.broadcasted_iota(jnp.int32, (S, S), 0)
            ci = jax.lax.broadcasted_iota(jnp.int32, (S, S), 1)
            struct = ci == ri + 1                                    # block only the "next" position
            colv = jax.lax.broadcasted_iota(jnp.int32, (1, S), 1)

            biases = []
            for b in range(B):
                # rebuild content: tgt = [bos, argmax(logits[:, :-1])]
                cont_ref[b * S:b * S + 1, :] = bos_row
                cont_ref[b * S + 1:b * S + S, :] = pq[:S - 1, :] + embs[b * S:b * S + S - 1, :]
                # key-padding mask: every column at/after the first EOS is blocked
                acc = jnp.zeros((1, 1), f32)
                padv = jnp.zeros((1, S), f32)
                for k in range(1, S):
                    acc = jnp.maximum(acc, is_eos[b * S + k - 1:b * S + k, :])
                    padv = padv + acc * (colv == k).astype(f32)
                blocked = jnp.logical_or(struct, jnp.broadcast_to(padv, (S, S)) > 0)
                biases.append(jnp.where(blocked, NEG_MASK, 0.0).astype(f32))

            q_all = jnp.concatenate([pq] * B, axis=0)                # (B*S, d)
            out_ref[...] = dec_layer(q_all, S, cont_ref[...], biases)


# ------------------------------- full forward -------------------------------
@partial(jax.jit, static_argnames=('max_length', 'bos_id', 'eos_id', 'pad_id'))
def forward(rp, poses, max_length, bos_id, eos_id, pad_id):
    del pad_id                               # padded AR positions handled purely by masking
    c = CFG
    d = c['mlp_hidden']
    max_length = min(max_length, c['max_output_len'])
    S = max_length + 1
    B, T, J, D = poses.shape
    enc, dec = rp['enc'], rp['dec']
    assert enc['sel_a1'].shape[1] == T, "selection matrices were built for a different T"

    L1 = (T + 4 - 5) // 2 + 1
    L2 = ((L1 // 2) + 4 - 5) // 2 + 1
    Lm = L2 // 2

    # ---------------- encoder: one fused launch ----------------
    memory = pl.pallas_call(
        partial(_encoder_kernel, B=B, K=5, Lm=Lm),
        out_shape=jax.ShapeDtypeStruct((B * Lm, d), jnp.float32),
    )(poses.reshape(B, T, J * D),
      enc['gnn_w1'], enc['gnn_b1'], enc['gnn_w2'], enc['gnn_b2'],
      enc['proj_w'], enc['proj_b'],
      enc['sel_a1'], enc['sel_e1'], enc['sel_o1'], enc['conv1_w'], enc['conv1_b'],
      enc['sel_a2'], enc['sel_e2'], enc['sel_o2'], enc['conv2_w'], enc['conv2_b'],
      enc['pe'], enc['mlp_w'], enc['mlp_b'])

    # -------- fused AR decode + cloze refine: one launch, grid over steps --------
    n_refine = c['refine_iters']
    pos_q = rp['pos_queries'][:S, :]
    const2d = lambda shape: pl.BlockSpec(shape, lambda t: (0, 0))   # resident blocks

    logits_flat = pl.pallas_call(
        partial(_decode_kernel, B=B, S=S, Lm=Lm, d=d, H=c['nhead'], ff=c['ff'],
                n_refine=n_refine, bos_id=bos_id, eos_id=eos_id),
        grid=(S + n_refine,),
        in_specs=[const2d((B * Lm, d)), const2d((S, d)), const2d((CPAD, d)),
                  const2d((d, 4 * d)), const2d((d, 4 * d)), const2d((d, 2 * CPAD)),
                  const2d((c['ff'], d)), const2d(dec['bvec'].shape)],
        out_specs=const2d((B * S, CPAD)),
        out_shape=jax.ShapeDtypeStruct((B * S, CPAD), jnp.float32),
        scratch_shapes=[pltpu.VMEM((B * S, d), jnp.float32)],
        compiler_params=pltpu.CompilerParams(dimension_semantics=("arbitrary",)),
    )(memory, pos_q, dec['tok_emb'], dec['sa_w'], dec['ca_w'], dec['fo_w'],
      dec['ff2_w'], dec['bvec'])

    return logits_flat.reshape(B, S, CPAD)[:, :, :c['num_classes']]


# -------------------------------- parameters --------------------------------
def positional_encoding(d_model, max_len):
    position = jnp.arange(max_len, dtype=jnp.float32)[:, None]
    div_term = jnp.exp(jnp.arange(0, d_model, 2, dtype=jnp.float32)
                       * (-math.log(10000.0) / d_model))
    pe = jnp.zeros((max_len, d_model), jnp.float32)
    pe = pe.at[:, 0::2].set(jnp.sin(position * div_term))
    pe = pe.at[:, 1::2].set(jnp.cos(position * div_term))
    return pe[None]


def init_params(key):
    c = CFG
    d = c['mlp_hidden']
    it = iter(jax.random.split(key, 24))

    def W(shape, scale=0.05):
        return (scale * jax.random.normal(next(it), shape)).astype(jnp.float32)

    z = lambda *s: jnp.zeros(s, jnp.float32)
    o = lambda *s: jnp.ones(s, jnp.float32)

    p = {
        'gnn_w1': W((c['D'], c['gnn_hidden'])), 'gnn_b1': z(c['gnn_hidden']),
        'gnn_w2': W((c['gnn_hidden'], c['gnn_feat'])), 'gnn_b2': z(c['gnn_feat']),
        'proj_w': W((c['J'] * c['gnn_feat'], c['hidden'])), 'proj_b': z(c['hidden']),
        'conv1_w': W((c['conv_ch'], c['hidden'], 5)), 'conv1_b': z(c['conv_ch']),
        'conv2_w': W((c['conv_ch'], c['conv_ch'], 5)), 'conv2_b': z(c['conv_ch']),
        'mlp_w': W((c['conv_ch'], d)), 'mlp_b': z(d),
        'tok_emb': W((c['num_classes'], d)),
        'pos_queries': W((1, c['max_output_len'] + 1, d)),
        'out_w': W((d, c['num_classes'])), 'out_b': z(c['num_classes']),
        'dec_norm_w': o(d), 'dec_norm_b': z(d),
        'pe': positional_encoding(c['conv_ch'], c['max_input_len']),
    }
    lp = {}
    for pre in ('sa', 'ca'):
        lp[pre + '_wq'] = W((d, d)); lp[pre + '_bq'] = z(d)
        lp[pre + '_wk'] = W((d, d)); lp[pre + '_bk'] = z(d)
        lp[pre + '_wv'] = W((d, d)); lp[pre + '_bv'] = z(d)
        lp[pre + '_wo'] = W((d, d)); lp[pre + '_bo'] = z(d)
    lp['lin1_w'] = W((d, c['ff'])); lp['lin1_b'] = z(c['ff'])
    lp['lin2_w'] = W((c['ff'], d)); lp['lin2_b'] = z(d)
    for nm in ('norm1', 'norm2', 'normq', 'normc'):
        lp[nm + '_w'] = o(d); lp[nm + '_b'] = z(d)
    p['dec_layer'] = lp
    return p


def _conv_sel(l_in, K=5, stride=2, pad=2):
    """Constant tap-selection matrix: rows grouped by tap k; out-of-range taps are zero rows."""
    l_out = (l_in + 2 * pad - K) // stride + 1
    rows = []
    for k in range(K):
        for m in range(l_out):
            src = stride * m + k - pad
            rows.append([1.0 if (0 <= src < l_in and tt == src) else 0.0 for tt in range(l_in)])
    return jnp.array(rows, jnp.float32), l_out


def _pool_sel(l_in):
    l_out = l_in // 2
    ev = [[1.0 if tt == 2 * m else 0.0 for tt in range(l_in)] for m in range(l_out)]
    od = [[1.0 if tt == 2 * m + 1 else 0.0 for tt in range(l_in)] for m in range(l_out)]
    return jnp.array(ev, jnp.float32), jnp.array(od, jnp.float32), l_out


def prep_params(p):
    """One-time repack into kernel-ready slabs: BN folded into conv mats, joint-mean
    folded into the first GNN linear, gnn_proj folded over joints, attention weights
    concatenated into (d,4d) slabs, biases/LN params stacked into one (21,128) slab,
    out_proj & token-embedding padded to 128 lanes."""
    c = CFG
    d = c['mlp_hidden']
    J, D, gf, Cn = c['J'], c['D'], c['gnn_feat'], c['num_classes']

    # --- encoder ---
    M = jnp.zeros((J * D, D), jnp.float32)
    for j in range(J):
        for dd in range(D):
            M = M.at[j * D + dd, dd].set(1.0 / J)           # mean over joints
    gnn_w1 = M @ p['gnn_w1']

    def conv_mat(w, b):
        c_out, c_in, K = w.shape
        wm = jnp.transpose(w, (2, 1, 0)).reshape(K * c_in, c_out) * BN_SCALE
        return wm, (b * BN_SCALE).reshape(1, -1)

    c1w, c1b = conv_mat(p['conv1_w'], p['conv1_b'])
    c2w, c2b = conv_mat(p['conv2_w'], p['conv2_b'])

    T = c['T']
    sel_a1, L1 = _conv_sel(T)
    sel_e1, sel_o1, L1p = _pool_sel(L1)
    sel_a2, L2 = _conv_sel(L1p)
    sel_e2, sel_o2, Lm = _pool_sel(L2)

    enc = dict(
        gnn_w1=gnn_w1, gnn_b1=p['gnn_b1'].reshape(1, -1),
        gnn_w2=p['gnn_w2'], gnn_b2=p['gnn_b2'].reshape(1, -1),
        proj_w=p['proj_w'].reshape(J, gf, c['hidden']).sum(axis=0),   # identical joints folded
        proj_b=p['proj_b'].reshape(1, -1),
        sel_a1=sel_a1, sel_e1=sel_e1, sel_o1=sel_o1, conv1_w=c1w, conv1_b=c1b,
        sel_a2=sel_a2, sel_e2=sel_e2, sel_o2=sel_o2, conv2_w=c2w, conv2_b=c2b,
        pe=p['pe'][0, :Lm, :], mlp_w=p['mlp_w'], mlp_b=p['mlp_b'].reshape(1, -1),
    )

    # --- decoder slabs ---
    lp = p['dec_layer']
    sa_w = jnp.concatenate([lp['sa_wq'], lp['sa_wk'], lp['sa_wv'], lp['sa_wo']], axis=1)
    ca_w = jnp.concatenate([lp['ca_wq'], lp['ca_wk'], lp['ca_wv'], lp['ca_wo']], axis=1)
    out_w_pad = jnp.zeros((d, CPAD), jnp.float32).at[:, :Cn].set(p['out_w'])
    fo_w = jnp.zeros((d, 2 * CPAD), jnp.float32)
    fo_w = fo_w.at[:, :c['ff']].set(lp['lin1_w']).at[:, CPAD:].set(out_w_pad)
    out_b_pad = jnp.full((CPAD,), NEG_MASK, jnp.float32).at[:Cn].set(p['out_b'])

    def rowpad(v):
        return jnp.zeros((CPAD,), jnp.float32).at[:v.shape[0]].set(v)

    bvec = jnp.stack([rowpad(v) for v in (
        lp['sa_bq'], lp['sa_bk'], lp['sa_bv'], lp['sa_bo'],
        lp['ca_bq'], lp['ca_bk'], lp['ca_bv'], lp['ca_bo'],
        lp['normq_w'], lp['normq_b'], lp['normc_w'], lp['normc_b'],
        lp['norm1_w'], lp['norm1_b'], lp['norm2_w'], lp['norm2_b'],
        p['dec_norm_w'], p['dec_norm_b'],
        lp['lin1_b'], lp['lin2_b'])] + [out_b_pad], axis=0)          # (21, 128)

    tok_emb = jnp.zeros((CPAD, d), jnp.float32).at[:Cn, :].set(math.sqrt(d) * p['tok_emb'])

    dec = dict(sa_w=sa_w, ca_w=ca_w, fo_w=fo_w, ff2_w=lp['lin2_w'], bvec=bvec, tok_emb=tok_emb)
    return dict(enc=enc, dec=dec, pos_queries=p['pos_queries'][0])


# ----------------------------------- main -----------------------------------
if __name__ == "__main__":
    key = jax.random.PRNGKey(0)
    pkey, xkey = jax.random.split(key)
    params = init_params(pkey)
    rp = prep_params(params)
    poses = jax.random.normal(xkey, (CFG['B'], CFG['T'], CFG['J'], CFG['D']), jnp.float32)
    tokenizer = Tokenizer(CFG['eos_id'], CFG['bos_id'], CFG['pad_id'])

    logits = forward(rp, poses, max_length=4,
                     bos_id=tokenizer.bos_id, eos_id=tokenizer.eos_id,
                     pad_id=tokenizer.pad_id)
    logits = jax.block_until_ready(logits)
    assert logits.shape == (CFG['B'], 5, CFG['num_classes'])
    assert bool(jnp.all(jnp.isfinite(logits)))
    print("KERNEL_OK")
</pallas_src>

<mosaic_0001>
module attributes {stable_mosaic.version = 11 : i64} {
  func.func @_encoder_kernel(%arg0: memref<2x32x8xf32, #tpu.memory_space<vmem>>, %arg1: memref<8x16xf32, #tpu.memory_space<vmem>>, %arg2: memref<1x16xf32, #tpu.memory_space<vmem>>, %arg3: memref<16x8xf32, #tpu.memory_space<vmem>>, %arg4: memref<1x8xf32, #tpu.memory_space<vmem>>, %arg5: memref<8x32xf32, #tpu.memory_space<vmem>>, %arg6: memref<1x32xf32, #tpu.memory_space<vmem>>, %arg7: memref<80x32xf32, #tpu.memory_space<vmem>>, %arg8: memref<8x16xf32, #tpu.memory_space<vmem>>, %arg9: memref<8x16xf32, #tpu.memory_space<vmem>>, %arg10: memref<160x32xf32, #tpu.memory_space<vmem>>, %arg11: memref<1x32xf32, #tpu.memory_space<vmem>>, %arg12: memref<20x8xf32, #tpu.memory_space<vmem>>, %arg13: memref<2x4xf32, #tpu.memory_space<vmem>>, %arg14: memref<2x4xf32, #tpu.memory_space<vmem>>, %arg15: memref<160x32xf32, #tpu.memory_space<vmem>>, %arg16: memref<1x32xf32, #tpu.memory_space<vmem>>, %arg17: memref<2x32xf32, #tpu.memory_space<vmem>>, %arg18: memref<32x32xf32, #tpu.memory_space<vmem>>, %arg19: memref<1x32xf32, #tpu.memory_space<vmem>>, %arg20: memref<4x32xf32, #tpu.memory_space<vmem>>) attributes {dimension_semantics = [], scalar_prefetch = 0 : i64, scratch_operands = 0 : i64, tpu.core_type = #tpu.core_type<tc>} {
    %c0 = arith.constant 0 : index
    %c0_0 = arith.constant 0 : index
    %c0_1 = arith.constant 0 : index
    %0 = vector.load %arg0[%c0, %c0_0, %c0_1] : memref<2x32x8xf32, #tpu.memory_space<vmem>>, vector<1x32x8xf32>
    %1 = vector.shape_cast %0 : vector<1x32x8xf32> to vector<32x8xf32>
    %c0_2 = arith.constant 0 : index
    %c0_3 = arith.constant 0 : index
    %2 = vector.load %arg1[%c0_2, %c0_3] : memref<8x16xf32, #tpu.memory_space<vmem>>, vector<8x16xf32>
    %cst = arith.constant dense<0.000000e+00> : vector<32x16xf32>
    %3 = tpu.matmul %1, %2, %cst {dimension_numbers = #tpu.dot_dimension_numbers<[1], [0], [0], [1], [0, 0, 1, 1], [], []>} : vector<32x8xf32>, vector<8x16xf32>, vector<32x16xf32> -> vector<32x16xf32>
    %c0_4 = arith.constant 0 : index
    %c0_5 = arith.constant 0 : index
    %4 = vector.load %arg2[%c0_4, %c0_5] : memref<1x16xf32, #tpu.memory_space<vmem>>, vector<1x16xf32>
    %5 = vector.broadcast %4 : vector<1x16xf32> to vector<32x16xf32>
    %6 = arith.addf %3, %5 : vector<32x16xf32>
    %cst_6 = arith.constant 0.000000e+00 : f32
    %7 = vector.broadcast %cst_6 : f32 to vector<32x16xf32>
    %8 = arith.maximumf %6, %7 : vector<32x16xf32>
    %c0_7 = arith.constant 0 : index
    %c0_8 = arith.constant 0 : index
    %9 = vector.load %arg3[%c0_7, %c0_8] : memref<16x8xf32, #tpu.memory_space<vmem>>, vector<16x8xf32>
    %cst_9 = arith.constant dense<0.000000e+00> : vector<32x8xf32>
    %10 = tpu.matmul %8, %9, %cst_9 {dimension_numbers = #tpu.dot_dimension_numbers<[1], [0], [0], [1], [0, 0, 1, 1], [], []>} : vector<32x16xf32>, vector<16x8xf32>, vector<32x8xf32> -> vector<32x8xf32>
    %c0_10 = arith.constant 0 : index
    %c0_11 = arith.constant 0 : index
    %11 = vector.load %arg4[%c0_10, %c0_11] : memref<1x8xf32, #tpu.memory_space<vmem>>, vector<1x8xf32>
    %12 = vector.broadcast %11 : vector<1x8xf32> to vector<32x8xf32>
    %13 = arith.addf %10, %12 : vector<32x8xf32>
    %c0_12 = arith.constant 0 : index
    %c0_13 = arith.constant 0 : index
    %14 = vector.load %arg5[%c0_12, %c0_13] : memref<8x32xf32, #tpu.memory_space<vmem>>, vector<8x32xf32>
    %cst_14 = arith.constant dense<0.000000e+00> : vector<32x32xf32>
    %15 = tpu.matmul %13, %14, %cst_14 {dimension_numbers = #tpu.dot_dimension_numbers<[1], [0], [0], [1], [0, 0, 1, 1], [], []>} : vector<32x8xf32>, vector<8x32xf32>, vector<32x32xf32> -> vector<32x32xf32>
    %c0_15 = arith.constant 0 : index
    %c0_16 = arith.constant 0 : index
    %16 = vector.load %arg6[%c0_15, %c0_16] : memref<1x32xf32, #tpu.memory_space<vmem>>, vector<1x32xf32>
    %17 = vector.broadcast %16 : vector<1x32xf32> to vector<32x32xf32>
    %18 = arith.addf %15, %17 : vector<32x32xf32>
    %c0_17 = arith.constant 0 : index
    %c0_18 = arith.constant 0 : index
    %19 = vector.load %arg7[%c0_17, %c0_18] : memref<80x32xf32, #tpu.memory_space<vmem>>, vector<80x32xf32>
    %cst_19 = arith.constant dense<0.000000e+00> : vector<80x32xf32>
    %20 = tpu.matmul %19, %18, %cst_19 {dimension_numbers = #tpu.dot_dimension_numbers<[1], [0], [0], [1], [0, 0, 1, 1], [], []>} : vector<80x32xf32>, vector<32x32xf32>, vector<80x32xf32> -> vector<80x32xf32>
    %c0_20 = arith.constant 0 : index
    %c0_21 = arith.constant 0 : index
    %21 = vector.load %arg10[%c0_20, %c0_21] : memref<160x32xf32, #tpu.memory_space<vmem>>, vector<160x32xf32>
    %cst_22 = arith.constant 0.000000e+00 : f32
    %22 = vector.broadcast %cst_22 : f32 to vector<16x32xf32>
    %23 = vector.extract_strided_slice %20 {offsets = [0, 0], sizes = [16, 32], strides = [1, 1]} : vector<80x32xf32> to vector<16x32xf32>
    %24 = vector.extract_strided_slice %21 {offsets = [0, 0], sizes = [32, 32], strides = [1, 1]} : vector<160x32xf32> to vector<32x32xf32>
    %cst_23 = arith.constant dense<0.000000e+00> : vector<16x32xf32>
    %25 = tpu.matmul %23, %24, %cst_23 {dimension_numbers = #tpu.dot_dimension_numbers<[1], [0], [0], [1], [0, 0, 1, 1], [], []>} : vector<16x32xf32>, vector<32x32xf32>, vector<16x32xf32> -> vector<16x32xf32>
    %26 = arith.addf %22, %25 : vector<16x32xf32>
    %27 = vector.extract_strided_slice %20 {offsets = [16, 0], sizes = [16, 32], strides = [1, 1]} : vector<80x32xf32> to vector<16x32xf32>
    %28 = vector.extract_strided_slice %21 {offsets = [32, 0], sizes = [32, 32], strides = [1, 1]} : vector<160x32xf32> to vector<32x32xf32>
    %cst_24 = arith.constant dense<0.000000e+00> : vector<16x32xf32>
    %29 = tpu.matmul %27, %28, %cst_24 {dimension_numbers = #tpu.dot_dimension_numbers<[1], [0], [0], [1], [0, 0, 1, 1], [], []>} : vector<16x32xf32>, vector<32x32xf32>, vector<16x32xf32> -> vector<16x32xf32>
    %30 = arith.addf %26, %29 : vector<16x32xf32>
    %31 = vector.extract_strided_slice %20 {offsets = [32, 0], sizes = [16, 32], strides = [1, 1]} : vector<80x32xf32> to vector<16x32xf32>
    %32 = vector.extract_strided_slice %21 {offsets = [64, 0], sizes = [32, 32], strides = [1, 1]} : vector<160x32xf32> to vector<32x32xf32>
    %cst_25 = arith.constant dense<0.000000e+00> : vector<16x32xf32>
    %33 = tpu.matmul %31, %32, %cst_25 {dimension_numbers = #tpu.dot_dimension_numbers<[1], [0], [0], [1], [0, 0, 1, 1], [], []>} : vector<16x32xf32>, vector<32x32xf32>, vector<16x32xf32> -> vector<16x32xf32>
    %34 = arith.addf %30, %33 : vector<16x32xf32>
    %35 = vector.extract_strided_slice %20 {offsets = [48, 0], sizes = [16, 32], strides = [1, 1]} : vector<80x32xf32> to vector<16x32xf32>
    %36 = vector.extract_strided_slice %21 {offsets = [96, 0], sizes = [32, 32], strides = [1, 1]} : vector<160x32xf32> to vector<32x32xf32>
    %cst_26 = arith.constant dense<0.000000e+00> : vector<16x32xf32>
    %37 = tpu.matmul %35, %36, %cst_26 {dimension_numbers = #tpu.dot_dimension_numbers<[1], [0], [0], [1], [0, 0, 1, 1], [], []>} : vector<16x32xf32>, vector<32x32xf32>, vector<16x32xf32> -> vector<16x32xf32>
    %38 = arith.addf %34, %37 : vector<16x32xf32>
    %39 = vector.extract_strided_slice %20 {offsets = [64, 0], sizes = [16, 32], strides = [1, 1]} : vector<80x32xf32> to vector<16x32xf32>
    %40 = vector.extract_strided_slice %21 {offsets = [128, 0], sizes = [32, 32], strides = [1, 1]} : vector<160x32xf32> to vector<32x32xf32>
    %cst_27 = arith.constant dense<0.000000e+00> : vector<16x32xf32>
    %41 = tpu.matmul %39, %40, %cst_27 {dimension_numbers = #tpu.dot_dimension_numbers<[1], [0], [0], [1], [0, 0, 1, 1], [], []>} : vector<16x32xf32>, vector<32x32xf32>, vector<16x32xf32> -> vector<16x32xf32>
    %42 = arith.addf %38, %41 : vector<16x32xf32>
    %c0_28 = arith.constant 0 : index
    %c0_29 = arith.constant 0 : index
    %43 = vector.load %arg11[%c0_28, %c0_29] : memref<1x32xf32, #tpu.memory_space<vmem>>, vector<1x32xf32>
    %44 = vector.broadcast %43 : vector<1x32xf32> to vector<16x32xf32>
    %45 = arith.addf %42, %44 : vector<16x32xf32>
    %cst_30 = arith.constant 5.000000e-01 : f32
    %46 = vector.broadcast %cst_30 : f32 to vector<16x32xf32>
    %47 = arith.mulf %46, %45 : vector<16x32xf32>
    %cst_31 = arith.constant 0.707106769 : f32
    %48 = vector.broadcast %cst_31 : f32 to vector<16x32xf32>
    %49 = arith.mulf %45, %48 : vector<16x32xf32>
    %50 = math.erf %49 : vector<16x32xf32>
    %cst_32 = arith.constant 1.000000e+00 : f32
    %51 = vector.broadcast %cst_32 : f32 to vector<16x32xf32>
    %52 = arith.addf %51, %50 : vector<16x32xf32>
    %53 = arith.mulf %47, %52 : vector<16x32xf32>
    %c0_33 = arith.constant 0 : index
    %c0_34 = arith.constant 0 : index
    %54 = vector.load %arg8[%c0_33, %c0_34] : memref<8x16xf32, #tpu.memory_space<vmem>>, vector<8x16xf32>
    %cst_35 = arith.constant dense<0.000000e+00> : vector<8x32xf32>
    %55 = tpu.matmul %54, %53, %cst_35 {dimension_numbers = #tpu.dot_dimension_numbers<[1], [0], [0], [1], [0, 0, 1, 1], [], []>} : vector<8x16xf32>, vector<16x32xf32>, vector<8x32xf32> -> vector<8x32xf32>
    %c0_36 = arith.constant 0 : index
    %c0_37 = arith.constant 0 : index
    %56 = vector.load %arg9[%c0_36, %c0_37] : memref<8x16xf32, #tpu.memory_space<vmem>>, vector<8x16xf32>
    %cst_38 = arith.constant dense<0.000000e+00> : vector<8x32xf32>
    %57 = tpu.matmul %56, %53, %cst_38 {dimension_numbers = #tpu.dot_dimension_numbers<[1], [0], [0], [1], [0, 0, 1, 1], [], []>} : vector<8x16xf32>, vector<16x32xf32>, vector<8x32xf32> -> vector<8x32xf32>
    %58 = arith.maximumf %55, %57 : vector<8x32xf32>
    %c0_39 = arith.constant 0 : index
    %c0_40 = arith.constant 0 : index
    %59 = vector.load %arg12[%c0_39, %c0_40] : memref<20x8xf32, #tpu.memory_space<vmem>>, vector<20x8xf32>
    %cst_41 = arith.constant dense<0.000000e+00> : vector<20x32xf32>
    %60 = tpu.matmul %59, %58, %cst_41 {dimension_numbers = #tpu.dot_dimension_numbers<[1], [0], [0], [1], [0, 0, 1, 1], [], []>} : vector<20x8xf32>, vector<8x32xf32>, vector<20x32xf32> -> vector<20x32xf32>
    %c0_42 = arith.constant 0 : index
    %c0_43 = arith.constant 0 : index
    %61 = vector.load %arg15[%c0_42, %c0_43] : memref<160x32xf32, #tpu.memory_space<vmem>>, vector<160x32xf32>
    %cst_44 = arith.constant 0.000000e+00 : f32
    %62 = vector.broadcast %cst_44 : f32 to vector<4x32xf32>
    %63 = vector.extract_strided_slice %60 {offsets = [0, 0], sizes = [4, 32], strides = [1, 1]} : vector<20x32xf32> to vector<4x32xf32>
    %64 = vector.extract_strided_slice %61 {offsets = [0, 0], sizes = [32, 32], strides = [1, 1]} : vector<160x32xf32> to vector<32x32xf32>
    %cst_45 = arith.constant dense<0.000000e+00> : vector<4x32xf32>
    %65 = tpu.matmul %63, %64, %cst_45 {dimension_numbers = #tpu.dot_dimension_numbers<[1], [0], [0], [1], [0, 0, 1, 1], [], []>} : vector<4x32xf32>, vector<32x32xf32>, vector<4x32xf32> -> vector<4x32xf32>
    %66 = arith.addf %62, %65 : vector<4x32xf32>
    %67 = vector.extract_strided_slice %60 {offsets = [4, 0], sizes = [4, 32], strides = [1, 1]} : vector<20x32xf32> to vector<4x32xf32>
    %68 = vector.extract_strided_slice %61 {offsets = [32, 0], sizes = [32, 32], strides = [1, 1]} : vector<160x32xf32> to vector<32x32xf32>
    %cst_46 = arith.constant dense<0.000000e+00> : vector<4x32xf32>
    %69 = tpu.matmul %67, %68, %cst_46 {dimension_numbers = #tpu.dot_dimension_numbers<[1], [0], [0], [1], [0, 0, 1, 1], [], []>} : vector<4x32xf32>, vector<32x32xf32>, vector<4x32xf32> -> vector<4x32xf32>
    %70 = arith.addf %66, %69 : vector<4x32xf32>
    %71 = vector.extract_strided_slice %60 {offsets = [8, 0], sizes = [4, 32], strides = [1, 1]} : vector<20x32xf32> to vector<4x32xf32>
    %72 = vector.extract_strided_slice %61 {offsets = [64, 0], sizes = [32, 32], strides = [1, 1]} : vector<160x32xf32> to vector<32x32xf32>
    %cst_47 = arith.constant dense<0.000000e+00> : vector<4x32xf32>
    %73 = tpu.matmul %71, %72, %cst_47 {dimension_numbers = #tpu.dot_dimension_numbers<[1], [0], [0], [1], [0, 0, 1, 1], [], []>} : vector<4x32xf32>, vector<32x32xf32>, vector<4x32xf32> -> vector<4x32xf32>
    %74 = arith.addf %70, %73 : vector<4x32xf32>
    %75 = vector.extract_strided_slice %60 {offsets = [12, 0], sizes = [4, 32], strides = [1, 1]} : vector<20x32xf32> to vector<4x32xf32>
    %76 = vector.extract_strided_slice %61 {offsets = [96, 0], sizes = [32, 32], strides = [1, 1]} : vector<160x32xf32> to vector<32x32xf32>
    %cst_48 = arith.constant dense<0.000000e+00> : vector<4x32xf32>
    %77 = tpu.matmul %75, %76, %cst_48 {dimension_numbers = #tpu.dot_dimension_numbers<[1], [0], [0], [1], [0, 0, 1, 1], [], []>} : vector<4x32xf32>, vector<32x32xf32>, vector<4x32xf32> -> vector<4x32xf32>
    %78 = arith.addf %74, %77 : vector<4x32xf32>
    %79 = vector.extract_strided_slice %60 {offsets = [16, 0], sizes = [4, 32], strides = [1, 1]} : vector<20x32xf32> to vector<4x32xf32>
    %80 = vector.extract_strided_slice %61 {offsets = [128, 0], sizes = [32, 32], strides = [1, 1]} : vector<160x32xf32> to vector<32x32xf32>
    %cst_49 = arith.constant dense<0.000000e+00> : vector<4x32xf32>
    %81 = tpu.matmul %79, %80, %cst_49 {dimension_numbers = #tpu.dot_dimension_numbers<[1], [0], [0], [1], [0, 0, 1, 1], [], []>} : vector<4x32xf32>, vector<32x32xf32>, vector<4x32xf32> -> vector<4x32xf32>
    %82 = arith.addf %78, %81 : vector<4x32xf32>
    %c0_50 = arith.constant 0 : index
    %c0_51 = arith.constant 0 : index
    %83 = vector.load %arg16[%c0_50, %c0_51] : memref<1x32xf32, #tpu.memory_space<vmem>>, vector<1x32xf32>
    %84 = vector.broadcast %83 : vector<1x32xf32> to vector<4x32xf32>
    %85 = arith.addf %82, %84 : vector<4x32xf32>
    %cst_52 = arith.constant 5.000000e-01 : f32
    %86 = vector.broadcast %cst_52 : f32 to vector<4x32xf32>
    %87 = arith.mulf %86, %85 : vector<4x32xf32>
    %cst_53 = arith.constant 0.707106769 : f32
    %88 = vector.broadcast %cst_53 : f32 to vector<4x32xf32>
    %89 = arith.mulf %85, %88 : vector<4x32xf32>
    %90 = math.erf %89 : vector<4x32xf32>
    %cst_54 = arith.constant 1.000000e+00 : f32
    %91 = vector.broadcast %cst_54 : f32 to vector<4x32xf32>
    %92 = arith.addf %91, %90 : vector<4x32xf32>
    %93 = arith.mulf %87, %92 : vector<4x32xf32>
    %c0_55 = arith.constant 0 : index
    %c0_56 = arith.constant 0 : index
    %94 = vector.load %arg13[%c0_55, %c0_56] : memref<2x4xf32, #tpu.memory_space<vmem>>, vector<2x4xf32>
    %cst_57 = arith.constant dense<0.000000e+00> : vector<2x32xf32>
    %95 = tpu.matmul %94, %93, %cst_57 {dimension_numbers = #tpu.dot_dimension_numbers<[1], [0], [0], [1], [0, 0, 1, 1], [], []>} : vector<2x4xf32>, vector<4x32xf32>, vector<2x32xf32> -> vector<2x32xf32>
    %c0_58 = arith.constant 0 : index
    %c0_59 = arith.constant 0 : index
    %96 = vector.load %arg14[%c0_58, %c0_59] : memref<2x4xf32, #tpu.memory_space<vmem>>, vector<2x4xf32>
    %cst_60 = arith.constant dense<0.000000e+00> : vector<2x32xf32>
    %97 = tpu.matmul %96, %93, %cst_60 {dimension_numbers = #tpu.dot_dimension_numbers<[1], [0], [0], [1], [0, 0, 1, 1], [], []>} : vector<2x4xf32>, vector<4x32xf32>, vector<2x32xf32> -> vector<2x32xf32>
    %98 = arith.maximumf %95, %97 : vector<2x32xf32>
    %c0_61 = arith.constant 0 : index
    %c0_62 = arith.constant 0 : index
    %99 = vector.load %arg17[%c0_61, %c0_62] : memref<2x32xf32, #tpu.memory_space<vmem>>, vector<2x32xf32>
    %100 = arith.addf %98, %99 : vector<2x32xf32>
    %c0_63 = arith.constant 0 : index
    %c0_64 = arith.constant 0 : index
    %101 = vector.load %arg18[%c0_63, %c0_64] : memref<32x32xf32, #tpu.memory_space<vmem>>, vector<32x32xf32>
    %cst_65 = arith.constant dense<0.000000e+00> : vector<2x32xf32>
    %102 = tpu.matmul %100, %101, %cst_65 {dimension_numbers = #tpu.dot_dimension_numbers<[1], [0], [0], [1], [0, 0, 1, 1], [], []>} : vector<2x32xf32>, vector<32x32xf32>, vector<2x32xf32> -> vector<2x32xf32>
    %c0_66 = arith.constant 0 : index
    %c0_67 = arith.constant 0 : index
    %103 = vector.load %arg19[%c0_66, %c0_67] : memref<1x32xf32, #tpu.memory_space<vmem>>, vector<1x32xf32>
    %104 = vector.broadcast %103 : vector<1x32xf32> to vector<2x32xf32>
    %105 = arith.addf %102, %104 : vector<2x32xf32>
    %cst_68 = arith.constant 5.000000e-01 : f32
    %106 = vector.broadcast %cst_68 : f32 to vector<2x32xf32>
    %107 = arith.mulf %106, %105 : vector<2x32xf32>
    %cst_69 = arith.constant 0.707106769 : f32
    %108 = vector.broadcast %cst_69 : f32 to vector<2x32xf32>
    %109 = arith.mulf %105, %108 : vector<2x32xf32>
    %110 = math.erf %109 : vector<2x32xf32>
    %cst_70 = arith.constant 1.000000e+00 : f32
    %111 = vector.broadcast %cst_70 : f32 to vector<2x32xf32>
    %112 = arith.addf %111, %110 : vector<2x32xf32>
    %113 = arith.mulf %107, %112 : vector<2x32xf32>
    %c0_71 = arith.constant 0 : index
    %c0_72 = arith.constant 0 : index
    %114 = vector.load %arg20[%c0_71, %c0_72] : memref<4x32xf32, #tpu.memory_space<vmem>>, vector<2x32xf32>
    tpu.vector_store %arg20[%c0_71, %c0_72], %113 {strides = array<i32>} : memref<4x32xf32, #tpu.memory_space<vmem>>, vector<2x32xf32>,
    %c1 = arith.constant 1 : index
    %c0_73 = arith.constant 0 : index
    %c0_74 = arith.constant 0 : index
    %115 = vector.load %arg0[%c1, %c0_73, %c0_74] : memref<2x32x8xf32, #tpu.memory_space<vmem>>, vector<1x32x8xf32>
    %116 = vector.shape_cast %115 : vector<1x32x8xf32> to vector<32x8xf32>
    %c0_75 = arith.constant 0 : index
    %c0_76 = arith.constant 0 : index
    %117 = vector.load %arg1[%c0_75, %c0_76] : memref<8x16xf32, #tpu.memory_space<vmem>>, vector<8x16xf32>
    %cst_77 = arith.constant dense<0.000000e+00> : vector<32x16xf32>
    %118 = tpu.matmul %116, %117, %cst_77 {dimension_numbers = #tpu.dot_dimension_numbers<[1], [0], [0], [1], [0, 0, 1, 1], [], []>} : vector<32x8xf32>, vector<8x16xf32>, vector<32x16xf32> -> vector<32x16xf32>
    %c0_78 = arith.constant 0 : index
    %c0_79 = arith.constant 0 : index
    %119 = vector.load %arg2[%c0_78, %c0_79] : memref<1x16xf32, #tpu.memory_space<vmem>>, vector<1x16xf32>
    %120 = vector.broadcast %119 : vector<1x16xf32> to vector<32x16xf32>
    %121 = arith.addf %118, %120 : vector<32x16xf32>
    %cst_80 = arith.constant 0.000000e+00 : f32
    %122 = vector.broadcast %cst_80 : f32 to vector<32x16xf32>
    %123 = arith.maximumf %121, %122 : vector<32x16xf32>
    %c0_81 = arith.constant 0 : index
    %c0_82 = arith.constant 0 : index
    %124 = vector.load %arg3[%c0_81, %c0_82] : memref<16x8xf32, #tpu.memory_space<vmem>>, vector<16x8xf32>
    %cst_83 = arith.constant dense<0.000000e+00> : vector<32x8xf32>
    %125 = tpu.matmul %123, %124, %cst_83 {dimension_numbers = #tpu.dot_dimension_numbers<[1], [0], [0], [1], [0, 0, 1, 1], [], []>} : vector<32x16xf32>, vector<16x8xf32>, vector<32x8xf32> -> vector<32x8xf32>
    %c0_84 = arith.constant 0 : index
    %c0_85 = arith.constant 0 : index
    %126 = vector.load %arg4[%c0_84, %c0_85] : memref<1x8xf32, #tpu.memory_space<vmem>>, vector<1x8xf32>
    %127 = vector.broadcast %126 : vector<1x8xf32> to vector<32x8xf32>
    %128 = arith.addf %125, %127 : vector<32x8xf32>
    %c0_86 = arith.constant 0 : index
    %c0_87 = arith.constant 0 : index
    %129 = vector.load %arg5[%c0_86, %c0_87] : memref<8x32xf32, #tpu.memory_space<vmem>>, vector<8x32xf32>
    %cst_88 = arith.constant dense<0.000000e+00> : vector<32x32xf32>
    %130 = tpu.matmul %128, %129, %cst_88 {dimension_numbers = #tpu.dot_dimension_numbers<[1], [0], [0], [1], [0, 0, 1, 1], [], []>} : vector<32x8xf32>, vector<8x32xf32>, vector<32x32xf32> -> vector<32x32xf32>
    %c0_89 = arith.constant 0 : index
    %c0_90 = arith.constant 0 : index
    %131 = vector.load %arg6[%c0_89, %c0_90] : memref<1x32xf32, #tpu.memory_space<vmem>>, vector<1x32xf32>
    %132 = vector.broadcast %131 : vector<1x32xf32> to vector<32x32xf32>
    %133 = arith.addf %130, %132 : vector<32x32xf32>
    %c0_91 = arith.constant 0 : index
    %c0_92 = arith.constant 0 : index
    %134 = vector.load %arg7[%c0_91, %c0_92] : memref<80x32xf32, #tpu.memory_space<vmem>>, vector<80x32xf32>
    %cst_93 = arith.constant dense<0.000000e+00> : vector<80x32xf32>
    %135 = tpu.matmul %134, %133, %cst_93 {dimension_numbers = #tpu.dot_dimension_numbers<[1], [0], [0], [1], [0, 0, 1, 1], [], []>} : vector<80x32xf32>, vector<32x32xf32>, vector<80x32xf32> -> vector<80x32xf32>
    %c0_94 = arith.constant 0 : index
    %c0_95 = arith.constant 0 : index
    %136 = vector.load %arg10[%c0_94, %c0_95] : memref<160x32xf32, #tpu.memory_space<vmem>>, vector<160x32xf32>
    %cst_96 = arith.constant 0.000000e+00 : f32
    %137 = vector.broadcast %cst_96 : f32 to vector<16x32xf32>
    %138 = vector.extract_strided_slice %135 {offsets = [0, 0], sizes = [16, 32], strides = [1, 1]} : vector<80x32xf32> to vector<16x32xf32>
    %139 = vector.extract_strided_slice %136 {offsets = [0, 0], sizes = [32, 32], strides = [1, 1]} : vector<160x32xf32> to vector<32x32xf32>
    %cst_97 = arith.constant dense<0.000000e+00> : vector<16x32xf32>
    %140 = tpu.matmul %138, %139, %cst_97 {dimension_numbers = #tpu.dot_dimension_numbers<[1], [0], [0], [1], [0, 0, 1, 1], [], []>} : vector<16x32xf32>, vector<32x32xf32>, vector<16x32xf32> -> vector<16x32xf32>
    %141 = arith.addf %137, %140 : vector<16x32xf32>
    %142 = vector.extract_strided_slice %135 {offsets = [16, 0], sizes = [16, 32], strides = [1, 1]} : vector<80x32xf32> to vector<16x32xf32>
    %143 = vector.extract_strided_slice %136 {offsets = [32, 0], sizes = [32, 32], strides = [1, 1]} : vector<160x32xf32> to vector<32x32xf32>
    %cst_98 = arith.constant dense<0.000000e+00> : vector<16x32xf32>
    %144 = tpu.matmul %142, %143, %cst_98 {dimension_numbers = #tpu.dot_dimension_numbers<[1], [0], [0], [1], [0, 0, 1, 1], [], []>} : vector<16x32xf32>, vector<32x32xf32>, vector<16x32xf32> -> vector<16x32xf32>
    %145 = arith.addf %141, %144 : vector<16x32xf32>
    %146 = vector.extract_strided_slice %135 {offsets = [32, 0], sizes = [16, 32], strides = [1, 1]} : vector<80x32xf32> to vector<16x32xf32>
    %147 = vector.extract_strided_slice %136 {offsets = [64, 0], sizes = [32, 32], strides = [1, 1]} : vector<160x32xf32> to vector<32x32xf32>
    %cst_99 = arith.constant dense<0.000000e+00> : vector<16x32xf32>
    %148 = tpu.matmul %146, %147, %cst_99 {dimension_numbers = #tpu.dot_dimension_numbers<[1], [0], [0], [1], [0, 0, 1, 1], [], []>} : vector<16x32xf32>, vector<32x32xf32>, vector<16x32xf32> -> vector<16x32xf32>
    %149 = arith.addf %145, %148 : vector<16x32xf32>
    %150 = vector.extract_strided_slice %135 {offsets = [48, 0], sizes = [16, 32], strides = [1, 1]} : vector<80x32xf32> to vector<16x32xf32>
    %151 = vector.extract_strided_slice %136 {offsets = [96, 0], sizes = [32, 32], strides = [1, 1]} : vector<160x32xf32> to vector<32x32xf32>
    %cst_100 = arith.constant dense<0.000000e+00> : vector<16x32xf32>
    %152 = tpu.matmul %150, %151, %cst_100 {dimension_numbers = #tpu.dot_dimension_numbers<[1], [0], [0], [1], [0, 0, 1, 1], [], []>} : vector<16x32xf32>, vector<32x32xf32>, vector<16x32xf32> -> vector<16x32xf32>
    %153 = arith.addf %149, %152 : vector<16x32xf32>
    %154 = vector.extract_strided_slice %135 {offsets = [64, 0], sizes = [16, 32], strides = [1, 1]} : vector<80x32xf32> to vector<16x32xf32>
    %155 = vector.extract_strided_slice %136 {offsets = [128, 0], sizes = [32, 32], strides = [1, 1]} : vector<160x32xf32> to vector<32x32xf32>
    %cst_101 = arith.constant dense<0.000000e+00> : vector<16x32xf32>
    %156 = tpu.matmul %154, %155, %cst_101 {dimension_numbers = #tpu.dot_dimension_numbers<[1], [0], [0], [1], [0, 0, 1, 1], [], []>} : vector<16x32xf32>, vector<32x32xf32>, vector<16x32xf32> -> vector<16x32xf32>
    %157 = arith.addf %153, %156 : vector<16x32xf32>
    %c0_102 = arith.constant 0 : index
    %c0_103 = arith.constant 0 : index
    %158 = vector.load %arg11[%c0_102, %c0_103] : memref<1x32xf32, #tpu.memory_space<vmem>>, vector<1x32xf32>
    %159 = vector.broadcast %158 : vector<1x32xf32> to vector<16x32xf32>
    %160 = arith.addf %157, %159 : vector<16x32xf32>
    %cst_104 = arith.constant 5.000000e-01 : f32
    %161 = vector.broadcast %cst_104 : f32 to vector<16x32xf32>
    %162 = arith.mulf %161, %160 : vector<16x32xf32>
    %cst_105 = arith.constant 0.707106769 : f32
    %163 = vector.broadcast %cst_105 : f32 to vector<16x32xf32>
    %164 = arith.mulf %160, %163 : vector<16x32xf32>
    %165 = math.erf %164 : vector<16x32xf32>
    %cst_106 = arith.constant 1.000000e+00 : f32
    %166 = vector.broadcast %cst_106 : f32 to vector<16x32xf32>
    %167 = arith.addf %166, %165 : vector<16x32xf32>
    %168 = arith.mulf %162, %167 : vector<16x32xf32>
    %c0_107 = arith.constant 0 : index
    %c0_108 = arith.constant 0 : index
    %169 = vector.load %arg8[%c0_107, %c0_108] : memref<8x16xf32, #tpu.memory_space<vmem>>, vector<8x16xf32>
    %cst_109 = arith.constant dense<0.000000e+00> : vector<8x32xf32>
    %170 = tpu.matmul %169, %168, %cst_109 {dimension_numbers = #tpu.dot_dimension_numbers<[1], [0], [0], [1], [0, 0, 1, 1], [], []>} : vector<8x16xf32>, vector<16x32xf32>, vector<8x32xf32> -> vector<8x32xf32>
    %c0_110 = arith.constant 0 : index
    %c0_111 = arith.constant 0 : index
    %171 = vector.load %arg9[%c0_110, %c0_111] : memref<8x16xf32, #tpu.memory_space<vmem>>, vector<8x16xf32>
    %cst_112 = arith.constant dense<0.000000e+00> : vector<8x32xf32>
    %172 = tpu.matmul %171, %168, %cst_112 {dimension_numbers = #tpu.dot_dimension_numbers<[1], [0], [0], [1], [0, 0, 1, 1], [], []>} : vector<8x16xf32>, vector<16x32xf32>, vector<8x32xf32> -> vector<8x32xf32>
    %173 = arith.maximumf %170, %172 : vector<8x32xf32>
    %c0_113 = arith.constant 0 : index
    %c0_114 = arith.constant 0 : index
    %174 = vector.load %arg12[%c0_113, %c0_114] : memref<20x8xf32, #tpu.memory_space<vmem>>, vector<20x8xf32>
    %cst_115 = arith.constant dense<0.000000e+00> : vector<20x32xf32>
    %175 = tpu.matmul %174, %173, %cst_115 {dimension_numbers = #tpu.dot_dimension_numbers<[1], [0], [0], [1], [0, 0, 1, 1], [], []>} : vector<20x8xf32>, vector<8x32xf32>, vector<20x32xf32> -> vector<20x32xf32>
    %c0_116 = arith.constant 0 : index
    %c0_117 = arith.constant 0 : index
    %176 = vector.load %arg15[%c0_116, %c0_117] : memref<160x32xf32, #tpu.memory_space<vmem>>, vector<160x32xf32>
    %cst_118 = arith.constant 0.000000e+00 : f32
    %177 = vector.broadcast %cst_118 : f32 to vector<4x32xf32>
    %178 = vector.extract_strided_slice %175 {offsets = [0, 0], sizes = [4, 32], strides = [1, 1]} : vector<20x32xf32> to vector<4x32xf32>
    %179 = vector.extract_strided_slice %176 {offsets = [0, 0], sizes = [32, 32], strides = [1, 1]} : vector<160x32xf32> to vector<32x32xf32>
    %cst_119 = arith.constant dense<0.000000e+00> : vector<4x32xf32>
    %180 = tpu.matmul %178, %179, %cst_119 {dimension_numbers = #tpu.dot_dimension_numbers<[1], [0], [0], [1], [0, 0, 1, 1], [], []>} : vector<4x32xf32>, vector<32x32xf32>, vector<4x32xf32> -> vector<4x32xf32>
    %181 = arith.addf %177, %180 : vector<4x32xf32>
    %182 = vector.extract_strided_slice %175 {offsets = [4, 0], sizes = [4, 32], strides = [1, 1]} : vector<20x32xf32> to vector<4x32xf32>
    %183 = vector.extract_strided_slice %176 {offsets = [32, 0], sizes = [32, 32], strides = [1, 1]} : vector<160x32xf32> to vector<32x32xf32>
    %cst_120 = arith.constant dense<0.000000e+00> : vector<4x32xf32>
    %184 = tpu.matmul %182, %183, %cst_120 {dimension_numbers = #tpu.dot_dimension_numbers<[1], [0], [0], [1], [0, 0, 1, 1], [], []>} : vector<4x32xf32>, vector<32x32xf32>, vector<4x32xf32> -> vector<4x32xf32>
    %185 = arith.addf %181, %184 : vector<4x32xf32>
    %186 = vector.extract_strided_slice %175 {offsets = [8, 0], sizes = [4, 32], strides = [1, 1]} : vector<20x32xf32> to vector<4x32xf32>
    %187 = vector.extract_strided_slice %176 {offsets = [64, 0], sizes = [32, 32], strides = [1, 1]} : vector<160x32xf32> to vector<32x32xf32>
    %cst_121 = arith.constant dense<0.000000e+00> : vector<4x32xf32>
    %188 = tpu.matmul %186, %187, %cst_121 {dimension_numbers = #tpu.dot_dimension_numbers<[1], [0], [0], [1], [0, 0, 1, 1], [], []>} : vector<4x32xf32>, vector<32x32xf32>, vector<4x32xf32> -> vector<4x32xf32>
    %189 = arith.addf %185, %188 : vector<4x32xf32>
    %190 = vector.extract_strided_slice %175 {offsets = [12, 0], sizes = [4, 32], strides = [1, 1]} : vector<20x32xf32> to vector<4x32xf32>
    %191 = vector.extract_strided_slice %176 {offsets = [96, 0], sizes = [32, 32], strides = [1, 1]} : vector<160x32xf32> to vector<32x32xf32>
    %cst_122 = arith.constant dense<0.000000e+00> : vector<4x32xf32>
    %192 = tpu.matmul %190, %191, %cst_122 {dimension_numbers = #tpu.dot_dimension_numbers<[1], [0], [0], [1], [0, 0, 1, 1], [], []>} : vector<4x32xf32>, vector<32x32xf32>, vector<4x32xf32> -> vector<4x32xf32>
    %193 = arith.addf %189, %192 : vector<4x32xf32>
    %194 = vector.extract_strided_slice %175 {offsets = [16, 0], sizes = [4, 32], strides = [1, 1]} : vector<20x32xf32> to vector<4x32xf32>
    %195 = vector.extract_strided_slice %176 {offsets = [128, 0], sizes = [32, 32], strides = [1, 1]} : vector<160x32xf32> to vector<32x32xf32>
    %cst_123 = arith.constant dense<0.000000e+00> : vector<4x32xf32>
    %196 = tpu.matmul %194, %195, %cst_123 {dimension_numbers = #tpu.dot_dimension_numbers<[1], [0], [0], [1], [0, 0, 1, 1], [], []>} : vector<4x32xf32>, vector<32x32xf32>, vector<4x32xf32> -> vector<4x32xf32>
    %197 = arith.addf %193, %196 : vector<4x32xf32>
    %c0_124 = arith.constant 0 : index
    %c0_125 = arith.constant 0 : index
    %198 = vector.load %arg16[%c0_124, %c0_125] : memref<1x32xf32, #tpu.memory_space<vmem>>, vector<1x32xf32>
    %199 = vector.broadcast %198 : vector<1x32xf32> to vector<4x32xf32>
    %200 = arith.addf %197, %199 : vector<4x32xf32>
    %cst_126 = arith.constant 5.000000e-01 : f32
    %201 = vector.broadcast %cst_126 : f32 to vector<4x32xf32>
    %202 = arith.mulf %201, %200 : vector<4x32xf32>
    %cst_127 = arith.constant 0.707106769 : f32
    %203 = vector.broadcast %cst_127 : f32 to vector<4x32xf32>
    %204 = arith.mulf %200, %203 : vector<4x32xf32>
    %205 = math.erf %204 : vector<4x32xf32>
    %cst_128 = arith.constant 1.000000e+00 : f32
    %206 = vector.broadcast %cst_128 : f32 to vector<4x32xf32>
    %207 = arith.addf %206, %205 : vector<4x32xf32>
    %208 = arith.mulf %202, %207 : vector<4x32xf32>
    %c0_129 = arith.constant 0 : index
    %c0_130 = arith.constant 0 : index
    %209 = vector.load %arg13[%c0_129, %c0_130] : memref<2x4xf32, #tpu.memory_space<vmem>>, vector<2x4xf32>
    %cst_131 = arith.constant dense<0.000000e+00> : vector<2x32xf32>
    %210 = tpu.matmul %209, %208, %cst_131 {dimension_numbers = #tpu.dot_dimension_numbers<[1], [0], [0], [1], [0, 0, 1, 1], [], []>} : vector<2x4xf32>, vector<4x32xf32>, vector<2x32xf32> -> vector<2x32xf32>
    %c0_132 = arith.constant 0 : index
    %c0_133 = arith.constant 0 : index
    %211 = vector.load %arg14[%c0_132, %c0_133] : memref<2x4xf32, #tpu.memory_space<vmem>>, vector<2x4xf32>
    %cst_134 = arith.constant dense<0.000000e+00> : vector<2x32xf32>
    %212 = tpu.matmul %211, %208, %cst_134 {dimension_numbers = #tpu.dot_dimension_numbers<[1], [0], [0], [1], [0, 0, 1, 1], [], []>} : vector<2x4xf32>, vector<4x32xf32>, vector<2x32xf32> -> vector<2x32xf32>
    %213 = arith.maximumf %210, %212 : vector<2x32xf32>
    %c0_135 = arith.constant 0 : index
    %c0_136 = arith.constant 0 : index
    %214 = vector.load %arg17[%c0_135, %c0_136] : memref<2x32xf32, #tpu.memory_space<vmem>>, vector<2x32xf32>
    %215 = arith.addf %213, %214 : vector<2x32xf32>
    %c0_137 = arith.constant 0 : index
    %c0_138 = arith.constant 0 : index
    %216 = vector.load %arg18[%c0_137, %c0_138] : memref<32x32xf32, #tpu.memory_space<vmem>>, vector<32x32xf32>
    %cst_139 = arith.constant dense<0.000000e+00> : vector<2x32xf32>
    %217 = tpu.matmul %215, %216, %cst_139 {dimension_numbers = #tpu.dot_dimension_numbers<[1], [0], [0], [1], [0, 0, 1, 1], [], []>} : vector<2x32xf32>, vector<32x32xf32>, vector<2x32xf32> -> vector<2x32xf32>
    %c0_140 = arith.constant 0 : index
    %c0_141 = arith.constant 0 : index
    %218 = vector.load %arg19[%c0_140, %c0_141] : memref<1x32xf32, #tpu.memory_space<vmem>>, vector<1x32xf32>
    %219 = vector.broadcast %218 : vector<1x32xf32> to vector<2x32xf32>
    %220 = arith.addf %217, %219 : vector<2x32xf32>
    %cst_142 = arith.constant 5.000000e-01 : f32
    %221 = vector.broadcast %cst_142 : f32 to vector<2x32xf32>
    %222 = arith.mulf %221, %220 : vector<2x32xf32>
    %cst_143 = arith.constant 0.707106769 : f32
    %223 = vector.broadcast %cst_143 : f32 to vector<2x32xf32>
    %224 = arith.mulf %220, %223 : vector<2x32xf32>
    %225 = math.erf %224 : vector<2x32xf32>
    %cst_144 = arith.constant 1.000000e+00 : f32
    %226 = vector.broadcast %cst_144 : f32 to vector<2x32xf32>
    %227 = arith.addf %226, %225 : vector<2x32xf32>
    %228 = arith.mulf %222, %227 : vector<2x32xf32>
    %c2 = arith.constant 2 : index
    %c0_145 = arith.constant 0 : index
    %229 = vector.load %arg20[%c2, %c0_145] : memref<4x32xf32, #tpu.memory_space<vmem>>, vector<2x32xf32>
    tpu.vector_store %arg20[%c2, %c0_145], %228 {strides = array<i32>} : memref<4x32xf32, #tpu.memory_space<vmem>>, vector<2x32xf32>,
    return
  }
}

module attributes {stable_mosaic.version = 11 : i64} {
  func.func @_decode_kernel(%arg0: i32, %arg1: memref<4x32xf32, #tpu.memory_space<vmem>>, %arg2: memref<5x32xf32, #tpu.memory_space<vmem>>, %arg3: memref<128x32xf32, #tpu.memory_space<vmem>>, %arg4: memref<32x128xf32, #tpu.memory_space<vmem>>, %arg5: memref<32x128xf32, #tpu.memory_space<vmem>>, %arg6: memref<32x256xf32, #tpu.memory_space<vmem>>, %arg7: memref<64x32xf32, #tpu.memory_space<vmem>>, %arg8: memref<21x128xf32, #tpu.memory_space<vmem>>, %arg9: memref<10x128xf32, #tpu.memory_space<vmem>>, %arg10: memref<10x32xf32, #tpu.memory_space<vmem>>) attributes {dimension_semantics = [#tpu.dimension_semantics<arbitrary>], iteration_bounds = array<i64: 7>, scalar_prefetch = 0 : i64, scratch_operands = 1 : i64, tpu.core_type = #tpu.core_type<tc>, window_params = [{pipeline_mode = #tpu.pipeline_mode<synchronous>, transform_indices = @transform_0, window_bounds = array<i64: 4, 32>}, {pipeline_mode = #tpu.pipeline_mode<synchronous>, transform_indices = @transform_1, window_bounds = array<i64: 5, 32>}, {pipeline_mode = #tpu.pipeline_mode<synchronous>, transform_indices = @transform_2, window_bounds = array<i64: 128, 32>}, {pipeline_mode = #tpu.pipeline_mode<synchronous>, transform_indices = @transform_3, window_bounds = array<i64: 32, 128>}, {pipeline_mode = #tpu.pipeline_mode<synchronous>, transform_indices = @transform_4, window_bounds = array<i64: 32, 128>}, {pipeline_mode = #tpu.pipeline_mode<synchronous>, transform_indices = @transform_5, window_bounds = array<i64: 32, 256>}, {pipeline_mode = #tpu.pipeline_mode<synchronous>, transform_indices = @transform_6, window_bounds = array<i64: 64, 32>}, {pipeline_mode = #tpu.pipeline_mode<synchronous>, transform_indices = @transform_7, window_bounds = array<i64: 21, 128>}, {pipeline_mode = #tpu.pipeline_mode<synchronous>, transform_indices = @transform_8, window_bounds = array<i64: 10, 128>}]} {
    %c0 = arith.constant 0 : index
    %c0_0 = arith.constant 0 : index
    %0 = vector.load %arg1[%c0, %c0_0] : memref<4x32xf32, #tpu.memory_space<vmem>>, vector<4x32xf32>
    %c0_1 = arith.constant 0 : index
    %c0_2 = arith.constant 0 : index
    %1 = vector.load %arg2[%c0_1, %c0_2] : memref<5x32xf32, #tpu.memory_space<vmem>>, vector<5x32xf32>
    %c0_3 = arith.constant 0 : index
    %c0_4 = arith.constant 0 : index
    %2 = vector.load %arg3[%c0_3, %c0_4] : memref<128x32xf32, #tpu.memory_space<vmem>>, vector<128x32xf32>
    %c0_5 = arith.constant 0 : index
    %c0_6 = arith.constant 0 : index
    %3 = vector.load %arg4[%c0_5, %c0_6] : memref<32x128xf32, #tpu.memory_space<vmem>>, vector<32x128xf32>
    %c0_7 = arith.constant 0 : index
    %c0_8 = arith.constant 0 : index
    %4 = vector.load %arg5[%c0_7, %c0_8] : memref<32x128xf32, #tpu.memory_space<vmem>>, vector<32x128xf32>
    %c0_9 = arith.constant 0 : index
    %c0_10 = arith.constant 0 : index
    %5 = vector.load %arg6[%c0_9, %c0_10] : memref<32x256xf32, #tpu.memory_space<vmem>>, vector<32x256xf32>
    %c0_11 = arith.constant 0 : index
    %c0_12 = arith.constant 0 : index
    %6 = vector.load %arg7[%c0_11, %c0_12] : memref<64x32xf32, #tpu.memory_space<vmem>>, vector<64x32xf32>
    %c0_13 = arith.constant 0 : index
    %c0_14 = arith.constant 0 : index
    %7 = vector.load %arg8[%c0_13, %c0_14] : memref<21x128xf32, #tpu.memory_space<vmem>>, vector<21x128xf32>
    %8 = vector.extract_strided_slice %3 {offsets = [0, 0], sizes = [32, 32], strides = [1, 1]} : vector<32x128xf32> to vector<32x32xf32>
    %9 = vector.extract_strided_slice %3 {offsets = [0, 32], sizes = [32, 32], strides = [1, 1]} : vector<32x128xf32> to vector<32x32xf32>
    %10 = vector.extract_strided_slice %3 {offsets = [0, 64], sizes = [32, 32], strides = [1, 1]} : vector<32x128xf32> to vector<32x32xf32>
    %11 = vector.extract_strided_slice %3 {offsets = [0, 96], sizes = [32, 32], strides = [1, 1]} : vector<32x128xf32> to vector<32x32xf32>
    %12 = vector.extract_strided_slice %4 {offsets = [0, 0], sizes = [32, 32], strides = [1, 1]} : vector<32x128xf32> to vector<32x32xf32>
    %13 = vector.extract_strided_slice %4 {offsets = [0, 32], sizes = [32, 32], strides = [1, 1]} : vector<32x128xf32> to vector<32x32xf32>
    %14 = vector.extract_strided_slice %4 {offsets = [0, 64], sizes = [32, 32], strides = [1, 1]} : vector<32x128xf32> to vector<32x32xf32>
    %15 = vector.extract_strided_slice %4 {offsets = [0, 96], sizes = [32, 32], strides = [1, 1]} : vector<32x128xf32> to vector<32x32xf32>
    %16 = vector.extract_strided_slice %5 {offsets = [0, 0], sizes = [32, 64], strides = [1, 1]} : vector<32x256xf32> to vector<32x64xf32>
    %17 = vector.extract_strided_slice %5 {offsets = [0, 128], sizes = [32, 128], strides = [1, 1]} : vector<32x256xf32> to vector<32x128xf32>
    %18 = vector.extract_strided_slice %7 {offsets = [0, 0], sizes = [1, 32], strides = [1, 1]} : vector<21x128xf32> to vector<1x32xf32>
    %19 = vector.extract_strided_slice %7 {offsets = [1, 0], sizes = [1, 32], strides = [1, 1]} : vector<21x128xf32> to vector<1x32xf32>
    %20 = vector.extract_strided_slice %7 {offsets = [2, 0], sizes = [1, 32], strides = [1, 1]} : vector<21x128xf32> to vector<1x32xf32>
    %21 = vector.extract_strided_slice %7 {offsets = [3, 0], sizes = [1, 32], strides = [1, 1]} : vector<21x128xf32> to vector<1x32xf32>
    %22 = vector.extract_strided_slice %7 {offsets = [4, 0], sizes = [1, 32], strides = [1, 1]} : vector<21x128xf32> to vector<1x32xf32>
    %23 = vector.extract_strided_slice %7 {offsets = [5, 0], sizes = [1, 32], strides = [1, 1]} : vector<21x128xf32> to vector<1x32xf32>
    %24 = vector.extract_strided_slice %7 {offsets = [6, 0], sizes = [1, 32], strides = [1, 1]} : vector<21x128xf32> to vector<1x32xf32>
    %25 = vector.extract_strided_slice %7 {offsets = [7, 0], sizes = [1, 32], strides = [1, 1]} : vector<21x128xf32> to vector<1x32xf32>
    %26 = vector.extract_strided_slice %7 {offsets = [8, 0], sizes = [1, 32], strides = [1, 1]} : vector<21x128xf32> to vector<1x32xf32>
    %27 = vector.extract_strided_slice %7 {offsets = [9, 0], sizes = [1, 32], strides = [1, 1]} : vector<21x128xf32> to vector<1x32xf32>
    %28 = vector.extract_strided_slice %7 {offsets = [10, 0], sizes = [1, 32], strides = [1, 1]} : vector<21x128xf32> to vector<1x32xf32>
    %29 = vector.extract_strided_slice %7 {offsets = [11, 0], sizes = [1, 32], strides = [1, 1]} : vector<21x128xf32> to vector<1x32xf32>
    %30 = vector.extract_strided_slice %7 {offsets = [12, 0], sizes = [1, 32], strides = [1, 1]} : vector<21x128xf32> to vector<1x32xf32>
    %31 = vector.extract_strided_slice %7 {offsets = [13, 0], sizes = [1, 32], strides = [1, 1]} : vector<21x128xf32> to vector<1x32xf32>
    %32 = vector.extract_strided_slice %7 {offsets = [14, 0], sizes = [1, 32], strides = [1, 1]} : vector<21x128xf32> to vector<1x32xf32>
    %33 = vector.extract_strided_slice %7 {offsets = [15, 0], sizes = [1, 32], strides = [1, 1]} : vector<21x128xf32> to vector<1x32xf32>
    %34 = vector.extract_strided_slice %7 {offsets = [16, 0], sizes = [1, 32], strides = [1, 1]} : vector<21x128xf32> to vector<1x32xf32>
    %35 = vector.extract_strided_slice %7 {offsets = [17, 0], sizes = [1, 32], strides = [1, 1]} : vector<21x128xf32> to vector<1x32xf32>
    %36 = vector.extract_strided_slice %7 {offsets = [18, 0], sizes = [1, 64], strides = [1, 1]} : vector<21x128xf32> to vector<1x64xf32>
    %37 = vector.extract_strided_slice %7 {offsets = [19, 0], sizes = [1, 32], strides = [1, 1]} : vector<21x128xf32> to vector<1x32xf32>
    %38 = vector.extract_strided_slice %7 {offsets = [20, 0], sizes = [1, 128], strides = [1, 1]} : vector<21x128xf32> to vector<1x128xf32>
    %39 = tpu.iota {dimensions = array<i32: 0>} : vector<10x1xi32>
    %c0_i32 = arith.constant 0 : i32
    %40 = arith.cmpi eq, %arg0, %c0_i32 : i32
    %41 = arith.extui %40 : i1 to i32
    %c0_i32_15 = arith.constant 0 : i32
    %42 = arith.cmpi ne, %41, %c0_i32_15 : i32
    scf.if %42 {
      %cst = arith.constant 0.000000e+00 : f32
      %49 = vector.broadcast %cst : f32 to vector<10x32xf32>
      %c0_19 = arith.constant 0 : index
      %c0_20 = arith.constant 0 : index
      %50 = vector.load %arg10[%c0_19, %c0_20] : memref<10x32xf32, #tpu.memory_space<vmem>>, vector<10x32xf32>
      tpu.vector_store %arg10[%c0_19, %c0_20], %49 {strides = array<i32>} : memref<10x32xf32, #tpu.memory_space<vmem>>, vector<10x32xf32>,
      %51 = vector.extract_strided_slice %2 {offsets = [10, 0], sizes = [1, 32], strides = [1, 1]} : vector<128x32xf32> to vector<1x32xf32>
      %c0_21 = arith.constant 0 : index
      %c0_22 = arith.constant 0 : index
      %52 = vector.load %arg10[%c0_21, %c0_22] : memref<10x32xf32, #tpu.memory_space<vmem>>, vector<1x32xf32>
      tpu.vector_store %arg10[%c0_21, %c0_22], %51 {strides = array<i32>} : memref<10x32xf32, #tpu.memory_space<vmem>>, vector<1x32xf32>,
      %c5 = arith.constant 5 : index
      %c0_23 = arith.constant 0 : index
      %53 = vector.load %arg10[%c5, %c0_23] : memref<10x32xf32, #tpu.memory_space<vmem>>, vector<1x32xf32>
      tpu.vector_store %arg10[%c5, %c0_23], %51 {strides = array<i32>} : memref<10x32xf32, #tpu.memory_space<vmem>>, vector<1x32xf32>,
    } else {
    }
    %c5_i32 = arith.constant 5 : i32
    %43 = arith.cmpi slt, %arg0, %c5_i32 : i32
    %44 = arith.extui %43 : i1 to i32
    %c0_i32_16 = arith.constant 0 : i32
    %45 = arith.cmpi ne, %44, %c0_i32_16 : i32
    scf.if %45 {
      %49 = tpu.iota {dimensions = array<i32: 1>} : vector<1x5xi32>
      %50 = vector.broadcast %arg0 : i32 to vector<1x5xi32>
      %51 = arith.cmpi eq, %49, %50 : vector<1x5xi32>
      %52 = arith.extui %51 : vector<1x5xi1> to vector<1x5xi32>
      %53 = arith.sitofp %52 : vector<1x5xi32> to vector<1x5xf32>
      %cst = arith.constant dense<0.000000e+00> : vector<1x32xf32>
      %54 = tpu.matmul %53, %1, %cst {dimension_numbers = #tpu.dot_dimension_numbers<[1], [0], [0], [1], [0, 0, 1, 1], [], []>} : vector<1x5xf32>, vector<5x32xf32>, vector<1x32xf32> -> vector<1x32xf32>
      %55 = tpu.concatenate %54, %54 in 0 : vector<1x32xf32>, vector<1x32xf32> -> vector<2x32xf32>
      %56 = tpu.iota {dimensions = array<i32: 1>} : vector<1x5xi32>
      %57 = vector.broadcast %arg0 : i32 to vector<1x5xi32>
      %58 = arith.cmpi sgt, %56, %57 : vector<1x5xi32>
      %cst_19 = arith.constant -1.000000e+09 : f32
      %cst_20 = arith.constant 0.000000e+00 : f32
      %59 = vector.broadcast %cst_19 : f32 to vector<1x5xf32>
      %60 = vector.broadcast %cst_20 : f32 to vector<1x5xf32>
      %61 = arith.select %58, %59, %60 : vector<1x5xi1>, vector<1x5xf32>
      %c0_21 = arith.constant 0 : index
      %c0_22 = arith.constant 0 : index
      %62 = vector.load %arg10[%c0_21, %c0_22] : memref<10x32xf32, #tpu.memory_space<vmem>>, vector<10x32xf32>
      %cst_23 = arith.constant dense<0.000000e+00> : vector<2xf32>
      %63 = vector.multi_reduction <add>, %55, %cst_23 [1] : vector<2x32xf32> to vector<2xf32>
      %64 = vector.shape_cast %63 : vector<2xf32> to vector<2x1xf32>
      %cst_24 = arith.constant 3.200000e+01 : f32
      %65 = vector.broadcast %cst_24 : f32 to vector<2x1xf32>
      %66 = arith.divf %64, %65 : vector<2x1xf32>
      %67 = vector.broadcast %66 : vector<2x1xf32> to vector<2x32xf32>
      %68 = arith.subf %55, %67 : vector<2x32xf32>
      %69 = arith.mulf %68, %68 : vector<2x32xf32>
      %cst_25 = arith.constant dense<0.000000e+00> : vector<2xf32>
      %70 = vector.multi_reduction <add>, %69, %cst_25 [1] : vector<2x32xf32> to vector<2xf32>
      %71 = vector.shape_cast %70 : vector<2xf32> to vector<2x1xf32>
      %cst_26 = arith.constant 3.200000e+01 : f32
      %72 = vector.broadcast %cst_26 : f32 to vector<2x1xf32>
      %73 = arith.divf %71, %72 : vector<2x1xf32>
      %74 = vector.broadcast %66 : vector<2x1xf32> to vector<2x32xf32>
      %75 = arith.subf %55, %74 : vector<2x32xf32>
      %cst_27 = arith.constant 9.99999974E-6 : f32
      %76 = vector.broadcast %cst_27 : f32 to vector<2x1xf32>
      %77 = arith.addf %73, %76 : vector<2x1xf32>
      %78 = math.rsqrt %77 : vector<2x1xf32>
      %79 = vector.broadcast %78 : vector<2x1xf32> to vector<2x32xf32>
      %80 = arith.mulf %75, %79 : vector<2x32xf32>
      %81 = vector.broadcast %26 : vector<1x32xf32> to vector<2x32xf32>
      %82 = arith.mulf %80, %81 : vector<2x32xf32>
      %83 = vector.broadcast %27 : vector<1x32xf32> to vector<2x32xf32>
      %84 = arith.addf %82, %83 : vector<2x32xf32>
      %cst_28 = arith.constant dense<0.000000e+00> : vector<10xf32>
      %85 = vector.multi_reduction <add>, %62, %cst_28 [1] : vector<10x32xf32> to vector<10xf32>
      %86 = vector.shape_cast %85 : vector<10xf32> to vector<10x1xf32>
      %cst_29 = arith.constant 3.200000e+01 : f32
      %87 = vector.broadcast %cst_29 : f32 to vector<10x1xf32>
      %88 = arith.divf %86, %87 : vector<10x1xf32>
      %89 = vector.broadcast %88 : vector<10x1xf32> to vector<10x32xf32>
      %90 = arith.subf %62, %89 : vector<10x32xf32>
      %91 = arith.mulf %90, %90 : vector<10x32xf32>
      %cst_30 = arith.constant dense<0.000000e+00> : vector<10xf32>
      %92 = vector.multi_reduction <add>, %91, %cst_30 [1] : vector<10x32xf32> to vector<10xf32>
      %93 = vector.shape_cast %92 : vector<10xf32> to vector<10x1xf32>
      %cst_31 = arith.constant 3.200000e+01 : f32
      %94 = vector.broadcast %cst_31 : f32 to vector<10x1xf32>
      %95 = arith.divf %93, %94 : vector<10x1xf32>
      %96 = vector.broadcast %88 : vector<10x1xf32> to vector<10x32xf32>
      %97 = arith.subf %62, %96 : vector<10x32xf32>
      %cst_32 = arith.constant 9.99999974E-6 : f32
      %98 = vector.broadcast %cst_32 : f32 to vector<10x1xf32>
      %99 = arith.addf %95, %98 : vector<10x1xf32>
      %100 = math.rsqrt %99 : vector<10x1xf32>
      %101 = vector.broadcast %100 : vector<10x1xf32> to vector<10x32xf32>
      %102 = arith.mulf %97, %101 : vector<10x32xf32>
      %103 = vector.broadcast %28 : vector<1x32xf32> to vector<10x32xf32>
      %104 = arith.mulf %102, %103 : vector<10x32xf32>
      %105 = vector.broadcast %29 : vector<1x32xf32> to vector<10x32xf32>
      %106 = arith.addf %104, %105 : vector<10x32xf32>
      %cst_33 = arith.constant dense<0.000000e+00> : vector<2x32xf32>
      %107 = tpu.matmul %84, %8, %cst_33 {dimension_numbers = #tpu.dot_dimension_numbers<[1], [0], [0], [1], [0, 0, 1, 1], [], []>} : vector<2x32xf32>, vector<32x32xf32>, vector<2x32xf32> -> vector<2x32xf32>
      %108 = vector.broadcast %18 : vector<1x32xf32> to vector<2x32xf32>
      %109 = arith.addf %107, %108 : vector<2x32xf32>
      %cst_34 = arith.constant dense<0.000000e+00> : vector<10x32xf32>
      %110 = tpu.matmul %106, %9, %cst_34 {dimension_numbers = #tpu.dot_dimension_numbers<[1], [0], [0], [1], [0, 0, 1, 1], [], []>} : vector<10x32xf32>, vector<32x32xf32>, vector<10x32xf32> -> vector<10x32xf32>
      %111 = vector.broadcast %19 : vector<1x32xf32> to vector<10x32xf32>
      %112 = arith.addf %110, %111 : vector<10x32xf32>
      %cst_35 = arith.constant dense<0.000000e+00> : vector<10x32xf32>
      %113 = tpu.matmul %106, %10, %cst_35 {dimension_numbers = #tpu.dot_dimension_numbers<[1], [0], [0], [1], [0, 0, 1, 1], [], []>} : vector<10x32xf32>, vector<32x32xf32>, vector<10x32xf32> -> vector<10x32xf32>
      %114 = vector.broadcast %20 : vector<1x32xf32> to vector<10x32xf32>
      %115 = arith.addf %113, %114 : vector<10x32xf32>
      %116 = vector.extract_strided_slice %109 {offsets = [0, 0], sizes = [1, 32], strides = [1, 1]} : vector<2x32xf32> to vector<1x32xf32>
      %117 = vector.extract_strided_slice %112 {offsets = [0, 0], sizes = [5, 32], strides = [1, 1]} : vector<10x32xf32> to vector<5x32xf32>
      %118 = vector.extract_strided_slice %115 {offsets = [0, 0], sizes = [5, 32], strides = [1, 1]} : vector<10x32xf32> to vector<5x32xf32>
      %119 = vector.extract_strided_slice %116 {offsets = [0, 0], sizes = [1, 8], strides = [1, 1]} : vector<1x32xf32> to vector<1x8xf32>
      %120 = vector.extract_strided_slice %117 {offsets = [0, 0], sizes = [5, 8], strides = [1, 1]} : vector<5x32xf32> to vector<5x8xf32>
      %121 = tpu.transpose %120, [1, 0] : vector<5x8xf32> -> vector<8x5xf32>
      %cst_36 = arith.constant dense<0.000000e+00> : vector<1x5xf32>
      %122 = tpu.matmul %119, %121, %cst_36 {dimension_numbers = #tpu.dot_dimension_numbers<[1], [0], [0], [1], [0, 0, 1, 1], [], []>} : vector<1x8xf32>, vector<8x5xf32>, vector<1x5xf32> -> vector<1x5xf32>
      %cst_37 = arith.constant 0.353553385 : f32
      %123 = vector.broadcast %cst_37 : f32 to vector<1x5xf32>
      %124 = arith.mulf %122, %123 : vector<1x5xf32>
      %125 = arith.addf %124, %61 : vector<1x5xf32>
      %cst_38 = arith.constant dense<0xFF800000> : vector<1xf32>
      %126 = vector.multi_reduction <maximumf>, %125, %cst_38 [1] : vector<1x5xf32> to vector<1xf32>
      %127 = vector.shape_cast %126 : vector<1xf32> to vector<1x1xf32>
      %128 = vector.broadcast %127 : vector<1x1xf32> to vector<1x5xf32>
      %129 = arith.subf %125, %128 : vector<1x5xf32>
      %130 = math.exp %129 : vector<1x5xf32>
      %cst_39 = arith.constant dense<0.000000e+00> : vector<1xf32>
      %131 = vector.multi_reduction <add>, %130, %cst_39 [1] : vector<1x5xf32> to vector<1xf32>
      %132 = vector.shape_cast %131 : vector<1xf32> to vector<1x1xf32>
      %133 = vector.broadcast %132 : vector<1x1xf32> to vector<1x5xf32>
      %134 = arith.divf %130, %133 : vector<1x5xf32>
      %135 = vector.extract_strided_slice %118 {offsets = [0, 0], sizes = [5, 8], strides = [1, 1]} : vector<5x32xf32> to vector<5x8xf32>
      %cst_40 = arith.constant dense<0.000000e+00> : vector<1x8xf32>
      %136 = tpu.matmul %134, %135, %cst_40 {dimension_numbers = #tpu.dot_dimension_numbers<[1], [0], [0], [1], [0, 0, 1, 1], [], []>} : vector<1x5xf32>, vector<5x8xf32>, vector<1x8xf32> -> vector<1x8xf32>
      %137 = vector.extract_strided_slice %116 {offsets = [0, 8], sizes = [1, 8], strides = [1, 1]} : vector<1x32xf32> to vector<1x8xf32>
      %138 = vector.extract_strided_slice %117 {offsets = [0, 8], sizes = [5, 8], strides = [1, 1]} : vector<5x32xf32> to vector<5x8xf32>
      %139 = tpu.transpose %138, [1, 0] : vector<5x8xf32> -> vector<8x5xf32>
      %cst_41 = arith.constant dense<0.000000e+00> : vector<1x5xf32>
      %140 = tpu.matmul %137, %139, %cst_41 {dimension_numbers = #tpu.dot_dimension_numbers<[1], [0], [0], [1], [0, 0, 1, 1], [], []>} : vector<1x8xf32>, vector<8x5xf32>, vector<1x5xf32> -> vector<1x5xf32>
      %cst_42 = arith.constant 0.353553385 : f32
      %141 = vector.broadcast %cst_42 : f32 to vector<1x5xf32>
      %142 = arith.mulf %140, %141 : vector<1x5xf32>
      %143 = arith.addf %142, %61 : vector<1x5xf32>
      %cst_43 = arith.constant dense<0xFF800000> : vector<1xf32>
      %144 = vector.multi_reduction <maximumf>, %143, %cst_43 [1] : vector<1x5xf32> to vector<1xf32>
      %145 = vector.shape_cast %144 : vector<1xf32> to vector<1x1xf32>
      %146 = vector.broadcast %145 : vector<1x1xf32> to vector<1x5xf32>
      %147 = arith.subf %143, %146 : vector<1x5xf32>
      %148 = math.exp %147 : vector<1x5xf32>
      %cst_44 = arith.constant dense<0.000000e+00> : vector<1xf32>
      %149 = vector.multi_reduction <add>, %148, %cst_44 [1] : vector<1x5xf32> to vector<1xf32>
      %150 = vector.shape_cast %149 : vector<1xf32> to vector<1x1xf32>
      %151 = vector.broadcast %150 : vector<1x1xf32> to vector<1x5xf32>
      %152 = arith.divf %148, %151 : vector<1x5xf32>
      %153 = vector.extract_strided_slice %118 {offsets = [0, 8], sizes = [5, 8], strides = [1, 1]} : vector<5x32xf32> to vector<5x8xf32>
      %cst_45 = arith.constant dense<0.000000e+00> : vector<1x8xf32>
      %154 = tpu.matmul %152, %153, %cst_45 {dimension_numbers = #tpu.dot_dimension_numbers<[1], [0], [0], [1], [0, 0, 1, 1], [], []>} : vector<1x5xf32>, vector<5x8xf32>, vector<1x8xf32> -> vector<1x8xf32>
      %155 = vector.extract_strided_slice %116 {offsets = [0, 16], sizes = [1, 8], strides = [1, 1]} : vector<1x32xf32> to vector<1x8xf32>
      %156 = vector.extract_strided_slice %117 {offsets = [0, 16], sizes = [5, 8], strides = [1, 1]} : vector<5x32xf32> to vector<5x8xf32>
      %157 = tpu.transpose %156, [1, 0] : vector<5x8xf32> -> vector<8x5xf32>
      %cst_46 = arith.constant dense<0.000000e+00> : vector<1x5xf32>
      %158 = tpu.matmul %155, %157, %cst_46 {dimension_numbers = #tpu.dot_dimension_numbers<[1], [0], [0], [1], [0, 0, 1, 1], [], []>} : vector<1x8xf32>, vector<8x5xf32>, vector<1x5xf32> -> vector<1x5xf32>
      %cst_47 = arith.constant 0.353553385 : f32
      %159 = vector.broadcast %cst_47 : f32 to vector<1x5xf32>
      %160 = arith.mulf %158, %159 : vector<1x5xf32>
      %161 = arith.addf %160, %61 : vector<1x5xf32>
      %cst_48 = arith.constant dense<0xFF800000> : vector<1xf32>
      %162 = vector.multi_reduction <maximumf>, %161, %cst_48 [1] : vector<1x5xf32> to vector<1xf32>
      %163 = vector.shape_cast %162 : vector<1xf32> to vector<1x1xf32>
      %164 = vector.broadcast %163 : vector<1x1xf32> to vector<1x5xf32>
      %165 = arith.subf %161, %164 : vector<1x5xf32>
      %166 = math.exp %165 : vector<1x5xf32>
      %cst_49 = arith.constant dense<0.000000e+00> : vector<1xf32>
      %167 = vector.multi_reduction <add>, %166, %cst_49 [1] : vector<1x5xf32> to vector<1xf32>
      %168 = vector.shape_cast %167 : vector<1xf32> to vector<1x1xf32>
      %169 = vector.broadcast %168 : vector<1x1xf32> to vector<1x5xf32>
      %170 = arith.divf %166, %169 : vector<1x5xf32>
      %171 = vector.extract_strided_slice %118 {offsets = [0, 16], sizes = [5, 8], strides = [1, 1]} : vector<5x32xf32> to vector<5x8xf32>
      %cst_50 = arith.constant dense<0.000000e+00> : vector<1x8xf32>
      %172 = tpu.matmul %170, %171, %cst_50 {dimension_numbers = #tpu.dot_dimension_numbers<[1], [0], [0], [1], [0, 0, 1, 1], [], []>} : vector<1x5xf32>, vector<5x8xf32>, vector<1x8xf32> -> vector<1x8xf32>
      %173 = vector.extract_strided_slice %116 {offsets = [0, 24], sizes = [1, 8], strides = [1, 1]} : vector<1x32xf32> to vector<1x8xf32>
      %174 = vector.extract_strided_slice %117 {offsets = [0, 24], sizes = [5, 8], strides = [1, 1]} : vector<5x32xf32> to vector<5x8xf32>
      %175 = tpu.transpose %174, [1, 0] : vector<5x8xf32> -> vector<8x5xf32>
      %cst_51 = arith.constant dense<0.000000e+00> : vector<1x5xf32>
      %176 = tpu.matmul %173, %175, %cst_51 {dimension_numbers = #tpu.dot_dimension_numbers<[1], [0], [0], [1], [0, 0, 1, 1], [], []>} : vector<1x8xf32>, vector<8x5xf32>, vector<1x5xf32> -> vector<1x5xf32>
      %cst_52 = arith.constant 0.353553385 : f32
      %177 = vector.broadcast %cst_52 : f32 to vector<1x5xf32>
      %178 = arith.mulf %176, %177 : vector<1x5xf32>
      %179 = arith.addf %178, %61 : vector<1x5xf32>
      %cst_53 = arith.constant dense<0xFF800000> : vector<1xf32>
      %180 = vector.multi_reduction <maximumf>, %179, %cst_53 [1] : vector<1x5xf32> to vector<1xf32>
      %181 = vector.shape_cast %180 : vector<1xf32> to vector<1x1xf32>
      %182 = vector.broadcast %181 : vector<1x1xf32> to vector<1x5xf32>
      %183 = arith.subf %179, %182 : vector<1x5xf32>
      %184 = math.exp %183 : vector<1x5xf32>
      %cst_54 = arith.constant dense<0.000000e+00> : vector<1xf32>
      %185 = vector.multi_reduction <add>, %184, %cst_54 [1] : vector<1x5xf32> to vector<1xf32>
      %186 = vector.shape_cast %185 : vector<1xf32> to vector<1x1xf32>
      %187 = vector.broadcast %186 : vector<1x1xf32> to vector<1x5xf32>
      %188 = arith.divf %184, %187 : vector<1x5xf32>
      %189 = vector.extract_strided_slice %118 {offsets = [0, 24], sizes = [5, 8], strides = [1, 1]} : vector<5x32xf32> to vector<5x8xf32>
      %cst_55 = arith.constant dense<0.000000e+00> : vector<1x8xf32>
      %190 = tpu.matmul %188, %189, %cst_55 {dimension_numbers = #tpu.dot_dimension_numbers<[1], [0], [0], [1], [0, 0, 1, 1], [], []>} : vector<1x5xf32>, vector<5x8xf32>, vector<1x8xf32> -> vector<1x8xf32>
      %191 = tpu.concatenate %136, %154, %172, %190 in 1 : vector<1x8xf32>, vector<1x8xf32>, vector<1x8xf32>, vector<1x8xf32> -> vector<1x32xf32>
      %192 = vector.extract_strided_slice %109 {offsets = [1, 0], sizes = [1, 32], strides = [1, 1]} : vector<2x32xf32> to vector<1x32xf32>
      %193 = vector.extract_strided_slice %112 {offsets = [5, 0], sizes = [5, 32], strides = [1, 1]} : vector<10x32xf32> to vector<5x32xf32>
      %194 = vector.extract_strided_slice %115 {offsets = [5, 0], sizes = [5, 32], strides = [1, 1]} : vector<10x32xf32> to vector<5x32xf32>
      %195 = vector.extract_strided_slice %192 {offsets = [0, 0], sizes = [1, 8], strides = [1, 1]} : vector<1x32xf32> to vector<1x8xf32>
      %196 = vector.extract_strided_slice %193 {offsets = [0, 0], sizes = [5, 8], strides = [1, 1]} : vector<5x32xf32> to vector<5x8xf32>
      %197 = tpu.transpose %196, [1, 0] : vector<5x8xf32> -> vector<8x5xf32>
      %cst_56 = arith.constant dense<0.000000e+00> : vector<1x5xf32>
      %198 = tpu.matmul %195, %197, %cst_56 {dimension_numbers = #tpu.dot_dimension_numbers<[1], [0], [0], [1], [0, 0, 1, 1], [], []>} : vector<1x8xf32>, vector<8x5xf32>, vector<1x5xf32> -> vector<1x5xf32>
      %cst_57 = arith.constant 0.353553385 : f32
      %199 = vector.broadcast %cst_57 : f32 to vector<1x5xf32>
      %200 = arith.mulf %198, %199 : vector<1x5xf32>
      %201 = arith.addf %200, %61 : vector<1x5xf32>
      %cst_58 = arith.constant dense<0xFF800000> : vector<1xf32>
      %202 = vector.multi_reduction <maximumf>, %201, %cst_58 [1] : vector<1x5xf32> to vector<1xf32>
      %203 = vector.shape_cast %202 : vector<1xf32> to vector<1x1xf32>
      %204 = vector.broadcast %203 : vector<1x1xf32> to vector<1x5xf32>
      %205 = arith.subf %201, %204 : vector<1x5xf32>
      %206 = math.exp %205 : vector<1x5xf32>
      %cst_59 = arith.constant dense<0.000000e+00> : vector<1xf32>
      %207 = vector.multi_reduction <add>, %206, %cst_59 [1] : vector<1x5xf32> to vector<1xf32>
      %208 = vector.shape_cast %207 : vector<1xf32> to vector<1x1xf32>
      %209 = vector.broadcast %208 : vector<1x1xf32> to vector<1x5xf32>
      %210 = arith.divf %206, %209 : vector<1x5xf32>
      %211 = vector.extract_strided_slice %194 {offsets = [0, 0], sizes = [5, 8], strides = [1, 1]} : vector<5x32xf32> to vector<5x8xf32>
      %cst_60 = arith.constant dense<0.000000e+00> : vector<1x8xf32>
      %212 = tpu.matmul %210, %211, %cst_60 {dimension_numbers = #tpu.dot_dimension_numbers<[1], [0], [0], [1], [0, 0, 1, 1], [], []>} : vector<1x5xf32>, vector<5x8xf32>, vector<1x8xf32> -> vector<1x8xf32>
      %213 = vector.extract_strided_slice %192 {offsets = [0, 8], sizes = [1, 8], strides = [1, 1]} : vector<1x32xf32> to vector<1x8xf32>
      %214 = vector.extract_strided_slice %193 {offsets = [0, 8], sizes = [5, 8], strides = [1, 1]} : vector<5x32xf32> to vector<5x8xf32>
      %215 = tpu.transpose %214, [1, 0] : vector<5x8xf32> -> vector<8x5xf32>
      %cst_61 = arith.constant dense<0.000000e+00> : vector<1x5xf32>
      %216 = tpu.matmul %213, %215, %cst_61 {dimension_numbers = #tpu.dot_dimension_numbers<[1], [0], [0], [1], [0, 0, 1, 1], [], []>} : vector<1x8xf32>, vector<8x5xf32>, vector<1x5xf32> -> vector<1x5xf32>
      %cst_62 = arith.constant 0.353553385 : f32
      %217 = vector.broadcast %cst_62 : f32 to vector<1x5xf32>
      %218 = arith.mulf %216, %217 : vector<1x5xf32>
      %219 = arith.addf %218, %61 : vector<1x5xf32>
      %cst_63 = arith.constant dense<0xFF800000> : vector<1xf32>
      %220 = vector.multi_reduction <maximumf>, %219, %cst_63 [1] : vector<1x5xf32> to vector<1xf32>
      %221 = vector.shape_cast %220 : vector<1xf32> to vector<1x1xf32>
      %222 = vector.broadcast %221 : vector<1x1xf32> to vector<1x5xf32>
      %223 = arith.subf %219, %222 : vector<1x5xf32>
      %224 = math.exp %223 : vector<1x5xf32>
      %cst_64 = arith.constant dense<0.000000e+00> : vector<1xf32>
      %225 = vector.multi_reduction <add>, %224, %cst_64 [1] : vector<1x5xf32> to vector<1xf32>
      %226 = vector.shape_cast %225 : vector<1xf32> to vector<1x1xf32>
      %227 = vector.broadcast %226 : vector<1x1xf32> to vector<1x5xf32>
      %228 = arith.divf %224, %227 : vector<1x5xf32>
      %229 = vector.extract_strided_slice %194 {offsets = [0, 8], sizes = [5, 8], strides = [1, 1]} : vector<5x32xf32> to vector<5x8xf32>
      %cst_65 = arith.constant dense<0.000000e+00> : vector<1x8xf32>
      %230 = tpu.matmul %228, %229, %cst_65 {dimension_numbers = #tpu.dot_dimension_numbers<[1], [0], [0], [1], [0, 0, 1, 1], [], []>} : vector<1x5xf32>, vector<5x8xf32>, vector<1x8xf32> -> vector<1x8xf32>
      %231 = vector.extract_strided_slice %192 {offsets = [0, 16], sizes = [1, 8], strides = [1, 1]} : vector<1x32xf32> to vector<1x8xf32>
      %232 = vector.extract_strided_slice %193 {offsets = [0, 16], sizes = [5, 8], strides = [1, 1]} : vector<5x32xf32> to vector<5x8xf32>
      %233 = tpu.transpose %232, [1, 0] : vector<5x8xf32> -> vector<8x5xf32>
      %cst_66 = arith.constant dense<0.000000e+00> : vector<1x5xf32>
      %234 = tpu.matmul %231, %233, %cst_66 {dimension_numbers = #tpu.dot_dimension_numbers<[1], [0], [0], [1], [0, 0, 1, 1], [], []>} : vector<1x8xf32>, vector<8x5xf32>, vector<1x5xf32> -> vector<1x5xf32>
      %cst_67 = arith.constant 0.353553385 : f32
      %235 = vector.broadcast %cst_67 : f32 to vector<1x5xf32>
      %236 = arith.mulf %234, %235 : vector<1x5xf32>
      %237 = arith.addf %236, %61 : vector<1x5xf32>
      %cst_68 = arith.constant dense<0xFF800000> : vector<1xf32>
      %238 = vector.multi_reduction <maximumf>, %237, %cst_68 [1] : vector<1x5xf32> to vector<1xf32>
      %239 = vector.shape_cast %238 : vector<1xf32> to vector<1x1xf32>
      %240 = vector.broadcast %239 : vector<1x1xf32> to vector<1x5xf32>
      %241 = arith.subf %237, %240 : vector<1x5xf32>
      %242 = math.exp %241 : vector<1x5xf32>
      %cst_69 = arith.constant dense<0.000000e+00> : vector<1xf32>
      %243 = vector.multi_reduction <add>, %242, %cst_69 [1] : vector<1x5xf32> to vector<1xf32>
      %244 = vector.shape_cast %243 : vector<1xf32> to vector<1x1xf32>
      %245 = vector.broadcast %244 : vector<1x1xf32> to vector<1x5xf32>
      %246 = arith.divf %242, %245 : vector<1x5xf32>
      %247 = vector.extract_strided_slice %194 {offsets = [0, 16], sizes = [5, 8], strides = [1, 1]} : vector<5x32xf32> to vector<5x8xf32>
      %cst_70 = arith.constant dense<0.000000e+00> : vector<1x8xf32>
      %248 = tpu.matmul %246, %247, %cst_70 {dimension_numbers = #tpu.dot_dimension_numbers<[1], [0], [0], [1], [0, 0, 1, 1], [], []>} : vector<1x5xf32>, vector<5x8xf32>, vector<1x8xf32> -> vector<1x8xf32>
      %249 = vector.extract_strided_slice %192 {offsets = [0, 24], sizes = [1, 8], strides = [1, 1]} : vector<1x32xf32> to vector<1x8xf32>
      %250 = vector.extract_strided_slice %193 {offsets = [0, 24], sizes = [5, 8], strides = [1, 1]} : vector<5x32xf32> to vector<5x8xf32>
      %251 = tpu.transpose %250, [1, 0] : vector<5x8xf32> -> vector<8x5xf32>
      %cst_71 = arith.constant dense<0.000000e+00> : vector<1x5xf32>
      %252 = tpu.matmul %249, %251, %cst_71 {dimension_numbers = #tpu.dot_dimension_numbers<[1], [0], [0], [1], [0, 0, 1, 1], [], []>} : vector<1x8xf32>, vector<8x5xf32>, vector<1x5xf32> -> vector<1x5xf32>
      %cst_72 = arith.constant 0.353553385 : f32
      %253 = vector.broadcast %cst_72 : f32 to vector<1x5xf32>
      %254 = arith.mulf %252, %253 : vector<1x5xf32>
      %255 = arith.addf %254, %61 : vector<1x5xf32>
      %cst_73 = arith.constant dense<0xFF800000> : vector<1xf32>
      %256 = vector.multi_reduction <maximumf>, %255, %cst_73 [1] : vector<1x5xf32> to vector<1xf32>
      %257 = vector.shape_cast %256 : vector<1xf32> to vector<1x1xf32>
      %258 = vector.broadcast %257 : vector<1x1xf32> to vector<1x5xf32>
      %259 = arith.subf %255, %258 : vector<1x5xf32>
      %260 = math.exp %259 : vector<1x5xf32>
      %cst_74 = arith.constant dense<0.000000e+00> : vector<1xf32>
      %261 = vector.multi_reduction <add>, %260, %cst_74 [1] : vector<1x5xf32> to vector<1xf32>
      %262 = vector.shape_cast %261 : vector<1xf32> to vector<1x1xf32>
      %263 = vector.broadcast %262 : vector<1x1xf32> to vector<1x5xf32>
      %264 = arith.divf %260, %263 : vector<1x5xf32>
      %265 = vector.extract_strided_slice %194 {offsets = [0, 24], sizes = [5, 8], strides = [1, 1]} : vector<5x32xf32> to vector<5x8xf32>
      %cst_75 = arith.constant dense<0.000000e+00> : vector<1x8xf32>
      %266 = tpu.matmul %264, %265, %cst_75 {dimension_numbers = #tpu.dot_dimension_numbers<[1], [0], [0], [1], [0, 0, 1, 1], [], []>} : vector<1x5xf32>, vector<5x8xf32>, vector<1x8xf32> -> vector<1x8xf32>
      %267 = tpu.concatenate %212, %230, %248, %266 in 1 : vector<1x8xf32>, vector<1x8xf32>, vector<1x8xf32>, vector<1x8xf32> -> vector<1x32xf32>
      %268 = tpu.concatenate %191, %267 in 0 : vector<1x32xf32>, vector<1x32xf32> -> vector<2x32xf32>
      %cst_76 = arith.constant dense<0.000000e+00> : vector<2x32xf32>
      %269 = tpu.matmul %268, %11, %cst_76 {dimension_numbers = #tpu.dot_dimension_numbers<[1], [0], [0], [1], [0, 0, 1, 1], [], []>} : vector<2x32xf32>, vector<32x32xf32>, vector<2x32xf32> -> vector<2x32xf32>
      %270 = vector.broadcast %21 : vector<1x32xf32> to vector<2x32xf32>
      %271 = arith.addf %269, %270 : vector<2x32xf32>
      %272 = arith.addf %55, %271 : vector<2x32xf32>
      %cst_77 = arith.constant dense<0.000000e+00> : vector<2xf32>
      %273 = vector.multi_reduction <add>, %272, %cst_77 [1] : vector<2x32xf32> to vector<2xf32>
      %274 = vector.shape_cast %273 : vector<2xf32> to vector<2x1xf32>
      %cst_78 = arith.constant 3.200000e+01 : f32
      %275 = vector.broadcast %cst_78 : f32 to vector<2x1xf32>
      %276 = arith.divf %274, %275 : vector<2x1xf32>
      %277 = vector.broadcast %276 : vector<2x1xf32> to vector<2x32xf32>
      %278 = arith.subf %272, %277 : vector<2x32xf32>
      %279 = arith.mulf %278, %278 : vector<2x32xf32>
      %cst_79 = arith.constant dense<0.000000e+00> : vector<2xf32>
      %280 = vector.multi_reduction <add>, %279, %cst_79 [1] : vector<2x32xf32> to vector<2xf32>
      %281 = vector.shape_cast %280 : vector<2xf32> to vector<2x1xf32>
      %cst_80 = arith.constant 3.200000e+01 : f32
      %282 = vector.broadcast %cst_80 : f32 to vector<2x1xf32>
      %283 = arith.divf %281, %282 : vector<2x1xf32>
      %284 = vector.broadcast %276 : vector<2x1xf32> to vector<2x32xf32>
      %285 = arith.subf %272, %284 : vector<2x32xf32>
      %cst_81 = arith.constant 9.99999974E-6 : f32
      %286 = vector.broadcast %cst_81 : f32 to vector<2x1xf32>
      %287 = arith.addf %283, %286 : vector<2x1xf32>
      %288 = math.rsqrt %287 : vector<2x1xf32>
      %289 = vector.broadcast %288 : vector<2x1xf32> to vector<2x32xf32>
      %290 = arith.mulf %285, %289 : vector<2x32xf32>
      %291 = vector.broadcast %30 : vector<1x32xf32> to vector<2x32xf32>
      %292 = arith.mulf %290, %291 : vector<2x32xf32>
      %293 = vector.broadcast %31 : vector<1x32xf32> to vector<2x32xf32>
      %294 = arith.addf %292, %293 : vector<2x32xf32>
      %cst_82 = arith.constant dense<0.000000e+00> : vector<2x32xf32>
      %295 = tpu.matmul %294, %12, %cst_82 {dimension_numbers = #tpu.dot_dimension_numbers<[1], [0], [0], [1], [0, 0, 1, 1], [], []>} : vector<2x32xf32>, vector<32x32xf32>, vector<2x32xf32> -> vector<2x32xf32>
      %296 = vector.broadcast %22 : vector<1x32xf32> to vector<2x32xf32>
      %297 = arith.addf %295, %296 : vector<2x32xf32>
      %cst_83 = arith.constant dense<0.000000e+00> : vector<4x32xf32>
      %298 = tpu.matmul %0, %13, %cst_83 {dimension_numbers = #tpu.dot_dimension_numbers<[1], [0], [0], [1], [0, 0, 1, 1], [], []>} : vector<4x32xf32>, vector<32x32xf32>, vector<4x32xf32> -> vector<4x32xf32>
      %299 = vector.broadcast %23 : vector<1x32xf32> to vector<4x32xf32>
      %300 = arith.addf %298, %299 : vector<4x32xf32>
      %cst_84 = arith.constant dense<0.000000e+00> : vector<4x32xf32>
      %301 = tpu.matmul %0, %14, %cst_84 {dimension_numbers = #tpu.dot_dimension_numbers<[1], [0], [0], [1], [0, 0, 1, 1], [], []>} : vector<4x32xf32>, vector<32x32xf32>, vector<4x32xf32> -> vector<4x32xf32>
      %302 = vector.broadcast %24 : vector<1x32xf32> to vector<4x32xf32>
      %303 = arith.addf %301, %302 : vector<4x32xf32>
      %304 = vector.extract_strided_slice %297 {offsets = [0, 0], sizes = [1, 32], strides = [1, 1]} : vector<2x32xf32> to vector<1x32xf32>
      %305 = vector.extract_strided_slice %300 {offsets = [0, 0], sizes = [2, 32], strides = [1, 1]} : vector<4x32xf32> to vector<2x32xf32>
      %306 = vector.extract_strided_slice %303 {offsets = [0, 0], sizes = [2, 32], strides = [1, 1]} : vector<4x32xf32> to vector<2x32xf32>
      %307 = vector.extract_strided_slice %304 {offsets = [0, 0], sizes = [1, 8], strides = [1, 1]} : vector<1x32xf32> to vector<1x8xf32>
      %308 = vector.extract_strided_slice %305 {offsets = [0, 0], sizes = [2, 8], strides = [1, 1]} : vector<2x32xf32> to vector<2x8xf32>
      %309 = tpu.transpose %308, [1, 0] : vector<2x8xf32> -> vector<8x2xf32>
      %cst_85 = arith.constant dense<0.000000e+00> : vector<1x2xf32>
      %310 = tpu.matmul %307, %309, %cst_85 {dimension_numbers = #tpu.dot_dimension_numbers<[1], [0], [0], [1], [0, 0, 1, 1], [], []>} : vector<1x8xf32>, vector<8x2xf32>, vector<1x2xf32> -> vector<1x2xf32>
      %cst_86 = arith.constant 0.353553385 : f32
      %311 = vector.broadcast %cst_86 : f32 to vector<1x2xf32>
      %312 = arith.mulf %310, %311 : vector<1x2xf32>
      %cst_87 = arith.constant dense<0xFF800000> : vector<1xf32>
      %313 = vector.multi_reduction <maximumf>, %312, %cst_87 [1] : vector<1x2xf32> to vector<1xf32>
      %314 = vector.shape_cast %313 : vector<1xf32> to vector<1x1xf32>
      %315 = vector.broadcast %314 : vector<1x1xf32> to vector<1x2xf32>
      %316 = arith.subf %312, %315 : vector<1x2xf32>
      %317 = math.exp %316 : vector<1x2xf32>
      %cst_88 = arith.constant dense<0.000000e+00> : vector<1xf32>
      %318 = vector.multi_reduction <add>, %317, %cst_88 [1] : vector<1x2xf32> to vector<1xf32>
      %319 = vector.shape_cast %318 : vector<1xf32> to vector<1x1xf32>
      %320 = vector.broadcast %319 : vector<1x1xf32> to vector<1x2xf32>
      %321 = arith.divf %317, %320 : vector<1x2xf32>
      %322 = vector.extract_strided_slice %306 {offsets = [0, 0], sizes = [2, 8], strides = [1, 1]} : vector<2x32xf32> to vector<2x8xf32>
      %cst_89 = arith.constant dense<0.000000e+00> : vector<1x8xf32>
      %323 = tpu.matmul %321, %322, %cst_89 {dimension_numbers = #tpu.dot_dimension_numbers<[1], [0], [0], [1], [0, 0, 1, 1], [], []>} : vector<1x2xf32>, vector<2x8xf32>, vector<1x8xf32> -> vector<1x8xf32>
      %324 = vector.extract_strided_slice %304 {offsets = [0, 8], sizes = [1, 8], strides = [1, 1]} : vector<1x32xf32> to vector<1x8xf32>
      %325 = vector.extract_strided_slice %305 {offsets = [0, 8], sizes = [2, 8], strides = [1, 1]} : vector<2x32xf32> to vector<2x8xf32>
      %326 = tpu.transpose %325, [1, 0] : vector<2x8xf32> -> vector<8x2xf32>
      %cst_90 = arith.constant dense<0.000000e+00> : vector<1x2xf32>
      %327 = tpu.matmul %324, %326, %cst_90 {dimension_numbers = #tpu.dot_dimension_numbers<[1], [0], [0], [1], [0, 0, 1, 1], [], []>} : vector<1x8xf32>, vector<8x2xf32>, vector<1x2xf32> -> vector<1x2xf32>
      %cst_91 = arith.constant 0.353553385 : f32
      %328 = vector.broadcast %cst_91 : f32 to vector<1x2xf32>
      %329 = arith.mulf %327, %328 : vector<1x2xf32>
      %cst_92 = arith.constant dense<0xFF800000> : vector<1xf32>
      %330 = vector.multi_reduction <maximumf>, %329, %cst_92 [1] : vector<1x2xf32> to vector<1xf32>
      %331 = vector.shape_cast %330 : vector<1xf32> to vector<1x1xf32>
      %332 = vector.broadcast %331 : vector<1x1xf32> to vector<1x2xf32>
      %333 = arith.subf %329, %332 : vector<1x2xf32>
      %334 = math.exp %333 : vector<1x2xf32>
      %cst_93 = arith.constant dense<0.000000e+00> : vector<1xf32>
      %335 = vector.multi_reduction <add>, %334, %cst_93 [1] : vector<1x2xf32> to vector<1xf32>
      %336 = vector.shape_cast %335 : vector<1xf32> to vector<1x1xf32>
      %337 = vector.broadcast %336 : vector<1x1xf32> to vector<1x2xf32>
      %338 = arith.divf %334, %337 : vector<1x2xf32>
      %339 = vector.extract_strided_slice %306 {offsets = [0, 8], sizes = [2, 8], strides = [1, 1]} : vector<2x32xf32> to vector<2x8xf32>
      %cst_94 = arith.constant dense<0.000000e+00> : vector<1x8xf32>
      %340 = tpu.matmul %338, %339, %cst_94 {dimension_numbers = #tpu.dot_dimension_numbers<[1], [0], [0], [1], [0, 0, 1, 1], [], []>} : vector<1x2xf32>, vector<2x8xf32>, vector<1x8xf32> -> vector<1x8xf32>
      %341 = vector.extract_strided_slice %304 {offsets = [0, 16], sizes = [1, 8], strides = [1, 1]} : vector<1x32xf32> to vector<1x8xf32>
      %342 = vector.extract_strided_slice %305 {offsets = [0, 16], sizes = [2, 8], strides = [1, 1]} : vector<2x32xf32> to vector<2x8xf32>
      %343 = tpu.transpose %342, [1, 0] : vector<2x8xf32> -> vector<8x2xf32>
      %cst_95 = arith.constant dense<0.000000e+00> : vector<1x2xf32>
      %344 = tpu.matmul %341, %343, %cst_95 {dimension_numbers = #tpu.dot_dimension_numbers<[1], [0], [0], [1], [0, 0, 1, 1], [], []>} : vector<1x8xf32>, vector<8x2xf32>, vector<1x2xf32> -> vector<1x2xf32>
      %cst_96 = arith.constant 0.353553385 : f32
      %345 = vector.broadcast %cst_96 : f32 to vector<1x2xf32>
      %346 = arith.mulf %344, %345 : vector<1x2xf32>
      %cst_97 = arith.constant dense<0xFF800000> : vector<1xf32>
      %347 = vector.multi_reduction <maximumf>, %346, %cst_97 [1] : vector<1x2xf32> to vector<1xf32>
      %348 = vector.shape_cast %347 : vector<1xf32> to vector<1x1xf32>
      %349 = vector.broadcast %348 : vector<1x1xf32> to vector<1x2xf32>
      %350 = arith.subf %346, %349 : vector<1x2xf32>
      %351 = math.exp %350 : vector<1x2xf32>
      %cst_98 = arith.constant dense<0.000000e+00> : vector<1xf32>
      %352 = vector.multi_reduction <add>, %351, %cst_98 [1] : vector<1x2xf32> to vector<1xf32>
      %353 = vector.shape_cast %352 : vector<1xf32> to vector<1x1xf32>
      %354 = vector.broadcast %353 : vector<1x1xf32> to vector<1x2xf32>
      %355 = arith.divf %351, %354 : vector<1x2xf32>
      %356 = vector.extract_strided_slice %306 {offsets = [0, 16], sizes = [2, 8], strides = [1, 1]} : vector<2x32xf32> to vector<2x8xf32>
      %cst_99 = arith.constant dense<0.000000e+00> : vector<1x8xf32>
      %357 = tpu.matmul %355, %356, %cst_99 {dimension_numbers = #tpu.dot_dimension_numbers<[1], [0], [0], [1], [0, 0, 1, 1], [], []>} : vector<1x2xf32>, vector<2x8xf32>, vector<1x8xf32> -> vector<1x8xf32>
      %358 = vector.extract_strided_slice %304 {offsets = [0, 24], sizes = [1, 8], strides = [1, 1]} : vector<1x32xf32> to vector<1x8xf32>
      %359 = vector.extract_strided_slice %305 {offsets = [0, 24], sizes = [2, 8], strides = [1, 1]} : vector<2x32xf32> to vector<2x8xf32>
      %360 = tpu.transpose %359, [1, 0] : vector<2x8xf32> -> vector<8x2xf32>
      %cst_100 = arith.constant dense<0.000000e+00> : vector<1x2xf32>
      %361 = tpu.matmul %358, %360, %cst_100 {dimension_numbers = #tpu.dot_dimension_numbers<[1], [0], [0], [1], [0, 0, 1, 1], [], []>} : vector<1x8xf32>, vector<8x2xf32>, vector<1x2xf32> -> vector<1x2xf32>
      %cst_101 = arith.constant 0.353553385 : f32
      %362 = vector.broadcast %cst_101 : f32 to vector<1x2xf32>
      %363 = arith.mulf %361, %362 : vector<1x2xf32>
      %cst_102 = arith.constant dense<0xFF800000> : vector<1xf32>
      %364 = vector.multi_reduction <maximumf>, %363, %cst_102 [1] : vector<1x2xf32> to vector<1xf32>
      %365 = vector.shape_cast %364 : vector<1xf32> to vector<1x1xf32>
      %366 = vector.broadcast %365 : vector<1x1xf32> to vector<1x2xf32>
      %367 = arith.subf %363, %366 : vector<1x2xf32>
      %368 = math.exp %367 : vector<1x2xf32>
      %cst_103 = arith.constant dense<0.000000e+00> : vector<1xf32>
      %369 = vector.multi_reduction <add>, %368, %cst_103 [1] : vector<1x2xf32> to vector<1xf32>
      %370 = vector.shape_cast %369 : vector<1xf32> to vector<1x1xf32>
      %371 = vector.broadcast %370 : vector<1x1xf32> to vector<1x2xf32>
      %372 = arith.divf %368, %371 : vector<1x2xf32>
      %373 = vector.extract_strided_slice %306 {offsets = [0, 24], sizes = [2, 8], strides = [1, 1]} : vector<2x32xf32> to vector<2x8xf32>
      %cst_104 = arith.constant dense<0.000000e+00> : vector<1x8xf32>
      %374 = tpu.matmul %372, %373, %cst_104 {dimension_numbers = #tpu.dot_dimension_numbers<[1], [0], [0], [1], [0, 0, 1, 1], [], []>} : vector<1x2xf32>, vector<2x8xf32>, vector<1x8xf32> -> vector<1x8xf32>
      %375 = tpu.concatenate %323, %340, %357, %374 in 1 : vector<1x8xf32>, vector<1x8xf32>, vector<1x8xf32>, vector<1x8xf32> -> vector<1x32xf32>
      %376 = vector.extract_strided_slice %297 {offsets = [1, 0], sizes = [1, 32], strides = [1, 1]} : vector<2x32xf32> to vector<1x32xf32>
      %377 = vector.extract_strided_slice %300 {offsets = [2, 0], sizes = [2, 32], strides = [1, 1]} : vector<4x32xf32> to vector<2x32xf32>
      %378 = vector.extract_strided_slice %303 {offsets = [2, 0], sizes = [2, 32], strides = [1, 1]} : vector<4x32xf32> to vector<2x32xf32>
      %379 = vector.extract_strided_slice %376 {offsets = [0, 0], sizes = [1, 8], strides = [1, 1]} : vector<1x32xf32> to vector<1x8xf32>
      %380 = vector.extract_strided_slice %377 {offsets = [0, 0], sizes = [2, 8], strides = [1, 1]} : vector<2x32xf32> to vector<2x8xf32>
      %381 = tpu.transpose %380, [1, 0] : vector<2x8xf32> -> vector<8x2xf32>
      %cst_105 = arith.constant dense<0.000000e+00> : vector<1x2xf32>
      %382 = tpu.matmul %379, %381, %cst_105 {dimension_numbers = #tpu.dot_dimension_numbers<[1], [0], [0], [1], [0, 0, 1, 1], [], []>} : vector<1x8xf32>, vector<8x2xf32>, vector<1x2xf32> -> vector<1x2xf32>
      %cst_106 = arith.constant 0.353553385 : f32
      %383 = vector.broadcast %cst_106 : f32 to vector<1x2xf32>
      %384 = arith.mulf %382, %383 : vector<1x2xf32>
      %cst_107 = arith.constant dense<0xFF800000> : vector<1xf32>
      %385 = vector.multi_reduction <maximumf>, %384, %cst_107 [1] : vector<1x2xf32> to vector<1xf32>
      %386 = vector.shape_cast %385 : vector<1xf32> to vector<1x1xf32>
      %387 = vector.broadcast %386 : vector<1x1xf32> to vector<1x2xf32>
      %388 = arith.subf %384, %387 : vector<1x2xf32>
      %389 = math.exp %388 : vector<1x2xf32>
      %cst_108 = arith.constant dense<0.000000e+00> : vector<1xf32>
      %390 = vector.multi_reduction <add>, %389, %cst_108 [1] : vector<1x2xf32> to vector<1xf32>
      %391 = vector.shape_cast %390 : vector<1xf32> to vector<1x1xf32>
      %392 = vector.broadcast %391 : vector<1x1xf32> to vector<1x2xf32>
      %393 = arith.divf %389, %392 : vector<1x2xf32>
      %394 = vector.extract_strided_slice %378 {offsets = [0, 0], sizes = [2, 8], strides = [1, 1]} : vector<2x32xf32> to vector<2x8xf32>
      %cst_109 = arith.constant dense<0.000000e+00> : vector<1x8xf32>
      %395 = tpu.matmul %393, %394, %cst_109 {dimension_numbers = #tpu.dot_dimension_numbers<[1], [0], [0], [1], [0, 0, 1, 1], [], []>} : vector<1x2xf32>, vector<2x8xf32>, vector<1x8xf32> -> vector<1x8xf32>
      %396 = vector.extract_strided_slice %376 {offsets = [0, 8], sizes = [1, 8], strides = [1, 1]} : vector<1x32xf32> to vector<1x8xf32>
      %397 = vector.extract_strided_slice %377 {offsets = [0, 8], sizes = [2, 8], strides = [1, 1]} : vector<2x32xf32> to vector<2x8xf32>
      %398 = tpu.transpose %397, [1, 0] : vector<2x8xf32> -> vector<8x2xf32>
      %cst_110 = arith.constant dense<0.000000e+00> : vector<1x2xf32>
      %399 = tpu.matmul %396, %398, %cst_110 {dimension_numbers = #tpu.dot_dimension_numbers<[1], [0], [0], [1], [0, 0, 1, 1], [], []>} : vector<1x8xf32>, vector<8x2xf32>, vector<1x2xf32> -> vector<1x2xf32>
      %cst_111 = arith.constant 0.353553385 : f32
      %400 = vector.broadcast %cst_111 : f32 to vector<1x2xf32>
      %401 = arith.mulf %399, %400 : vector<1x2xf32>
      %cst_112 = arith.constant dense<0xFF800000> : vector<1xf32>
      %402 = vector.multi_reduction <maximumf>, %401, %cst_112 [1] : vector<1x2xf32> to vector<1xf32>
      %403 = vector.shape_cast %402 : vector<1xf32> to vector<1x1xf32>
      %404 = vector.broadcast %403 : vector<1x1xf32> to vector<1x2xf32>
      %405 = arith.subf %401, %404 : vector<1x2xf32>
      %406 = math.exp %405 : vector<1x2xf32>
      %cst_113 = arith.constant dense<0.000000e+00> : vector<1xf32>
      %407 = vector.multi_reduction <add>, %406, %cst_113 [1] : vector<1x2xf32> to vector<1xf32>
      %408 = vector.shape_cast %407 : vector<1xf32> to vector<1x1xf32>
      %409 = vector.broadcast %408 : vector<1x1xf32> to vector<1x2xf32>
      %410 = arith.divf %406, %409 : vector<1x2xf32>
      %411 = vector.extract_strided_slice %378 {offsets = [0, 8], sizes = [2, 8], strides = [1, 1]} : vector<2x32xf32> to vector<2x8xf32>
      %cst_114 = arith.constant dense<0.000000e+00> : vector<1x8xf32>
      %412 = tpu.matmul %410, %411, %cst_114 {dimension_numbers = #tpu.dot_dimension_numbers<[1], [0], [0], [1], [0, 0, 1, 1], [], []>} : vector<1x2xf32>, vector<2x8xf32>, vector<1x8xf32> -> vector<1x8xf32>
      %413 = vector.extract_strided_slice %376 {offsets = [0, 16], sizes = [1, 8], strides = [1, 1]} : vector<1x32xf32> to vector<1x8xf32>
      %414 = vector.extract_strided_slice %377 {offsets = [0, 16], sizes = [2, 8], strides = [1, 1]} : vector<2x32xf32> to vector<2x8xf32>
      %415 = tpu.transpose %414, [1, 0] : vector<2x8xf32> -> vector<8x2xf32>
      %cst_115 = arith.constant dense<0.000000e+00> : vector<1x2xf32>
      %416 = tpu.matmul %413, %415, %cst_115 {dimension_numbers = #tpu.dot_dimension_numbers<[1], [0], [0], [1], [0, 0, 1, 1], [], []>} : vector<1x8xf32>, vector<8x2xf32>, vector<1x2xf32> -> vector<1x2xf32>
      %cst_116 = arith.constant 0.353553385 : f32
      %417 = vector.broadcast %cst_116 : f32 to vector<1x2xf32>
      %418 = arith.mulf %416, %417 : vector<1x2xf32>
      %cst_117 = arith.constant dense<0xFF800000> : vector<1xf32>
      %419 = vector.multi_reduction <maximumf>, %418, %cst_117 [1] : vector<1x2xf32> to vector<1xf32>
      %420 = vector.shape_cast %419 : vector<1xf32> to vector<1x1xf32>
      %421 = vector.broadcast %420 : vector<1x1xf32> to vector<1x2xf32>
      %422 = arith.subf %418, %421 : vector<1x2xf32>
      %423 = math.exp %422 : vector<1x2xf32>
      %cst_118 = arith.constant dense<0.000000e+00> : vector<1xf32>
      %424 = vector.multi_reduction <add>, %423, %cst_118 [1] : vector<1x2xf32> to vector<1xf32>
      %425 = vector.shape_cast %424 : vector<1xf32> to vector<1x1xf32>
      %426 = vector.broadcast %425 : vector<1x1xf32> to vector<1x2xf32>
      %427 = arith.divf %423, %426 : vector<1x2xf32>
      %428 = vector.extract_strided_slice %378 {offsets = [0, 16], sizes = [2, 8], strides = [1, 1]} : vector<2x32xf32> to vector<2x8xf32>
      %cst_119 = arith.constant dense<0.000000e+00> : vector<1x8xf32>
      %429 = tpu.matmul %427, %428, %cst_119 {dimension_numbers = #tpu.dot_dimension_numbers<[1], [0], [0], [1], [0, 0, 1, 1], [], []>} : vector<1x2xf32>, vector<2x8xf32>, vector<1x8xf32> -> vector<1x8xf32>
      %430 = vector.extract_strided_slice %376 {offsets = [0, 24], sizes = [1, 8], strides = [1, 1]} : vector<1x32xf32> to vector<1x8xf32>
      %431 = vector.extract_strided_slice %377 {offsets = [0, 24], sizes = [2, 8], strides = [1, 1]} : vector<2x32xf32> to vector<2x8xf32>
      %432 = tpu.transpose %431, [1, 0] : vector<2x8xf32> -> vector<8x2xf32>
      %cst_120 = arith.constant dense<0.000000e+00> : vector<1x2xf32>
      %433 = tpu.matmul %430, %432, %cst_120 {dimension_numbers = #tpu.dot_dimension_numbers<[1], [0], [0], [1], [0, 0, 1, 1], [], []>} : vector<1x8xf32>, vector<8x2xf32>, vector<1x2xf32> -> vector<1x2xf32>
      %cst_121 = arith.constant 0.353553385 : f32
      %434 = vector.broadcast %cst_121 : f32 to vector<1x2xf32>
      %435 = arith.mulf %433, %434 : vector<1x2xf32>
      %cst_122 = arith.constant dense<0xFF800000> : vector<1xf32>
      %436 = vector.multi_reduction <maximumf>, %435, %cst_122 [1] : vector<1x2xf32> to vector<1xf32>
      %437 = vector.shape_cast %436 : vector<1xf32> to vector<1x1xf32>
      %438 = vector.broadcast %437 : vector<1x1xf32> to vector<1x2xf32>
      %439 = arith.subf %435, %438 : vector<1x2xf32>
      %440 = math.exp %439 : vector<1x2xf32>
      %cst_123 = arith.constant dense<0.000000e+00> : vector<1xf32>
      %441 = vector.multi_reduction <add>, %440, %cst_123 [1] : vector<1x2xf32> to vector<1xf32>
      %442 = vector.shape_cast %441 : vector<1xf32> to vector<1x1xf32>
      %443 = vector.broadcast %442 : vector<1x1xf32> to vector<1x2xf32>
      %444 = arith.divf %440, %443 : vector<1x2xf32>
      %445 = vector.extract_strided_slice %378 {offsets = [0, 24], sizes = [2, 8], strides = [1, 1]} : vector<2x32xf32> to vector<2x8xf32>
      %cst_124 = arith.constant dense<0.000000e+00> : vector<1x8xf32>
      %446 = tpu.matmul %444, %445, %cst_124 {dimension_numbers = #tpu.dot_dimension_numbers<[1], [0], [0], [1], [0, 0, 1, 1], [], []>} : vector<1x2xf32>, vector<2x8xf32>, vector<1x8xf32> -> vector<1x8xf32>
      %447 = tpu.concatenate %395, %412, %429, %446 in 1 : vector<1x8xf32>, vector<1x8xf32>, vector<1x8xf32>, vector<1x8xf32> -> vector<1x32xf32>
      %448 = tpu.concatenate %375, %447 in 0 : vector<1x32xf32>, vector<1x32xf32> -> vector<2x32xf32>
      %cst_125 = arith.constant dense<0.000000e+00> : vector<2x32xf32>
      %449 = tpu.matmul %448, %15, %cst_125 {dimension_numbers = #tpu.dot_dimension_numbers<[1], [0], [0], [1], [0, 0, 1, 1], [], []>} : vector<2x32xf32>, vector<32x32xf32>, vector<2x32xf32> -> vector<2x32xf32>
      %450 = vector.broadcast %25 : vector<1x32xf32> to vector<2x32xf32>
      %451 = arith.addf %449, %450 : vector<2x32xf32>
      %452 = arith.addf %272, %451 : vector<2x32xf32>
      %cst_126 = arith.constant dense<0.000000e+00> : vector<2xf32>
      %453 = vector.multi_reduction <add>, %452, %cst_126 [1] : vector<2x32xf32> to vector<2xf32>
      %454 = vector.shape_cast %453 : vector<2xf32> to vector<2x1xf32>
      %cst_127 = arith.constant 3.200000e+01 : f32
      %455 = vector.broadcast %cst_127 : f32 to vector<2x1xf32>
      %456 = arith.divf %454, %455 : vector<2x1xf32>
      %457 = vector.broadcast %456 : vector<2x1xf32> to vector<2x32xf32>
      %458 = arith.subf %452, %457 : vector<2x32xf32>
      %459 = arith.mulf %458, %458 : vector<2x32xf32>
      %cst_128 = arith.constant dense<0.000000e+00> : vector<2xf32>
      %460 = vector.multi_reduction <add>, %459, %cst_128 [1] : vector<2x32xf32> to vector<2xf32>
      %461 = vector.shape_cast %460 : vector<2xf32> to vector<2x1xf32>
      %cst_129 = arith.constant 3.200000e+01 : f32
      %462 = vector.broadcast %cst_129 : f32 to vector<2x1xf32>
      %463 = arith.divf %461, %462 : vector<2x1xf32>
      %464 = vector.broadcast %456 : vector<2x1xf32> to vector<2x32xf32>
      %465 = arith.subf %452, %464 : vector<2x32xf32>
      %cst_130 = arith.constant 9.99999974E-6 : f32
      %466 = vector.broadcast %cst_130 : f32 to vector<2x1xf32>
      %467 = arith.addf %463, %466 : vector<2x1xf32>
      %468 = math.rsqrt %467 : vector<2x1xf32>
      %469 = vector.broadcast %468 : vector<2x1xf32> to vector<2x32xf32>
      %470 = arith.mulf %465, %469 : vector<2x32xf32>
      %471 = vector.broadcast %32 : vector<1x32xf32> to vector<2x32xf32>
      %472 = arith.mulf %470, %471 : vector<2x32xf32>
      %473 = vector.broadcast %33 : vector<1x32xf32> to vector<2x32xf32>
      %474 = arith.addf %472, %473 : vector<2x32xf32>
      %cst_131 = arith.constant dense<0.000000e+00> : vector<2x64xf32>
      %475 = tpu.matmul %474, %16, %cst_131 {dimension_numbers = #tpu.dot_dimension_numbers<[1], [0], [0], [1], [0, 0, 1, 1], [], []>} : vector<2x32xf32>, vector<32x64xf32>, vector<2x64xf32> -> vector<2x64xf32>
      %476 = vector.broadcast %36 : vector<1x64xf32> to vector<2x64xf32>
      %477 = arith.addf %475, %476 : vector<2x64xf32>
      %cst_132 = arith.constant 5.000000e-01 : f32
      %478 = vector.broadcast %cst_132 : f32 to vector<2x64xf32>
      %479 = arith.mulf %478, %477 : vector<2x64xf32>
      %cst_133 = arith.constant 0.707106769 : f32
      %480 = vector.broadcast %cst_133 : f32 to vector<2x64xf32>
      %481 = arith.mulf %477, %480 : vector<2x64xf32>
      %482 = math.erf %481 : vector<2x64xf32>
      %cst_134 = arith.constant 1.000000e+00 : f32
      %483 = vector.broadcast %cst_134 : f32 to vector<2x64xf32>
      %484 = arith.addf %483, %482 : vector<2x64xf32>
      %485 = arith.mulf %479, %484 : vector<2x64xf32>
      %cst_135 = arith.constant dense<0.000000e+00> : vector<2x32xf32>
      %486 = tpu.matmul %485, %6, %cst_135 {dimension_numbers = #tpu.dot_dimension_numbers<[1], [0], [0], [1], [0, 0, 1, 1], [], []>} : vector<2x64xf32>, vector<64x32xf32>, vector<2x32xf32> -> vector<2x32xf32>
      %487 = arith.addf %452, %486 : vector<2x32xf32>
      %488 = vector.broadcast %37 : vector<1x32xf32> to vector<2x32xf32>
      %489 = arith.addf %487, %488 : vector<2x32xf32>
      %cst_136 = arith.constant dense<0.000000e+00> : vector<2xf32>
      %490 = vector.multi_reduction <add>, %489, %cst_136 [1] : vector<2x32xf32> to vector<2xf32>
      %491 = vector.shape_cast %490 : vector<2xf32> to vector<2x1xf32>
      %cst_137 = arith.constant 3.200000e+01 : f32
      %492 = vector.broadcast %cst_137 : f32 to vector<2x1xf32>
      %493 = arith.divf %491, %492 : vector<2x1xf32>
      %494 = vector.broadcast %493 : vector<2x1xf32> to vector<2x32xf32>
      %495 = arith.subf %489, %494 : vector<2x32xf32>
      %496 = arith.mulf %495, %495 : vector<2x32xf32>
      %cst_138 = arith.constant dense<0.000000e+00> : vector<2xf32>
      %497 = vector.multi_reduction <add>, %496, %cst_138 [1] : vector<2x32xf32> to vector<2xf32>
      %498 = vector.shape_cast %497 : vector<2xf32> to vector<2x1xf32>
      %cst_139 = arith.constant 3.200000e+01 : f32
      %499 = vector.broadcast %cst_139 : f32 to vector<2x1xf32>
      %500 = arith.divf %498, %499 : vector<2x1xf32>
      %501 = vector.broadcast %493 : vector<2x1xf32> to vector<2x32xf32>
      %502 = arith.subf %489, %501 : vector<2x32xf32>
      %cst_140 = arith.constant 9.99999974E-6 : f32
      %503 = vector.broadcast %cst_140 : f32 to vector<2x1xf32>
      %504 = arith.addf %500, %503 : vector<2x1xf32>
      %505 = math.rsqrt %504 : vector<2x1xf32>
      %506 = vector.broadcast %505 : vector<2x1xf32> to vector<2x32xf32>
      %507 = arith.mulf %502, %506 : vector<2x32xf32>
      %508 = vector.broadcast %34 : vector<1x32xf32> to vector<2x32xf32>
      %509 = arith.mulf %507, %508 : vector<2x32xf32>
      %510 = vector.broadcast %35 : vector<1x32xf32> to vector<2x32xf32>
      %511 = arith.addf %509, %510 : vector<2x32xf32>
      %cst_141 = arith.constant dense<0.000000e+00> : vector<2x128xf32>
      %512 = tpu.matmul %511, %17, %cst_141 {dimension_numbers = #tpu.dot_dimension_numbers<[1], [0], [0], [1], [0, 0, 1, 1], [], []>} : vector<2x32xf32>, vector<32x128xf32>, vector<2x128xf32> -> vector<2x128xf32>
      %513 = vector.broadcast %38 : vector<1x128xf32> to vector<2x128xf32>
      %514 = arith.addf %512, %513 : vector<2x128xf32>
      %c0_142 = arith.constant 0 : index
      %c0_143 = arith.constant 0 : index
      %515 = vector.load %arg9[%c0_142, %c0_143] : memref<10x128xf32, #tpu.memory_space<vmem>>, vector<10x128xf32>
      %c0_i32_144 = arith.constant 0 : i32
      %516 = arith.addi %c0_i32_144, %arg0 : i32
      %517 = vector.broadcast %516 : i32 to vector<10x1xi32>
      %518 = arith.cmpi eq, %39, %517 : vector<10x1xi32>
      %519 = vector.extract_strided_slice %514 {offsets = [0, 0], sizes = [1, 128], strides = [1, 1]} : vector<2x128xf32> to vector<1x128xf32>
      %520 = vector.shape_cast %518 : vector<10x1xi1> to vector<10x1xi1>
      %521 = vector.broadcast %520 : vector<10x1xi1> to vector<10x128xi1>
      %522 = vector.shape_cast %519 : vector<1x128xf32> to vector<1x128xf32>
      %523 = vector.broadcast %522 : vector<1x128xf32> to vector<10x128xf32>
      %524 = arith.select %521, %523, %515 : vector<10x128xi1>, vector<10x128xf32>
      %c5_i32_145 = arith.constant 5 : i32
      %525 = arith.addi %c5_i32_145, %arg0 : i32
      %526 = vector.broadcast %525 : i32 to vector<10x1xi32>
      %527 = arith.cmpi eq, %39, %526 : vector<10x1xi32>
      %528 = vector.extract_strided_slice %514 {offsets = [1, 0], sizes = [1, 128], strides = [1, 1]} : vector<2x128xf32> to vector<1x128xf32>
      %529 = vector.shape_cast %527 : vector<10x1xi1> to vector<10x1xi1>
      %530 = vector.broadcast %529 : vector<10x1xi1> to vector<10x128xi1>
      %531 = vector.shape_cast %528 : vector<1x128xf32> to vector<1x128xf32>
      %532 = vector.broadcast %531 : vector<1x128xf32> to vector<10x128xf32>
      %533 = arith.select %530, %532, %524 : vector<10x128xi1>, vector<10x128xf32>
      %c0_146 = arith.constant 0 : index
      %c0_147 = arith.constant 0 : index
      %534 = vector.load %arg9[%c0_146, %c0_147] : memref<10x128xf32, #tpu.memory_space<vmem>>, vector<10x128xf32>
      tpu.vector_store %arg9[%c0_146, %c0_147], %533 {strides = array<i32>} : memref<10x128xf32, #tpu.memory_space<vmem>>, vector<10x128xf32>,
      %535 = tpu.iota {dimensions = array<i32: 1>} : vector<2x128xi32>
      %cst_148 = arith.constant dense<0xFF800000> : vector<2xf32>
      %536 = vector.multi_reduction <maximumf>, %514, %cst_148 [1] : vector<2x128xf32> to vector<2xf32>
      %537 = vector.shape_cast %536 : vector<2xf32> to vector<2x1xf32>
      %538 = vector.broadcast %537 : vector<2x1xf32> to vector<2x128xf32>
      %539 = arith.cmpf oge, %514, %538 : vector<2x128xf32>
      %c128_i32 = arith.constant 128 : i32
      %540 = vector.broadcast %c128_i32 : i32 to vector<2x128xi32>
      %541 = arith.select %539, %535, %540 : vector<2x128xi1>, vector<2x128xi32>
      %cst_149 = arith.constant dense<2147483647> : vector<2xi32>
      %542 = vector.multi_reduction <minsi>, %541, %cst_149 [1] : vector<2x128xi32> to vector<2xi32>
      %543 = vector.shape_cast %542 : vector<2xi32> to vector<2x1xi32>
      %544 = vector.broadcast %543 : vector<2x1xi32> to vector<2x128xi32>
      %545 = arith.cmpi eq, %535, %544 : vector<2x128xi32>
      %546 = arith.extui %545 : vector<2x128xi1> to vector<2x128xi32>
      %547 = arith.sitofp %546 : vector<2x128xi32> to vector<2x128xf32>
      %cst_150 = arith.constant dense<0.000000e+00> : vector<2x32xf32>
      %548 = tpu.matmul %547, %2, %cst_150 {dimension_numbers = #tpu.dot_dimension_numbers<[1], [0], [0], [1], [0, 0, 1, 1], [], []>} : vector<2x128xf32>, vector<128x32xf32>, vector<2x32xf32> -> vector<2x32xf32>
      %c0_151 = arith.constant 0 : index
      %c0_152 = arith.constant 0 : index
      %549 = vector.load %arg10[%c0_151, %c0_152] : memref<10x32xf32, #tpu.memory_space<vmem>>, vector<10x32xf32>
      %c0_i32_153 = arith.constant 0 : i32
      %550 = arith.addi %c0_i32_153, %arg0 : i32
      %c1_i32 = arith.constant 1 : i32
      %551 = arith.addi %550, %c1_i32 : i32
      %552 = vector.broadcast %551 : i32 to vector<10x1xi32>
      %553 = arith.cmpi eq, %39, %552 : vector<10x1xi32>
      %c1_i32_154 = arith.constant 1 : i32
      %554 = arith.addi %arg0, %c1_i32_154 : i32
      %c5_i32_155 = arith.constant 5 : i32
      %555 = arith.cmpi slt, %554, %c5_i32_155 : i32
      %556 = vector.broadcast %555 : i1 to vector<10x1xi1>
      %557 = arith.andi %553, %556 : vector<10x1xi1>
      %558 = vector.extract_strided_slice %548 {offsets = [0, 0], sizes = [1, 32], strides = [1, 1]} : vector<2x32xf32> to vector<1x32xf32>
      %559 = arith.addf %54, %558 : vector<1x32xf32>
      %560 = vector.shape_cast %557 : vector<10x1xi1> to vector<10x1xi1>
      %561 = vector.broadcast %560 : vector<10x1xi1> to vector<10x32xi1>
      %562 = vector.shape_cast %559 : vector<1x32xf32> to vector<1x32xf32>
      %563 = vector.broadcast %562 : vector<1x32xf32> to vector<10x32xf32>
      %564 = arith.select %561, %563, %549 : vector<10x32xi1>, vector<10x32xf32>
      %c5_i32_156 = arith.constant 5 : i32
      %565 = arith.addi %c5_i32_156, %arg0 : i32
      %c1_i32_157 = arith.constant 1 : i32
      %566 = arith.addi %565, %c1_i32_157 : i32
      %567 = vector.broadcast %566 : i32 to vector<10x1xi32>
      %568 = arith.cmpi eq, %39, %567 : vector<10x1xi32>
      %c1_i32_158 = arith.constant 1 : i32
      %569 = arith.addi %arg0, %c1_i32_158 : i32
      %c5_i32_159 = arith.constant 5 : i32
      %570 = arith.cmpi slt, %569, %c5_i32_159 : i32
      %571 = vector.broadcast %570 : i1 to vector<10x1xi1>
      %572 = arith.andi %568, %571 : vector<10x1xi1>
      %573 = vector.extract_strided_slice %548 {offsets = [1, 0], sizes = [1, 32], strides = [1, 1]} : vector<2x32xf32> to vector<1x32xf32>
      %574 = arith.addf %54, %573 : vector<1x32xf32>
      %575 = vector.shape_cast %572 : vector<10x1xi1> to vector<10x1xi1>
      %576 = vector.broadcast %575 : vector<10x1xi1> to vector<10x32xi1>
      %577 = vector.shape_cast %574 : vector<1x32xf32> to vector<1x32xf32>
      %578 = vector.broadcast %577 : vector<1x32xf32> to vector<10x32xf32>
      %579 = arith.select %576, %578, %564 : vector<10x32xi1>, vector<10x32xf32>
      %c0_160 = arith.constant 0 : index
      %c0_161 = arith.constant 0 : index
      %580 = vector.load %arg10[%c0_160, %c0_161] : memref<10x32xf32, #tpu.memory_space<vmem>>, vector<10x32xf32>
      tpu.vector_store %arg10[%c0_160, %c0_161], %579 {strides = array<i32>} : memref<10x32xf32, #tpu.memory_space<vmem>>, vector<10x32xf32>,
    } else {
    }
    %c5_i32_17 = arith.constant 5 : i32
    %46 = arith.cmpi sge, %arg0, %c5_i32_17 : i32
    %47 = arith.extui %46 : i1 to i32
    %c0_i32_18 = arith.constant 0 : i32
    %48 = arith.cmpi ne, %47, %c0_i32_18 : i32
    scf.if %48 {
      %c0_19 = arith.constant 0 : index
      %c0_20 = arith.constant 0 : index
      %49 = vector.load %arg9[%c0_19, %c0_20] : memref<10x128xf32, #tpu.memory_space<vmem>>, vector<10x128xf32>
      %50 = tpu.iota {dimensions = array<i32: 1>} : vector<10x128xi32>
      %cst = arith.constant dense<0xFF800000> : vector<10xf32>
      %51 = vector.multi_reduction <maximumf>, %49, %cst [1] : vector<10x128xf32> to vector<10xf32>
      %52 = vector.shape_cast %51 : vector<10xf32> to vector<10x1xf32>
      %53 = vector.broadcast %52 : vector<10x1xf32> to vector<10x128xf32>
      %54 = arith.cmpf oge, %49, %53 : vector<10x128xf32>
      %c128_i32 = arith.constant 128 : i32
      %55 = vector.broadcast %c128_i32 : i32 to vector<10x128xi32>
      %56 = arith.select %54, %50, %55 : vector<10x128xi1>, vector<10x128xi32>
      %cst_21 = arith.constant dense<2147483647> : vector<10xi32>
      %57 = vector.multi_reduction <minsi>, %56, %cst_21 [1] : vector<10x128xi32> to vector<10xi32>
      %58 = vector.shape_cast %57 : vector<10xi32> to vector<10x1xi32>
      %59 = vector.broadcast %58 : vector<10x1xi32> to vector<10x128xi32>
      %60 = arith.cmpi eq, %50, %59 : vector<10x128xi32>
      %61 = arith.extui %60 : vector<10x128xi1> to vector<10x128xi32>
      %62 = arith.sitofp %61 : vector<10x128xi32> to vector<10x128xf32>
      %cst_22 = arith.constant dense<0.000000e+00> : vector<10x32xf32>
      %63 = tpu.matmul %62, %2, %cst_22 {dimension_numbers = #tpu.dot_dimension_numbers<[1], [0], [0], [1], [0, 0, 1, 1], [], []>} : vector<10x128xf32>, vector<128x32xf32>, vector<10x32xf32> -> vector<10x32xf32>
      %c0_i32_23 = arith.constant 0 : i32
      %64 = vector.broadcast %c0_i32_23 : i32 to vector<10x1xi32>
      %65 = arith.cmpi eq, %58, %64 : vector<10x1xi32>
      %66 = arith.extui %65 : vector<10x1xi1> to vector<10x1xi32>
      %67 = arith.sitofp %66 : vector<10x1xi32> to vector<10x1xf32>
      %68 = vector.extract_strided_slice %2 {offsets = [10, 0], sizes = [1, 32], strides = [1, 1]} : vector<128x32xf32> to vector<1x32xf32>
      %69 = tpu.iota {dimensions = array<i32: 0>} : vector<5x5xi32>
      %70 = tpu.iota {dimensions = array<i32: 1>} : vector<5x5xi32>
      %c1_i32 = arith.constant 1 : i32
      %71 = vector.broadcast %c1_i32 : i32 to vector<5x5xi32>
      %72 = arith.addi %69, %71 : vector<5x5xi32>
      %73 = arith.cmpi eq, %70, %72 : vector<5x5xi32>
      %74 = tpu.iota {dimensions = array<i32: 1>} : vector<1x5xi32>
      %c0_24 = arith.constant 0 : index
      %c0_25 = arith.constant 0 : index
      %75 = vector.load %arg10[%c0_24, %c0_25] : memref<10x32xf32, #tpu.memory_space<vmem>>, vector<1x32xf32>
      tpu.vector_store %arg10[%c0_24, %c0_25], %68 {strides = array<i32>} : memref<10x32xf32, #tpu.memory_space<vmem>>, vector<1x32xf32>,
      %76 = vector.extract_strided_slice %1 {offsets = [0, 0], sizes = [4, 32], strides = [1, 1]} : vector<5x32xf32> to vector<4x32xf32>
      %77 = vector.extract_strided_slice %63 {offsets = [0, 0], sizes = [4, 32], strides = [1, 1]} : vector<10x32xf32> to vector<4x32xf32>
      %78 = arith.addf %76, %77 : vector<4x32xf32>
      %c1 = arith.constant 1 : index
      %c0_26 = arith.constant 0 : index
      %79 = vector.load %arg10[%c1, %c0_26] : memref<10x32xf32, #tpu.memory_space<vmem>>, vector<4x32xf32>
      tpu.vector_store %arg10[%c1, %c0_26], %78 {strides = array<i32>} : memref<10x32xf32, #tpu.memory_space<vmem>>, vector<4x32xf32>,
      %cst_27 = arith.constant 0.000000e+00 : f32
      %80 = vector.broadcast %cst_27 : f32 to vector<1x1xf32>
      %cst_28 = arith.constant 0.000000e+00 : f32
      %81 = vector.broadcast %cst_28 : f32 to vector<1x5xf32>
      %82 = vector.extract_strided_slice %67 {offsets = [0, 0], sizes = [1, 1], strides = [1, 1]} : vector<10x1xf32> to vector<1x1xf32>
      %83 = arith.maximumf %80, %82 : vector<1x1xf32>
      %c1_i32_29 = arith.constant 1 : i32
      %84 = vector.broadcast %c1_i32_29 : i32 to vector<1x5xi32>
      %85 = arith.cmpi eq, %74, %84 : vector<1x5xi32>
      %86 = arith.extui %85 : vector<1x5xi1> to vector<1x5xi32>
      %87 = arith.sitofp %86 : vector<1x5xi32> to vector<1x5xf32>
      %88 = vector.broadcast %83 : vector<1x1xf32> to vector<1x5xf32>
      %89 = arith.mulf %88, %87 : vector<1x5xf32>
      %90 = arith.addf %81, %89 : vector<1x5xf32>
      %91 = vector.extract_strided_slice %67 {offsets = [1, 0], sizes = [1, 1], strides = [1, 1]} : vector<10x1xf32> to vector<1x1xf32>
      %92 = arith.maximumf %83, %91 : vector<1x1xf32>
      %c2_i32 = arith.constant 2 : i32
      %93 = vector.broadcast %c2_i32 : i32 to vector<1x5xi32>
      %94 = arith.cmpi eq, %74, %93 : vector<1x5xi32>
      %95 = arith.extui %94 : vector<1x5xi1> to vector<1x5xi32>
      %96 = arith.sitofp %95 : vector<1x5xi32> to vector<1x5xf32>
      %97 = vector.broadcast %92 : vector<1x1xf32> to vector<1x5xf32>
      %98 = arith.mulf %97, %96 : vector<1x5xf32>
      %99 = arith.addf %90, %98 : vector<1x5xf32>
      %100 = vector.extract_strided_slice %67 {offsets = [2, 0], sizes = [1, 1], strides = [1, 1]} : vector<10x1xf32> to vector<1x1xf32>
      %101 = arith.maximumf %92, %100 : vector<1x1xf32>
      %c3_i32 = arith.constant 3 : i32
      %102 = vector.broadcast %c3_i32 : i32 to vector<1x5xi32>
      %103 = arith.cmpi eq, %74, %102 : vector<1x5xi32>
      %104 = arith.extui %103 : vector<1x5xi1> to vector<1x5xi32>
      %105 = arith.sitofp %104 : vector<1x5xi32> to vector<1x5xf32>
      %106 = vector.broadcast %101 : vector<1x1xf32> to vector<1x5xf32>
      %107 = arith.mulf %106, %105 : vector<1x5xf32>
      %108 = arith.addf %99, %107 : vector<1x5xf32>
      %109 = vector.extract_strided_slice %67 {offsets = [3, 0], sizes = [1, 1], strides = [1, 1]} : vector<10x1xf32> to vector<1x1xf32>
      %110 = arith.maximumf %101, %109 : vector<1x1xf32>
      %c4_i32 = arith.constant 4 : i32
      %111 = vector.broadcast %c4_i32 : i32 to vector<1x5xi32>
      %112 = arith.cmpi eq, %74, %111 : vector<1x5xi32>
      %113 = arith.extui %112 : vector<1x5xi1> to vector<1x5xi32>
      %114 = arith.sitofp %113 : vector<1x5xi32> to vector<1x5xf32>
      %115 = vector.broadcast %110 : vector<1x1xf32> to vector<1x5xf32>
      %116 = arith.mulf %115, %114 : vector<1x5xf32>
      %117 = arith.addf %108, %116 : vector<1x5xf32>
      %118 = vector.shape_cast %117 : vector<1x5xf32> to vector<1x5xf32>
      %119 = vector.broadcast %118 : vector<1x5xf32> to vector<5x5xf32>
      %cst_30 = arith.constant 0.000000e+00 : f32
      %120 = vector.broadcast %cst_30 : f32 to vector<5x5xf32>
      %121 = arith.cmpf ogt, %119, %120 : vector<5x5xf32>
      %122 = arith.ori %73, %121 : vector<5x5xi1>
      %cst_31 = arith.constant -1.000000e+09 : f32
      %cst_32 = arith.constant 0.000000e+00 : f32
      %123 = vector.broadcast %cst_31 : f32 to vector<5x5xf32>
      %124 = vector.broadcast %cst_32 : f32 to vector<5x5xf32>
      %125 = arith.select %122, %123, %124 : vector<5x5xi1>, vector<5x5xf32>
      %c5 = arith.constant 5 : index
      %c0_33 = arith.constant 0 : index
      %126 = vector.load %arg10[%c5, %c0_33] : memref<10x32xf32, #tpu.memory_space<vmem>>, vector<1x32xf32>
      tpu.vector_store %arg10[%c5, %c0_33], %68 {strides = array<i32>} : memref<10x32xf32, #tpu.memory_space<vmem>>, vector<1x32xf32>,
      %127 = vector.extract_strided_slice %1 {offsets = [0, 0], sizes = [4, 32], strides = [1, 1]} : vector<5x32xf32> to vector<4x32xf32>
      %128 = vector.extract_strided_slice %63 {offsets = [5, 0], sizes = [4, 32], strides = [1, 1]} : vector<10x32xf32> to vector<4x32xf32>
      %129 = arith.addf %127, %128 : vector<4x32xf32>
      %c6 = arith.constant 6 : index
      %c0_34 = arith.constant 0 : index
      %130 = vector.load %arg10[%c6, %c0_34] : memref<10x32xf32, #tpu.memory_space<vmem>>, vector<4x32xf32>
      tpu.vector_store %arg10[%c6, %c0_34], %129 {strides = array<i32>} : memref<10x32xf32, #tpu.memory_space<vmem>>, vector<4x32xf32>,
      %cst_35 = arith.constant 0.000000e+00 : f32
      %131 = vector.broadcast %cst_35 : f32 to vector<1x1xf32>
      %cst_36 = arith.constant 0.000000e+00 : f32
      %132 = vector.broadcast %cst_36 : f32 to vector<1x5xf32>
      %133 = vector.extract_strided_slice %67 {offsets = [5, 0], sizes = [1, 1], strides = [1, 1]} : vector<10x1xf32> to vector<1x1xf32>
      %134 = arith.maximumf %131, %133 : vector<1x1xf32>
      %c1_i32_37 = arith.constant 1 : i32
      %135 = vector.broadcast %c1_i32_37 : i32 to vector<1x5xi32>
      %136 = arith.cmpi eq, %74, %135 : vector<1x5xi32>
      %137 = arith.extui %136 : vector<1x5xi1> to vector<1x5xi32>
      %138 = arith.sitofp %137 : vector<1x5xi32> to vector<1x5xf32>
      %139 = vector.broadcast %134 : vector<1x1xf32> to vector<1x5xf32>
      %140 = arith.mulf %139, %138 : vector<1x5xf32>
      %141 = arith.addf %132, %140 : vector<1x5xf32>
      %142 = vector.extract_strided_slice %67 {offsets = [6, 0], sizes = [1, 1], strides = [1, 1]} : vector<10x1xf32> to vector<1x1xf32>
      %143 = arith.maximumf %134, %142 : vector<1x1xf32>
      %c2_i32_38 = arith.constant 2 : i32
      %144 = vector.broadcast %c2_i32_38 : i32 to vector<1x5xi32>
      %145 = arith.cmpi eq, %74, %144 : vector<1x5xi32>
      %146 = arith.extui %145 : vector<1x5xi1> to vector<1x5xi32>
      %147 = arith.sitofp %146 : vector<1x5xi32> to vector<1x5xf32>
      %148 = vector.broadcast %143 : vector<1x1xf32> to vector<1x5xf32>
      %149 = arith.mulf %148, %147 : vector<1x5xf32>
      %150 = arith.addf %141, %149 : vector<1x5xf32>
      %151 = vector.extract_strided_slice %67 {offsets = [7, 0], sizes = [1, 1], strides = [1, 1]} : vector<10x1xf32> to vector<1x1xf32>
      %152 = arith.maximumf %143, %151 : vector<1x1xf32>
      %c3_i32_39 = arith.constant 3 : i32
      %153 = vector.broadcast %c3_i32_39 : i32 to vector<1x5xi32>
      %154 = arith.cmpi eq, %74, %153 : vector<1x5xi32>
      %155 = arith.extui %154 : vector<1x5xi1> to vector<1x5xi32>
      %156 = arith.sitofp %155 : vector<1x5xi32> to vector<1x5xf32>
      %157 = vector.broadcast %152 : vector<1x1xf32> to vector<1x5xf32>
      %158 = arith.mulf %157, %156 : vector<1x5xf32>
      %159 = arith.addf %150, %158 : vector<1x5xf32>
      %160 = vector.extract_strided_slice %67 {offsets = [8, 0], sizes = [1, 1], strides = [1, 1]} : vector<10x1xf32> to vector<1x1xf32>
      %161 = arith.maximumf %152, %160 : vector<1x1xf32>
      %c4_i32_40 = arith.constant 4 : i32
      %162 = vector.broadcast %c4_i32_40 : i32 to vector<1x5xi32>
      %163 = arith.cmpi eq, %74, %162 : vector<1x5xi32>
      %164 = arith.extui %163 : vector<1x5xi1> to vector<1x5xi32>
      %165 = arith.sitofp %164 : vector<1x5xi32> to vector<1x5xf32>
      %166 = vector.broadcast %161 : vector<1x1xf32> to vector<1x5xf32>
      %167 = arith.mulf %166, %165 : vector<1x5xf32>
      %168 = arith.addf %159, %167 : vector<1x5xf32>
      %169 = vector.shape_cast %168 : vector<1x5xf32> to vector<1x5xf32>
      %170 = vector.broadcast %169 : vector<1x5xf32> to vector<5x5xf32>
      %cst_41 = arith.constant 0.000000e+00 : f32
      %171 = vector.broadcast %cst_41 : f32 to vector<5x5xf32>
      %172 = arith.cmpf ogt, %170, %171 : vector<5x5xf32>
      %173 = arith.ori %73, %172 : vector<5x5xi1>
      %cst_42 = arith.constant -1.000000e+09 : f32
      %cst_43 = arith.constant 0.000000e+00 : f32
      %174 = vector.broadcast %cst_42 : f32 to vector<5x5xf32>
      %175 = vector.broadcast %cst_43 : f32 to vector<5x5xf32>
      %176 = arith.select %173, %174, %175 : vector<5x5xi1>, vector<5x5xf32>
      %177 = tpu.concatenate %1, %1 in 0 : vector<5x32xf32>, vector<5x32xf32> -> vector<10x32xf32>
      %c0_44 = arith.constant 0 : index
      %c0_45 = arith.constant 0 : index
      %178 = vector.load %arg10[%c0_44, %c0_45] : memref<10x32xf32, #tpu.memory_space<vmem>>, vector<10x32xf32>
      %cst_46 = arith.constant dense<0.000000e+00> : vector<10xf32>
      %179 = vector.multi_reduction <add>, %177, %cst_46 [1] : vector<10x32xf32> to vector<10xf32>
      %180 = vector.shape_cast %179 : vector<10xf32> to vector<10x1xf32>
      %cst_47 = arith.constant 3.200000e+01 : f32
      %181 = vector.broadcast %cst_47 : f32 to vector<10x1xf32>
      %182 = arith.divf %180, %181 : vector<10x1xf32>
      %183 = vector.broadcast %182 : vector<10x1xf32> to vector<10x32xf32>
      %184 = arith.subf %177, %183 : vector<10x32xf32>
      %185 = arith.mulf %184, %184 : vector<10x32xf32>
      %cst_48 = arith.constant dense<0.000000e+00> : vector<10xf32>
      %186 = vector.multi_reduction <add>, %185, %cst_48 [1] : vector<10x32xf32> to vector<10xf32>
      %187 = vector.shape_cast %186 : vector<10xf32> to vector<10x1xf32>
      %cst_49 = arith.constant 3.200000e+01 : f32
      %188 = vector.broadcast %cst_49 : f32 to vector<10x1xf32>
      %189 = arith.divf %187, %188 : vector<10x1xf32>
      %190 = vector.broadcast %182 : vector<10x1xf32> to vector<10x32xf32>
      %191 = arith.subf %177, %190 : vector<10x32xf32>
      %cst_50 = arith.constant 9.99999974E-6 : f32
      %192 = vector.broadcast %cst_50 : f32 to vector<10x1xf32>
      %193 = arith.addf %189, %192 : vector<10x1xf32>
      %194 = math.rsqrt %193 : vector<10x1xf32>
      %195 = vector.broadcast %194 : vector<10x1xf32> to vector<10x32xf32>
      %196 = arith.mulf %191, %195 : vector<10x32xf32>
      %197 = vector.broadcast %26 : vector<1x32xf32> to vector<10x32xf32>
      %198 = arith.mulf %196, %197 : vector<10x32xf32>
      %199 = vector.broadcast %27 : vector<1x32xf32> to vector<10x32xf32>
      %200 = arith.addf %198, %199 : vector<10x32xf32>
      %cst_51 = arith.constant dense<0.000000e+00> : vector<10xf32>
      %201 = vector.multi_reduction <add>, %178, %cst_51 [1] : vector<10x32xf32> to vector<10xf32>
      %202 = vector.shape_cast %201 : vector<10xf32> to vector<10x1xf32>
      %cst_52 = arith.constant 3.200000e+01 : f32
      %203 = vector.broadcast %cst_52 : f32 to vector<10x1xf32>
      %204 = arith.divf %202, %203 : vector<10x1xf32>
      %205 = vector.broadcast %204 : vector<10x1xf32> to vector<10x32xf32>
      %206 = arith.subf %178, %205 : vector<10x32xf32>
      %207 = arith.mulf %206, %206 : vector<10x32xf32>
      %cst_53 = arith.constant dense<0.000000e+00> : vector<10xf32>
      %208 = vector.multi_reduction <add>, %207, %cst_53 [1] : vector<10x32xf32> to vector<10xf32>
      %209 = vector.shape_cast %208 : vector<10xf32> to vector<10x1xf32>
      %cst_54 = arith.constant 3.200000e+01 : f32
      %210 = vector.broadcast %cst_54 : f32 to vector<10x1xf32>
      %211 = arith.divf %209, %210 : vector<10x1xf32>
      %212 = vector.broadcast %204 : vector<10x1xf32> to vector<10x32xf32>
      %213 = arith.subf %178, %212 : vector<10x32xf32>
      %cst_55 = arith.constant 9.99999974E-6 : f32
      %214 = vector.broadcast %cst_55 : f32 to vector<10x1xf32>
      %215 = arith.addf %211, %214 : vector<10x1xf32>
      %216 = math.rsqrt %215 : vector<10x1xf32>
      %217 = vector.broadcast %216 : vector<10x1xf32> to vector<10x32xf32>
      %218 = arith.mulf %213, %217 : vector<10x32xf32>
      %219 = vector.broadcast %28 : vector<1x32xf32> to vector<10x32xf32>
      %220 = arith.mulf %218, %219 : vector<10x32xf32>
      %221 = vector.broadcast %29 : vector<1x32xf32> to vector<10x32xf32>
      %222 = arith.addf %220, %221 : vector<10x32xf32>
      %cst_56 = arith.constant dense<0.000000e+00> : vector<10x32xf32>
      %223 = tpu.matmul %200, %8, %cst_56 {dimension_numbers = #tpu.dot_dimension_numbers<[1], [0], [0], [1], [0, 0, 1, 1], [], []>} : vector<10x32xf32>, vector<32x32xf32>, vector<10x32xf32> -> vector<10x32xf32>
      %224 = vector.broadcast %18 : vector<1x32xf32> to vector<10x32xf32>
      %225 = arith.addf %223, %224 : vector<10x32xf32>
      %cst_57 = arith.constant dense<0.000000e+00> : vector<10x32xf32>
      %226 = tpu.matmul %222, %9, %cst_57 {dimension_numbers = #tpu.dot_dimension_numbers<[1], [0], [0], [1], [0, 0, 1, 1], [], []>} : vector<10x32xf32>, vector<32x32xf32>, vector<10x32xf32> -> vector<10x32xf32>
      %227 = vector.broadcast %19 : vector<1x32xf32> to vector<10x32xf32>
      %228 = arith.addf %226, %227 : vector<10x32xf32>
      %cst_58 = arith.constant dense<0.000000e+00> : vector<10x32xf32>
      %229 = tpu.matmul %222, %10, %cst_58 {dimension_numbers = #tpu.dot_dimension_numbers<[1], [0], [0], [1], [0, 0, 1, 1], [], []>} : vector<10x32xf32>, vector<32x32xf32>, vector<10x32xf32> -> vector<10x32xf32>
      %230 = vector.broadcast %20 : vector<1x32xf32> to vector<10x32xf32>
      %231 = arith.addf %229, %230 : vector<10x32xf32>
      %232 = vector.extract_strided_slice %225 {offsets = [0, 0], sizes = [5, 32], strides = [1, 1]} : vector<10x32xf32> to vector<5x32xf32>
      %233 = vector.extract_strided_slice %228 {offsets = [0, 0], sizes = [5, 32], strides = [1, 1]} : vector<10x32xf32> to vector<5x32xf32>
      %234 = vector.extract_strided_slice %231 {offsets = [0, 0], sizes = [5, 32], strides = [1, 1]} : vector<10x32xf32> to vector<5x32xf32>
      %235 = vector.extract_strided_slice %232 {offsets = [0, 0], sizes = [5, 8], strides = [1, 1]} : vector<5x32xf32> to vector<5x8xf32>
      %236 = vector.extract_strided_slice %233 {offsets = [0, 0], sizes = [5, 8], strides = [1, 1]} : vector<5x32xf32> to vector<5x8xf32>
      %237 = tpu.transpose %236, [1, 0] : vector<5x8xf32> -> vector<8x5xf32>
      %cst_59 = arith.constant dense<0.000000e+00> : vector<5x5xf32>
      %238 = tpu.matmul %235, %237, %cst_59 {dimension_numbers = #tpu.dot_dimension_numbers<[1], [0], [0], [1], [0, 0, 1, 1], [], []>} : vector<5x8xf32>, vector<8x5xf32>, vector<5x5xf32> -> vector<5x5xf32>
      %cst_60 = arith.constant 0.353553385 : f32
      %239 = vector.broadcast %cst_60 : f32 to vector<5x5xf32>
      %240 = arith.mulf %238, %239 : vector<5x5xf32>
      %241 = arith.addf %240, %125 : vector<5x5xf32>
      %cst_61 = arith.constant dense<0xFF800000> : vector<5xf32>
      %242 = vector.multi_reduction <maximumf>, %241, %cst_61 [1] : vector<5x5xf32> to vector<5xf32>
      %243 = vector.shape_cast %242 : vector<5xf32> to vector<5x1xf32>
      %244 = vector.broadcast %243 : vector<5x1xf32> to vector<5x5xf32>
      %245 = arith.subf %241, %244 : vector<5x5xf32>
      %246 = math.exp %245 : vector<5x5xf32>
      %cst_62 = arith.constant dense<0.000000e+00> : vector<5xf32>
      %247 = vector.multi_reduction <add>, %246, %cst_62 [1] : vector<5x5xf32> to vector<5xf32>
      %248 = vector.shape_cast %247 : vector<5xf32> to vector<5x1xf32>
      %249 = vector.broadcast %248 : vector<5x1xf32> to vector<5x5xf32>
      %250 = arith.divf %246, %249 : vector<5x5xf32>
      %251 = vector.extract_strided_slice %234 {offsets = [0, 0], sizes = [5, 8], strides = [1, 1]} : vector<5x32xf32> to vector<5x8xf32>
      %cst_63 = arith.constant dense<0.000000e+00> : vector<5x8xf32>
      %252 = tpu.matmul %250, %251, %cst_63 {dimension_numbers = #tpu.dot_dimension_numbers<[1], [0], [0], [1], [0, 0, 1, 1], [], []>} : vector<5x5xf32>, vector<5x8xf32>, vector<5x8xf32> -> vector<5x8xf32>
      %253 = vector.extract_strided_slice %232 {offsets = [0, 8], sizes = [5, 8], strides = [1, 1]} : vector<5x32xf32> to vector<5x8xf32>
      %254 = vector.extract_strided_slice %233 {offsets = [0, 8], sizes = [5, 8], strides = [1, 1]} : vector<5x32xf32> to vector<5x8xf32>
      %255 = tpu.transpose %254, [1, 0] : vector<5x8xf32> -> vector<8x5xf32>
      %cst_64 = arith.constant dense<0.000000e+00> : vector<5x5xf32>
      %256 = tpu.matmul %253, %255, %cst_64 {dimension_numbers = #tpu.dot_dimension_numbers<[1], [0], [0], [1], [0, 0, 1, 1], [], []>} : vector<5x8xf32>, vector<8x5xf32>, vector<5x5xf32> -> vector<5x5xf32>
      %cst_65 = arith.constant 0.353553385 : f32
      %257 = vector.broadcast %cst_65 : f32 to vector<5x5xf32>
      %258 = arith.mulf %256, %257 : vector<5x5xf32>
      %259 = arith.addf %258, %125 : vector<5x5xf32>
      %cst_66 = arith.constant dense<0xFF800000> : vector<5xf32>
      %260 = vector.multi_reduction <maximumf>, %259, %cst_66 [1] : vector<5x5xf32> to vector<5xf32>
      %261 = vector.shape_cast %260 : vector<5xf32> to vector<5x1xf32>
      %262 = vector.broadcast %261 : vector<5x1xf32> to vector<5x5xf32>
      %263 = arith.subf %259, %262 : vector<5x5xf32>
      %264 = math.exp %263 : vector<5x5xf32>
      %cst_67 = arith.constant dense<0.000000e+00> : vector<5xf32>
      %265 = vector.multi_reduction <add>, %264, %cst_67 [1] : vector<5x5xf32> to vector<5xf32>
      %266 = vector.shape_cast %265 : vector<5xf32> to vector<5x1xf32>
      %267 = vector.broadcast %266 : vector<5x1xf32> to vector<5x5xf32>
      %268 = arith.divf %264, %267 : vector<5x5xf32>
      %269 = vector.extract_strided_slice %234 {offsets = [0, 8], sizes = [5, 8], strides = [1, 1]} : vector<5x32xf32> to vector<5x8xf32>
      %cst_68 = arith.constant dense<0.000000e+00> : vector<5x8xf32>
      %270 = tpu.matmul %268, %269, %cst_68 {dimension_numbers = #tpu.dot_dimension_numbers<[1], [0], [0], [1], [0, 0, 1, 1], [], []>} : vector<5x5xf32>, vector<5x8xf32>, vector<5x8xf32> -> vector<5x8xf32>
      %271 = vector.extract_strided_slice %232 {offsets = [0, 16], sizes = [5, 8], strides = [1, 1]} : vector<5x32xf32> to vector<5x8xf32>
      %272 = vector.extract_strided_slice %233 {offsets = [0, 16], sizes = [5, 8], strides = [1, 1]} : vector<5x32xf32> to vector<5x8xf32>
      %273 = tpu.transpose %272, [1, 0] : vector<5x8xf32> -> vector<8x5xf32>
      %cst_69 = arith.constant dense<0.000000e+00> : vector<5x5xf32>
      %274 = tpu.matmul %271, %273, %cst_69 {dimension_numbers = #tpu.dot_dimension_numbers<[1], [0], [0], [1], [0, 0, 1, 1], [], []>} : vector<5x8xf32>, vector<8x5xf32>, vector<5x5xf32> -> vector<5x5xf32>
      %cst_70 = arith.constant 0.353553385 : f32
      %275 = vector.broadcast %cst_70 : f32 to vector<5x5xf32>
      %276 = arith.mulf %274, %275 : vector<5x5xf32>
      %277 = arith.addf %276, %125 : vector<5x5xf32>
      %cst_71 = arith.constant dense<0xFF800000> : vector<5xf32>
      %278 = vector.multi_reduction <maximumf>, %277, %cst_71 [1] : vector<5x5xf32> to vector<5xf32>
      %279 = vector.shape_cast %278 : vector<5xf32> to vector<5x1xf32>
      %280 = vector.broadcast %279 : vector<5x1xf32> to vector<5x5xf32>
      %281 = arith.subf %277, %280 : vector<5x5xf32>
      %282 = math.exp %281 : vector<5x5xf32>
      %cst_72 = arith.constant dense<0.000000e+00> : vector<5xf32>
      %283 = vector.multi_reduction <add>, %282, %cst_72 [1] : vector<5x5xf32> to vector<5xf32>
      %284 = vector.shape_cast %283 : vector<5xf32> to vector<5x1xf32>
      %285 = vector.broadcast %284 : vector<5x1xf32> to vector<5x5xf32>
      %286 = arith.divf %282, %285 : vector<5x5xf32>
      %287 = vector.extract_strided_slice %234 {offsets = [0, 16], sizes = [5, 8], strides = [1, 1]} : vector<5x32xf32> to vector<5x8xf32>
      %cst_73 = arith.constant dense<0.000000e+00> : vector<5x8xf32>
      %288 = tpu.matmul %286, %287, %cst_73 {dimension_numbers = #tpu.dot_dimension_numbers<[1], [0], [0], [1], [0, 0, 1, 1], [], []>} : vector<5x5xf32>, vector<5x8xf32>, vector<5x8xf32> -> vector<5x8xf32>
      %289 = vector.extract_strided_slice %232 {offsets = [0, 24], sizes = [5, 8], strides = [1, 1]} : vector<5x32xf32> to vector<5x8xf32>
      %290 = vector.extract_strided_slice %233 {offsets = [0, 24], sizes = [5, 8], strides = [1, 1]} : vector<5x32xf32> to vector<5x8xf32>
      %291 = tpu.transpose %290, [1, 0] : vector<5x8xf32> -> vector<8x5xf32>
      %cst_74 = arith.constant dense<0.000000e+00> : vector<5x5xf32>
      %292 = tpu.matmul %289, %291, %cst_74 {dimension_numbers = #tpu.dot_dimension_numbers<[1], [0], [0], [1], [0, 0, 1, 1], [], []>} : vector<5x8xf32>, vector<8x5xf32>, vector<5x5xf32> -> vector<5x5xf32>
      %cst_75 = arith.constant 0.353553385 : f32
      %293 = vector.broadcast %cst_75 : f32 to vector<5x5xf32>
      %294 = arith.mulf %292, %293 : vector<5x5xf32>
      %295 = arith.addf %294, %125 : vector<5x5xf32>
      %cst_76 = arith.constant dense<0xFF800000> : vector<5xf32>
      %296 = vector.multi_reduction <maximumf>, %295, %cst_76 [1] : vector<5x5xf32> to vector<5xf32>
      %297 = vector.shape_cast %296 : vector<5xf32> to vector<5x1xf32>
      %298 = vector.broadcast %297 : vector<5x1xf32> to vector<5x5xf32>
      %299 = arith.subf %295, %298 : vector<5x5xf32>
      %300 = math.exp %299 : vector<5x5xf32>
      %cst_77 = arith.constant dense<0.000000e+00> : vector<5xf32>
      %301 = vector.multi_reduction <add>, %300, %cst_77 [1] : vector<5x5xf32> to vector<5xf32>
      %302 = vector.shape_cast %301 : vector<5xf32> to vector<5x1xf32>
      %303 = vector.broadcast %302 : vector<5x1xf32> to vector<5x5xf32>
      %304 = arith.divf %300, %303 : vector<5x5xf32>
      %305 = vector.extract_strided_slice %234 {offsets = [0, 24], sizes = [5, 8], strides = [1, 1]} : vector<5x32xf32> to vector<5x8xf32>
      %cst_78 = arith.constant dense<0.000000e+00> : vector<5x8xf32>
      %306 = tpu.matmul %304, %305, %cst_78 {dimension_numbers = #tpu.dot_dimension_numbers<[1], [0], [0], [1], [0, 0, 1, 1], [], []>} : vector<5x5xf32>, vector<5x8xf32>, vector<5x8xf32> -> vector<5x8xf32>
      %307 = tpu.concatenate %252, %270, %288, %306 in 1 : vector<5x8xf32>, vector<5x8xf32>, vector<5x8xf32>, vector<5x8xf32> -> vector<5x32xf32>
      %308 = vector.extract_strided_slice %225 {offsets = [5, 0], sizes = [5, 32], strides = [1, 1]} : vector<10x32xf32> to vector<5x32xf32>
      %309 = vector.extract_strided_slice %228 {offsets = [5, 0], sizes = [5, 32], strides = [1, 1]} : vector<10x32xf32> to vector<5x32xf32>
      %310 = vector.extract_strided_slice %231 {offsets = [5, 0], sizes = [5, 32], strides = [1, 1]} : vector<10x32xf32> to vector<5x32xf32>
      %311 = vector.extract_strided_slice %308 {offsets = [0, 0], sizes = [5, 8], strides = [1, 1]} : vector<5x32xf32> to vector<5x8xf32>
      %312 = vector.extract_strided_slice %309 {offsets = [0, 0], sizes = [5, 8], strides = [1, 1]} : vector<5x32xf32> to vector<5x8xf32>
      %313 = tpu.transpose %312, [1, 0] : vector<5x8xf32> -> vector<8x5xf32>
      %cst_79 = arith.constant dense<0.000000e+00> : vector<5x5xf32>
      %314 = tpu.matmul %311, %313, %cst_79 {dimension_numbers = #tpu.dot_dimension_numbers<[1], [0], [0], [1], [0, 0, 1, 1], [], []>} : vector<5x8xf32>, vector<8x5xf32>, vector<5x5xf32> -> vector<5x5xf32>
      %cst_80 = arith.constant 0.353553385 : f32
      %315 = vector.broadcast %cst_80 : f32 to vector<5x5xf32>
      %316 = arith.mulf %314, %315 : vector<5x5xf32>
      %317 = arith.addf %316, %176 : vector<5x5xf32>
      %cst_81 = arith.constant dense<0xFF800000> : vector<5xf32>
      %318 = vector.multi_reduction <maximumf>, %317, %cst_81 [1] : vector<5x5xf32> to vector<5xf32>
      %319 = vector.shape_cast %318 : vector<5xf32> to vector<5x1xf32>
      %320 = vector.broadcast %319 : vector<5x1xf32> to vector<5x5xf32>
      %321 = arith.subf %317, %320 : vector<5x5xf32>
      %322 = math.exp %321 : vector<5x5xf32>
      %cst_82 = arith.constant dense<0.000000e+00> : vector<5xf32>
      %323 = vector.multi_reduction <add>, %322, %cst_82 [1] : vector<5x5xf32> to vector<5xf32>
      %324 = vector.shape_cast %323 : vector<5xf32> to vector<5x1xf32>
      %325 = vector.broadcast %324 : vector<5x1xf32> to vector<5x5xf32>
      %326 = arith.divf %322, %325 : vector<5x5xf32>
      %327 = vector.extract_strided_slice %310 {offsets = [0, 0], sizes = [5, 8], strides = [1, 1]} : vector<5x32xf32> to vector<5x8xf32>
      %cst_83 = arith.constant dense<0.000000e+00> : vector<5x8xf32>
      %328 = tpu.matmul %326, %327, %cst_83 {dimension_numbers = #tpu.dot_dimension_numbers<[1], [0], [0], [1], [0, 0, 1, 1], [], []>} : vector<5x5xf32>, vector<5x8xf32>, vector<5x8xf32> -> vector<5x8xf32>
      %329 = vector.extract_strided_slice %308 {offsets = [0, 8], sizes = [5, 8], strides = [1, 1]} : vector<5x32xf32> to vector<5x8xf32>
      %330 = vector.extract_strided_slice %309 {offsets = [0, 8], sizes = [5, 8], strides = [1, 1]} : vector<5x32xf32> to vector<5x8xf32>
      %331 = tpu.transpose %330, [1, 0] : vector<5x8xf32> -> vector<8x5xf32>
      %cst_84 = arith.constant dense<0.000000e+00> : vector<5x5xf32>
      %332 = tpu.matmul %329, %331, %cst_84 {dimension_numbers = #tpu.dot_dimension_numbers<[1], [0], [0], [1], [0, 0, 1, 1], [], []>} : vector<5x8xf32>, vector<8x5xf32>, vector<5x5xf32> -> vector<5x5xf32>
      %cst_85 = arith.constant 0.353553385 : f32
      %333 = vector.broadcast %cst_85 : f32 to vector<5x5xf32>
      %334 = arith.mulf %332, %333 : vector<5x5xf32>
      %335 = arith.addf %334, %176 : vector<5x5xf32>
      %cst_86 = arith.constant dense<0xFF800000> : vector<5xf32>
      %336 = vector.multi_reduction <maximumf>, %335, %cst_86 [1] : vector<5x5xf32> to vector<5xf32>
      %337 = vector.shape_cast %336 : vector<5xf32> to vector<5x1xf32>
      %338 = vector.broadcast %337 : vector<5x1xf32> to vector<5x5xf32>
      %339 = arith.subf %335, %338 : vector<5x5xf32>
      %340 = math.exp %339 : vector<5x5xf32>
      %cst_87 = arith.constant dense<0.000000e+00> : vector<5xf32>
      %341 = vector.multi_reduction <add>, %340, %cst_87 [1] : vector<5x5xf32> to vector<5xf32>
      %342 = vector.shape_cast %341 : vector<5xf32> to vector<5x1xf32>
      %343 = vector.broadcast %342 : vector<5x1xf32> to vector<5x5xf32>
      %344 = arith.divf %340, %343 : vector<5x5xf32>
      %345 = vector.extract_strided_slice %310 {offsets = [0, 8], sizes = [5, 8], strides = [1, 1]} : vector<5x32xf32> to vector<5x8xf32>
      %cst_88 = arith.constant dense<0.000000e+00> : vector<5x8xf32>
      %346 = tpu.matmul %344, %345, %cst_88 {dimension_numbers = #tpu.dot_dimension_numbers<[1], [0], [0], [1], [0, 0, 1, 1], [], []>} : vector<5x5xf32>, vector<5x8xf32>, vector<5x8xf32> -> vector<5x8xf32>
      %347 = vector.extract_strided_slice %308 {offsets = [0, 16], sizes = [5, 8], strides = [1, 1]} : vector<5x32xf32> to vector<5x8xf32>
      %348 = vector.extract_strided_slice %309 {offsets = [0, 16], sizes = [5, 8], strides = [1, 1]} : vector<5x32xf32> to vector<5x8xf32>
      %349 = tpu.transpose %348, [1, 0] : vector<5x8xf32> -> vector<8x5xf32>
      %cst_89 = arith.constant dense<0.000000e+00> : vector<5x5xf32>
      %350 = tpu.matmul %347, %349, %cst_89 {dimension_numbers = #tpu.dot_dimension_numbers<[1], [0], [0], [1], [0, 0, 1, 1], [], []>} : vector<5x8xf32>, vector<8x5xf32>, vector<5x5xf32> -> vector<5x5xf32>
      %cst_90 = arith.constant 0.353553385 : f32
      %351 = vector.broadcast %cst_90 : f32 to vector<5x5xf32>
      %352 = arith.mulf %350, %351 : vector<5x5xf32>
      %353 = arith.addf %352, %176 : vector<5x5xf32>
      %cst_91 = arith.constant dense<0xFF800000> : vector<5xf32>
      %354 = vector.multi_reduction <maximumf>, %353, %cst_91 [1] : vector<5x5xf32> to vector<5xf32>
      %355 = vector.shape_cast %354 : vector<5xf32> to vector<5x1xf32>
      %356 = vector.broadcast %355 : vector<5x1xf32> to vector<5x5xf32>
      %357 = arith.subf %353, %356 : vector<5x5xf32>
      %358 = math.exp %357 : vector<5x5xf32>
      %cst_92 = arith.constant dense<0.000000e+00> : vector<5xf32>
      %359 = vector.multi_reduction <add>, %358, %cst_92 [1] : vector<5x5xf32> to vector<5xf32>
      %360 = vector.shape_cast %359 : vector<5xf32> to vector<5x1xf32>
      %361 = vector.broadcast %360 : vector<5x1xf32> to vector<5x5xf32>
      %362 = arith.divf %358, %361 : vector<5x5xf32>
      %363 = vector.extract_strided_slice %310 {offsets = [0, 16], sizes = [5, 8], strides = [1, 1]} : vector<5x32xf32> to vector<5x8xf32>
      %cst_93 = arith.constant dense<0.000000e+00> : vector<5x8xf32>
      %364 = tpu.matmul %362, %363, %cst_93 {dimension_numbers = #tpu.dot_dimension_numbers<[1], [0], [0], [1], [0, 0, 1, 1], [], []>} : vector<5x5xf32>, vector<5x8xf32>, vector<5x8xf32> -> vector<5x8xf32>
      %365 = vector.extract_strided_slice %308 {offsets = [0, 24], sizes = [5, 8], strides = [1, 1]} : vector<5x32xf32> to vector<5x8xf32>
      %366 = vector.extract_strided_slice %309 {offsets = [0, 24], sizes = [5, 8], strides = [1, 1]} : vector<5x32xf32> to vector<5x8xf32>
      %367 = tpu.transpose %366, [1, 0] : vector<5x8xf32> -> vector<8x5xf32>
      %cst_94 = arith.constant dense<0.000000e+00> : vector<5x5xf32>
      %368 = tpu.matmul %365, %367, %cst_94 {dimension_numbers = #tpu.dot_dimension_numbers<[1], [0], [0], [1], [0, 0, 1, 1], [], []>} : vector<5x8xf32>, vector<8x5xf32>, vector<5x5xf32> -> vector<5x5xf32>
      %cst_95 = arith.constant 0.353553385 : f32
      %369 = vector.broadcast %cst_95 : f32 to vector<5x5xf32>
      %370 = arith.mulf %368, %369 : vector<5x5xf32>
      %371 = arith.addf %370, %176 : vector<5x5xf32>
      %cst_96 = arith.constant dense<0xFF800000> : vector<5xf32>
      %372 = vector.multi_reduction <maximumf>, %371, %cst_96 [1] : vector<5x5xf32> to vector<5xf32>
      %373 = vector.shape_cast %372 : vector<5xf32> to vector<5x1xf32>
      %374 = vector.broadcast %373 : vector<5x1xf32> to vector<5x5xf32>
      %375 = arith.subf %371, %374 : vector<5x5xf32>
      %376 = math.exp %375 : vector<5x5xf32>
      %cst_97 = arith.constant dense<0.000000e+00> : vector<5xf32>
      %377 = vector.multi_reduction <add>, %376, %cst_97 [1] : vector<5x5xf32> to vector<5xf32>
      %378 = vector.shape_cast %377 : vector<5xf32> to vector<5x1xf32>
      %379 = vector.broadcast %378 : vector<5x1xf32> to vector<5x5xf32>
      %380 = arith.divf %376, %379 : vector<5x5xf32>
      %381 = vector.extract_strided_slice %310 {offsets = [0, 24], sizes = [5, 8], strides = [1, 1]} : vector<5x32xf32> to vector<5x8xf32>
      %cst_98 = arith.constant dense<0.000000e+00> : vector<5x8xf32>
      %382 = tpu.matmul %380, %381, %cst_98 {dimension_numbers = #tpu.dot_dimension_numbers<[1], [0], [0], [1], [0, 0, 1, 1], [], []>} : vector<5x5xf32>, vector<5x8xf32>, vector<5x8xf32> -> vector<5x8xf32>
      %383 = tpu.concatenate %328, %346, %364, %382 in 1 : vector<5x8xf32>, vector<5x8xf32>, vector<5x8xf32>, vector<5x8xf32> -> vector<5x32xf32>
      %384 = tpu.concatenate %307, %383 in 0 : vector<5x32xf32>, vector<5x32xf32> -> vector<10x32xf32>
      %cst_99 = arith.constant dense<0.000000e+00> : vector<10x32xf32>
      %385 = tpu.matmul %384, %11, %cst_99 {dimension_numbers = #tpu.dot_dimension_numbers<[1], [0], [0], [1], [0, 0, 1, 1], [], []>} : vector<10x32xf32>, vector<32x32xf32>, vector<10x32xf32> -> vector<10x32xf32>
      %386 = vector.broadcast %21 : vector<1x32xf32> to vector<10x32xf32>
      %387 = arith.addf %385, %386 : vector<10x32xf32>
      %388 = arith.addf %177, %387 : vector<10x32xf32>
      %cst_100 = arith.constant dense<0.000000e+00> : vector<10xf32>
      %389 = vector.multi_reduction <add>, %388, %cst_100 [1] : vector<10x32xf32> to vector<10xf32>
      %390 = vector.shape_cast %389 : vector<10xf32> to vector<10x1xf32>
      %cst_101 = arith.constant 3.200000e+01 : f32
      %391 = vector.broadcast %cst_101 : f32 to vector<10x1xf32>
      %392 = arith.divf %390, %391 : vector<10x1xf32>
      %393 = vector.broadcast %392 : vector<10x1xf32> to vector<10x32xf32>
      %394 = arith.subf %388, %393 : vector<10x32xf32>
      %395 = arith.mulf %394, %394 : vector<10x32xf32>
      %cst_102 = arith.constant dense<0.000000e+00> : vector<10xf32>
      %396 = vector.multi_reduction <add>, %395, %cst_102 [1] : vector<10x32xf32> to vector<10xf32>
      %397 = vector.shape_cast %396 : vector<10xf32> to vector<10x1xf32>
      %cst_103 = arith.constant 3.200000e+01 : f32
      %398 = vector.broadcast %cst_103 : f32 to vector<10x1xf32>
      %399 = arith.divf %397, %398 : vector<10x1xf32>
      %400 = vector.broadcast %392 : vector<10x1xf32> to vector<10x32xf32>
      %401 = arith.subf %388, %400 : vector<10x32xf32>
      %cst_104 = arith.constant 9.99999974E-6 : f32
      %402 = vector.broadcast %cst_104 : f32 to vector<10x1xf32>
      %403 = arith.addf %399, %402 : vector<10x1xf32>
      %404 = math.rsqrt %403 : vector<10x1xf32>
      %405 = vector.broadcast %404 : vector<10x1xf32> to vector<10x32xf32>
      %406 = arith.mulf %401, %405 : vector<10x32xf32>
      %407 = vector.broadcast %30 : vector<1x32xf32> to vector<10x32xf32>
      %408 = arith.mulf %406, %407 : vector<10x32xf32>
      %409 = vector.broadcast %31 : vector<1x32xf32> to vector<10x32xf32>
      %410 = arith.addf %408, %409 : vector<10x32xf32>
      %cst_105 = arith.constant dense<0.000000e+00> : vector<10x32xf32>
      %411 = tpu.matmul %410, %12, %cst_105 {dimension_numbers = #tpu.dot_dimension_numbers<[1], [0], [0], [1], [0, 0, 1, 1], [], []>} : vector<10x32xf32>, vector<32x32xf32>, vector<10x32xf32> -> vector<10x32xf32>
      %412 = vector.broadcast %22 : vector<1x32xf32> to vector<10x32xf32>
      %413 = arith.addf %411, %412 : vector<10x32xf32>
      %cst_106 = arith.constant dense<0.000000e+00> : vector<4x32xf32>
      %414 = tpu.matmul %0, %13, %cst_106 {dimension_numbers = #tpu.dot_dimension_numbers<[1], [0], [0], [1], [0, 0, 1, 1], [], []>} : vector<4x32xf32>, vector<32x32xf32>, vector<4x32xf32> -> vector<4x32xf32>
      %415 = vector.broadcast %23 : vector<1x32xf32> to vector<4x32xf32>
      %416 = arith.addf %414, %415 : vector<4x32xf32>
      %cst_107 = arith.constant dense<0.000000e+00> : vector<4x32xf32>
      %417 = tpu.matmul %0, %14, %cst_107 {dimension_numbers = #tpu.dot_dimension_numbers<[1], [0], [0], [1], [0, 0, 1, 1], [], []>} : vector<4x32xf32>, vector<32x32xf32>, vector<4x32xf32> -> vector<4x32xf32>
      %418 = vector.broadcast %24 : vector<1x32xf32> to vector<4x32xf32>
      %419 = arith.addf %417, %418 : vector<4x32xf32>
      %420 = vector.extract_strided_slice %413 {offsets = [0, 0], sizes = [5, 32], strides = [1, 1]} : vector<10x32xf32> to vector<5x32xf32>
      %421 = vector.extract_strided_slice %416 {offsets = [0, 0], sizes = [2, 32], strides = [1, 1]} : vector<4x32xf32> to vector<2x32xf32>
      %422 = vector.extract_strided_slice %419 {offsets = [0, 0], sizes = [2, 32], strides = [1, 1]} : vector<4x32xf32> to vector<2x32xf32>
      %423 = vector.extract_strided_slice %420 {offsets = [0, 0], sizes = [5, 8], strides = [1, 1]} : vector<5x32xf32> to vector<5x8xf32>
      %424 = vector.extract_strided_slice %421 {offsets = [0, 0], sizes = [2, 8], strides = [1, 1]} : vector<2x32xf32> to vector<2x8xf32>
      %425 = tpu.transpose %424, [1, 0] : vector<2x8xf32> -> vector<8x2xf32>
      %cst_108 = arith.constant dense<0.000000e+00> : vector<5x2xf32>
      %426 = tpu.matmul %423, %425, %cst_108 {dimension_numbers = #tpu.dot_dimension_numbers<[1], [0], [0], [1], [0, 0, 1, 1], [], []>} : vector<5x8xf32>, vector<8x2xf32>, vector<5x2xf32> -> vector<5x2xf32>
      %cst_109 = arith.constant 0.353553385 : f32
      %427 = vector.broadcast %cst_109 : f32 to vector<5x2xf32>
      %428 = arith.mulf %426, %427 : vector<5x2xf32>
      %cst_110 = arith.constant dense<0xFF800000> : vector<5xf32>
      %429 = vector.multi_reduction <maximumf>, %428, %cst_110 [1] : vector<5x2xf32> to vector<5xf32>
      %430 = vector.shape_cast %429 : vector<5xf32> to vector<5x1xf32>
      %431 = vector.broadcast %430 : vector<5x1xf32> to vector<5x2xf32>
      %432 = arith.subf %428, %431 : vector<5x2xf32>
      %433 = math.exp %432 : vector<5x2xf32>
      %cst_111 = arith.constant dense<0.000000e+00> : vector<5xf32>
      %434 = vector.multi_reduction <add>, %433, %cst_111 [1] : vector<5x2xf32> to vector<5xf32>
      %435 = vector.shape_cast %434 : vector<5xf32> to vector<5x1xf32>
      %436 = vector.broadcast %435 : vector<5x1xf32> to vector<5x2xf32>
      %437 = arith.divf %433, %436 : vector<5x2xf32>
      %438 = vector.extract_strided_slice %422 {offsets = [0, 0], sizes = [2, 8], strides = [1, 1]} : vector<2x32xf32> to vector<2x8xf32>
      %cst_112 = arith.constant dense<0.000000e+00> : vector<5x8xf32>
      %439 = tpu.matmul %437, %438, %cst_112 {dimension_numbers = #tpu.dot_dimension_numbers<[1], [0], [0], [1], [0, 0, 1, 1], [], []>} : vector<5x2xf32>, vector<2x8xf32>, vector<5x8xf32> -> vector<5x8xf32>
      %440 = vector.extract_strided_slice %420 {offsets = [0, 8], sizes = [5, 8], strides = [1, 1]} : vector<5x32xf32> to vector<5x8xf32>
      %441 = vector.extract_strided_slice %421 {offsets = [0, 8], sizes = [2, 8], strides = [1, 1]} : vector<2x32xf32> to vector<2x8xf32>
      %442 = tpu.transpose %441, [1, 0] : vector<2x8xf32> -> vector<8x2xf32>
      %cst_113 = arith.constant dense<0.000000e+00> : vector<5x2xf32>
      %443 = tpu.matmul %440, %442, %cst_113 {dimension_numbers = #tpu.dot_dimension_numbers<[1], [0], [0], [1], [0, 0, 1, 1], [], []>} : vector<5x8xf32>, vector<8x2xf32>, vector<5x2xf32> -> vector<5x2xf32>
      %cst_114 = arith.constant 0.353553385 : f32
      %444 = vector.broadcast %cst_114 : f32 to vector<5x2xf32>
      %445 = arith.mulf %443, %444 : vector<5x2xf32>
      %cst_115 = arith.constant dense<0xFF800000> : vector<5xf32>
      %446 = vector.multi_reduction <maximumf>, %445, %cst_115 [1] : vector<5x2xf32> to vector<5xf32>
      %447 = vector.shape_cast %446 : vector<5xf32> to vector<5x1xf32>
      %448 = vector.broadcast %447 : vector<5x1xf32> to vector<5x2xf32>
      %449 = arith.subf %445, %448 : vector<5x2xf32>
      %450 = math.exp %449 : vector<5x2xf32>
      %cst_116 = arith.constant dense<0.000000e+00> : vector<5xf32>
      %451 = vector.multi_reduction <add>, %450, %cst_116 [1] : vector<5x2xf32> to vector<5xf32>
      %452 = vector.shape_cast %451 : vector<5xf32> to vector<5x1xf32>
      %453 = vector.broadcast %452 : vector<5x1xf32> to vector<5x2xf32>
      %454 = arith.divf %450, %453 : vector<5x2xf32>
      %455 = vector.extract_strided_slice %422 {offsets = [0, 8], sizes = [2, 8], strides = [1, 1]} : vector<2x32xf32> to vector<2x8xf32>
      %cst_117 = arith.constant dense<0.000000e+00> : vector<5x8xf32>
      %456 = tpu.matmul %454, %455, %cst_117 {dimension_numbers = #tpu.dot_dimension_numbers<[1], [0], [0], [1], [0, 0, 1, 1], [], []>} : vector<5x2xf32>, vector<2x8xf32>, vector<5x8xf32> -> vector<5x8xf32>
      %457 = vector.extract_strided_slice %420 {offsets = [0, 16], sizes = [5, 8], strides = [1, 1]} : vector<5x32xf32> to vector<5x8xf32>
      %458 = vector.extract_strided_slice %421 {offsets = [0, 16], sizes = [2, 8], strides = [1, 1]} : vector<2x32xf32> to vector<2x8xf32>
      %459 = tpu.transpose %458, [1, 0] : vector<2x8xf32> -> vector<8x2xf32>
      %cst_118 = arith.constant dense<0.000000e+00> : vector<5x2xf32>
      %460 = tpu.matmul %457, %459, %cst_118 {dimension_numbers = #tpu.dot_dimension_numbers<[1], [0], [0], [1], [0, 0, 1, 1], [], []>} : vector<5x8xf32>, vector<8x2xf32>, vector<5x2xf32> -> vector<5x2xf32>
      %cst_119 = arith.constant 0.353553385 : f32
      %461 = vector.broadcast %cst_119 : f32 to vector<5x2xf32>
      %462 = arith.mulf %460, %461 : vector<5x2xf32>
      %cst_120 = arith.constant dense<0xFF800000> : vector<5xf32>
      %463 = vector.multi_reduction <maximumf>, %462, %cst_120 [1] : vector<5x2xf32> to vector<5xf32>
      %464 = vector.shape_cast %463 : vector<5xf32> to vector<5x1xf32>
      %465 = vector.broadcast %464 : vector<5x1xf32> to vector<5x2xf32>
      %466 = arith.subf %462, %465 : vector<5x2xf32>
      %467 = math.exp %466 : vector<5x2xf32>
      %cst_121 = arith.constant dense<0.000000e+00> : vector<5xf32>
      %468 = vector.multi_reduction <add>, %467, %cst_121 [1] : vector<5x2xf32> to vector<5xf32>
      %469 = vector.shape_cast %468 : vector<5xf32> to vector<5x1xf32>
      %470 = vector.broadcast %469 : vector<5x1xf32> to vector<5x2xf32>
      %471 = arith.divf %467, %470 : vector<5x2xf32>
      %472 = vector.extract_strided_slice %422 {offsets = [0, 16], sizes = [2, 8], strides = [1, 1]} : vector<2x32xf32> to vector<2x8xf32>
      %cst_122 = arith.constant dense<0.000000e+00> : vector<5x8xf32>
      %473 = tpu.matmul %471, %472, %cst_122 {dimension_numbers = #tpu.dot_dimension_numbers<[1], [0], [0], [1], [0, 0, 1, 1], [], []>} : vector<5x2xf32>, vector<2x8xf32>, vector<5x8xf32> -> vector<5x8xf32>
      %474 = vector.extract_strided_slice %420 {offsets = [0, 24], sizes = [5, 8], strides = [1, 1]} : vector<5x32xf32> to vector<5x8xf32>
      %475 = vector.extract_strided_slice %421 {offsets = [0, 24], sizes = [2, 8], strides = [1, 1]} : vector<2x32xf32> to vector<2x8xf32>
      %476 = tpu.transpose %475, [1, 0] : vector<2x8xf32> -> vector<8x2xf32>
      %cst_123 = arith.constant dense<0.000000e+00> : vector<5x2xf32>
      %477 = tpu.matmul %474, %476, %cst_123 {dimension_numbers = #tpu.dot_dimension_numbers<[1], [0], [0], [1], [0, 0, 1, 1], [], []>} : vector<5x8xf32>, vector<8x2xf32>, vector<5x2xf32> -> vector<5x2xf32>
      %cst_124 = arith.constant 0.353553385 : f32
      %478 = vector.broadcast %cst_124 : f32 to vector<5x2xf32>
      %479 = arith.mulf %477, %478 : vector<5x2xf32>
      %cst_125 = arith.constant dense<0xFF800000> : vector<5xf32>
      %480 = vector.multi_reduction <maximumf>, %479, %cst_125 [1] : vector<5x2xf32> to vector<5xf32>
      %481 = vector.shape_cast %480 : vector<5xf32> to vector<5x1xf32>
      %482 = vector.broadcast %481 : vector<5x1xf32> to vector<5x2xf32>
      %483 = arith.subf %479, %482 : vector<5x2xf32>
      %484 = math.exp %483 : vector<5x2xf32>
      %cst_126 = arith.constant dense<0.000000e+00> : vector<5xf32>
      %485 = vector.multi_reduction <add>, %484, %cst_126 [1] : vector<5x2xf32> to vector<5xf32>
      %486 = vector.shape_cast %485 : vector<5xf32> to vector<5x1xf32>
      %487 = vector.broadcast %486 : vector<5x1xf32> to vector<5x2xf32>
      %488 = arith.divf %484, %487 : vector<5x2xf32>
      %489 = vector.extract_strided_slice %422 {offsets = [0, 24], sizes = [2, 8], strides = [1, 1]} : vector<2x32xf32> to vector<2x8xf32>
      %cst_127 = arith.constant dense<0.000000e+00> : vector<5x8xf32>
      %490 = tpu.matmul %488, %489, %cst_127 {dimension_numbers = #tpu.dot_dimension_numbers<[1], [0], [0], [1], [0, 0, 1, 1], [], []>} : vector<5x2xf32>, vector<2x8xf32>, vector<5x8xf32> -> vector<5x8xf32>
      %491 = tpu.concatenate %439, %456, %473, %490 in 1 : vector<5x8xf32>, vector<5x8xf32>, vector<5x8xf32>, vector<5x8xf32> -> vector<5x32xf32>
      %492 = vector.extract_strided_slice %413 {offsets = [5, 0], sizes = [5, 32], strides = [1, 1]} : vector<10x32xf32> to vector<5x32xf32>
      %493 = vector.extract_strided_slice %416 {offsets = [2, 0], sizes = [2, 32], strides = [1, 1]} : vector<4x32xf32> to vector<2x32xf32>
      %494 = vector.extract_strided_slice %419 {offsets = [2, 0], sizes = [2, 32], strides = [1, 1]} : vector<4x32xf32> to vector<2x32xf32>
      %495 = vector.extract_strided_slice %492 {offsets = [0, 0], sizes = [5, 8], strides = [1, 1]} : vector<5x32xf32> to vector<5x8xf32>
      %496 = vector.extract_strided_slice %493 {offsets = [0, 0], sizes = [2, 8], strides = [1, 1]} : vector<2x32xf32> to vector<2x8xf32>
      %497 = tpu.transpose %496, [1, 0] : vector<2x8xf32> -> vector<8x2xf32>
      %cst_128 = arith.constant dense<0.000000e+00> : vector<5x2xf32>
      %498 = tpu.matmul %495, %497, %cst_128 {dimension_numbers = #tpu.dot_dimension_numbers<[1], [0], [0], [1], [0, 0, 1, 1], [], []>} : vector<5x8xf32>, vector<8x2xf32>, vector<5x2xf32> -> vector<5x2xf32>
      %cst_129 = arith.constant 0.353553385 : f32
      %499 = vector.broadcast %cst_129 : f32 to vector<5x2xf32>
      %500 = arith.mulf %498, %499 : vector<5x2xf32>
      %cst_130 = arith.constant dense<0xFF800000> : vector<5xf32>
      %501 = vector.multi_reduction <maximumf>, %500, %cst_130 [1] : vector<5x2xf32> to vector<5xf32>
      %502 = vector.shape_cast %501 : vector<5xf32> to vector<5x1xf32>
      %503 = vector.broadcast %502 : vector<5x1xf32> to vector<5x2xf32>
      %504 = arith.subf %500, %503 : vector<5x2xf32>
      %505 = math.exp %504 : vector<5x2xf32>
      %cst_131 = arith.constant dense<0.000000e+00> : vector<5xf32>
      %506 = vector.multi_reduction <add>, %505, %cst_131 [1] : vector<5x2xf32> to vector<5xf32>
      %507 = vector.shape_cast %506 : vector<5xf32> to vector<5x1xf32>
      %508 = vector.broadcast %507 : vector<5x1xf32> to vector<5x2xf32>
      %509 = arith.divf %505, %508 : vector<5x2xf32>
      %510 = vector.extract_strided_slice %494 {offsets = [0, 0], sizes = [2, 8], strides = [1, 1]} : vector<2x32xf32> to vector<2x8xf32>
      %cst_132 = arith.constant dense<0.000000e+00> : vector<5x8xf32>
      %511 = tpu.matmul %509, %510, %cst_132 {dimension_numbers = #tpu.dot_dimension_numbers<[1], [0], [0], [1], [0, 0, 1, 1], [], []>} : vector<5x2xf32>, vector<2x8xf32>, vector<5x8xf32> -> vector<5x8xf32>
      %512 = vector.extract_strided_slice %492 {offsets = [0, 8], sizes = [5, 8], strides = [1, 1]} : vector<5x32xf32> to vector<5x8xf32>
      %513 = vector.extract_strided_slice %493 {offsets = [0, 8], sizes = [2, 8], strides = [1, 1]} : vector<2x32xf32> to vector<2x8xf32>
      %514 = tpu.transpose %513, [1, 0] : vector<2x8xf32> -> vector<8x2xf32>
      %cst_133 = arith.constant dense<0.000000e+00> : vector<5x2xf32>
      %515 = tpu.matmul %512, %514, %cst_133 {dimension_numbers = #tpu.dot_dimension_numbers<[1], [0], [0], [1], [0, 0, 1, 1], [], []>} : vector<5x8xf32>, vector<8x2xf32>, vector<5x2xf32> -> vector<5x2xf32>
      %cst_134 = arith.constant 0.353553385 : f32
      %516 = vector.broadcast %cst_134 : f32 to vector<5x2xf32>
      %517 = arith.mulf %515, %516 : vector<5x2xf32>
      %cst_135 = arith.constant dense<0xFF800000> : vector<5xf32>
      %518 = vector.multi_reduction <maximumf>, %517, %cst_135 [1] : vector<5x2xf32> to vector<5xf32>
      %519 = vector.shape_cast %518 : vector<5xf32> to vector<5x1xf32>
      %520 = vector.broadcast %519 : vector<5x1xf32> to vector<5x2xf32>
      %521 = arith.subf %517, %520 : vector<5x2xf32>
      %522 = math.exp %521 : vector<5x2xf32>
      %cst_136 = arith.constant dense<0.000000e+00> : vector<5xf32>
      %523 = vector.multi_reduction <add>, %522, %cst_136 [1] : vector<5x2xf32> to vector<5xf32>
      %524 = vector.shape_cast %523 : vector<5xf32> to vector<5x1xf32>
      %525 = vector.broadcast %524 : vector<5x1xf32> to vector<5x2xf32>
      %526 = arith.divf %522, %525 : vector<5x2xf32>
      %527 = vector.extract_strided_slice %494 {offsets = [0, 8], sizes = [2, 8], strides = [1, 1]} : vector<2x32xf32> to vector<2x8xf32>
      %cst_137 = arith.constant dense<0.000000e+00> : vector<5x8xf32>
      %528 = tpu.matmul %526, %527, %cst_137 {dimension_numbers = #tpu.dot_dimension_numbers<[1], [0], [0], [1], [0, 0, 1, 1], [], []>} : vector<5x2xf32>, vector<2x8xf32>, vector<5x8xf32> -> vector<5x8xf32>
      %529 = vector.extract_strided_slice %492 {offsets = [0, 16], sizes = [5, 8], strides = [1, 1]} : vector<5x32xf32> to vector<5x8xf32>
      %530 = vector.extract_strided_slice %493 {offsets = [0, 16], sizes = [2, 8], strides = [1, 1]} : vector<2x32xf32> to vector<2x8xf32>
      %531 = tpu.transpose %530, [1, 0] : vector<2x8xf32> -> vector<8x2xf32>
      %cst_138 = arith.constant dense<0.000000e+00> : vector<5x2xf32>
      %532 = tpu.matmul %529, %531, %cst_138 {dimension_numbers = #tpu.dot_dimension_numbers<[1], [0], [0], [1], [0, 0, 1, 1], [], []>} : vector<5x8xf32>, vector<8x2xf32>, vector<5x2xf32> -> vector<5x2xf32>
      %cst_139 = arith.constant 0.353553385 : f32
      %533 = vector.broadcast %cst_139 : f32 to vector<5x2xf32>
      %534 = arith.mulf %532, %533 : vector<5x2xf32>
      %cst_140 = arith.constant dense<0xFF800000> : vector<5xf32>
      %535 = vector.multi_reduction <maximumf>, %534, %cst_140 [1] : vector<5x2xf32> to vector<5xf32>
      %536 = vector.shape_cast %535 : vector<5xf32> to vector<5x1xf32>
      %537 = vector.broadcast %536 : vector<5x1xf32> to vector<5x2xf32>
      %538 = arith.subf %534, %537 : vector<5x2xf32>
      %539 = math.exp %538 : vector<5x2xf32>
      %cst_141 = arith.constant dense<0.000000e+00> : vector<5xf32>
      %540 = vector.multi_reduction <add>, %539, %cst_141 [1] : vector<5x2xf32> to vector<5xf32>
      %541 = vector.shape_cast %540 : vector<5xf32> to vector<5x1xf32>
      %542 = vector.broadcast %541 : vector<5x1xf32> to vector<5x2xf32>
      %543 = arith.divf %539, %542 : vector<5x2xf32>
      %544 = vector.extract_strided_slice %494 {offsets = [0, 16], sizes = [2, 8], strides = [1, 1]} : vector<2x32xf32> to vector<2x8xf32>
      %cst_142 = arith.constant dense<0.000000e+00> : vector<5x8xf32>
      %545 = tpu.matmul %543, %544, %cst_142 {dimension_numbers = #tpu.dot_dimension_numbers<[1], [0], [0], [1], [0, 0, 1, 1], [], []>} : vector<5x2xf32>, vector<2x8xf32>, vector<5x8xf32> -> vector<5x8xf32>
      %546 = vector.extract_strided_slice %492 {offsets = [0, 24], sizes = [5, 8], strides = [1, 1]} : vector<5x32xf32> to vector<5x8xf32>
      %547 = vector.extract_strided_slice %493 {offsets = [0, 24], sizes = [2, 8], strides = [1, 1]} : vector<2x32xf32> to vector<2x8xf32>
      %548 = tpu.transpose %547, [1, 0] : vector<2x8xf32> -> vector<8x2xf32>
      %cst_143 = arith.constant dense<0.000000e+00> : vector<5x2xf32>
      %549 = tpu.matmul %546, %548, %cst_143 {dimension_numbers = #tpu.dot_dimension_numbers<[1], [0], [0], [1], [0, 0, 1, 1], [], []>} : vector<5x8xf32>, vector<8x2xf32>, vector<5x2xf32> -> vector<5x2xf32>
      %cst_144 = arith.constant 0.353553385 : f32
      %550 = vector.broadcast %cst_144 : f32 to vector<5x2xf32>
      %551 = arith.mulf %549, %550 : vector<5x2xf32>
      %cst_145 = arith.constant dense<0xFF800000> : vector<5xf32>
      %552 = vector.multi_reduction <maximumf>, %551, %cst_145 [1] : vector<5x2xf32> to vector<5xf32>
      %553 = vector.shape_cast %552 : vector<5xf32> to vector<5x1xf32>
      %554 = vector.broadcast %553 : vector<5x1xf32> to vector<5x2xf32>
      %555 = arith.subf %551, %554 : vector<5x2xf32>
      %556 = math.exp %555 : vector<5x2xf32>
      %cst_146 = arith.constant dense<0.000000e+00> : vector<5xf32>
      %557 = vector.multi_reduction <add>, %556, %cst_146 [1] : vector<5x2xf32> to vector<5xf32>
      %558 = vector.shape_cast %557 : vector<5xf32> to vector<5x1xf32>
      %559 = vector.broadcast %558 : vector<5x1xf32> to vector<5x2xf32>
      %560 = arith.divf %556, %559 : vector<5x2xf32>
      %561 = vector.extract_strided_slice %494 {offsets = [0, 24], sizes = [2, 8], strides = [1, 1]} : vector<2x32xf32> to vector<2x8xf32>
      %cst_147 = arith.constant dense<0.000000e+00> : vector<5x8xf32>
      %562 = tpu.matmul %560, %561, %cst_147 {dimension_numbers = #tpu.dot_dimension_numbers<[1], [0], [0], [1], [0, 0, 1, 1], [], []>} : vector<5x2xf32>, vector<2x8xf32>, vector<5x8xf32> -> vector<5x8xf32>
      %563 = tpu.concatenate %511, %528, %545, %562 in 1 : vector<5x8xf32>, vector<5x8xf32>, vector<5x8xf32>, vector<5x8xf32> -> vector<5x32xf32>
      %564 = tpu.concatenate %491, %563 in 0 : vector<5x32xf32>, vector<5x32xf32> -> vector<10x32xf32>
      %cst_148 = arith.constant dense<0.000000e+00> : vector<10x32xf32>
      %565 = tpu.matmul %564, %15, %cst_148 {dimension_numbers = #tpu.dot_dimension_numbers<[1], [0], [0], [1], [0, 0, 1, 1], [], []>} : vector<10x32xf32>, vector<32x32xf32>, vector<10x32xf32> -> vector<10x32xf32>
      %566 = vector.broadcast %25 : vector<1x32xf32> to vector<10x32xf32>
      %567 = arith.addf %565, %566 : vector<10x32xf32>
      %568 = arith.addf %388, %567 : vector<10x32xf32>
      %cst_149 = arith.constant dense<0.000000e+00> : vector<10xf32>
      %569 = vector.multi_reduction <add>, %568, %cst_149 [1] : vector<10x32xf32> to vector<10xf32>
      %570 = vector.shape_cast %569 : vector<10xf32> to vector<10x1xf32>
      %cst_150 = arith.constant 3.200000e+01 : f32
      %571 = vector.broadcast %cst_150 : f32 to vector<10x1xf32>
      %572 = arith.divf %570, %571 : vector<10x1xf32>
      %573 = vector.broadcast %572 : vector<10x1xf32> to vector<10x32xf32>
      %574 = arith.subf %568, %573 : vector<10x32xf32>
      %575 = arith.mulf %574, %574 : vector<10x32xf32>
      %cst_151 = arith.constant dense<0.000000e+00> : vector<10xf32>
      %576 = vector.multi_reduction <add>, %575, %cst_151 [1] : vector<10x32xf32> to vector<10xf32>
      %577 = vector.shape_cast %576 : vector<10xf32> to vector<10x1xf32>
      %cst_152 = arith.constant 3.200000e+01 : f32
      %578 = vector.broadcast %cst_152 : f32 to vector<10x1xf32>
      %579 = arith.divf %577, %578 : vector<10x1xf32>
      %580 = vector.broadcast %572 : vector<10x1xf32> to vector<10x32xf32>
      %581 = arith.subf %568, %580 : vector<10x32xf32>
      %cst_153 = arith.constant 9.99999974E-6 : f32
      %582 = vector.broadcast %cst_153 : f32 to vector<10x1xf32>
      %583 = arith.addf %579, %582 : vector<10x1xf32>
      %584 = math.rsqrt %583 : vector<10x1xf32>
      %585 = vector.broadcast %584 : vector<10x1xf32> to vector<10x32xf32>
      %586 = arith.mulf %581, %585 : vector<10x32xf32>
      %587 = vector.broadcast %32 : vector<1x32xf32> to vector<10x32xf32>
      %588 = arith.mulf %586, %587 : vector<10x32xf32>
      %589 = vector.broadcast %33 : vector<1x32xf32> to vector<10x32xf32>
      %590 = arith.addf %588, %589 : vector<10x32xf32>
      %cst_154 = arith.constant dense<0.000000e+00> : vector<10x64xf32>
      %591 = tpu.matmul %590, %16, %cst_154 {dimension_numbers = #tpu.dot_dimension_numbers<[1], [0], [0], [1], [0, 0, 1, 1], [], []>} : vector<10x32xf32>, vector<32x64xf32>, vector<10x64xf32> -> vector<10x64xf32>
      %592 = vector.broadcast %36 : vector<1x64xf32> to vector<10x64xf32>
      %593 = arith.addf %591, %592 : vector<10x64xf32>
      %cst_155 = arith.constant 5.000000e-01 : f32
      %594 = vector.broadcast %cst_155 : f32 to vector<10x64xf32>
      %595 = arith.mulf %594, %593 : vector<10x64xf32>
      %cst_156 = arith.constant 0.707106769 : f32
      %596 = vector.broadcast %cst_156 : f32 to vector<10x64xf32>
      %597 = arith.mulf %593, %596 : vector<10x64xf32>
      %598 = math.erf %597 : vector<10x64xf32>
      %cst_157 = arith.constant 1.000000e+00 : f32
      %599 = vector.broadcast %cst_157 : f32 to vector<10x64xf32>
      %600 = arith.addf %599, %598 : vector<10x64xf32>
      %601 = arith.mulf %595, %600 : vector<10x64xf32>
      %cst_158 = arith.constant dense<0.000000e+00> : vector<10x32xf32>
      %602 = tpu.matmul %601, %6, %cst_158 {dimension_numbers = #tpu.dot_dimension_numbers<[1], [0], [0], [1], [0, 0, 1, 1], [], []>} : vector<10x64xf32>, vector<64x32xf32>, vector<10x32xf32> -> vector<10x32xf32>
      %603 = arith.addf %568, %602 : vector<10x32xf32>
      %604 = vector.broadcast %37 : vector<1x32xf32> to vector<10x32xf32>
      %605 = arith.addf %603, %604 : vector<10x32xf32>
      %cst_159 = arith.constant dense<0.000000e+00> : vector<10xf32>
      %606 = vector.multi_reduction <add>, %605, %cst_159 [1] : vector<10x32xf32> to vector<10xf32>
      %607 = vector.shape_cast %606 : vector<10xf32> to vector<10x1xf32>
      %cst_160 = arith.constant 3.200000e+01 : f32
      %608 = vector.broadcast %cst_160 : f32 to vector<10x1xf32>
      %609 = arith.divf %607, %608 : vector<10x1xf32>
      %610 = vector.broadcast %609 : vector<10x1xf32> to vector<10x32xf32>
      %611 = arith.subf %605, %610 : vector<10x32xf32>
      %612 = arith.mulf %611, %611 : vector<10x32xf32>
      %cst_161 = arith.constant dense<0.000000e+00> : vector<10xf32>
      %613 = vector.multi_reduction <add>, %612, %cst_161 [1] : vector<10x32xf32> to vector<10xf32>
      %614 = vector.shape_cast %613 : vector<10xf32> to vector<10x1xf32>
      %cst_162 = arith.constant 3.200000e+01 : f32
      %615 = vector.broadcast %cst_162 : f32 to vector<10x1xf32>
      %616 = arith.divf %614, %615 : vector<10x1xf32>
      %617 = vector.broadcast %609 : vector<10x1xf32> to vector<10x32xf32>
      %618 = arith.subf %605, %617 : vector<10x32xf32>
      %cst_163 = arith.constant 9.99999974E-6 : f32
      %619 = vector.broadcast %cst_163 : f32 to vector<10x1xf32>
      %620 = arith.addf %616, %619 : vector<10x1xf32>
      %621 = math.rsqrt %620 : vector<10x1xf32>
      %622 = vector.broadcast %621 : vector<10x1xf32> to vector<10x32xf32>
      %623 = arith.mulf %618, %622 : vector<10x32xf32>
      %624 = vector.broadcast %34 : vector<1x32xf32> to vector<10x32xf32>
      %625 = arith.mulf %623, %624 : vector<10x32xf32>
      %626 = vector.broadcast %35 : vector<1x32xf32> to vector<10x32xf32>
      %627 = arith.addf %625, %626 : vector<10x32xf32>
      %cst_164 = arith.constant dense<0.000000e+00> : vector<10x128xf32>
      %628 = tpu.matmul %627, %17, %cst_164 {dimension_numbers = #tpu.dot_dimension_numbers<[1], [0], [0], [1], [0, 0, 1, 1], [], []>} : vector<10x32xf32>, vector<32x128xf32>, vector<10x128xf32> -> vector<10x128xf32>
      %629 = vector.broadcast %38 : vector<1x128xf32> to vector<10x128xf32>
      %630 = arith.addf %628, %629 : vector<10x128xf32>
      %c0_165 = arith.constant 0 : index
      %c0_166 = arith.constant 0 : index
      %631 = vector.load %arg9[%c0_165, %c0_166] : memref<10x128xf32, #tpu.memory_space<vmem>>, vector<10x128xf32>
      tpu.vector_store %arg9[%c0_165, %c0_166], %630 {strides = array<i32>} : memref<10x128xf32, #tpu.memory_space<vmem>>, vector<10x128xf32>,
    } else {
    }
    return
  }
  func.func @transform_0(%arg0: i32) -> (i32, i32) {
    %c0_i32 = arith.constant 0 : i32
    %c0_i32_0 = arith.constant 0 : i32
    %c0_i32_1 = arith.constant 0 : i32
    return %c0_i32, %c0_i32_0 : i32, i32
  }
  func.func @transform_1(%arg0: i32) -> (i32, i32) {
    %c0_i32 = arith.constant 0 : i32
    %c0_i32_0 = arith.constant 0 : i32
    %c0_i32_1 = arith.constant 0 : i32
    return %c0_i32, %c0_i32_0 : i32, i32
  }
  func.func @transform_2(%arg0: i32) -> (i32, i32) {
    %c0_i32 = arith.constant 0 : i32
    %c0_i32_0 = arith.constant 0 : i32
    %c0_i32_1 = arith.constant 0 : i32
    return %c0_i32, %c0_i32_0 : i32, i32
  }
  func.func @transform_3(%arg0: i32) -> (i32, i32) {
    %c0_i32 = arith.constant 0 : i32
    %c0_i32_0 = arith.constant 0 : i32
    %c0_i32_1 = arith.constant 0 : i32
    return %c0_i32, %c0_i32_0 : i32, i32
  }
  func.func @transform_4(%arg0: i32) -> (i32, i32) {
    %c0_i32 = arith.constant 0 : i32
    %c0_i32_0 = arith.constant 0 : i32
    %c0_i32_1 = arith.constant 0 : i32
    return %c0_i32, %c0_i32_0 : i32, i32
  }
  func.func @transform_5(%arg0: i32) -> (i32, i32) {
    %c0_i32 = arith.constant 0 : i32
    %c0_i32_0 = arith.constant 0 : i32
    %c0_i32_1 = arith.constant 0 : i32
    return %c0_i32, %c0_i32_0 : i32, i32
  }
  func.func @transform_6(%arg0: i32) -> (i32, i32) {
    %c0_i32 = arith.constant 0 : i32
    %c0_i32_0 = arith.constant 0 : i32
    %c0_i32_1 = arith.constant 0 : i32
    return %c0_i32, %c0_i32_0 : i32, i32
  }
  func.func @transform_7(%arg0: i32) -> (i32, i32) {
    %c0_i32 = arith.constant 0 : i32
    %c0_i32_0 = arith.constant 0 : i32
    %c0_i32_1 = arith.constant 0 : i32
    return %c0_i32, %c0_i32_0 : i32, i32
  }
  func.func @transform_8(%arg0: i32) -> (i32, i32) {
    %c0_i32 = arith.constant 0 : i32
    %c0_i32_0 = arith.constant 0 : i32
    %c0_i32_1 = arith.constant 0 : i32
    return %c0_i32, %c0_i32_0 : i32, i32
  }
}

</mosaic_0001>

<bundles_post_ra>
// kernel: forward.2
= control target key start
LH: loop header
LB: loop body
LE: loop exit
PB: predicated region body
PF: predicated region fallthrough
CT: control target
= control target key end

     0   :  { %vm77_vm0 = vcmask 64512   ;;  %vm188_vm1 = vcmask 130048   ;;  %vm401_vm2 = vcmask 261120   ;;  %vm4660_vm3 = vmmov 0   ;;  %s5435_s1 = inlined_call_operand.vmem [shape: f32[8,16], index: 1, kind: input, shape index: {}]   ;;  %s5436_s0 = inlined_call_operand.vmem [shape: f32[2,32,8], index: 0, kind: input, shape index: {}]   ;;  %s5437_s3 = inlined_call_operand.vmem [shape: f32[16,8], index: 3, kind: input, shape index: {}]   ;;  %s5438_s2 = inlined_call_operand.vmem [shape: f32[1,16], index: 2, kind: input, shape index: {}]   ;;  %s5439_s5 = inlined_call_operand.vmem [shape: f32[8,32], index: 5, kind: input, shape index: {}]   ;;  %s5440_s4 = inlined_call_operand.vmem [shape: f32[1,8], index: 4, kind: input, shape index: {}]   ;;  %s5441_s7 = inlined_call_operand.vmem [shape: f32[80,32], index: 7, kind: input, shape index: {}]   ;;  %s5442_s10 = inlined_call_operand.vmem [shape: f32[160,32], index: 10, kind: input, shape index: {}]   ;;  %s5443_s6 = inlined_call_operand.vmem [shape: f32[1,32], index: 6, kind: input, shape index: {}]   ;;  %s5444_s11 = inlined_call_operand.vmem [shape: f32[1,32], index: 11, kind: input, shape index: {}]   ;;  %s5445_s8 = inlined_call_operand.vmem [shape: f32[8,16], index: 8, kind: input, shape index: {}]   ;;  %s5446_s9 = inlined_call_operand.vmem [shape: f32[8,16], index: 9, kind: input, shape index: {}]   ;;  %s5447_s15 = inlined_call_operand.vmem [shape: f32[160,32], index: 15, kind: input, shape index: {}]   ;;  %s5448_s12 = inlined_call_operand.vmem [shape: f32[20,8], index: 12, kind: input, shape index: {}]   ;;  %s5449_s16 = inlined_call_operand.vmem [shape: f32[1,32], index: 16, kind: input, shape index: {}]   ;;  %s5450_s18 = inlined_call_operand.vmem [shape: f32[32,32], index: 18, kind: input, shape index: {}]   ;;  %s5451_s13 = inlined_call_operand.vmem [shape: f32[2,4], index: 13, kind: input, shape index: {}]   ;;  %s5452_s14 = inlined_call_operand.vmem [shape: f32[2,4], index: 14, kind: input, shape index: {}]   ;;  %s5453_s17 = inlined_call_operand.vmem [shape: f32[2,32], index: 17, kind: input, shape index: {}]   ;;  %s5454_s19 = inlined_call_operand.vmem [shape: f32[1,32], index: 19, kind: input, shape index: {}]   ;;  %s5455_s20 = inlined_call_operand.vmem [shape: f32[4,32], index: 20, kind: output, shape index: {}]  }
   0x1   :  { %5458 = sst [smem:[#allocation2_spill]] %s5435_s1  ;;  %v4825_v22 = vld [vmem:[%s5440_s4] ss:$0 sm:$0xff]  ;;  %v552_v33 = vld [vmem:[%s5442_s10 + $0x28] sm:$0xff]  ;;  %v4869_v47 = vld [vmem:[%s5441_s7 + $0x10] sm:$0xff]  ;;  %vm1644_vm4 = vcmask 1043456  }
   0x2   :  { %5459 = sst [smem:[#allocation3_spill]] %s5436_s0  ;;  %s5463_s23 = sld [smem:[#allocation2_spill]]  ;;  %v4838_v31 = vld [vmem:[%s5441_s7] sm:$0xff]  ;;  %v4864_v46 = vld [vmem:[%s5441_s7 + $0x8] sm:$0xff]  ;;  %v4878_v48 = vld [vmem:[%s5441_s7 + $0x18] sm:$0xff]  ;;  %vm1640_vm5 = vcmask 31744  }
   0x3   :  { %5460 = sst [smem:[#allocation4_spill]] %s5437_s3  ;;  %s5464_s25 = sld [smem:[#allocation3_spill]]  ;;  %v551_v32 = vld [vmem:[%s5442_s10 + $0x20] sm:$0xff]  ;;  %v4892_v50 = vld [vmem:[%s5441_s7 + $0x28] sm:$0xff]  ;;  %v4897_v51 = vld [vmem:[%s5441_s7 + $0x30] sm:$0xff]  ;;  %vm1884_vm6 = vcmask 254976  }
   0x4   :  { %5461 = sst [smem:[#allocation5_spill]] %s5438_s2  ;;  %s5465_s21 = sld [smem:[#allocation4_spill]]  ;;  %v4848_v34 = vpack.c.bf16 %v552_v33, %v551_v32  ;;  %v4855_v35 = vld [vmem:[%s5443_s6] ss:$0 sm:$0xff]  ;;  %v4906_v52 = vld [vmem:[%s5441_s7 + $0x38] sm:$0xff]  ;;  %v4920_v54 = vld [vmem:[%s5441_s7 + $0x48] sm:$0xff] }
   0x5   :  { %5462 = sst [smem:[#allocation6_spill]] %s5439_s5  ;;  %s5466_s3 = sld [smem:[#allocation5_spill]]  ;;  %v4883_v49 = vld [vmem:[%s5441_s7 + $0x20] sm:$0xff]  ;;  %v553_v55 = vld [vmem:[%s5442_s10 + $0x30] sm:$0xff]  ;;  %v554_v56 = vld [vmem:[%s5442_s10 + $0x38] sm:$0xff] }
   0x6   :  { %s5467_s27 = sld [smem:[#allocation6_spill]]  ;;  %v4911_v53 = vld [vmem:[%s5441_s7 + $0x40] sm:$0xff]  ;;  %v4930_v57 = vpack.c.bf16 %v554_v56, %v553_v55  ;;  %v548_v59 = vld [vmem:[%s5442_s10 + $0x8] sm:$0xff]  ;;  %v549_v63 = vld [vmem:[%s5442_s10 + $0x10] sm:$0xff] }
   0x7   :  { %v547_v58 = vld [vmem:[%s5442_s10] sm:$0xff]  ;;  %v566_v32 = vld [vmem:[%s5442_s10 + $0x98] sm:$0xff] }
   0x8   :  { %v4770_v0 = vld [vmem:[%s5463_s23] sm:$0xff]  ;;  %v4940_v60 = vpack.c.bf16 %v548_v59, %v547_v58 }
   0x9   :  { %v65_v1 = vld [vmem:[%s5464_s25] sm:$0xff]  ;;  %v66_v2 = vld [vmem:[%s5464_s25 + $0x8] sm:$0xff]  ;;  %4024 = vmatprep.subr.mxu0 %v4770_v0  ;;  %v67_v3 = vld [vmem:[%s5464_s25 + $0x10] sm:$0xff]  ;;  %4622 = vmatprep.subr.mxu1 %v4770_v0 }
   0xa   :  { %4026 = vmatprep.mubr.msk.f32.mxu0 %vm77_vm0, %v65_v1  ;;  %4025 = vmatpush3.msra.mxu0 %v4770_v0  ;;  %v68_v4 = vld [vmem:[%s5464_s25 + $0x18] sm:$0xff]  ;;  %v179_v5 = vld [vmem:[%s5465_s21] sm:$0xff]  ;;  %v180_v6 = vld [vmem:[%s5465_s21 + $0x8] sm:$0xff] }
   0xb   :  { %4027 = vmatmul.mubr.msk.f32.vlgmr.msra.gmra.mrb[0].mxu0 %vm77_vm0, %v66_v2  ;;  %4623 = vmatpush3.msra.mxu1 %v4770_v0  ;;  %v4798_v7 = vpack.c.bf16 %v180_v6, %v179_v5  ;;  %v4805_v8 = vld [vmem:[%s5466_s3] ss:$0 sm:$0xff]  ;;  %v550_v1 = vld [vmem:[%s5442_s10 + $0x18] sm:$0xff]  ;;  %v556_v6 = vld [vmem:[%s5442_s10 + $0x48] sm:$0xff] }
   0xc   :  { %4029 = vmatprep.mubr.msk.f32.mxu1 %vm77_vm0, %v67_v3  ;;  %v4818_v21 = vld [vmem:[%s5467_s27] sm:$0xff] }
   0xd   :  { %4030 = vmatmul.mubr.msk.f32.vlgmr.msra.gmra.mrb[0].mxu1 %vm77_vm0, %v68_v4  ;;  %4435 = vmatprep.subr.bf16.mxu1 %v4798_v7  ;;  %v4949_v4 = vpack.c.bf16 %v550_v1, %v549_v63  ;;  %v555_v5 = vld [vmem:[%s5442_s10 + $0x40] sm:$0xff] }
   0xe   :  { %4437 = vmatpush3.bf16.msra.mxu1 %v4798_v7  ;;  %4042 = vmatprep.subr.mxu0 %v4818_v21 }
   0xf   :  { %4043 = vmatpush3.msra.mxu0 %v4818_v21 }
  0x10   :  { %4447 = vmatprep.subr.bf16.mxu0 %v4848_v34 }
  0xde   :  { %v4028_v9 = vpop.f32.mrb[0].mxu0 }
  0xdf   :  { %v162_v10 = vadd.f32 %v4028_v9, %v4805_v8  ;;  %v156_v11 = vpop.f32.mrb[1].mxu0 }
  0xe0   :  { %v157_v12 = vadd.f32 %v4805_v8, %v156_v11  ;;  %v4031_v13 = vpop.f32.mrb[0].mxu1 }
  0xe1   :  { %v166_v14 = vpop.f32.mrb[1].mxu1  ;;  %v176_v17 = vmax.f32 %v162_v10, 0.0  ;;  %v172_v18 = vadd.f32 %v4031_v13, %v4805_v8  ;;  %v4962_v10 = vpack.c.bf16 %v556_v6, %v555_v5  ;;  %v558_v13 = vld [vmem:[%s5442_s10 + $0x58] sm:$0xff]  ;;  %v1238_v5 = vld [vmem:[%s5447_s15] sm:$0xff]  ;;  %v1239_v6 = vld [vmem:[%s5447_s15 + $0x8] sm:$0xff] }
  0xe2   :  { %v175_v15 = vmax.f32 %v157_v12, 0.0  ;;  %v167_v16 = vadd.f32 %v4805_v8, %v166_v14  ;;  %v557_v12 = vld [vmem:[%s5442_s10 + $0x50] sm:$0xff] }
  0xe3   :  { %v178_v20 = vmax.f32 %v172_v18, 0.0  ;;  %v560_v18 = vld [vmem:[%s5442_s10 + $0x68] sm:$0xff] }
  0xe4   :  { %v177_v19 = vmax.f32 %v167_v16, 0.0  ;;  %4036 = vmatprep.mubr.msk.f32.mxu1 %vm188_vm1, %v175_v15  ;;  %v4972_v15 = vpack.c.bf16 %v558_v13, %v557_v12  ;;  %v1241_v12 = vld [vmem:[%s5447_s15 + $0x18] sm:$0xff] }
  0xe5   :  { %4037 = vmatmul.mubr.msk.f32.vlgmr.msra.gmra.mrb[2].mxu1 %vm188_vm1, %v176_v17  ;;  %v559_v17 = vld [vmem:[%s5442_s10 + $0x60] sm:$0xff] }
  0xe6   :  { %4039 = vmatprep.mubr.msk.f32.mxu1 %vm188_vm1, %v177_v19 }
  0xe9   :  { %4040 = vmatmul.mubr.msk.f32.gmra.mrb[4].mxu1 %vm188_vm1, %v178_v20  ;;  %v4984_v20 = vpack.c.bf16 %v560_v18, %v559_v17  ;;  %v1242_v17 = vld [vmem:[%s5447_s15 + $0x20] sm:$0xff]  ;;  %v1243_v18 = vld [vmem:[%s5447_s15 + $0x28] sm:$0xff] }
  0xea   :  { %4058 = vmatprep.mubr.msk.f32.mxu1 %vm401_vm2, %v4838_v31 }
 0x1b8   :  { %v4038_v23 = vpop.f32.mrb[2].mxu1 }
 0x1b9   :  { %v267_v24 = vpop.f32.mrb[3].mxu1  ;;  %v273_v26 = vadd.f32 %v4038_v23, %v4825_v22 }
 0x1ba   :  { %v268_v25 = vadd.f32 %v4825_v22, %v267_v24  ;;  %v561_v24 = vld [vmem:[%s5442_s10 + $0x70] sm:$0xff] }
 0x1bc   :  { %v4041_v27 = vpop.f32.mrb[4].mxu1  ;;  %4044 = vmatprep.mubr.msk.f32.mxu0 %vm77_vm0, %v268_v25  ;;  %v562_v25 = vld [vmem:[%s5442_s10 + $0x78] sm:$0xff] }
 0x1bd   :  { %v277_v28 = vpop.f32.mrb[5].mxu1  ;;  %4045 = vmatmul.mubr.msk.f32.vlgmr.msra.gmra.mrb[2].mxu0 %vm77_vm0, %v273_v26  ;;  %v283_v30 = vadd.f32 %v4041_v27, %v4825_v22  ;;  %v4994_v26 = vpack.c.bf16 %v562_v25, %v561_v24  ;;  %v563_v27 = vld [vmem:[%s5442_s10 + $0x80] sm:$0xff] }
 0x1be   :  { %v278_v29 = vadd.f32 %v4825_v22, %v277_v28  ;;  %4449 = vmatpush3.bf16.msra.mxu0 %v4848_v34  ;;  %v564_v28 = vld [vmem:[%s5442_s10 + $0x88] sm:$0xff]  ;;  %v5086_v25 = vld [vmem:[%s5448_s12] sm:$0xff] }
 0x1bf   :  { %4451 = vmatprep.subr.bf16.mxu0 %v4930_v57 }
 0x1c0   :  { %4047 = vmatprep.mubr.msk.f32.mxu0 %vm77_vm0, %v278_v29  ;;  %v5006_v29 = vpack.c.bf16 %v564_v28, %v563_v27  ;;  %v5088_v27 = vpack.c.bf16 %v1243_v18, %v1242_v17  ;;  %v1244_v28 = vld [vmem:[%s5447_s15 + $0x30] sm:$0xff]  ;;  %v1255_v17 = vld [vmem:[%s5447_s15 + $0x88] sm:$0xff] }
 0x1c1   :  { %4048 = vmatmul.mubr.msk.f32.gmra.mrb[4].mxu0 %vm77_vm0, %v283_v30  ;;  %v565_v30 = vld [vmem:[%s5442_s10 + $0x90] sm:$0xff] }
 0x1c2   :  { %4453 = vmatpush3.bf16.msra.mxu0 %v4930_v57  ;;  %v5016_v33 = vpack.c.bf16 %v566_v32, %v565_v30  ;;  %v1245_v30 = vld [vmem:[%s5447_s15 + $0x38] sm:$0xff]  ;;  %v5104_v32 = vld [vmem:[%s5448_s12 + $0x8] sm:$0xff] }
 0x1c3   :  { %4455 = vmatprep.subr.bf16.mxu0 %v4940_v60 }
 0x290   :  { %v4046_v36 = vpop.f32.mrb[2].mxu0 }
 0x291   :  { %v378_v37 = vadd.f32 %v4046_v36, %v4855_v35  ;;  %v372_v38 = vpop.f32.mrb[3].mxu0  ;;  %v4659_v36 = vmov 0.0|0.0  }
 0x292   :  { %v373_v39 = vadd.f32 %v4855_v35, %v372_v38  ;;  %v5033_v38 = vld [vmem:[%s5444_s11] ss:$0 sm:$0xff] }
 0x294   :  { %v4438_v40 = vpack.c.bf16 %v378_v37, %v373_v39  ;;  %v4049_v41 = vpop.f32.mrb[4].mxu0  ;;  %v4661_v37 = vmov 0.0  }
 0x295   :  { %v388_v42 = vadd.f32 %v4049_v41, %v4855_v35  ;;  %v382_v43 = vpop.f32.mrb[5].mxu0 }
 0x296   :  { %v383_v44 = vadd.f32 %v4855_v35, %v382_v43  ;;  %4439 = vmatprep.subr.bf16.mxu1 %v4438_v40 }
 0x297   :  { %4441 = vmatpush3.bf16.msra.mxu1 %v4438_v40 }
 0x298   :  { %v4442_v45 = vpack.c.bf16 %v388_v42, %v383_v44 }
 0x29a   :  { %4443 = vmatprep.subr.bf16.mxu1 %v4442_v45 }
 0x29b   :  { %4445 = vmatpush3.bf16.msra.mxu1 %v4442_v45 }
 0x29c   :  { %4486 = vmatprep.subr.bf16.mxu1 %v4659_v36 }
 0x29e   :  { %4059 = vmatmul.mubr.msk.f32.vlgmr.msra.gmra.mrb[6].mxu1 %vm401_vm2, %v4864_v46 }
 0x29f   :  { %4061 = vmatprep.mubr.msk.f32.mxu1 %vm401_vm2, %v4869_v47 }
 0x2a2   :  { %4062 = vmatmul.mubr.msk.f32.gmra.mrb[8].mxu1 %vm401_vm2, %v4878_v48 }
 0x2a3   :  { %4064 = vmatprep.mubr.msk.f32.mxu1 %vm401_vm2, %v4883_v49 }
 0x2a6   :  { %4065 = vmatmul.mubr.msk.f32.gmra.mrb[10].mxu1 %vm401_vm2, %v4892_v50 }
 0x2a7   :  { %4067 = vmatprep.mubr.msk.f32.mxu1 %vm401_vm2, %v4897_v51 }
 0x2aa   :  { %4068 = vmatmul.mubr.msk.f32.gmra.mrb[12].mxu1 %vm401_vm2, %v4906_v52 }
 0x2ab   :  { %4070 = vmatprep.mubr.msk.f32.mxu1 %vm401_vm2, %v4911_v53 }
 0x2ae   :  { %4071 = vmatmul.mubr.msk.f32.gmra.mrb[14].mxu1 %vm401_vm2, %v4920_v54 }
 0x2af   :  { %4132 = vmatprep.mubr.msk.f32.mxu1 %vm4660_vm3, %v4661_v37 }
 0x371   :  { %v4060_v61 = vpop.f32.mrb[6].mxu1 }
 0x372   :  { %v498_v62 = vpop.f32.mrb[7].mxu1 }
 0x375   :  { %v4063_v2 = vpop.f32.mrb[8].mxu1 }
 0x376   :  { %v508_v3 = vpop.f32.mrb[9].mxu1 }
 0x377   :  { %4081 = vmatprep.mubr.msk.f32.mxu0 %vm401_vm2, %v508_v3  ;;  %v5050_v3 = vld [vmem:[%s5446_s9] sm:$0xff] }
 0x378   :  { %4082 = vmatmul.mubr.msk.f32.vlgmr.msra.gmra.mrb[6].mxu0 %vm401_vm2, %v4063_v2  ;;  %v5040_v2 = vld [vmem:[%s5445_s8] sm:$0xff] }
 0x379   :  { %4457 = vmatpush3.bf16.msra.mxu0 %v4940_v60  ;;  %4092 = vmatprep.mubr.msk.f32.mxu0 %vm401_vm2, %v498_v62  ;;  %v4066_v9 = vpop.f32.mrb[10].mxu1 }
 0x37a   :  { %4459 = vmatprep.subr.bf16.mxu0 %v4949_v4  ;;  %v518_v11 = vpop.f32.mrb[11].mxu1 }
 0x37d   :  { %4461 = vmatpush3.bf16.msra.mxu0 %v4949_v4  ;;  %v4069_v14 = vpop.f32.mrb[12].mxu1 }
 0x37e   :  { %4463 = vmatprep.subr.bf16.mxu0 %v4962_v10  ;;  %v528_v16 = vpop.f32.mrb[13].mxu1 }
 0x380   :  { %4093 = vmatmul.mubr.msk.f32.vlgmr.msra.gmra.mrb[6].mxu0 %vm401_vm2, %v4060_v61 }
 0x381   :  { %4465 = vmatpush3.bf16.msra.mxu0 %v4962_v10  ;;  %4103 = vmatprep.mubr.msk.f32.mxu0 %vm401_vm2, %v518_v11  ;;  %v4072_v19 = vpop.f32.mrb[14].mxu1  ;;  %v1240_v11 = vld [vmem:[%s5447_s15 + $0x10] sm:$0xff] }
 0x382   :  { %4467 = vmatprep.subr.bf16.mxu0 %v4972_v15  ;;  %v538_v23 = vpop.f32.mrb[15].mxu1  ;;  %v5072_v13 = vpack.c.bf16 %v1241_v12, %v1240_v11 }
 0x385   :  { %4469 = vmatpush3.bf16.msra.mxu0 %v4972_v15 }
 0x386   :  { %4471 = vmatprep.subr.bf16.mxu0 %v4984_v20 }
 0x388   :  { %4104 = vmatmul.mubr.msk.f32.vlgmr.msra.gmra.mrb[6].mxu0 %vm401_vm2, %v4066_v9  ;;  %v5063_v9 = vpack.c.bf16 %v1239_v6, %v1238_v5 }
 0x389   :  { %4473 = vmatpush3.bf16.msra.mxu0 %v4984_v20  ;;  %4114 = vmatprep.mubr.msk.f32.mxu0 %vm401_vm2, %v528_v16 }
 0x38a   :  { %4475 = vmatprep.subr.bf16.mxu0 %v4994_v26 }
 0x38d   :  { %4477 = vmatpush3.bf16.msra.mxu0 %v4994_v26 }
 0x38e   :  { %4479 = vmatprep.subr.bf16.mxu0 %v5006_v29 }
 0x390   :  { %4115 = vmatmul.mubr.msk.f32.vlgmr.msra.gmra.mrb[6].mxu0 %vm401_vm2, %v4069_v14 }
 0x391   :  { %4481 = vmatpush3.bf16.msra.mxu0 %v5006_v29  ;;  %4125 = vmatprep.mubr.msk.f32.mxu0 %vm401_vm2, %v538_v23 }
 0x392   :  { %4483 = vmatprep.subr.bf16.mxu0 %v5016_v33 }
 0x395   :  { %4485 = vmatpush3.bf16.msra.mxu0 %v5016_v33 }
 0x396   :  { %4498 = vmatprep.subr.bf16.mxu0 %v4659_v36 }
 0x398   :  { %4126 = vmatmul.mubr.msk.f32.vlgmr.msra.gmra.mrb[6].mxu0 %vm401_vm2, %v4072_v19 }
 0x399   :  { %4172 = vmatprep.mubr.msk.f32.mxu0 %vm4660_vm3, %v4661_v37  ;;  %4500 = vmatpush3.bf16.msra.mxu0 %v5063_v9 }
 0x39a   :  { %4501 = vmatprep.subr.bf16.mxu0 %v4659_v36 }
 0x39d   :  { %4503 = vmatpush3.bf16.msra.mxu0 %v5072_v13 }
 0x39e   :  { %4510 = vmatprep.subr.bf16.mxu0 %v4659_v36 }
 0x46b   :  { %v4127_v39 = vpop.f32.mrb[6].mxu0 }
 0x46c   :  { %v986_v40 = vadd.f32 %v4127_v39, %v5033_v38  ;;  %v967_v41 = vpop.f32.mrb[7].mxu0  ;;  %v5107_v39 = vpack.c.bf16 %v1245_v30, %v1244_v28 }
 0x46d   :  { %v985_v42 = vadd.f32 %v5033_v38, %v967_v41  ;;  %v1250_v41 = vld [vmem:[%s5447_s15 + $0x60] sm:$0xff] }
 0x46e   :  { %v990_v43 = vmul.f32 0.70710677, %v986_v40  ;;  %v988_v56 = vmul.f32 0.5, %v986_v40  ;;  %v1148_v40 = vld [vmem:[%s5448_s12 + $0x10] sm:$0xf] }
 0x46f   :  { %v989_v44 = vmul.f32 0.70710677, %v985_v42  ;;  %v987_v59 = vmul.f32 0.5, %v985_v42  ;;  %v1251_v42 = vld [vmem:[%s5447_s15 + $0x68] sm:$0xff] }
 0x470   :  { %4643 = verf.f32 %v990_v43  ;;  %v1246_v43 = vld [vmem:[%s5447_s15 + $0x40] sm:$0xff] }
 0x471   :  { %4645 = verf.f32 %v989_v44  ;;  %v1247_v44 = vld [vmem:[%s5447_s15 + $0x48] sm:$0xff] }
 0x47a   :  { %v4644_v45 = vpop.eup %4643 }
 0x47b   :  { %v4646_v55 = vpop.eup %4645  ;;  %v994_v58 = vadd.f32 1.0, %v4644_v45  ;;  %v5134_v45 = vpack.c.bf16 %v1251_v42, %v1250_v41 }
 0x47c   :  { %v993_v61 = vadd.f32 1.0, %v4646_v55  ;;  %v1252_v55 = vld [vmem:[%s5447_s15 + $0x70] sm:$0xff] }
 0x47d   :  { %v996_v62 = vmul.f32 %v994_v58, %v988_v56  ;;  %v1253_v56 = vld [vmem:[%s5447_s15 + $0x78] sm:$0xff] }
 0x47e   :  { %v995_v63 = vmul.f32 %v993_v61, %v987_v59  ;;  %v5142_v59 = vpack.c.bf16 %v1247_v44, %v1246_v43  ;;  %v5152_v5 = vpack.c.bf16 %v1253_v56, %v1252_v55 }
 0x480   :  { %v4487_v1 = vpack.c.bf16 %v996_v62, %v995_v63  ;;  %v1248_v63 = vld [vmem:[%s5447_s15 + $0x50] sm:$0xff] }
 0x482   :  { %4488 = vmatpush3.bf16.msra.mxu1 %v4487_v1 }
 0x483   :  { %4489 = vmatprep.subr.bf16.mxu1 %v4659_v36 }
 0x485   :  { %4133 = vmatmul.mubr.msk.f32.vlgmr.msra.gmra.mrb[16].mxu1 %vm188_vm1, %v5040_v2 }
 0x486   :  { %4491 = vmatpush3.bf16.msra.mxu1 %v4487_v1  ;;  %4139 = vmatprep.mubr.msk.f32.mxu1 %vm4660_vm3, %v4661_v37  ;;  %v1249_v1 = vld [vmem:[%s5447_s15 + $0x58] sm:$0xff] }
 0x487   :  { %4142 = vmatprep.subr.mxu1 %v4661_v37  ;;  %v5159_v6 = vpack.c.bf16 %v1249_v1, %v1248_v63 }
 0x489   :  { %4140 = vmatmul.mubr.msk.f32.vlgmr.msra.gmra.mrb[18].mxu1 %vm188_vm1, %v5050_v3 }
 0x48a   :  { %4144 = vmatprep.mubr.msk.f32.mxu1 %vm4660_vm3, %v4661_v37 }
 0x558   :  { %v1067_v14 = vpop.f32.mrb[16].mxu1 }
 0x559   :  { %v4134_v16 = vpop.f32.mrb[17].mxu1 }
 0x55a   :  { %v1254_v16 = vld [vmem:[%s5447_s15 + $0x80] sm:$0xff] }
 0x55b   :  { %v5173_v18 = vpack.c.bf16 %v1255_v17, %v1254_v16 }
 0x55c   :  { %v1141_v19 = vpop.f32.mrb[18].mxu1 }
 0x55d   :  { %v1145_v23 = vmax.f32 %v1067_v14, %v1141_v19  ;;  %v4141_v24 = vpop.f32.mrb[19].mxu1 }
 0x55e   :  { %v1257_v24 = vld [vmem:[%s5447_s15 + $0x98] sm:$0xff] }
 0x55f   :  { %4143 = vmatpush3.msra.mxu1 %v1145_v23  ;;  %v1256_v23 = vld [vmem:[%s5447_s15 + $0x90] sm:$0xff] }
 0x560   :  { %4145 = vmatmul.mubr.msk.f32.vlgmr.msra.gmra.mrb[20].mxu1 %vm77_vm0, %v5086_v25  ;;  %4492 = vmatprep.subr.bf16.mxu1 %v4659_v36  ;;  %v5187_v30 = vpack.c.bf16 %v1257_v24, %v1256_v23 }
 0x561   :  { %4147 = vmatprep.mubr.msk.f32.mxu1 %vm4660_vm3, %v4661_v37  ;;  %4494 = vmatpush3.bf16.msra.mxu1 %v5088_v27 }
 0x562   :  { %4495 = vmatprep.subr.bf16.mxu1 %v4659_v36 }
 0x564   :  { %4148 = vmatmul.mubr.msk.f32.gmra.mrb[22].mxu1 %vm77_vm0, %v5104_v32 }
 0x565   :  { %4150 = vmatprep.mubr.msk.f32.mxu1 %vm4660_vm3, %v4661_v37  ;;  %4497 = vmatpush3.bf16.msra.mxu1 %v5107_v39 }
 0x566   :  { %4504 = vmatprep.subr.bf16.mxu1 %v4659_v36 }
 0x568   :  { %4151 = vmatmul.mubr.msk.f32.gmra.mrb[24].mxu1 %vm77_vm0, %v1148_v40 }
 0x569   :  { %4161 = vmatprep.mubr.msk.f32.mxu1 %vm4660_vm3, %v4661_v37 }
 0x633   :  { %v1224_v58 = vpop.f32.mrb[20].mxu1 }
 0x634   :  { %v1259_v61 = vrot.slane %v1224_v58, 4  ;;  %v4146_v62 = vpop.f32.mrb[21].mxu1  ;;  %4173 = vmatmul.mubr.msk.f32.vlgmr.msra.gmra.mrb[8].mxu0 %vm401_vm2, %v1224_v58 }
 0x635   :  { %4512 = vmatpush3.bf16.msra.mxu0 %v5134_v45  ;;  %4194 = vmatprep.mubr.msk.f32.mxu0 %vm4660_vm3, %v4661_v37 }
 0x636   :  { %4162 = vmatmul.mubr.msk.f32.vlgmr.msra.gmra.mrb[26].mxu1 %vm401_vm2, %v1259_v61  ;;  %4513 = vmatprep.subr.bf16.mxu0 %v4659_v36 }
 0x637   :  { %4506 = vmatpush3.bf16.msra.mxu1 %v5142_v59  ;;  %v1229_v11 = vpop.f32.mrb[22].mxu1  ;;  %4183 = vmatprep.mubr.msk.f32.mxu1 %vm4660_vm3, %v4661_v37 }
 0x638   :  { %4507 = vmatprep.subr.bf16.mxu1 %v4659_v36  ;;  %v1478_v12 = vrot.slane %v1229_v11, 4  ;;  %v4149_v14 = vpop.f32.mrb[23].mxu1 }
 0x639   :  { %4515 = vmatpush3.bf16.msra.mxu0 %v5152_v5 }
 0x63a   :  { %4208 = vmatprep.subr.mxu0 %v4661_v37 }
 0x63b   :  { %4509 = vmatpush3.bf16.msra.mxu1 %v5159_v6  ;;  %v1234_v19 = vpop.f32.mrb[24].mxu1 }
 0x63c   :  { %4516 = vmatprep.subr.bf16.mxu1 %v4659_v36  ;;  %4195 = vmatmul.mubr.msk.f32.vlgmr.msra.gmra.mrb[10].mxu0 %vm401_vm2, %v1478_v12  ;;  %v4152_v28 = vpop.f32.mrb[25].mxu1 }
 0x63d   :  { %4210 = vmatprep.mubr.msk.f32.mxu0 %vm4660_vm3, %v4661_v37  ;;  %v1795_v28 = vld [vmem:[%s5450_s18] sm:$0xff] }
 0x63e   :  { %4184 = vmatmul.mubr.msk.f32.vlgmr.msra.gmra.mrb[28].mxu1 %vm401_vm2, %v1229_v11  ;;  %v5200_v11 = vld [vmem:[%s5449_s16] ss:$0 sm:$0xff] }
 0x63f   :  { %4518 = vmatpush3.bf16.msra.mxu1 %v5173_v18  ;;  %4205 = vmatprep.mubr.msk.f32.mxu1 %vm4660_vm3, %v4661_v37 }
 0x640   :  { %4519 = vmatprep.subr.bf16.mxu1 %v4659_v36 }
 0x643   :  { %4521 = vmatpush3.bf16.msra.mxu1 %v5187_v30 }
 0x644   :  { %4213 = vmatprep.subr.mxu1 %v4661_v37 }
 0x646   :  { %4206 = vmatmul.mubr.msk.f32.vlgmr.msra.gmra.mrb[30].mxu1 %vm401_vm2, %v1234_v19 }
 0x647   :  { %4215 = vmatprep.mubr.msk.f32.mxu1 %vm4660_vm3, %v4661_v37 }
 0x707   :  { %v1400_v40 = vpop.f32.mrb[8].mxu0 }
 0x708   :  { %v4174_v41 = vpop.f32.mrb[9].mxu0 }
 0x709   :  { %v1328_v42 = vpop.f32.mrb[26].mxu1 }
 0x70a   :  { %v1401_v43 = vadd.f32 %v1400_v40, %v1328_v42  ;;  %v4163_v44 = vpop.f32.mrb[27].mxu1  ;;  %v1796_v40 = vld [vmem:[%s5450_s18 + $0x8] sm:$0xff]  ;;  %v1639_v42 = vld [vmem:[%s5451_s13] sm:$0x3] }
 0x70b   :  { %v3759_v44 = vld [vmem:[%s5464_s25 + $0x20] sm:$0xff] }
 0x70f   :  { %v1547_v55 = vpop.f32.mrb[10].mxu0 }
 0x710   :  { %v4196_v56 = vpop.f32.mrb[11].mxu0 }
 0x711   :  { %v1473_v58 = vpop.f32.mrb[28].mxu1  ;;  %v3760_v56 = vld [vmem:[%s5464_s25 + $0x28] sm:$0xff] }
 0x712   :  { %v1477_v61 = vadd.f32 %v1473_v58, %v1401_v43  ;;  %v4185_v62 = vpop.f32.mrb[29].mxu1  ;;  %v1718_v43 = vld [vmem:[%s5452_s14] sm:$0x3]  ;;  %v3761_v58 = vld [vmem:[%s5464_s25 + $0x30] sm:$0xff] }
 0x713   :  { %v1798_v62 = vld [vmem:[%s5450_s18 + $0x18] sm:$0xff] }
 0x714   :  { %v1551_v63 = vadd.f32 %v1547_v55, %v1477_v61  ;;  %v5220_v55 = vpack.c.bf16 %v1796_v40, %v1795_v28  ;;  %v1797_v61 = vld [vmem:[%s5450_s18 + $0x10] sm:$0xff] }
 0x719   :  { %v1621_v1 = vpop.f32.mrb[30].mxu1 }
 0x71a   :  { %v1625_v12 = vadd.f32 %v1621_v1, %v1551_v63  ;;  %v4207_v14 = vpop.f32.mrb[31].mxu1  ;;  %v5253_v63 = vpack.c.bf16 %v1798_v62, %v1797_v61 }
 0x71c   :  { %v1633_v16 = vadd.f32 %v5200_v11, %v1625_v12  ;;  %v1793_v12 = vld [vmem:[%s5453_s17] sm:$0x3] }
 0x71e   :  { %v1635_v17 = vmul.f32 0.70710677, %v1633_v16  ;;  %v1634_v23 = vmul.f32 0.5, %v1633_v16 }
 0x720   :  { %4647 = verf.f32 %v1635_v17 }
 0x72a   :  { %v4648_v19 = vpop.eup %4647 }
 0x72b   :  { %v1637_v24 = vadd.f32 1.0, %v4648_v19 }
 0x72d   :  { %v1638_v41 = vmul.f32 %v1637_v24, %v1634_v23 }
 0x72f   :  { %4209 = vmatpush3.msk.msra.mxu0 %vm1644_vm4, %v1638_v41  ;;  %4214 = vmatpush3.msk.msra.mxu1 %vm1644_vm4, %v1638_v41 }
 0x730   :  { %4211 = vmatmul.mubr.msk.f32.vlgmr.msra.gmra.mrb[12].mxu0 %vm1640_vm5, %v1639_v42  ;;  %4216 = vmatmul.mubr.msk.f32.vlgmr.msra.gmra.mrb[32].mxu1 %vm1640_vm5, %v1718_v43 }
 0x731   :  { %4229 = vmatprep.subr.mxu1 %v4770_v0  ;;  %4231 = vmatprep.mubr.msk.f32.mxu1 %vm77_vm0, %v3759_v44 }
 0x732   :  { %4230 = vmatpush3.msra.mxu1 %v4770_v0  ;;  %4522 = vmatprep.subr.bf16.mxu0 %v4659_v36  ;;  %v3762_v0 = vld [vmem:[%s5464_s25 + $0x38] sm:$0xff] }
 0x733   :  { %4524 = vmatpush3.bf16.msra.mxu0 %v5220_v55  ;;  %4226 = vmatprep.mubr.msk.f32.mxu0 %vm4660_vm3, %v4661_v37 }
 0x734   :  { %4232 = vmatmul.mubr.msk.f32.vlgmr.msra.gmra.mrb[34].mxu1 %vm77_vm0, %v3760_v56  ;;  %4525 = vmatprep.subr.bf16.mxu0 %v4659_v36 }
 0x735   :  { %4234 = vmatprep.mubr.msk.f32.mxu1 %vm77_vm0, %v3761_v58  ;;  %4247 = vmatprep.subr.mxu1 %v4818_v21 }
 0x736   :  { %4248 = vmatpush3.msra.mxu1 %v4818_v21 }
 0x737   :  { %4541 = vmatprep.subr.bf16.mxu1 %v4848_v34  ;;  %4527 = vmatpush3.bf16.msra.mxu0 %v5253_v63 }
 0x738   :  { %4235 = vmatmul.mubr.msk.f32.gmra.mrb[36].mxu1 %vm77_vm0, %v3762_v0  ;;  %4529 = vmatprep.subr.bf16.mxu0 %v4798_v7 }
 0x803   :  { %v1714_v1 = vpop.f32.mrb[12].mxu0  ;;  %v1788_v21 = vpop.f32.mrb[32].mxu1 }
 0x804   :  { %v1792_v14 = vmax.f32 %v1714_v1, %v1788_v21  ;;  %v4217_v16 = vpop.f32.mrb[33].mxu1  ;;  %v4212_v17 = vpop.f32.mrb[13].mxu0 }
 0x806   :  { %v1794_v19 = vadd.f32 %v1793_v12, %v1792_v14 }
 0x807   :  { %v4233_v23 = vpop.f32.mrb[34].mxu1 }
 0x808   :  { %v1983_v24 = vadd.f32 %v4233_v23, %v4805_v8  ;;  %4227 = vmatmul.mubr.msk.f32.vlgmr.msra.gmra.mrb[14].mxu0 %vm401_vm2, %v1794_v19  ;;  %v1977_v28 = vpop.f32.mrb[35].mxu1 }
 0x809   :  { %v1978_v40 = vadd.f32 %v4805_v8, %v1977_v28  ;;  %4531 = vmatpush3.bf16.msra.mxu0 %v4798_v7  ;;  %v5275_v7 = vld [vmem:[%s5454_s19] ss:$0 sm:$0xff] }
 0x80a   :  { %v1997_v43 = vmax.f32 %v1983_v24, 0.0 }
 0x80b   :  { %v1996_v41 = vmax.f32 %v1978_v40, 0.0  ;;  %v4236_v42 = vpop.f32.mrb[36].mxu1 }
 0x80c   :  { %v1993_v44 = vadd.f32 %v4236_v42, %v4805_v8  ;;  %v1987_v56 = vpop.f32.mrb[37].mxu1 }
 0x80d   :  { %v1988_v58 = vadd.f32 %v4805_v8, %v1987_v56  ;;  %4241 = vmatprep.mubr.msk.f32.mxu0 %vm188_vm1, %v1996_v41 }
 0x80e   :  { %4242 = vmatmul.mubr.msk.f32.vlgmr.msra.gmra.mrb[16].mxu0 %vm188_vm1, %v1997_v43  ;;  %v1999_v61 = vmax.f32 %v1993_v44, 0.0 }
 0x80f   :  { %v1998_v0 = vmax.f32 %v1988_v58, 0.0 }
 0x811   :  { %4244 = vmatprep.mubr.msk.f32.mxu0 %vm188_vm1, %v1998_v0 }
 0x812   :  { %4245 = vmatmul.mubr.msk.f32.gmra.mrb[18].mxu0 %vm188_vm1, %v1999_v61 }
 0x813   :  { %4263 = vmatprep.mubr.msk.f32.mxu0 %vm401_vm2, %v4838_v31 }
 0x8db   :  { %v1875_v62 = vpop.f32.mrb[14].mxu0 }
 0x8dc   :  { %v1876_v8 = vadd.f32 %v5275_v7, %v1875_v62  ;;  %v4228_v1 = vpop.f32.mrb[15].mxu0 }
 0x8de   :  { %v1880_v21 = vmul.f32 0.70710677, %v1876_v8  ;;  %v1879_v40 = vmul.f32 0.5, %v1876_v8 }
 0x8e0   :  { %4649 = verf.f32 %v1880_v21 }
 0x8e1   :  { %v4243_v12 = vpop.f32.mrb[16].mxu0 }
 0x8e2   :  { %v2087_v14 = vpop.f32.mrb[17].mxu0  ;;  %v2093_v17 = vadd.f32 %v4243_v12, %v4825_v22 }
 0x8e3   :  { %v2088_v16 = vadd.f32 %v4825_v22, %v2087_v14 }
 0x8e5   :  { %v4246_v19 = vpop.f32.mrb[18].mxu0  ;;  %4249 = vmatprep.mubr.msk.f32.mxu1 %vm77_vm0, %v2088_v16 }
 0x8e6   :  { %v2097_v31 = vpop.f32.mrb[19].mxu0  ;;  %4250 = vmatmul.mubr.msk.f32.vlgmr.msra.gmra.mrb[38].mxu1 %vm77_vm0, %v2093_v17  ;;  %v2103_v24 = vadd.f32 %v4246_v19, %v4825_v22 }
 0x8e7   :  { %v2098_v23 = vadd.f32 %v4825_v22, %v2097_v31  ;;  %4543 = vmatpush3.bf16.msra.mxu1 %v4848_v34 }
 0x8e8   :  { %4545 = vmatprep.subr.bf16.mxu1 %v4930_v57 }
 0x8e9   :  { %4252 = vmatprep.mubr.msk.f32.mxu1 %vm77_vm0, %v2098_v23 }
 0x8ea   :  { %v4650_v28 = vpop.eup %4649  ;;  %4253 = vmatmul.mubr.msk.f32.gmra.mrb[40].mxu1 %vm77_vm0, %v2103_v24 }
 0x8eb   :  { %v1882_v41 = vadd.f32 1.0, %v4650_v28  ;;  %4547 = vmatpush3.bf16.msra.mxu1 %v4930_v57 }
 0x8ec   :  { %4549 = vmatprep.subr.bf16.mxu1 %v4940_v60 }
 0x8ed   :  { %v1883_v42 = vmul.f32 %v1882_v41, %v1879_v40 }
 0x8ef   :  { %1885 = vst.msk [vmem:[%s5455_s20] sm:$0x3] %vm1884_vm6, %v1883_v42 }
 0x9b9   :  { %v4251_v22 = vpop.f32.mrb[38].mxu1 }
 0x9ba   :  { %v2198_v34 = vadd.f32 %v4251_v22, %v4855_v35  ;;  %v2192_v43 = vpop.f32.mrb[39].mxu1 }
 0x9bb   :  { %v2193_v44 = vadd.f32 %v4855_v35, %v2192_v43 }
 0x9bd   :  { %v4532_v56 = vpack.c.bf16 %v2198_v34, %v2193_v44  ;;  %v4254_v58 = vpop.f32.mrb[40].mxu1 }
 0x9be   :  { %v2208_v0 = vadd.f32 %v4254_v58, %v4855_v35  ;;  %v2202_v57 = vpop.f32.mrb[41].mxu1 }
 0x9bf   :  { %v2203_v61 = vadd.f32 %v4855_v35, %v2202_v57  ;;  %4533 = vmatprep.subr.bf16.mxu0 %v4532_v56 }
 0x9c0   :  { %4535 = vmatpush3.bf16.msra.mxu0 %v4532_v56 }
 0x9c1   :  { %v4536_v62 = vpack.c.bf16 %v2208_v0, %v2203_v61  ;;  %v3458_v61 = vld [vmem:[%s5451_s13] sm:$0x3] }
 0x9c3   :  { %4537 = vmatprep.subr.bf16.mxu0 %v4536_v62 }
 0x9c4   :  { %4539 = vmatpush3.bf16.msra.mxu0 %v4536_v62 }
 0x9c5   :  { %4580 = vmatprep.subr.bf16.mxu0 %v4659_v36 }
 0x9c7   :  { %4264 = vmatmul.mubr.msk.f32.vlgmr.msra.gmra.mrb[20].mxu0 %vm401_vm2, %v4864_v46 }
 0x9c8   :  { %4266 = vmatprep.mubr.msk.f32.mxu0 %vm401_vm2, %v4869_v47 }
 0x9cb   :  { %4267 = vmatmul.mubr.msk.f32.gmra.mrb[22].mxu0 %vm401_vm2, %v4878_v48 }
 0x9cc   :  { %4269 = vmatprep.mubr.msk.f32.mxu0 %vm401_vm2, %v4883_v49 }
 0x9cf   :  { %4270 = vmatmul.mubr.msk.f32.gmra.mrb[24].mxu0 %vm401_vm2, %v4892_v50 }
 0x9d0   :  { %4272 = vmatprep.mubr.msk.f32.mxu0 %vm401_vm2, %v4897_v51 }
 0x9d3   :  { %4273 = vmatmul.mubr.msk.f32.gmra.mrb[26].mxu0 %vm401_vm2, %v4906_v52 }
 0x9d4   :  { %4275 = vmatprep.mubr.msk.f32.mxu0 %vm401_vm2, %v4911_v53 }
 0x9d7   :  { %4276 = vmatmul.mubr.msk.f32.gmra.mrb[28].mxu0 %vm401_vm2, %v4920_v54 }
 0x9d8   :  { %4337 = vmatprep.mubr.msk.f32.mxu0 %vm4660_vm3, %v4661_v37 }
 0xa9a   :  { %v4265_v35 = vpop.f32.mrb[20].mxu0 }
 0xa9b   :  { %v2317_v46 = vpop.f32.mrb[21].mxu0 }
 0xa9e   :  { %v4268_v47 = vpop.f32.mrb[22].mxu0 }
 0xa9f   :  { %v2327_v48 = vpop.f32.mrb[23].mxu0 }
 0xaa0   :  { %4286 = vmatprep.mubr.msk.f32.mxu1 %vm401_vm2, %v2327_v48 }
 0xaa1   :  { %4287 = vmatmul.mubr.msk.f32.vlgmr.msra.gmra.mrb[42].mxu1 %vm401_vm2, %v4268_v47  ;;  %v3610_v47 = vld [vmem:[%s5453_s17] sm:$0x3] }
 0xaa2   :  { %4551 = vmatpush3.bf16.msra.mxu1 %v4940_v60  ;;  %4297 = vmatprep.mubr.msk.f32.mxu1 %vm401_vm2, %v2317_v46  ;;  %v4271_v49 = vpop.f32.mrb[24].mxu0 }
 0xaa3   :  { %4553 = vmatprep.subr.bf16.mxu1 %v4949_v4  ;;  %v2337_v50 = vpop.f32.mrb[25].mxu0 }
 0xaa6   :  { %4555 = vmatpush3.bf16.msra.mxu1 %v4949_v4  ;;  %v4274_v51 = vpop.f32.mrb[26].mxu0 }
 0xaa7   :  { %4557 = vmatprep.subr.bf16.mxu1 %v4962_v10  ;;  %v2347_v52 = vpop.f32.mrb[27].mxu0 }
 0xaa9   :  { %4298 = vmatmul.mubr.msk.f32.vlgmr.msra.gmra.mrb[42].mxu1 %vm401_vm2, %v4265_v35 }
 0xaaa   :  { %4559 = vmatpush3.bf16.msra.mxu1 %v4962_v10  ;;  %4308 = vmatprep.mubr.msk.f32.mxu1 %vm401_vm2, %v2337_v50  ;;  %v4277_v53 = vpop.f32.mrb[28].mxu0 }
 0xaab   :  { %4561 = vmatprep.subr.bf16.mxu1 %v4972_v15  ;;  %v2357_v54 = vpop.f32.mrb[29].mxu0 }
 0xaae   :  { %4563 = vmatpush3.bf16.msra.mxu1 %v4972_v15 }
 0xaaf   :  { %4565 = vmatprep.subr.bf16.mxu1 %v4984_v20 }
 0xab1   :  { %4309 = vmatmul.mubr.msk.f32.vlgmr.msra.gmra.mrb[42].mxu1 %vm401_vm2, %v4271_v49 }
 0xab2   :  { %4567 = vmatpush3.bf16.msra.mxu1 %v4984_v20  ;;  %4319 = vmatprep.mubr.msk.f32.mxu1 %vm401_vm2, %v2347_v52 }
 0xab3   :  { %4569 = vmatprep.subr.bf16.mxu1 %v4994_v26 }
 0xab6   :  { %4571 = vmatpush3.bf16.msra.mxu1 %v4994_v26 }
 0xab7   :  { %4573 = vmatprep.subr.bf16.mxu1 %v5006_v29 }
 0xab9   :  { %4320 = vmatmul.mubr.msk.f32.vlgmr.msra.gmra.mrb[42].mxu1 %vm401_vm2, %v4274_v51 }
 0xaba   :  { %4575 = vmatpush3.bf16.msra.mxu1 %v5006_v29  ;;  %4330 = vmatprep.mubr.msk.f32.mxu1 %vm401_vm2, %v2357_v54 }
 0xabb   :  { %4577 = vmatprep.subr.bf16.mxu1 %v5016_v33 }
 0xabe   :  { %4579 = vmatpush3.bf16.msra.mxu1 %v5016_v33 }
 0xabf   :  { %4592 = vmatprep.subr.bf16.mxu1 %v4659_v36 }
 0xac1   :  { %4331 = vmatmul.mubr.msk.f32.vlgmr.msra.gmra.mrb[42].mxu1 %vm401_vm2, %v4277_v53 }
 0xac2   :  { %4594 = vmatpush3.bf16.msra.mxu1 %v5063_v9  ;;  %4377 = vmatprep.mubr.msk.f32.mxu1 %vm4660_vm3, %v4661_v37 }
 0xac3   :  { %4595 = vmatprep.subr.bf16.mxu1 %v4659_v36 }
 0xac6   :  { %4597 = vmatpush3.bf16.msra.mxu1 %v5072_v13 }
 0xac7   :  { %4604 = vmatprep.subr.bf16.mxu1 %v4659_v36 }
 0xb94   :  { %v4332_v60 = vpop.f32.mrb[42].mxu1 }
 0xb95   :  { %v2805_v4 = vadd.f32 %v4332_v60, %v5033_v38  ;;  %v2786_v10 = vpop.f32.mrb[43].mxu1 }
 0xb96   :  { %v2804_v15 = vadd.f32 %v5033_v38, %v2786_v10 }
 0xb97   :  { %v2809_v20 = vmul.f32 0.70710677, %v2805_v4  ;;  %v2807_v9 = vmul.f32 0.5, %v2805_v4 }
 0xb98   :  { %v2808_v26 = vmul.f32 0.70710677, %v2804_v15  ;;  %v2806_v1 = vmul.f32 0.5, %v2804_v15 }
 0xb99   :  { %4651 = verf.f32 %v2809_v20 }
 0xb9a   :  { %4653 = verf.f32 %v2808_v26 }
 0xba3   :  { %v4652_v29 = vpop.eup %4651 }
 0xba4   :  { %v4654_v33 = vpop.eup %4653  ;;  %v2813_v8 = vadd.f32 1.0, %v4652_v29 }
 0xba5   :  { %v2812_v21 = vadd.f32 1.0, %v4654_v33 }
 0xba6   :  { %v2815_v12 = vmul.f32 %v2813_v8, %v2807_v9 }
 0xba7   :  { %v2814_v13 = vmul.f32 %v2812_v21, %v2806_v1 }
 0xba9   :  { %v4581_v14 = vpack.c.bf16 %v2815_v12, %v2814_v13 }
 0xbab   :  { %4582 = vmatpush3.bf16.msra.mxu0 %v4581_v14 }
 0xbac   :  { %4583 = vmatprep.subr.bf16.mxu0 %v4659_v36 }
 0xbae   :  { %4338 = vmatmul.mubr.msk.f32.vlgmr.msra.gmra.mrb[30].mxu0 %vm188_vm1, %v5040_v2  ;;  %v2967_v2 = vld [vmem:[%s5448_s12 + $0x10] sm:$0xf] }
 0xbaf   :  { %4585 = vmatpush3.bf16.msra.mxu0 %v4581_v14  ;;  %4344 = vmatprep.mubr.msk.f32.mxu0 %vm4660_vm3, %v4661_v37 }
 0xbb0   :  { %4347 = vmatprep.subr.mxu0 %v4661_v37 }
 0xbb2   :  { %4345 = vmatmul.mubr.msk.f32.vlgmr.msra.gmra.mrb[32].mxu0 %vm188_vm1, %v5050_v3 }
 0xbb3   :  { %4349 = vmatprep.mubr.msk.f32.mxu0 %vm4660_vm3, %v4661_v37 }
 0xc81   :  { %v2886_v38 = vpop.f32.mrb[30].mxu0 }
 0xc82   :  { %v4339_v16 = vpop.f32.mrb[31].mxu0 }
 0xc85   :  { %v2960_v17 = vpop.f32.mrb[32].mxu0 }
 0xc86   :  { %v2964_v19 = vmax.f32 %v2886_v38, %v2960_v17  ;;  %v4346_v31 = vpop.f32.mrb[33].mxu0 }
 0xc88   :  { %4348 = vmatpush3.msra.mxu0 %v2964_v19 }
 0xc89   :  { %4350 = vmatmul.mubr.msk.f32.vlgmr.msra.gmra.mrb[34].mxu0 %vm77_vm0, %v5086_v25  ;;  %4586 = vmatprep.subr.bf16.mxu0 %v4659_v36 }
 0xc8a   :  { %4352 = vmatprep.mubr.msk.f32.mxu0 %vm4660_vm3, %v4661_v37  ;;  %4588 = vmatpush3.bf16.msra.mxu0 %v5088_v27 }
 0xc8b   :  { %4589 = vmatprep.subr.bf16.mxu0 %v4659_v36 }
 0xc8d   :  { %4353 = vmatmul.mubr.msk.f32.gmra.mrb[36].mxu0 %vm77_vm0, %v5104_v32 }
 0xc8e   :  { %4355 = vmatprep.mubr.msk.f32.mxu0 %vm4660_vm3, %v4661_v37  ;;  %4591 = vmatpush3.bf16.msra.mxu0 %v5107_v39 }
 0xc8f   :  { %4598 = vmatprep.subr.bf16.mxu0 %v4659_v36 }
 0xc91   :  { %4356 = vmatmul.mubr.msk.f32.gmra.mrb[38].mxu0 %vm77_vm0, %v2967_v2 }
 0xc92   :  { %4366 = vmatprep.mubr.msk.f32.mxu0 %vm4660_vm3, %v4661_v37 }
 0xd5c   :  { %v3043_v3 = vpop.f32.mrb[34].mxu0 }
 0xd5d   :  { %v3078_v25 = vrot.slane %v3043_v3, 4  ;;  %v4351_v27 = vpop.f32.mrb[35].mxu0  ;;  %4378 = vmatmul.mubr.msk.f32.vlgmr.msra.gmra.mrb[44].mxu1 %vm401_vm2, %v3043_v3 }
 0xd5e   :  { %4606 = vmatpush3.bf16.msra.mxu1 %v5134_v45  ;;  %4399 = vmatprep.mubr.msk.f32.mxu1 %vm4660_vm3, %v4661_v37 }
 0xd5f   :  { %4367 = vmatmul.mubr.msk.f32.vlgmr.msra.gmra.mrb[40].mxu0 %vm401_vm2, %v3078_v25  ;;  %4607 = vmatprep.subr.bf16.mxu1 %v4659_v36 }
 0xd60   :  { %4600 = vmatpush3.bf16.msra.mxu0 %v5142_v59  ;;  %v3048_v32 = vpop.f32.mrb[36].mxu0  ;;  %4388 = vmatprep.mubr.msk.f32.mxu0 %vm4660_vm3, %v4661_v37 }
 0xd61   :  { %4601 = vmatprep.subr.bf16.mxu0 %v4659_v36  ;;  %v3297_v39 = vrot.slane %v3048_v32, 4  ;;  %v4354_v23 = vpop.f32.mrb[37].mxu0 }
 0xd62   :  { %4609 = vmatpush3.bf16.msra.mxu1 %v5152_v5 }
 0xd63   :  { %4413 = vmatprep.subr.mxu1 %v4661_v37 }
 0xd64   :  { %4603 = vmatpush3.bf16.msra.mxu0 %v5159_v6  ;;  %v3053_v45 = vpop.f32.mrb[38].mxu0 }
 0xd65   :  { %4610 = vmatprep.subr.bf16.mxu0 %v4659_v36  ;;  %4400 = vmatmul.mubr.msk.f32.vlgmr.msra.gmra.mrb[46].mxu1 %vm401_vm2, %v3297_v39  ;;  %v4357_v59 = vpop.f32.mrb[39].mxu0 }
 0xd66   :  { %4415 = vmatprep.mubr.msk.f32.mxu1 %vm4660_vm3, %v4661_v37 }
 0xd67   :  { %4389 = vmatmul.mubr.msk.f32.vlgmr.msra.gmra.mrb[42].mxu0 %vm401_vm2, %v3048_v32 }
 0xd68   :  { %4612 = vmatpush3.bf16.msra.mxu0 %v5173_v18  ;;  %4410 = vmatprep.mubr.msk.f32.mxu0 %vm4660_vm3, %v4661_v37 }
 0xd69   :  { %4613 = vmatprep.subr.bf16.mxu0 %v4659_v36 }
 0xd6c   :  { %4615 = vmatpush3.bf16.msra.mxu0 %v5187_v30 }
 0xd6d   :  { %4616 = vmatprep.subr.bf16.mxu0 %v4659_v36 }
 0xd6f   :  { %4411 = vmatmul.mubr.msk.f32.vlgmr.msra.gmra.mrb[44].mxu0 %vm401_vm2, %v3053_v45 }
 0xd70   :  { %4618 = vmatpush3.bf16.msra.mxu0 %v5220_v55  ;;  %4431 = vmatprep.mubr.msk.f32.mxu0 %vm4660_vm3, %v4661_v37 }
 0xd71   :  { %4619 = vmatprep.subr.bf16.mxu0 %v4659_v36 }
 0xd74   :  { %4621 = vmatpush3.bf16.msra.mxu0 %v5253_v63 }
 0xe30   :  { %v3219_v5 = vpop.f32.mrb[44].mxu1 }
 0xe31   :  { %v4379_v6 = vpop.f32.mrb[45].mxu1 }
 0xe32   :  { %v3147_v18 = vpop.f32.mrb[40].mxu0 }
 0xe33   :  { %v3220_v24 = vadd.f32 %v3219_v5, %v3147_v18  ;;  %v4368_v28 = vpop.f32.mrb[41].mxu0 }
 0xe38   :  { %v3366_v40 = vpop.f32.mrb[46].mxu1 }
 0xe39   :  { %v4401_v30 = vpop.f32.mrb[47].mxu1 }
 0xe3a   :  { %v3292_v41 = vpop.f32.mrb[42].mxu0 }
 0xe3b   :  { %v3296_v42 = vadd.f32 %v3292_v41, %v3220_v24  ;;  %v4390_v22 = vpop.f32.mrb[43].mxu0 }
 0xe3d   :  { %v3370_v34 = vadd.f32 %v3366_v40, %v3296_v42 }
 0xe42   :  { %v3440_v43 = vpop.f32.mrb[44].mxu0 }
 0xe43   :  { %v3444_v55 = vadd.f32 %v3440_v43, %v3370_v34  ;;  %v4412_v44 = vpop.f32.mrb[45].mxu0 }
 0xe45   :  { %v3452_v56 = vadd.f32 %v5200_v11, %v3444_v55  ;;  %v3535_v11 = vld [vmem:[%s5452_s14] sm:$0x3] }
 0xe47   :  { %v3454_v58 = vmul.f32 0.70710677, %v3452_v56  ;;  %v3453_v63 = vmul.f32 0.5, %v3452_v56 }
 0xe49   :  { %4655 = verf.f32 %v3454_v58 }
 0xe53   :  { %v4656_v36 = vpop.eup %4655 }
 0xe54   :  { %v3456_v0 = vadd.f32 1.0, %v4656_v36 }
 0xe56   :  { %v3457_v57 = vmul.f32 %v3456_v0, %v3453_v63 }
 0xe58   :  { %4414 = vmatpush3.msk.msra.mxu1 %vm1644_vm4, %v3457_v57 }
 0xe59   :  { %4416 = vmatmul.mubr.msk.f32.vlgmr.msra.gmra.mrb[48].mxu1 %vm1640_vm5, %v3458_v61  ;;  %4418 = vmatprep.subr.mxu1 %v4661_v37 }
 0xe5a   :  { %4419 = vmatpush3.msk.msra.mxu1 %vm1644_vm4, %v3457_v57  ;;  %4420 = vmatprep.mubr.msk.f32.mxu1 %vm4660_vm3, %v4661_v37 }
 0xe5d   :  { %4421 = vmatmul.mubr.msk.f32.vlgmr.msra.gmra.mrb[50].mxu1 %vm1640_vm5, %v3535_v11 }
 0xf2c   :  { %v3531_v62 = vpop.f32.mrb[48].mxu1 }
 0xf2d   :  { %v4417_v35 = vpop.f32.mrb[49].mxu1 }
 0xf30   :  { %v3605_v46 = vpop.f32.mrb[50].mxu1 }
 0xf31   :  { %v3609_v48 = vmax.f32 %v3531_v62, %v3605_v46  ;;  %v4422_v49 = vpop.f32.mrb[51].mxu1 }
 0xf33   :  { %v3611_v50 = vadd.f32 %v3610_v47, %v3609_v48 }
 0xf35   :  { %4432 = vmatmul.mubr.msk.f32.vlgmr.msra.gmra.mrb[46].mxu0 %vm401_vm2, %v3611_v50 }
0x1008   :  { %v3692_v51 = vpop.f32.mrb[46].mxu0 }
0x1009   :  { %v3693_v37 = vadd.f32 %v5275_v7, %v3692_v51  ;;  %v4433_v52 = vpop.f32.mrb[47].mxu0 }
0x100b   :  { %v3697_v53 = vmul.f32 0.70710677, %v3693_v37  ;;  %v3696_v60 = vmul.f32 0.5, %v3693_v37 }
0x100d   :  { %4657 = verf.f32 %v3697_v53 }
0x1017   :  { %v4658_v54 = vpop.eup %4657 }
0x1018   :  { %v3699_v4 = vadd.f32 1.0, %v4658_v54 }
0x101a   :  { %v3700_v10 = vmul.f32 %v3699_v4, %v3696_v60 }
0x101c   :  { %3701 = vst.msk [vmem:[%s5455_s20 + $0x2] sm:$0x3] %vm1884_vm6, %v3700_v10 }

// kernel: forward.3
= control target key start
LH: loop header
LB: loop body
LE: loop exit
PB: predicated region body
PF: predicated region fallthrough
CT: control target
= control target key end

     0   :  { %s10384_s27 = smov 0   ;;  %s11914_s0 = inlined_call_operand.vmem [shape: f32[4,32], index: 0, kind: input, shape index: {}]   ;;  %s11915_s1 = inlined_call_operand.vmem [shape: f32[5,32], index: 1, kind: input, shape index: {}]   ;;  %s11916_s2 = inlined_call_operand.vmem [shape: f32[128,32], index: 2, kind: input, shape index: {}]   ;;  %s11917_s3 = inlined_call_operand.vmem [shape: f32[32,128], index: 3, kind: input, shape index: {}]   ;;  %s11918_s4 = inlined_call_operand.vmem [shape: f32[32,128], index: 4, kind: input, shape index: {}]   ;;  %s11919_s5 = inlined_call_operand.vmem [shape: f32[32,256], index: 5, kind: input, shape index: {}]   ;;  %s11920_s6 = inlined_call_operand.vmem [shape: f32[64,32], index: 6, kind: input, shape index: {}]   ;;  %s11921_s7 = inlined_call_operand.vmem [shape: f32[21,128], index: 7, kind: input, shape index: {}]   ;;  %s11922_s8 = inlined_call_operand.vmem [shape: f32[10,128], index: 8, kind: output, shape index: {}]  }
   0x1 LB: > { %s10390_s28 = sadd.s32 4294967295, %s10309_s27   ;;  %p8626_p0 = scmp.ge.s32.totalorder %s10309_s27, 1  ;;  %s10309_s27 = sphi %s10384_s27, %s18_s27  }
   0x2   : > { %p247_p1 = scmp.lt.s32.totalorder %s10309_s27, 8 }
   0x4   : > { %p248_p2 = pnand %p8626_p0, %p247_p1 }
   0x6   : > { %251 = sbr.rel (%p248_p2) target bundleno = 11769 (0x2df9), region = 52 }
   0xd   : > { %v10397_v0 = vld [vmem:[%s11914_s0] sm:$0xf]  ;;  %v11923_v3 = vlaneseq  ;;  %v10412_v4 = vld [vmem:[%s11916_s2 + $0x8] sm:$0xff]  ;;  %v10417_v5 = vld [vmem:[%s11916_s2 + $0x10] sm:$0xff]  ;;  %p8627_p3 = scmp.ne.s32.totalorder %s10390_s28, 0 }
   0xe   : > { %v10402_v1 = vld [vmem:[%s11915_s1] sm:$0x1f]  ;;  %11941 = vst [vmem:[#allocation4_spill] sm:$0xff] %v10417_v5  ;;  %v10422_v6 = vld [vmem:[%s11916_s2 + $0x18] sm:$0xff]  ;;  %v10432_v8 = vld [vmem:[%s11916_s2 + $0x28] sm:$0xff]  ;;  %vm323_vm0 = vcmask (!%p8627_p3), 261120  }
   0xf   : > { %11940 = vst [vmem:[#allocation3_spill] sm:$0xff] %v10402_v1  ;;  %v10407_v2 = vld [vmem:[%s11916_s2] sm:$0xff]  ;;  %11942 = vst [vmem:[#allocation5_spill] sm:$0xff] %v10422_v6  ;;  %v10437_v9 = vld [vmem:[%s11916_s2 + $0x30] sm:$0xff]  ;;  %v10440_v10 = vshrl.u32 %v11923_v3, 7  ;;  %vm325_vm1 = vcmask (!%p8627_p3), 254976  }
  0x10   : > { %v10427_v7 = vld [vmem:[%s11916_s2 + $0x20] sm:$0xff]  ;;  %11944 = vst [vmem:[#allocation7_spill] sm:$0xff] %v10432_v8  ;;  %11945 = vst [vmem:[#allocation8_spill] sm:$0xff] %v10437_v9  ;;  %v10445_v11 = vld [vmem:[%s11916_s2 + $0x38] sm:$0xff]  ;;  %vm327_vm2 = vcmask (!%p8627_p3), 256002   ;;  %v10311_v48 = vmov (!%p8627_p3), 0.0  }
  0x11   : > { %11943 = vst [vmem:[#allocation6_spill] sm:$0xff] %v10427_v7  ;;  %11946 = vst [vmem:[#allocation9_spill] sm:$0xff] %v10445_v11  ;;  %v10450_v12 = vld [vmem:[%s11916_s2 + $0x40] sm:$0xff]  ;;  %v10455_v13 = vld [vmem:[%s11916_s2 + $0x48] sm:$0xff]  ;;  %v10473_v17 = vadd.s32 8, %v10440_v10 }
  0x12   : > { %11947 = vst [vmem:[#allocation10_spill] sm:$0xff] %v10450_v12  ;;  %11948 = vst [vmem:[#allocation11_spill] sm:$0xff] %v10455_v13  ;;  %v10460_v14 = vld [vmem:[%s11916_s2 + $0x50] sm:$0xff]  ;;  %v10465_v15 = vld [vmem:[%s11916_s2 + $0x58] sm:$0xff] }
  0x13   : > { %11949 = vst [vmem:[#allocation12_spill] sm:$0xff] %v10460_v14  ;;  %11950 = vst [vmem:[#allocation13_spill] sm:$0xff] %v10465_v15  ;;  %v10470_v16 = vld [vmem:[%s11916_s2 + $0x60] sm:$0xff]  ;;  %v10478_v18 = vld [vmem:[%s11916_s2 + $0x68] sm:$0xff] }
  0x14   : > { %11951 = vst [vmem:[#allocation14_spill] sm:$0xff] %v10470_v16  ;;  %11952 = vst [vmem:[#allocation15_spill] sm:$0xff] %v10478_v18  ;;  %v10483_v19 = vld [vmem:[%s11916_s2 + $0x70] sm:$0xff]  ;;  %v10488_v20 = vld [vmem:[%s11916_s2 + $0x78] sm:$0xff] }
  0x15   : > { %11953 = vst [vmem:[#allocation16_spill] sm:$0xff] %v10483_v19  ;;  %11954 = vst [vmem:[#allocation17_spill] sm:$0xff] %v10488_v20  ;;  %v10493_v21 = vld [vmem:[%s11917_s3] sm:$0xff]  ;;  %v10498_v22 = vld [vmem:[%s11917_s3 + $0x8] sm:$0xff] }
  0x16   : > { %11955 = vst [vmem:[#allocation18_spill] sm:$0xff] %v10493_v21  ;;  %11956 = vst [vmem:[#allocation19_spill] sm:$0xff] %v10498_v22  ;;  %v10503_v23 = vld [vmem:[%s11917_s3 + $0x10] sm:$0xff]  ;;  %v10508_v24 = vld [vmem:[%s11917_s3 + $0x18] sm:$0xff] }
  0x17   : > { %11957 = vst [vmem:[#allocation20_spill] sm:$0xff] %v10503_v23  ;;  %11958 = vst [vmem:[#allocation21_spill] sm:$0xff] %v10508_v24  ;;  %v10513_v25 = vld [vmem:[%s11918_s4] sm:$0xff]  ;;  %v10518_v26 = vld [vmem:[%s11918_s4 + $0x8] sm:$0xff] }
  0x18   : > { %v10523_v27 = vld [vmem:[%s11918_s4 + $0x10] sm:$0xff]  ;;  %v10528_v28 = vld [vmem:[%s11918_s4 + $0x18] sm:$0xff]  ;;  %v10533_v29 = vld [vmem:[%s11919_s5] sm:$0xff]  ;;  %322 = sbr.rel (%p8627_p3) target bundleno = 31 (0x1f), region = 56  ;;  %324 = vst.msk [vmem:[#allocation2] sm:$0xff] (!%p8627_p3), %vm323_vm0, %v10311_v48 }
  0x19   : > { %v10538_v30 = vld [vmem:[%s11919_s5 + $0x8] sm:$0xff]  ;;  %v10543_v31 = vld [vmem:[%s11919_s5 + $0x10] sm:$0xff]  ;;  %v10548_v32 = vld [vmem:[%s11919_s5 + $0x18] sm:$0xff]  ;;  %326 = vst.msk [vmem:[#allocation2 + $0x8] sm:$0x3] (!%p8627_p3), %vm325_vm1, %v10311_v48 }
  0x1a   : > { %v10553_v33 = vld [vmem:[%s11919_s5 + $0x20] sm:$0xff]  ;;  %v10558_v34 = vld [vmem:[%s11919_s5 + $0x28] sm:$0xff]  ;;  %v10563_v35 = vld [vmem:[%s11919_s5 + $0x30] sm:$0xff]  ;;  %328 = vst.msk [vmem:[#allocation2 - $0x2] sm:$0x4] (!%p8627_p3), %vm327_vm2, %v10412_v4 }
  0x1b   : > { %v10568_v36 = vld [vmem:[%s11919_s5 + $0x38] sm:$0xff]  ;;  %v10573_v37 = vld [vmem:[%s11920_s6] sm:$0xff]  ;;  %v10578_v38 = vld [vmem:[%s11920_s6 + $0x8] sm:$0xff]  ;;  %329 = vst.msk [vmem:[#allocation2 + $0x3] sm:$0x4] (!%p8627_p3), %vm327_vm2, %v10412_v4 }
  0x1c   : > { %v10583_v39 = vld [vmem:[%s11920_s6 + $0x10] sm:$0xff]  ;;  %v10588_v40 = vld [vmem:[%s11920_s6 + $0x18] sm:$0xff]  ;;  %v10593_v41 = vld [vmem:[%s11920_s6 + $0x20] sm:$0xff] }
  0x1d   : > { %v10598_v42 = vld [vmem:[%s11920_s6 + $0x28] sm:$0xff]  ;;  %v10603_v43 = vld [vmem:[%s11920_s6 + $0x30] sm:$0xff]  ;;  %v10608_v44 = vld [vmem:[%s11920_s6 + $0x38] sm:$0xff] }
  0x1e   : > { %v10613_v45 = vld [vmem:[%s11921_s7] sm:$0xff]  ;;  %v10618_v46 = vld [vmem:[%s11921_s7 + $0x8] sm:$0xff]  ;;  %v10623_v47 = vld [vmem:[%s11921_s7 + $0x10] sm:$0x1f] }
  0x1f PF: > { %p8628_p4 = scmp.ge.s32.totalorder %s10390_s28, 5 }
  0x21   : > { %333 = sbr.rel (%p8628_p4) target bundleno = 5814 (0x16b6), region = 60 }
  0x28   : > { %vm344_vm3 = vcmask 1044480   ;;  %v10630_v49 = vand.u32 127, %v11923_v3  ;;  %v426_v50 = vld [vmem:[#allocation2 + $0x8] sm:$0x3]  ;;  %v11924_v51 = vmov 0.0   ;;  %vm10313_vm4 = vmmov 0  }
  0x29   : > { %9102 = vmatprep.subr.mxu0 %v11924_v51  ;;  %9104 = vmatprep.mubr.msk.f32.mxu0 %vm10313_vm4, %v11924_v51  ;;  %v10636_v52 = vstv %s10390_s28  ;;  %vm340_vm5 = vcmask 39936   ;;  %vm427_vm6 = vcmask 254976   ;;  %vm421_vm8 = vcmask 1040384   ;;  %v425_v48 = vld [vmem:[#allocation2] sm:$0xff]  ;;  %s10314_s17 = smov 96   ;;  %s10315_s18 = smov 64  }
  0x2a   : > { %9103 = vmatpush3.msk.msra.mxu0 %vm344_vm3, %v10402_v1  ;;  %vm337_vm7 = vcmp.eq.s32.totalorder %v10630_v49, %v10636_v52  ;;  %v456_v54 = vsel %vm427_vm6, %v426_v50, 0.0  ;;  %9115 = vmatprep.mubr.msk.f32.mxu1 %vm10313_vm4, %v11924_v51  ;;  %vm452_vm9 = vcmask 261120   ;;  %v10691_v20 = vsub.s32 0, %v10440_v10  ;;  %s10317_s19 = smov 120   ;;  %s10318_s20 = smov 112  }
  0x2b   : > { %v8629_v53 = vsel %vm337_vm7, 1.0, %v11924_v51  ;;  %9145 = vmatprep.subr.mxu0 %v11924_v51  ;;  %457 = vadd.xlane.f32.xlu1 %v456_v54  ;;  %vm760_vm10 = vcmask 64512   ;;  %s10319_s21 = smov 104   ;;  %vm1450_vm11 = vcmask 1042432   ;;  %vm423_vm12 = vcmp.gt.s32.totalorder %v10630_v49, %v10636_v52  ;;  %s10320_s22 = smov 32  }
  0x2c   : > { %9105 = vmatmul.mubr.msk.f32.vlgmr.msra.gmra.mrb[0].mxu0 %vm340_vm5, %v8629_v53  ;;  %v453_v53 = vsel %vm452_vm9, %v425_v48, 0.0  ;;  %vm839_vm13 = vcmask 32768   ;;  %s10321_s23 = smov 8   ;;  %s10322_s24 = smov 16   ;;  %vm1444_vm14 = vcmask 130048   ;;  %vm1446_vm15 = vcmask 195584  }
  0x2d   : > { %9147 = vmatprep.mubr.msk.f32.mxu0 %vm10313_vm4, %v11924_v51  ;;  %s10323_s25 = smov 24   ;;  %vm2589_vm0 = vcmask 8192   ;;  %vm2605_vm1 = vcmask 1041408   ;;  %vm2601_vm2 = vcmask 15360   ;;  %s4268_s26 = sadd.s32 5, %s10390_s28  ;;  %vm4257_vm7 = vcmp.eq.s32.totalorder %v10473_v17, %v10636_v52 }
  0x2e   : > { %s4379_s15 = sadd.s32 1, %s10390_s28 }
  0x2f   : > { %p4383_p5 = scmp.lt.s32.totalorder %s4379_s15, 5 }
  0x31   : > { %s4384_s16 = scalar_select %p4383_p5, 1, 0 }
  0xb8   : > { %v458_v55 = vpop.xlane.xlu1 %457 }
  0xb9   : > { %v460_v56 = vmul.f32 0.03125, %v458_v55 }
  0xbb   : > { %v10650_v57 = vsub.f32 %v426_v50, %v460_v56 }
  0xbd   : > { %v464_v58 = vmul.f32 %v10650_v57, %v10650_v57 }
  0xbf   : > { %v468_v59 = vsel %vm427_vm6, %v464_v58, 0.0 }
  0xc0   : > { %469 = vadd.xlane.f32.xlu1 %v468_v59 }
  0xff   : > { %v10655_v60 = vpop.f32.mrb[0].mxu0 }
 0x100   : > { %11959 = vst [vmem:[#allocation22_spill] sm:$0xff] %v10655_v60  ;;  %v419_v61 = vrot.slane %v10655_v60, 7  ;;  %v9106_v62 = vpop.f32.mrb[1].mxu0 }
 0x102   : > { %v10660_v63 = vsel %vm421_vm8, %v10655_v60, %v419_v61 }
 0x103   : > { %v428_v50 = vsel %vm427_vm6, %v10660_v63, 0.0 }
 0x104   : > { %429 = vadd.xlane.f32.xlu0 %v428_v50  ;;  %v10670_v50 = vpack.i.bf16 %v10508_v24, %v10503_v23 }
 0x108   : > { %454 = vadd.xlane.f32.xlu0 %v453_v53  ;;  %v10676_v53 = vpack.i.bf16 %v10498_v22, %v10493_v21 }
 0x191   : > { %v430_v54 = vpop.xlane.xlu0 %429 }
 0x192   : > { %v432_v55 = vmul.f32 0.03125, %v430_v54  ;;  %v470_v54 = vpop.xlane.xlu1 %469 }
 0x194   : > { %v433_v56 = vsub.f32 %v10660_v63, %v432_v55  ;;  %v472_v55 = vmul.f32 0.03125, %v470_v54  ;;  %v10694_v54 = vsub.s32 1, %v10440_v10 }
 0x195   : > { %v455_v58 = vpop.xlane.xlu0 %454 }
 0x196   : > { %v459_v59 = vmul.f32 0.03125, %v455_v58  ;;  %v434_v62 = vmul.f32 %v433_v56, %v433_v56 }
 0x198   : > { %v461_v3 = vsub.f32 %v425_v48, %v459_v59  ;;  %v435_v61 = vsel %vm427_vm6, %v434_v62, 0.0  ;;  %v9759_v48 = vpack.c.bf16 %v10508_v24, %v10503_v23  ;;  %v474_v62 = vadd.f32 1e-05, %v472_v55 }
 0x199   : > { %436 = vadd.xlane.f32.xlu1 %v435_v61  ;;  %v445_v55 = vrot.slane %v10618_v46, %v10691_v20 }
 0x19a   : > { %v463_v51 = vmul.f32 %v461_v3, %v461_v3 }
 0x19c   : > { %v465_v1 = vsel %vm452_vm9, %v463_v51, 0.0  ;;  %v9756_v51 = vpack.c.bf16 %v10498_v22, %v10493_v21 }
 0x19d   : > { %466 = vadd.xlane.f32.xlu0 %v465_v1  ;;  %v11938_v1 = vmov 0.0|0.0  }
 0x19e   : > { %9755 = vmatprep.subr.bf16.mxu1 %v11938_v1 }
 0x19f   : > { %9757 = vmatpush3.bf16.msra.mxu1 %v9756_v51 }
 0x1a0   : > { %9758 = vmatprep.subr.bf16.mxu1 %v11938_v1 }
 0x1a3   : > { %9760 = vmatpush3.bf16.msra.mxu1 %v9759_v48 }
 0x1aa   : > { %10021 = vrot.lane.b32.xlu1 %v10670_v50, %s10314_s17 }
 0x1ae   : > { %10026 = vrot.lane.b32.xlu1 %v10676_v53, %s10315_s18 }
 0x1b2   : > { %10031 = vrot.lane.b32.xlu1 %v10670_v50, %s10315_s18 }
 0x1b3   : > { %10016 = vrot.lane.b32.xlu0 %v10676_v53, %s10314_s17 }
 0x226   : > { %v437_v58 = vpop.xlane.xlu1 %436 }
 0x227   : > { %v438_v59 = vmul.f32 0.03125, %v437_v58 }
 0x229   : > { %v439_v61 = vadd.f32 1e-05, %v438_v59 }
 0x22a   : > { %v467_v22 = vpop.xlane.xlu0 %466  ;;  %v10022_v1 = vpop.permute.xlu1 %10021 }
 0x22b   : > { %10075 = vrsqrt.f32 %v439_v61  ;;  %v471_v51 = vmul.f32 0.03125, %v467_v22  ;;  %v10024_v22 = vunpack.i.h.bf16 %v10022_v1  ;;  %v10023_v59 = vunpack.i.l.bf16 %v10022_v1 }
 0x22c   : > { %10077 = vrsqrt.f32 %v474_v62 }
 0x22d   : > { %v473_v24 = vadd.f32 1e-05, %v471_v51  ;;  %v450_v51 = vrot.slane %v10618_v46, %v10694_v54  ;;  %v9765_v16 = vpack.c.bf16 %v10024_v22, %v10023_v59 }
 0x22e   : > { %v10017_v23 = vpop.permute.xlu0 %10016  ;;  %v10027_v62 = vpop.permute.xlu1 %10026 }
 0x22f   : > { %10079 = vrsqrt.f32 %v473_v24  ;;  %v10019_v21 = vunpack.i.h.bf16 %v10017_v23  ;;  %v10018_v60 = vunpack.i.l.bf16 %v10017_v23  ;;  %v10699_v24 = vsub.s32 2, %v10440_v10 }
 0x230   : > { %v10029_v14 = vunpack.i.h.bf16 %v10027_v62  ;;  %v10028_v13 = vunpack.i.l.bf16 %v10027_v62 }
 0x231   : > { %v9761_v48 = vpack.c.bf16 %v10019_v21, %v10018_v60  ;;  %v10704_v60 = vsub.s32 3, %v10440_v10  ;;  %v482_v1 = vrot.slane %v10618_v46, %v10699_v24 }
 0x232   : > { %v10032_v11 = vpop.permute.xlu1 %10031 }
 0x233   : > { %9762 = vmatprep.subr.bf16.mxu1 %v9761_v48  ;;  %v10034_v22 = vunpack.i.h.bf16 %v10032_v11  ;;  %v10033_v59 = vunpack.i.l.bf16 %v10032_v11  ;;  %v494_v11 = vrot.slane %v10613_v45, %v10691_v20 }
 0x235   : > { %v10076_v58 = vpop.eup %10075  ;;  %v9773_v62 = vpack.c.bf16 %v10034_v22, %v10033_v59 }
 0x236   : > { %v10078_v23 = vpop.eup %10077  ;;  %v441_v61 = vmul.f32 %v10076_v58, %v433_v56 }
 0x237   : > { %v478_v18 = vmul.f32 %v10078_v23, %v10650_v57 }
 0x238   : > { %v446_v21 = vmul.f32 %v445_v55, %v441_v61  ;;  %v488_v55 = vrot.slane %v10618_v46, %v10704_v60  ;;  %v9769_v61 = vpack.c.bf16 %v10029_v14, %v10028_v13 }
 0x239   : > { %v10080_v19 = vpop.eup %10079  ;;  %v484_v58 = vmul.f32 %v482_v1, %v478_v18 }
 0x23a   : > { %v451_v15 = vadd.f32 %v450_v51, %v446_v21  ;;  %v477_v12 = vmul.f32 %v10080_v19, %v461_v3  ;;  %v11960_v3 = vmov 0.0  }
 0x23b   : > { %v490_v23 = vadd.f32 %v488_v55, %v484_v58 }
 0x23c   : > { %9116 = vmatmul.mubr.msk.f32.vlgmr.msra.gmra.mrb[0].mxu1 %vm452_vm9, %v451_v15  ;;  %v483_v56 = vmul.f32 %v482_v1, %v477_v12  ;;  %v571_v15 = vrot.slane %v10613_v45, %v10694_v54 }
 0x23d   : > { %9764 = vmatpush3.bf16.msra.mxu1 %v9761_v48 }
 0x23e   : > { %9766 = vmatprep.subr.bf16.mxu1 %v9765_v16  ;;  %v489_v57 = vadd.f32 %v488_v55, %v483_v56  ;;  %v672_v56 = vrot.slane %v10613_v45, %v10699_v24 }
 0x240   : > { %9126 = vmatprep.mubr.msk.f32.mxu1 %vm452_vm9, %v489_v57 }
 0x241   : > { %9768 = vmatpush3.bf16.msra.mxu1 %v9765_v16 }
 0x242   : > { %9770 = vmatprep.subr.bf16.mxu1 %v9769_v61 }
 0x244   : > { %9127 = vmatmul.mubr.msk.f32.vlgmr.msra.gmra.mrb[2].mxu1 %vm452_vm9, %v490_v23 }
 0x245   : > { %9772 = vmatpush3.bf16.msra.mxu1 %v9769_v61  ;;  %9137 = vmatprep.mubr.msk.f32.mxu1 %vm452_vm9, %v489_v57 }
 0x246   : > { %9774 = vmatprep.subr.bf16.mxu1 %v9773_v62 }
 0x249   : > { %9776 = vmatpush3.bf16.msra.mxu1 %v9773_v62 }
 0x24a   : > { %9140 = vmatprep.subr.mxu1 %v11960_v3 }
 0x24c   : > { %9138 = vmatmul.mubr.msk.f32.vlgmr.msra.gmra.mrb[4].mxu1 %vm452_vm9, %v490_v23 }
 0x24d   : > { %9142 = vmatprep.mubr.msk.f32.mxu1 %vm10313_vm4, %v11960_v3 }
 0x30f   : > { %v564_v12 = vpop.f32.mrb[0].mxu1 }
 0x310   : > { %v565_v13 = vadd.f32 %v564_v12, %v494_v11  ;;  %v9117_v14 = vpop.f32.mrb[1].mxu1 }
 0x312   : > { %927 = vrot.lane.b32.xlu1 %v565_v13, %s10317_s19  ;;  %v1448_v1 = vrot.slane %v565_v13, 1 }
 0x316   : > { %1095 = vrot.lane.b32.xlu1 %v565_v13, %s10318_s20 }
 0x317   : > { %v9128_v16 = vpop.f32.mrb[2].mxu1 }
 0x318   : > { %v666_v18 = vadd.f32 %v9128_v16, %v571_v15  ;;  %v660_v19 = vpop.f32.mrb[3].mxu1 }
 0x319   : > { %v661_v48 = vadd.f32 %v660_v19, %v571_v15 }
 0x31a   : > { %v1452_v51 = vrot.slane %v666_v18, 5  ;;  %1263 = vrot.lane.b32.xlu1 %v565_v13, %s10319_s21 }
 0x31b   : > { %929 = vrot.lane.b32.xlu0 %v661_v48, %s10317_s19  ;;  %9141 = vmatpush3.xpose.msk.msra.mxu1 %vm760_vm10, %v661_v48  ;;  %v1451_v21 = vrot.slane %v661_v48, 5 }
 0x31c   : > { %9150 = vmatprep.subr.mxu1 %v11960_v3 }
 0x31d   : > { %v1453_v55 = vsel %vm1450_vm11, %v1451_v21, %v1452_v51 }
 0x31e   : > { %9143 = vmatmul.mubr.msk.f32.vlgmr.msra.gmra.mrb[6].mxu1 %vm760_vm10, %v565_v13  ;;  %1620 = vrot.lane.b32.xlu1 %v1448_v1, %s10317_s19 }
 0x31f   : > { %v9139_v58 = vpop.f32.mrb[4].mxu1  ;;  %1097 = vrot.lane.b32.xlu0 %v661_v48, %s10318_s20  ;;  %9152 = vmatprep.mubr.msk.f32.mxu1 %vm10313_vm4, %v11960_v3 }
 0x320   : > { %v757_v61 = vadd.f32 %v9139_v58, %v672_v56  ;;  %v751_v57 = vpop.f32.mrb[5].mxu1 }
 0x321   : > { %v10737_v22 = vadd.f32 %v751_v57, %v672_v56 }
 0x322   : > { %v1543_v59 = vrot.slane %v757_v61, 5  ;;  %1788 = vrot.lane.b32.xlu1 %v1448_v1, %s10318_s20 }
 0x323   : > { %9146 = vmatpush3.msk.msra.mxu0 %vm344_vm3, %v10737_v22  ;;  %1265 = vrot.lane.b32.xlu0 %v661_v48, %s10319_s21  ;;  %v1542_v23 = vrot.slane %v10737_v22, 5 }
 0x324   : > { %9155 = vmatprep.subr.mxu0 %v11960_v3 }
 0x325   : > { %v10746_v62 = vsel %vm1450_vm11, %v1542_v23, %v1543_v59 }
 0x326   : > { %1956 = vrot.lane.b32.xlu1 %v1448_v1, %s10319_s21 }
 0x327   : > { %1622 = vrot.lane.b32.xlu0 %v1453_v55, %s10317_s19 }
 0x32b   : > { %1790 = vrot.lane.b32.xlu0 %v1453_v55, %s10318_s20 }
 0x32f   : > { %1958 = vrot.lane.b32.xlu0 %v1453_v55, %s10319_s21 }
 0x384   : > { %v928_v11 = vpop.permute.xlu1 %927 }
 0x388   : > { %v1096_v13 = vpop.permute.xlu1 %1095 }
 0x38c   : > { %v1264_v16 = vpop.permute.xlu1 %1263 }
 0x38d   : > { %v930_v12 = vpop.permute.xlu0 %929 }
 0x38e   : > { %9151 = vmatpush3.xpose.msk.msra.mxu1 %vm760_vm10, %v930_v12 }
 0x38f   : > { %9160 = vmatprep.subr.mxu1 %v11960_v3 }
 0x390   : > { %v1621_v19 = vpop.permute.xlu1 %1620 }
 0x391   : > { %v1098_v14 = vpop.permute.xlu0 %1097  ;;  %9153 = vmatmul.mubr.msk.f32.vlgmr.msra.gmra.mrb[8].mxu1 %vm760_vm10, %v928_v11 }
 0x392   : > { %9161 = vmatpush3.xpose.msk.msra.mxu1 %vm760_vm10, %v1098_v14  ;;  %9162 = vmatprep.mubr.msk.f32.mxu1 %vm10313_vm4, %v11960_v3 }
 0x393   : > { %9170 = vmatprep.subr.mxu1 %v11960_v3 }
 0x394   : > { %v1789_v51 = vpop.permute.xlu1 %1788 }
 0x395   : > { %v1266_v15 = vpop.permute.xlu0 %1265  ;;  %9163 = vmatmul.mubr.msk.f32.vlgmr.msra.gmra.mrb[10].mxu1 %vm760_vm10, %v1096_v13 }
 0x396   : > { %9171 = vmatpush3.xpose.msk.msra.mxu1 %vm760_vm10, %v1266_v15  ;;  %9172 = vmatprep.mubr.msk.f32.mxu1 %vm10313_vm4, %v11960_v3 }
 0x397   : > { %9180 = vmatprep.subr.mxu1 %v11960_v3 }
 0x398   : > { %v1957_v56 = vpop.permute.xlu1 %1956 }
 0x399   : > { %v1623_v18 = vpop.permute.xlu0 %1622  ;;  %9173 = vmatmul.mubr.msk.f32.vlgmr.msra.gmra.mrb[12].mxu1 %vm760_vm10, %v1264_v16 }
 0x39a   : > { %9181 = vmatpush3.xpose.msk.msra.mxu1 %vm760_vm10, %v1453_v55  ;;  %9182 = vmatprep.mubr.msk.f32.mxu1 %vm10313_vm4, %v11960_v3  ;;  %v424_v55 = vsel %vm423_vm12, -1e+09, %v11960_v3 }
 0x39b   : > { %9190 = vmatprep.subr.mxu1 %v11960_v3 }
 0x39d   : > { %9183 = vmatmul.mubr.msk.f32.vlgmr.msra.gmra.mrb[14].mxu1 %vm760_vm10, %v1448_v1  ;;  %v1791_v48 = vpop.permute.xlu0 %1790  ;;  %v11961_v1 = vmov 0.0|0.0  }
 0x39e   : > { %9191 = vmatpush3.xpose.msk.msra.mxu1 %vm760_vm10, %v1623_v18  ;;  %9192 = vmatprep.mubr.msk.f32.mxu1 %vm10313_vm4, %v11960_v3 }
 0x39f   : > { %9200 = vmatprep.subr.mxu1 %v11960_v3 }
 0x3a1   : > { %9193 = vmatmul.mubr.msk.f32.vlgmr.msra.gmra.mrb[16].mxu1 %vm760_vm10, %v1621_v19  ;;  %v1959_v21 = vpop.permute.xlu0 %1958 }
 0x3a2   : > { %9201 = vmatpush3.xpose.msk.msra.mxu1 %vm760_vm10, %v1791_v48  ;;  %9202 = vmatprep.mubr.msk.f32.mxu1 %vm10313_vm4, %v11960_v3 }
 0x3a3   : > { %9210 = vmatprep.subr.mxu1 %v11960_v3 }
 0x3a5   : > { %9203 = vmatmul.mubr.msk.f32.vlgmr.msra.gmra.mrb[18].mxu1 %vm760_vm10, %v1789_v51 }
 0x3a6   : > { %9211 = vmatpush3.xpose.msk.msra.mxu1 %vm760_vm10, %v1959_v21  ;;  %9212 = vmatprep.mubr.msk.f32.mxu1 %vm10313_vm4, %v11960_v3 }
 0x3a7   : > { %9777 = vmatprep.subr.bf16.mxu1 %v11961_v1 }
 0x3a9   : > { %9213 = vmatmul.mubr.msk.f32.vlgmr.msra.gmra.mrb[20].mxu1 %vm760_vm10, %v1957_v56 }
 0x3aa   : > { %9228 = vmatprep.mubr.msk.f32.mxu1 %vm10313_vm4, %v11960_v3 }
 0x3f1   : > { %v833_v58 = vpop.f32.mrb[6].mxu1 }
 0x3f2   : > { %v837_v61 = vmul.f32 0.35355338, %v833_v58  ;;  %v9144_v57 = vpop.f32.mrb[7].mxu1 }
 0x3f4   : > { %v838_v59 = vadd.f32 %v837_v61, %v424_v55 }
 0x3f6   : > { %v840_v23 = vsel %vm839_vm13, %v838_v59, -inf }
 0x3f7   : > { %841 = vmax.xlane.f32.xlu0 %v840_v23 }
 0x464   : > { %v1001_v11 = vpop.f32.mrb[8].mxu1 }
 0x465   : > { %v1005_v12 = vmul.f32 0.35355338, %v1001_v11  ;;  %v9154_v13 = vpop.f32.mrb[9].mxu1 }
 0x467   : > { %v1006_v14 = vadd.f32 %v1005_v12, %v424_v55 }
 0x468   : > { %v1169_v15 = vpop.f32.mrb[10].mxu1 }
 0x469   : > { %v1173_v16 = vmul.f32 0.35355338, %v1169_v15  ;;  %v9164_v18 = vpop.f32.mrb[11].mxu1  ;;  %v1007_v19 = vsel %vm839_vm13, %v1006_v14, -inf }
 0x46a   : > { %1008 = vmax.xlane.f32.xlu1 %v1007_v19 }
 0x46b   : > { %v1174_v48 = vadd.f32 %v1173_v16, %v424_v55 }
 0x46c   : > { %v1337_v51 = vpop.f32.mrb[12].mxu1 }
 0x46d   : > { %v1341_v21 = vmul.f32 0.35355338, %v1337_v51  ;;  %v9174_v56 = vpop.f32.mrb[13].mxu1  ;;  %v1175_v58 = vsel %vm839_vm13, %v1174_v48, -inf }
 0x46e   : > { %1176 = vmax.xlane.f32.xlu0 %v1175_v58 }
 0x46f   : > { %v10793_v61 = vadd.f32 %v1341_v21, %v424_v55 }
 0x470   : > { %v1524_v57 = vpop.f32.mrb[14].mxu1 }
 0x471   : > { %v1528_v23 = vmul.f32 0.35355338, %v1524_v57  ;;  %v9184_v11 = vpop.f32.mrb[15].mxu1  ;;  %v1343_v12 = vsel %vm839_vm13, %v10793_v61, -inf }
 0x472   : > { %1344 = vmax.xlane.f32.xlu0 %v1343_v12 }
 0x473   : > { %v1529_v13 = vadd.f32 %v1528_v23, %v424_v55 }
 0x474   : > { %v1694_v15 = vpop.f32.mrb[16].mxu1 }
 0x475   : > { %v1698_v18 = vmul.f32 0.35355338, %v1694_v15  ;;  %v9194_v19 = vpop.f32.mrb[17].mxu1  ;;  %v1530_v16 = vsel %vm839_vm13, %v1529_v13, -inf }
 0x476   : > { %1531 = vmax.xlane.f32.xlu0 %v1530_v16 }
 0x477   : > { %v1699_v51 = vadd.f32 %v1698_v18, %v424_v55 }
 0x478   : > { %v1862_v56 = vpop.f32.mrb[18].mxu1 }
 0x479   : > { %v1866_v9 = vmul.f32 0.35355338, %v1862_v56  ;;  %v9204_v58 = vpop.f32.mrb[19].mxu1  ;;  %v1700_v21 = vsel %vm839_vm13, %v1699_v51, -inf }
 0x47a   : > { %1701 = vmax.xlane.f32.xlu1 %v1700_v21 }
 0x47b   : > { %v1867_v57 = vadd.f32 %v1866_v9, %v424_v55 }
 0x47c   : > { %v2030_v11 = vpop.f32.mrb[20].mxu1 }
 0x47d   : > { %v2034_v8 = vmul.f32 0.35355338, %v2030_v11  ;;  %v9214_v7 = vpop.f32.mrb[21].mxu1  ;;  %v1868_v12 = vsel %vm839_vm13, %v1867_v57, -inf }
 0x47e   : > { %1869 = vmax.xlane.f32.xlu0 %v1868_v12 }
 0x47f   : > { %v2035_v23 = vadd.f32 %v2034_v8, %v424_v55 }
 0x481   : > { %v2036_v15 = vsel %vm839_vm13, %v2035_v23, -inf }
 0x482   : > { %2037 = vmax.xlane.f32.xlu1 %v2036_v15 }
 0x484   : > { %v842_v19 = vpop.xlane.xlu0 %841 }
 0x485   : > { %v843_v16 = vsub.f32 %v838_v59, %v842_v19 }
 0x487   : > { %v844_v18 = vmul.f32 1.442695, %v843_v16 }
 0x489   : > { %10081 = vpow2.f32 %v844_v18 }
 0x493   : > { %v10082_v56 = vpop.eup %10081 }
 0x494   : > { %v846_v58 = vsel %vm839_vm13, %v10082_v56, 0.0 }
 0x495   : > { %847 = vadd.xlane.f32.xlu0 %v846_v58 }
 0x4f7   : > { %v1009_v21 = vpop.xlane.xlu1 %1008 }
 0x4f8   : > { %v1010_v9 = vsub.f32 %v1006_v14, %v1009_v21 }
 0x4fa   : > { %v1011_v6 = vmul.f32 1.442695, %v1010_v9 }
 0x4fb   : > { %v1177_v11 = vpop.xlane.xlu0 %1176 }
 0x4fc   : > { %10083 = vpow2.f32 %v1011_v6  ;;  %v1178_v7 = vsub.f32 %v1174_v48, %v1177_v11 }
 0x4fe   : > { %v1179_v5 = vmul.f32 1.442695, %v1178_v7 }
 0x4ff   : > { %v1345_v15 = vpop.xlane.xlu0 %1344 }
 0x500   : > { %10085 = vpow2.f32 %v1179_v5  ;;  %v1346_v16 = vsub.f32 %v10793_v61, %v1345_v15 }
 0x502   : > { %v1347_v11 = vmul.f32 1.442695, %v1346_v16 }
 0x503   : > { %v1532_v6 = vpop.xlane.xlu0 %1531 }
 0x504   : > { %v1533_v48 = vsub.f32 %v1529_v13, %v1532_v6 }
 0x506   : > { %v10802_v8 = vpop.eup %10083  ;;  %v1534_v58 = vmul.f32 1.442695, %v1533_v48 }
 0x507   : > { %v1013_v55 = vsel %vm839_vm13, %v10802_v8, 0.0  ;;  %v1702_v9 = vpop.xlane.xlu1 %1701 }
 0x508   : > { %1014 = vadd.xlane.f32.xlu1 %v1013_v55  ;;  %v1703_v7 = vsub.f32 %v1699_v51, %v1702_v9 }
 0x50a   : > { %v10806_v59 = vpop.eup %10085 }
 0x50b   : > { %v1181_v12 = vsel %vm839_vm13, %v10806_v59, 0.0  ;;  %v1870_v5 = vpop.xlane.xlu0 %1869 }
 0x50c   : > { %1182 = vadd.xlane.f32.xlu0 %v1181_v12  ;;  %v1871_v21 = vsub.f32 %v1867_v57, %v1870_v5  ;;  %v1704_v12 = vmul.f32 1.442695, %v1703_v7 }
 0x50e   : > { %v1872_v55 = vmul.f32 1.442695, %v1871_v21 }
 0x519   : > { %1186 = vrot.lane.b32.xlu1 %v10737_v22, %s10318_s20 }
 0x51d   : > { %1354 = vrot.lane.b32.xlu1 %v10737_v22, %s10319_s21 }
 0x521   : > { %1711 = vrot.lane.b32.xlu1 %v10746_v62, %s10317_s19 }
 0x522   : > { %1018 = vrot.lane.b32.xlu0 %v10737_v22, %s10317_s19  ;;  %v848_v14 = vpop.xlane.xlu0 %847  ;;  %v2038_v22 = vpop.xlane.xlu1 %2037 }
 0x523   : > { %10087 = vrcp.f32 %v848_v14  ;;  %v2039_v13 = vsub.f32 %v2035_v23, %v2038_v22 }
 0x524   : > { %10089 = vpow2.f32 %v1534_v58 }
 0x525   : > { %10091 = vpow2.f32 %v1347_v11  ;;  %v2040_v61 = vmul.f32 1.442695, %v2039_v13 }
 0x526   : > { %10093 = vpow2.f32 %v1872_v55 }
 0x527   : > { %10095 = vpow2.f32 %v1704_v12 }
 0x528   : > { %10097 = vpow2.f32 %v2040_v61 }
 0x52d   : > { %v10088_v19 = vpop.eup %10087 }
 0x52e   : > { %v850_v18 = vmul.f32 %v10088_v19, %v10082_v56  ;;  %v10090_v56 = vpop.eup %10089 }
 0x52f   : > { %v10092_v57 = vpop.eup %10091  ;;  %v1536_v15 = vsel %vm839_vm13, %v10090_v56, 0.0 }
 0x530   : > { %9148 = vmatmul.mubr.msk.f32.vlgmr.msra.gmra.mrb[2].mxu0 %vm340_vm5, %v850_v18  ;;  %v10823_v6 = vpop.eup %10093  ;;  %v1349_v51 = vsel %vm839_vm13, %v10092_v57, 0.0 }
 0x531   : > { %9157 = vmatprep.mubr.msk.f32.mxu0 %vm10313_vm4, %v11960_v3  ;;  %v1874_v5 = vsel %vm839_vm13, %v10823_v6, 0.0  ;;  %v10096_v14 = vpop.eup %10095 }
 0x532   : > { %v1706_v23 = vsel %vm839_vm13, %v10096_v14, 0.0  ;;  %v10829_v48 = vpop.eup %10097 }
 0x533   : > { %v2042_v19 = vsel %vm839_vm13, %v10829_v48, 0.0 }
 0x541   : > { %1537 = vadd.xlane.f32.xlu0 %v1536_v15 }
 0x545   : > { %1875 = vadd.xlane.f32.xlu0 %v1874_v5  ;;  %1350 = vadd.xlane.f32.xlu1 %v1349_v51 }
 0x549   : > { %1707 = vadd.xlane.f32.xlu1 %v1706_v23 }
 0x54d   : > { %2043 = vadd.xlane.f32.xlu1 %v2042_v19 }
 0x55b   : > { %1879 = vrot.lane.b32.xlu0 %v10746_v62, %s10318_s20 }
 0x55e   : > { %2047 = vrot.lane.b32.xlu1 %v10746_v62, %s10319_s21 }
 0x55f   : > { %10036 = vrot.lane.b32.xlu0 %v10676_v53, %s10320_s22 }
 0x562   : > { %10041 = vrot.lane.b32.xlu1 %v10670_v50, %s10320_s22 }
 0x595   : > { %v1015_v16 = vpop.xlane.xlu1 %1014 }
 0x596   : > { %10099 = vrcp.f32 %v1015_v16 }
 0x599   : > { %v1183_v18 = vpop.xlane.xlu0 %1182  ;;  %v1187_v11 = vpop.permute.xlu1 %1186 }
 0x59a   : > { %10101 = vrcp.f32 %v1183_v18 }
 0x59d   : > { %v1019_v58 = vpop.permute.xlu0 %1018  ;;  %v1355_v55 = vpop.permute.xlu1 %1354 }
 0x59e   : > { %9156 = vmatpush3.msk.msra.mxu0 %vm344_vm3, %v1019_v58 }
 0x59f   : > { %9165 = vmatprep.subr.mxu0 %v11960_v3 }
 0x5a0   : > { %v10100_v21 = vpop.eup %10099 }
 0x5a1   : > { %v1017_v9 = vmul.f32 %v10100_v21, %v10802_v8  ;;  %v1712_v8 = vpop.permute.xlu1 %1711 }
 0x5a3   : > { %9158 = vmatmul.mubr.msk.f32.vlgmr.msra.gmra.mrb[4].mxu0 %vm340_vm5, %v1017_v9 }
 0x5a4   : > { %v10102_v7 = vpop.eup %10101  ;;  %9166 = vmatpush3.msk.msra.mxu0 %vm344_vm3, %v1187_v11  ;;  %9167 = vmatprep.mubr.msk.f32.mxu0 %vm10313_vm4, %v11960_v3 }
 0x5a5   : > { %v1185_v53 = vmul.f32 %v10102_v7, %v10806_v59  ;;  %9175 = vmatprep.subr.mxu0 %v11960_v3 }
 0x5a7   : > { %9168 = vmatmul.mubr.msk.f32.vlgmr.msra.gmra.mrb[6].mxu0 %vm340_vm5, %v1185_v53 }
 0x5a8   : > { %9176 = vmatpush3.msk.msra.mxu0 %vm344_vm3, %v1355_v55  ;;  %9177 = vmatprep.mubr.msk.f32.mxu0 %vm10313_vm4, %v11960_v3 }
 0x5a9   : > { %9185 = vmatprep.subr.mxu0 %v11960_v3 }
 0x5ce   : > { %v1538_v12 = vpop.xlane.xlu0 %1537 }
 0x5d2   : > { %v1351_v22 = vpop.xlane.xlu1 %1350  ;;  %v1876_v59 = vpop.xlane.xlu0 %1875 }
 0x5d3   : > { %10103 = vrcp.f32 %v1351_v22 }
 0x5d4   : > { %10105 = vrcp.f32 %v1538_v12 }
 0x5d6   : > { %v1708_v13 = vpop.xlane.xlu1 %1707  ;;  %v1880_v18 = vpop.permute.xlu0 %1879 }
 0x5d7   : > { %10107 = vrcp.f32 %v1708_v13 }
 0x5d8   : > { %10109 = vrcp.f32 %v1876_v59 }
 0x5da   : > { %v2044_v5 = vpop.xlane.xlu1 %2043  ;;  %v10037_v9 = vpop.permute.xlu0 %10036 }
 0x5db   : > { %10111 = vrcp.f32 %v2044_v5  ;;  %v10039_v11 = vunpack.i.h.bf16 %v10037_v9  ;;  %v10038_v7 = vunpack.i.l.bf16 %v10037_v9 }
 0x5dd   : > { %v10104_v61 = vpop.eup %10103  ;;  %v9778_v53 = vpack.c.bf16 %v10039_v11, %v10038_v7 }
 0x5de   : > { %v1353_v15 = vmul.f32 %v10104_v61, %v10092_v57  ;;  %v10106_v51 = vpop.eup %10105  ;;  %v2048_v58 = vpop.permute.xlu1 %2047 }
 0x5df   : > { %v1540_v23 = vmul.f32 %v10106_v51, %v10090_v56  ;;  %9779 = vmatpush3.bf16.msra.mxu1 %v9778_v53 }
 0x5e0   : > { %9178 = vmatmul.mubr.msk.f32.vlgmr.msra.gmra.mrb[8].mxu0 %vm340_vm5, %v1353_v15  ;;  %9780 = vmatprep.subr.bf16.mxu1 %v11961_v1 }
 0x5e1   : > { %9186 = vmatpush3.msk.msra.mxu0 %vm344_vm3, %v10746_v62  ;;  %9187 = vmatprep.mubr.msk.f32.mxu0 %vm10313_vm4, %v11960_v3  ;;  %v10108_v19 = vpop.eup %10107 }
 0x5e2   : > { %9195 = vmatprep.subr.mxu0 %v11960_v3  ;;  %v1710_v57 = vmul.f32 %v10108_v19, %v10096_v14  ;;  %v10110_v16 = vpop.eup %10109  ;;  %v10042_v12 = vpop.permute.xlu1 %10041 }
 0x5e3   : > { %v1878_v62 = vmul.f32 %v10110_v16, %v10823_v6  ;;  %v10044_v13 = vunpack.i.h.bf16 %v10042_v12  ;;  %v10043_v59 = vunpack.i.l.bf16 %v10042_v12 }
 0x5e4   : > { %9188 = vmatmul.mubr.msk.f32.vlgmr.msra.gmra.mrb[10].mxu0 %vm340_vm5, %v1540_v23 }
 0x5e5   : > { %9196 = vmatpush3.msk.msra.mxu0 %vm344_vm3, %v1712_v8  ;;  %9197 = vmatprep.mubr.msk.f32.mxu0 %vm10313_vm4, %v11960_v3  ;;  %v10112_v56 = vpop.eup %10111  ;;  %v9781_v61 = vpack.c.bf16 %v10044_v13, %v10043_v59  ;;  %v2146_v59 = vrot.slane %v10613_v45, %v10704_v60 }
 0x5e6   : > { %9205 = vmatprep.subr.mxu0 %v11960_v3  ;;  %v2046_v14 = vmul.f32 %v10112_v56, %v10829_v48 }
 0x5e7   : > { %9782 = vmatpush3.bf16.msra.mxu1 %v9781_v61 }
 0x5e8   : > { %9198 = vmatmul.mubr.msk.f32.vlgmr.msra.gmra.mrb[12].mxu0 %vm340_vm5, %v1710_v57  ;;  %9789 = vmatprep.subr.bf16.mxu1 %v11961_v1 }
 0x5e9   : > { %9206 = vmatpush3.msk.msra.mxu0 %vm344_vm3, %v1880_v18  ;;  %9207 = vmatprep.mubr.msk.f32.mxu0 %vm10313_vm4, %v11960_v3 }
 0x5ea   : > { %9215 = vmatprep.subr.mxu0 %v11960_v3 }
 0x5ec   : > { %9208 = vmatmul.mubr.msk.f32.vlgmr.msra.gmra.mrb[14].mxu0 %vm340_vm5, %v1878_v62 }
 0x5ed   : > { %9216 = vmatpush3.msk.msra.mxu0 %vm344_vm3, %v2048_v58  ;;  %9217 = vmatprep.mubr.msk.f32.mxu0 %vm10313_vm4, %v11960_v3  ;;  %vm4074_vm3 = vcmask 523264  }
 0x5ee   : > { %9783 = vmatprep.subr.bf16.mxu0 %v11961_v1 }
 0x5f0   : > { %9218 = vmatmul.mubr.msk.f32.vlgmr.msra.gmra.mrb[16].mxu0 %vm340_vm5, %v2046_v14  ;;  %vm4256_vm5 = vcmp.eq.s32.totalorder %v10440_v10, %v10636_v52 }
 0x5f1   : > { %9239 = vmatprep.mubr.msk.f32.mxu0 %vm10313_vm4, %v11960_v3 }
 0x603   : > { %v923_v6 = vpop.f32.mrb[2].mxu0 }
 0x604   : > { %v9149_v21 = vpop.f32.mrb[3].mxu0 }
 0x676   : > { %v1091_v48 = vpop.f32.mrb[4].mxu0 }
 0x677   : > { %1432 = vrot.lane.b32.xlu0 %v1091_v48, %s10321_s23  ;;  %v9159_v55 = vpop.f32.mrb[5].mxu0 }
 0x67a   : > { %v1259_v8 = vpop.f32.mrb[6].mxu0 }
 0x67b   : > { %v9169_v22 = vpop.f32.mrb[7].mxu0 }
 0x6b3   : > { %v1427_v50 = vpop.f32.mrb[8].mxu0 }
 0x6b4   : > { %v9179_v15 = vpop.f32.mrb[9].mxu0 }
 0x6b7   : > { %v1616_v5 = vpop.f32.mrb[10].mxu0 }
 0x6b8   : > { %v9189_v51 = vpop.f32.mrb[11].mxu0 }
 0x6b9   : > { %v10908_v51 = vpack.i.bf16 %v10518_v26, %v10513_v25 }
 0x6bb   : > { %v1784_v23 = vpop.f32.mrb[12].mxu0 }
 0x6bc   : > { %2125 = vrot.lane.b32.xlu1 %v1784_v23, %s10321_s23  ;;  %v9199_v19 = vpop.f32.mrb[13].mxu0 }
 0x6bf   : > { %v1952_v57 = vpop.f32.mrb[14].mxu0 }
 0x6c0   : > { %2129 = vrot.lane.b32.xlu0 %v1952_v57, %s10322_s24  ;;  %v9209_v16 = vpop.f32.mrb[15].mxu0 }
 0x6c3   : > { %v2120_v18 = vpop.f32.mrb[16].mxu0 }
 0x6c4   : > { %1436 = vrot.lane.b32.xlu0 %v1259_v8, %s10322_s24  ;;  %2133 = vrot.lane.b32.xlu1 %v2120_v18, %s10323_s25  ;;  %v9219_v62 = vpop.f32.mrb[17].mxu0 }
 0x6c8   : > { %1440 = vrot.lane.b32.xlu1 %v1427_v50, %s10323_s25 }
 0x6e9   : > { %v1433_v56 = vpop.permute.xlu0 %1432 }
 0x6ea   : > { %v1443_v48 = vsel %vm760_vm10, %v923_v6, %v1433_v56 }
 0x72e   : > { %v2126_v58 = vpop.permute.xlu1 %2125 }
 0x72f   : > { %v2136_v21 = vsel %vm760_vm10, %v1616_v5, %v2126_v58 }
 0x732   : > { %v2130_v14 = vpop.permute.xlu0 %2129 }
 0x733   : > { %v2137_v9 = vsel %vm1444_vm14, %v2136_v21, %v2130_v14  ;;  %v9784_v21 = vpack.c.bf16 %v10518_v26, %v10513_v25 }
 0x735   : > { %9785 = vmatpush3.bf16.msra.mxu0 %v9784_v21 }
 0x736   : > { %v2134_v11 = vpop.permute.xlu1 %2133  ;;  %v1437_v7 = vpop.permute.xlu0 %1436  ;;  %9786 = vmatprep.subr.bf16.mxu0 %v11961_v1 }
 0x737   : > { %v2138_v53 = vsel %vm1446_vm15, %v2137_v9, %v2134_v11  ;;  %v1445_v55 = vsel %vm1444_vm14, %v1443_v48, %v1437_v7  ;;  %v9787_v9 = vpack.c.bf16 %v10528_v28, %v10523_v27 }
 0x738   : > { %v2140_v8 = vrot.slane %v2138_v53, 7 }
 0x739   : > { %9788 = vmatpush3.bf16.msra.mxu0 %v9787_v9 }
 0x73a   : > { %v1441_v22 = vpop.permute.xlu1 %1440  ;;  %9795 = vmatprep.subr.bf16.mxu0 %v11961_v1 }
 0x73b   : > { %v1447_v12 = vsel %vm1446_vm15, %v1445_v55, %v1441_v22 }
 0x73c   : > { %v2142_v13 = vsel %vm421_vm8, %v1447_v12, %v2140_v8  ;;  %v10928_v12 = vsub.s32 4, %v10440_v10 }
 0x73d   : > { %9229 = vmatmul.mubr.msk.f32.vlgmr.msra.gmra.mrb[22].mxu1 %vm452_vm9, %v2142_v13  ;;  %v2253_v13 = vsub.s32 5, %v10440_v10 }
 0x73e   : > { %9250 = vmatprep.mubr.msk.f32.mxu1 %vm10313_vm4, %v11960_v3 }
 0x810   : > { %v2228_v61 = vpop.f32.mrb[22].mxu1 }
 0x811   : > { %v2229_v50 = vadd.f32 %v2228_v61, %v2146_v59  ;;  %v9230_v15 = vpop.f32.mrb[23].mxu1  ;;  %v2249_v59 = vrot.slane %v10618_v46, %v10928_v12 }
 0x812   : > { %v2254_v15 = vrot.slane %v10618_v46, %v2253_v13 }
 0x813   : > { %v10902_v6 = vadd.f32 %v2229_v50, %v10660_v63  ;;  %v10916_v63 = vpack.i.bf16 %v10528_v28, %v10523_v27 }
 0x815   : > { %v2233_v5 = vsel %vm427_vm6, %v10902_v6, 0.0 }
 0x816   : > { %2234 = vadd.xlane.f32.xlu0 %v2233_v5 }
 0x82c   : > { %10046 = vrot.lane.b32.xlu0 %v10908_v51, %s10314_s17 }
 0x8a3   : > { %v2235_v23 = vpop.xlane.xlu0 %2234 }
 0x8a4   : > { %v2236_v19 = vmul.f32 0.03125, %v2235_v23 }
 0x8a6   : > { %v2237_v57 = vsub.f32 %v10902_v6, %v2236_v19  ;;  %v2336_v19 = vrot.slane %v10613_v45, %v2253_v13 }
 0x8a7   : > { %v10047_v62 = vpop.permute.xlu0 %10046 }
 0x8a8   : > { %v2238_v16 = vmul.f32 %v2237_v57, %v2237_v57  ;;  %v10049_v56 = vunpack.i.h.bf16 %v10047_v62  ;;  %v10048_v58 = vunpack.i.l.bf16 %v10047_v62 }
 0x8aa   : > { %v2239_v18 = vsel %vm427_vm6, %v2238_v16, 0.0  ;;  %v9790_v14 = vpack.c.bf16 %v10049_v56, %v10048_v58 }
 0x8ab   : > { %2240 = vadd.xlane.f32.xlu1 %v2239_v18 }
 0x8ac   : > { %9791 = vmatpush3.bf16.msra.mxu1 %v9790_v14 }
 0x8ad   : > { %9792 = vmatprep.subr.bf16.mxu1 %v11961_v1 }
 0x8bc   : > { %10051 = vrot.lane.b32.xlu1 %v10916_v63, %s10314_s17  ;;  %s4400_s17 = sadd.s32 6, %s10390_s28 }
 0x938   : > { %v2241_v11 = vpop.xlane.xlu1 %2240 }
 0x939   : > { %v2242_v7 = vmul.f32 0.03125, %v2241_v11 }
 0x93b   : > { %v2243_v53 = vadd.f32 1e-05, %v2242_v7 }
 0x93c   : > { %v10052_v48 = vpop.permute.xlu1 %10051 }
 0x93d   : > { %10113 = vrsqrt.f32 %v2243_v53  ;;  %v10054_v55 = vunpack.i.h.bf16 %v10052_v48  ;;  %v10053_v8 = vunpack.i.l.bf16 %v10052_v48 }
 0x93f   : > { %v9793_v22 = vpack.c.bf16 %v10054_v55, %v10053_v8 }
 0x941   : > { %9794 = vmatpush3.bf16.msra.mxu1 %v9793_v22 }
 0x942   : > { %9264 = vmatprep.subr.mxu1 %v11960_v3 }
 0x944   : > { %9251 = vmatmul.mubr.msk.f32.vlgmr.msra.gmra.mrb[24].mxu1 %vm452_vm9, %v10397_v0 }
 0x945   : > { %9266 = vmatprep.mubr.msk.f32.mxu1 %vm10313_vm4, %v11960_v3 }
 0x947   : > { %v10114_v61 = vpop.eup %10113 }
 0x948   : > { %v2245_v50 = vmul.f32 %v10114_v61, %v2237_v57  ;;  %v2259_v57 = vrot.slane %v10613_v45, %v10928_v12 }
 0x94a   : > { %v2250_v5 = vmul.f32 %v2249_v59, %v2245_v50 }
 0x94c   : > { %v2255_v23 = vadd.f32 %v2254_v15, %v2250_v5 }
 0x94e   : > { %9240 = vmatmul.mubr.msk.f32.vlgmr.msra.gmra.mrb[18].mxu0 %vm452_vm9, %v2255_v23 }
 0x94f   : > { %9261 = vmatprep.mubr.msk.f32.mxu0 %vm10313_vm4, %v11960_v3 }
 0xa17   : > { %v2422_v16 = vpop.f32.mrb[24].mxu1 }
 0xa18   : > { %v2423_v18 = vadd.f32 %v2422_v16, %v2336_v19  ;;  %v9252_v62 = vpop.f32.mrb[25].mxu1 }
 0xa1a   : > { %2681 = vrot.lane.b32.xlu0 %v2423_v18, %s10317_s19  ;;  %9265 = vmatpush3.xpose.msk.msra.mxu1 %vm760_vm10, %v2423_v18  ;;  %v3196_v21 = vrot.slane %v2423_v18, 2 }
 0xa1b   : > { %9274 = vmatprep.subr.mxu1 %v11960_v3 }
 0xa1e   : > { %2848 = vrot.lane.b32.xlu0 %v2423_v18, %s10318_s20 }
 0xa21   : > { %v2329_v56 = vpop.f32.mrb[18].mxu0 }
 0xa22   : > { %v2330_v58 = vadd.f32 %v2329_v56, %v2259_v57  ;;  %3015 = vrot.lane.b32.xlu0 %v2423_v18, %s10319_s21  ;;  %v9241_v14 = vpop.f32.mrb[19].mxu0 }
 0xa24   : > { %2679 = vrot.lane.b32.xlu1 %v2330_v58, %s10317_s19  ;;  %9267 = vmatmul.mubr.msk.f32.vlgmr.msra.gmra.mrb[26].mxu1 %vm760_vm10, %v2330_v58  ;;  %v3195_v9 = vrot.slane %v2330_v58, 1 }
 0xa25   : > { %9276 = vmatprep.mubr.msk.f32.mxu1 %vm10313_vm4, %v11960_v3 }
 0xa26   : > { %3361 = vrot.lane.b32.xlu0 %v3196_v21, %s10317_s19 }
 0xa28   : > { %2846 = vrot.lane.b32.xlu1 %v2330_v58, %s10318_s20 }
 0xa2a   : > { %3528 = vrot.lane.b32.xlu0 %v3196_v21, %s10318_s20 }
 0xa2c   : > { %3013 = vrot.lane.b32.xlu1 %v2330_v58, %s10319_s21 }
 0xa2e   : > { %3695 = vrot.lane.b32.xlu0 %v3196_v21, %s10319_s21 }
 0xa30   : > { %3359 = vrot.lane.b32.xlu1 %v3195_v9, %s10317_s19 }
 0xa32   : > { %10056 = vrot.lane.b32.xlu0 %v10908_v51, %s10315_s18 }
 0xa34   : > { %3526 = vrot.lane.b32.xlu1 %v3195_v9, %s10318_s20 }
 0xa38   : > { %3693 = vrot.lane.b32.xlu1 %v3195_v9, %s10319_s21 }
 0xa3c   : > { %10061 = vrot.lane.b32.xlu1 %v10916_v63, %s10315_s18 }
 0xa8c   : > { %v2682_v11 = vpop.permute.xlu0 %2681 }
 0xa8d   : > { %9275 = vmatpush3.xpose.msk.msra.mxu1 %vm760_vm10, %v2682_v11 }
 0xa8e   : > { %9284 = vmatprep.subr.mxu1 %v11960_v3 }
 0xa90   : > { %v2849_v7 = vpop.permute.xlu0 %2848 }
 0xa94   : > { %v3016_v53 = vpop.permute.xlu0 %3015 }
 0xa96   : > { %v2680_v48 = vpop.permute.xlu1 %2679 }
 0xa97   : > { %9277 = vmatmul.mubr.msk.f32.vlgmr.msra.gmra.mrb[28].mxu1 %vm760_vm10, %v2680_v48 }
 0xa98   : > { %9285 = vmatpush3.xpose.msk.msra.mxu1 %vm760_vm10, %v2849_v7  ;;  %v3362_v55 = vpop.permute.xlu0 %3361  ;;  %9286 = vmatprep.mubr.msk.f32.mxu1 %vm10313_vm4, %v11960_v3 }
 0xa99   : > { %9294 = vmatprep.subr.mxu1 %v11960_v3 }
 0xa9a   : > { %v2847_v8 = vpop.permute.xlu1 %2846 }
 0xa9b   : > { %9287 = vmatmul.mubr.msk.f32.vlgmr.msra.gmra.mrb[30].mxu1 %vm760_vm10, %v2847_v8 }
 0xa9c   : > { %9295 = vmatpush3.xpose.msk.msra.mxu1 %vm760_vm10, %v3016_v53  ;;  %v3529_v22 = vpop.permute.xlu0 %3528  ;;  %9296 = vmatprep.mubr.msk.f32.mxu1 %vm10313_vm4, %v11960_v3 }
 0xa9d   : > { %9304 = vmatprep.subr.mxu1 %v11960_v3 }
 0xa9e   : > { %v3014_v13 = vpop.permute.xlu1 %3013 }
 0xa9f   : > { %9297 = vmatmul.mubr.msk.f32.vlgmr.msra.gmra.mrb[32].mxu1 %vm760_vm10, %v3014_v13 }
 0xaa0   : > { %9305 = vmatpush3.xpose.msk.msra.mxu1 %vm760_vm10, %v3196_v21  ;;  %v3696_v59 = vpop.permute.xlu0 %3695  ;;  %9306 = vmatprep.mubr.msk.f32.mxu1 %vm10313_vm4, %v11960_v3 }
 0xaa1   : > { %9314 = vmatprep.subr.mxu1 %v11960_v3 }
 0xaa2   : > { %v3360_v61 = vpop.permute.xlu1 %3359 }
 0xaa3   : > { %9307 = vmatmul.mubr.msk.f32.vlgmr.msra.gmra.mrb[34].mxu1 %vm760_vm10, %v3195_v9 }
 0xaa4   : > { %9315 = vmatpush3.xpose.msk.msra.mxu1 %vm760_vm10, %v3362_v55  ;;  %9316 = vmatprep.mubr.msk.f32.mxu1 %vm10313_vm4, %v11960_v3  ;;  %v10057_v50 = vpop.permute.xlu0 %10056 }
 0xaa5   : > { %9324 = vmatprep.subr.mxu1 %v11960_v3  ;;  %v10059_v15 = vunpack.i.h.bf16 %v10057_v50  ;;  %v10058_v5 = vunpack.i.l.bf16 %v10057_v50 }
 0xaa6   : > { %v3527_v23 = vpop.permute.xlu1 %3526 }
 0xaa7   : > { %9317 = vmatmul.mubr.msk.f32.vlgmr.msra.gmra.mrb[36].mxu1 %vm760_vm10, %v3360_v61  ;;  %v9796_v19 = vpack.c.bf16 %v10059_v15, %v10058_v5 }
 0xaa8   : > { %9325 = vmatpush3.xpose.msk.msra.mxu1 %vm760_vm10, %v3529_v22  ;;  %9326 = vmatprep.mubr.msk.f32.mxu1 %vm10313_vm4, %v11960_v3 }
 0xaa9   : > { %9334 = vmatprep.subr.mxu1 %v11960_v3  ;;  %9797 = vmatpush3.bf16.msra.mxu0 %v9796_v19 }
 0xaaa   : > { %v3694_v16 = vpop.permute.xlu1 %3693  ;;  %9798 = vmatprep.subr.bf16.mxu0 %v11961_v1 }
 0xaab   : > { %9327 = vmatmul.mubr.msk.f32.vlgmr.msra.gmra.mrb[38].mxu1 %vm760_vm10, %v3527_v23 }
 0xaac   : > { %9335 = vmatpush3.xpose.msk.msra.mxu1 %vm760_vm10, %v3696_v59  ;;  %9336 = vmatprep.mubr.msk.f32.mxu1 %vm10313_vm4, %v11960_v3 }
 0xaad   : > { %9801 = vmatprep.subr.bf16.mxu1 %v11961_v1 }
 0xaae   : > { %v10062_v18 = vpop.permute.xlu1 %10061 }
 0xaaf   : > { %9337 = vmatmul.mubr.msk.f32.vlgmr.msra.gmra.mrb[40].mxu1 %vm760_vm10, %v3694_v16  ;;  %v10064_v62 = vunpack.i.h.bf16 %v10062_v18  ;;  %v10063_v57 = vunpack.i.l.bf16 %v10062_v18 }
 0xab0   : > { %9352 = vmatprep.mubr.msk.f32.mxu1 %vm10313_vm4, %v11960_v3 }
 0xab1   : > { %v9799_v56 = vpack.c.bf16 %v10064_v62, %v10063_v57 }
 0xab3   : > { %9800 = vmatpush3.bf16.msra.mxu0 %v9799_v56 }
 0xab4   : > { %9269 = vmatprep.subr.mxu0 %v11960_v3 }
 0xab6   : > { %9262 = vmatmul.mubr.msk.f32.vlgmr.msra.gmra.mrb[20].mxu0 %vm452_vm9, %v10397_v0 }
 0xab7   : > { %9271 = vmatprep.mubr.msk.f32.mxu0 %vm10313_vm4, %v11960_v3 }
 0xaf7   : > { %v2584_v58 = vpop.f32.mrb[26].mxu1 }
 0xaf8   : > { %v2588_v14 = vmul.f32 0.35355338, %v2584_v58  ;;  %v9268_v21 = vpop.f32.mrb[27].mxu1 }
 0xafa   : > { %v2590_v9 = vsel %vm2589_vm0, %v2588_v14, -inf }
 0xafb   : > { %2591 = vmax.xlane.f32.xlu0 %v2590_v9 }
 0xb6a   : > { %v2753_v11 = vpop.f32.mrb[28].mxu1 }
 0xb6b   : > { %v2757_v7 = vmul.f32 0.35355338, %v2753_v11  ;;  %v9278_v53 = vpop.f32.mrb[29].mxu1 }
 0xb6d   : > { %v2758_v48 = vsel %vm2589_vm0, %v2757_v7, -inf }
 0xb6e   : > { %2759 = vmax.xlane.f32.xlu1 %v2758_v48  ;;  %v2920_v55 = vpop.f32.mrb[30].mxu1 }
 0xb6f   : > { %v2924_v8 = vmul.f32 0.35355338, %v2920_v55  ;;  %v9288_v22 = vpop.f32.mrb[31].mxu1 }
 0xb71   : > { %v2925_v13 = vsel %vm2589_vm0, %v2924_v8, -inf }
 0xb72   : > { %2926 = vmax.xlane.f32.xlu0 %v2925_v13  ;;  %v3087_v59 = vpop.f32.mrb[32].mxu1 }
 0xb73   : > { %v11010_v61 = vmul.f32 0.35355338, %v3087_v59  ;;  %v9298_v50 = vpop.f32.mrb[33].mxu1 }
 0xb75   : > { %v3092_v15 = vsel %vm2589_vm0, %v11010_v61, -inf }
 0xb76   : > { %3093 = vmax.xlane.f32.xlu0 %v3092_v15  ;;  %v3267_v5 = vpop.f32.mrb[34].mxu1 }
 0xb77   : > { %v11014_v23 = vmul.f32 0.35355338, %v3267_v5  ;;  %v9308_v19 = vpop.f32.mrb[35].mxu1 }
 0xb78   : > { %v2428_v19 = vsub.s32 6, %v10440_v10 }
 0xb79   : > { %v3272_v16 = vsel %vm2589_vm0, %v11014_v23, -inf }
 0xb7a   : > { %3273 = vmax.xlane.f32.xlu0 %v3272_v16  ;;  %v3433_v18 = vpop.f32.mrb[36].mxu1 }
 0xb7b   : > { %v11018_v62 = vmul.f32 0.35355338, %v3433_v18  ;;  %v9318_v57 = vpop.f32.mrb[37].mxu1 }
 0xb7c   : > { %v2429_v57 = vrot.slane %v10613_v45, %v2428_v19 }
 0xb7d   : > { %v3438_v56 = vsel %vm2589_vm0, %v11018_v62, -inf }
 0xb7e   : > { %3439 = vmax.xlane.f32.xlu1 %v3438_v56  ;;  %v3600_v58 = vpop.f32.mrb[38].mxu1 }
 0xb7f   : > { %v3604_v21 = vmul.f32 0.35355338, %v3600_v58  ;;  %v9328_v9 = vpop.f32.mrb[39].mxu1 }
 0xb81   : > { %v3605_v11 = vsel %vm2589_vm0, %v3604_v21, -inf }
 0xb82   : > { %3606 = vmax.xlane.f32.xlu0 %v3605_v11  ;;  %v3767_v53 = vpop.f32.mrb[40].mxu1 }
 0xb83   : > { %v11023_v48 = vmul.f32 0.35355338, %v3767_v53  ;;  %v9338_v55 = vpop.f32.mrb[41].mxu1 }
 0xb85   : > { %v3772_v22 = vsel %vm2589_vm0, %v11023_v48, -inf }
 0xb86   : > { %3773 = vmax.xlane.f32.xlu1 %v3772_v22 }
 0xb88   : > { %v2592_v13 = vpop.xlane.xlu0 %2591 }
 0xb89   : > { %v2593_v59 = vsub.f32 %v2588_v14, %v2592_v13  ;;  %v2508_v16 = vpop.f32.mrb[20].mxu0 }
 0xb8a   : > { %v9263_v18 = vpop.f32.mrb[21].mxu0  ;;  %v2509_v56 = vadd.f32 %v2508_v16, %v2429_v57 }
 0xb8b   : > { %v2594_v50 = vmul.f32 1.442695, %v2593_v59 }
 0xb8c   : > { %9270 = vmatpush3.msk.msra.mxu0 %vm2605_vm1, %v2509_v56  ;;  %v11044_v16 = vrot.slane %v2509_v56, 2 }
 0xb8d   : > { %10115 = vpow2.f32 %v2594_v50  ;;  %9279 = vmatprep.subr.mxu0 %v11960_v3 }
 0xb97   : > { %v10116_v15 = vpop.eup %10115 }
 0xb98   : > { %v2596_v5 = vsel %vm2589_vm0, %v10116_v15, 0.0 }
 0xb99   : > { %2597 = vadd.xlane.f32.xlu0 %v2596_v5 }
 0xbfb   : > { %v2760_v14 = vpop.xlane.xlu1 %2759 }
 0xbfc   : > { %v2761_v58 = vsub.f32 %v2757_v7, %v2760_v14 }
 0xbfe   : > { %v2762_v9 = vmul.f32 1.442695, %v2761_v58 }
 0xbff   : > { %v2927_v11 = vpop.xlane.xlu0 %2926 }
 0xc00   : > { %10117 = vpow2.f32 %v2762_v9  ;;  %v2928_v53 = vsub.f32 %v2924_v8, %v2927_v11 }
 0xc02   : > { %v2929_v55 = vmul.f32 1.442695, %v2928_v53 }
 0xc03   : > { %v3094_v5 = vpop.xlane.xlu0 %3093 }
 0xc04   : > { %10119 = vpow2.f32 %v2929_v55  ;;  %v3095_v58 = vsub.f32 %v11010_v61, %v3094_v5 }
 0xc07   : > { %v3274_v7 = vpop.xlane.xlu0 %3273 }
 0xc08   : > { %v3275_v57 = vsub.f32 %v11014_v23, %v3274_v7 }
 0xc0a   : > { %v11034_v22 = vpop.eup %10117  ;;  %v3276_v11 = vmul.f32 1.442695, %v3275_v57 }
 0xc0b   : > { %v2764_v13 = vsel %vm2589_vm0, %v11034_v22, 0.0  ;;  %v3440_v55 = vpop.xlane.xlu1 %3439 }
 0xc0c   : > { %2765 = vadd.xlane.f32.xlu1 %v2764_v13  ;;  %v3096_v13 = vmul.f32 1.442695, %v3095_v58 }
 0xc0e   : > { %v11038_v59 = vpop.eup %10119 }
 0xc0f   : > { %v2931_v50 = vsel %vm2589_vm0, %v11038_v59, 0.0  ;;  %v3607_v8 = vpop.xlane.xlu0 %3606 }
 0xc10   : > { %2932 = vadd.xlane.f32.xlu0 %v2931_v50  ;;  %v3608_v53 = vsub.f32 %v3604_v21, %v3607_v8 }
 0xc12   : > { %v3609_v50 = vmul.f32 1.442695, %v3608_v53 }
 0xc1d   : > { %2936 = vrot.lane.b32.xlu1 %v2509_v56, %s10318_s20 }
 0xc21   : > { %3103 = vrot.lane.b32.xlu1 %v2509_v56, %s10319_s21 }
 0xc25   : > { %3449 = vrot.lane.b32.xlu1 %v11044_v16, %s10317_s19 }
 0xc26   : > { %v2598_v18 = vpop.xlane.xlu0 %2597  ;;  %2769 = vrot.lane.b32.xlu0 %v2509_v56, %s10317_s19  ;;  %v3441_v56 = vsub.f32 %v11018_v62, %v3440_v55 }
 0xc27   : > { %10121 = vrcp.f32 %v2598_v18  ;;  %v3774_v18 = vpop.xlane.xlu1 %3773 }
 0xc28   : > { %10123 = vpow2.f32 %v3276_v11  ;;  %v3442_v23 = vmul.f32 1.442695, %v3441_v56  ;;  %v3775_v61 = vsub.f32 %v11023_v48, %v3774_v18 }
 0xc29   : > { %10125 = vpow2.f32 %v3096_v13 }
 0xc2a   : > { %10127 = vpow2.f32 %v3609_v50 }
 0xc2b   : > { %10129 = vpow2.f32 %v3442_v23 }
 0xc31   : > { %v10122_v14 = vpop.eup %10121 }
 0xc32   : > { %v2600_v9 = vmul.f32 %v10122_v14, %v10116_v15  ;;  %v3776_v15 = vmul.f32 1.442695, %v3775_v61  ;;  %v10124_v21 = vpop.eup %10123 }
 0xc33   : > { %v10126_v5 = vpop.eup %10125  ;;  %v3278_v7 = vsel %vm2589_vm0, %v10124_v21, 0.0 }
 0xc34   : > { %9272 = vmatmul.mubr.msk.f32.vlgmr.msra.gmra.mrb[22].mxu0 %vm2601_vm2, %v2600_v9  ;;  %10131 = vpow2.f32 %v3776_v15  ;;  %v11057_v8 = vpop.eup %10127  ;;  %v3098_v57 = vsel %vm2589_vm0, %v10126_v5, 0.0 }
 0xc35   : > { %9281 = vmatprep.mubr.msk.f32.mxu0 %vm10313_vm4, %v11960_v3  ;;  %v3611_v62 = vsel %vm2589_vm0, %v11057_v8, 0.0  ;;  %v10130_v14 = vpop.eup %10129 }
 0xc36   : > { %v3444_v48 = vsel %vm2589_vm0, %v10130_v14, 0.0 }
 0xc3e   : > { %v11063_v58 = vpop.eup %10131 }
 0xc3f   : > { %v3778_v9 = vsel %vm2589_vm0, %v11063_v58, 0.0 }
 0xc45   : > { %3279 = vadd.xlane.f32.xlu0 %v3278_v7 }
 0xc49   : > { %3612 = vadd.xlane.f32.xlu0 %v3611_v62  ;;  %3099 = vadd.xlane.f32.xlu1 %v3098_v57 }
 0xc4d   : > { %3445 = vadd.xlane.f32.xlu1 %v3444_v48 }
 0xc51   : > { %3779 = vadd.xlane.f32.xlu1 %v3778_v9 }
 0xc5f   : > { %3616 = vrot.lane.b32.xlu0 %v11044_v16, %s10318_s20 }
 0xc62   : > { %3783 = vrot.lane.b32.xlu1 %v11044_v16, %s10319_s21 }
 0xc63   : > { %10066 = vrot.lane.b32.xlu0 %v10908_v51, %s10320_s22 }
 0xc66   : > { %10071 = vrot.lane.b32.xlu1 %v10916_v63, %s10320_s22 }
 0xc99   : > { %v2766_v11 = vpop.xlane.xlu1 %2765 }
 0xc9a   : > { %10133 = vrcp.f32 %v2766_v11 }
 0xc9d   : > { %v2933_v53 = vpop.xlane.xlu0 %2932  ;;  %v2937_v50 = vpop.permute.xlu1 %2936 }
 0xc9e   : > { %10135 = vrcp.f32 %v2933_v53 }
 0xca1   : > { %v2770_v55 = vpop.permute.xlu0 %2769  ;;  %v3104_v23 = vpop.permute.xlu1 %3103 }
 0xca2   : > { %9280 = vmatpush3.msk.msra.mxu0 %vm2605_vm1, %v2770_v55 }
 0xca3   : > { %9289 = vmatprep.subr.mxu0 %v11960_v3 }
 0xca4   : > { %v10134_v13 = vpop.eup %10133 }
 0xca5   : > { %v2768_v56 = vmul.f32 %v10134_v13, %v11034_v22  ;;  %v3450_v22 = vpop.permute.xlu1 %3449 }
 0xca7   : > { %9282 = vmatmul.mubr.msk.f32.vlgmr.msra.gmra.mrb[24].mxu0 %vm2601_vm2, %v2768_v56 }
 0xca8   : > { %v10136_v18 = vpop.eup %10135  ;;  %9290 = vmatpush3.msk.msra.mxu0 %vm2605_vm1, %v2937_v50  ;;  %9291 = vmatprep.mubr.msk.f32.mxu0 %vm10313_vm4, %v11960_v3 }
 0xca9   : > { %v2935_v51 = vmul.f32 %v10136_v18, %v11038_v59  ;;  %9299 = vmatprep.subr.mxu0 %v11960_v3 }
 0xcab   : > { %9292 = vmatmul.mubr.msk.f32.vlgmr.msra.gmra.mrb[26].mxu0 %vm2601_vm2, %v2935_v51 }
 0xcac   : > { %9300 = vmatpush3.msk.msra.mxu0 %vm2605_vm1, %v3104_v23  ;;  %9301 = vmatprep.mubr.msk.f32.mxu0 %vm10313_vm4, %v11960_v3 }
 0xcad   : > { %9309 = vmatprep.subr.mxu0 %v11960_v3 }
 0xcd2   : > { %v3280_v15 = vpop.xlane.xlu0 %3279 }
 0xcd6   : > { %v3100_v61 = vpop.xlane.xlu1 %3099  ;;  %v3613_v59 = vpop.xlane.xlu0 %3612 }
 0xcd7   : > { %10137 = vrcp.f32 %v3100_v61 }
 0xcd8   : > { %10139 = vrcp.f32 %v3280_v15 }
 0xcda   : > { %v3446_v7 = vpop.xlane.xlu1 %3445  ;;  %v3617_v13 = vpop.permute.xlu0 %3616 }
 0xcdb   : > { %10141 = vrcp.f32 %v3446_v7 }
 0xcdc   : > { %10143 = vrcp.f32 %v3613_v59 }
 0xcde   : > { %v3780_v48 = vpop.xlane.xlu1 %3779  ;;  %v10067_v18 = vpop.permute.xlu0 %10066 }
 0xcdf   : > { %10145 = vrcp.f32 %v3780_v48  ;;  %v10069_v51 = vunpack.i.h.bf16 %v10067_v18  ;;  %v10068_v23 = vunpack.i.l.bf16 %v10067_v18 }
 0xce1   : > { %v10138_v62 = vpop.eup %10137 }
 0xce2   : > { %v3102_v57 = vmul.f32 %v10138_v62, %v10126_v5  ;;  %v10140_v9 = vpop.eup %10139  ;;  %v3784_v56 = vpop.permute.xlu1 %3783 }
 0xce3   : > { %v3282_v11 = vmul.f32 %v10140_v9, %v10124_v21 }
 0xce4   : > { %9302 = vmatmul.mubr.msk.f32.vlgmr.msra.gmra.mrb[28].mxu0 %vm2601_vm2, %v3102_v57 }
 0xce5   : > { %9310 = vmatpush3.msk.msra.mxu0 %vm2605_vm1, %v11044_v16  ;;  %9311 = vmatprep.mubr.msk.f32.mxu0 %vm10313_vm4, %v11960_v3  ;;  %v10142_v53 = vpop.eup %10141 }
 0xce6   : > { %9319 = vmatprep.subr.mxu0 %v11960_v3  ;;  %v3448_v5 = vmul.f32 %v10142_v53, %v10130_v14  ;;  %v10144_v55 = vpop.eup %10143  ;;  %v10072_v59 = vpop.permute.xlu1 %10071 }
 0xce7   : > { %v3615_v16 = vmul.f32 %v10144_v55, %v11057_v8  ;;  %v10074_v62 = vunpack.i.h.bf16 %v10072_v59  ;;  %v10073_v57 = vunpack.i.l.bf16 %v10072_v59 }
 0xce8   : > { %9312 = vmatmul.mubr.msk.f32.vlgmr.msra.gmra.mrb[30].mxu0 %vm2601_vm2, %v3282_v11 }
 0xce9   : > { %9320 = vmatpush3.msk.msra.mxu0 %vm2605_vm1, %v3450_v22  ;;  %9321 = vmatprep.mubr.msk.f32.mxu0 %vm10313_vm4, %v11960_v3  ;;  %v10146_v21 = vpop.eup %10145  ;;  %v9802_v22 = vpack.c.bf16 %v10069_v51, %v10068_v23  ;;  %v9805_v48 = vpack.c.bf16 %v10074_v62, %v10073_v57 }
 0xcea   : > { %9329 = vmatprep.subr.mxu0 %v11960_v3  ;;  %v3782_v14 = vmul.f32 %v10146_v21, %v11063_v58 }
 0xceb   : > { %9803 = vmatpush3.bf16.msra.mxu1 %v9802_v22 }
 0xcec   : > { %9322 = vmatmul.mubr.msk.f32.vlgmr.msra.gmra.mrb[32].mxu0 %vm2601_vm2, %v3448_v5  ;;  %9804 = vmatprep.subr.bf16.mxu1 %v11961_v1 }
 0xced   : > { %9330 = vmatpush3.msk.msra.mxu0 %vm2605_vm1, %v3617_v13  ;;  %9331 = vmatprep.mubr.msk.f32.mxu0 %vm10313_vm4, %v11960_v3 }
 0xcee   : > { %9339 = vmatprep.subr.mxu0 %v11960_v3 }
 0xcef   : > { %9806 = vmatpush3.bf16.msra.mxu1 %v9805_v48 }
 0xcf0   : > { %9332 = vmatmul.mubr.msk.f32.vlgmr.msra.gmra.mrb[34].mxu0 %vm2601_vm2, %v3615_v16  ;;  %9813 = vmatprep.subr.bf16.mxu1 %v11961_v1 }
 0xcf1   : > { %9340 = vmatpush3.msk.msra.mxu0 %vm2605_vm1, %v3784_v56  ;;  %9341 = vmatprep.mubr.msk.f32.mxu0 %vm10313_vm4, %v11960_v3 }
 0xcf2   : > { %9807 = vmatprep.subr.bf16.mxu0 %v11961_v1 }
 0xcf4   : > { %9342 = vmatmul.mubr.msk.f32.vlgmr.msra.gmra.mrb[36].mxu0 %vm2601_vm2, %v3782_v14 }
 0xcf5   : > { %9363 = vmatprep.mubr.msk.f32.mxu0 %vm10313_vm4, %v11960_v3 }
 0xd07   : > { %v2675_v8 = vpop.f32.mrb[22].mxu0 }
 0xd08   : > { %v9273_v50 = vpop.f32.mrb[23].mxu0 }
 0xd7a   : > { %v2842_v58 = vpop.f32.mrb[24].mxu0 }
 0xd7b   : > { %3181 = vrot.lane.b32.xlu0 %v2842_v58, %s10321_s23  ;;  %v9283_v61 = vpop.f32.mrb[25].mxu0 }
 0xd7e   : > { %v3009_v15 = vpop.f32.mrb[26].mxu0 }
 0xd7f   : > { %v9293_v7 = vpop.f32.mrb[27].mxu0 }
 0xdb7   : > { %v3176_v63 = vpop.f32.mrb[28].mxu0 }
 0xdb8   : > { %v9303_v9 = vpop.f32.mrb[29].mxu0 }
 0xdbb   : > { %v3355_v11 = vpop.f32.mrb[30].mxu0 }
 0xdbc   : > { %v9313_v53 = vpop.f32.mrb[31].mxu0 }
 0xdbf   : > { %v3522_v5 = vpop.f32.mrb[32].mxu0 }
 0xdc0   : > { %3861 = vrot.lane.b32.xlu1 %v3522_v5, %s10321_s23  ;;  %v9323_v55 = vpop.f32.mrb[33].mxu0 }
 0xdc3   : > { %v3689_v13 = vpop.f32.mrb[34].mxu0 }
 0xdc4   : > { %3865 = vrot.lane.b32.xlu0 %v3689_v13, %s10322_s24  ;;  %v9333_v16 = vpop.f32.mrb[35].mxu0 }
 0xdc7   : > { %v3856_v21 = vpop.f32.mrb[36].mxu0 }
 0xdc8   : > { %3185 = vrot.lane.b32.xlu0 %v3009_v15, %s10322_s24  ;;  %3869 = vrot.lane.b32.xlu1 %v3856_v21, %s10323_s25  ;;  %v9343_v56 = vpop.f32.mrb[37].mxu0 }
 0xdcc   : > { %3189 = vrot.lane.b32.xlu1 %v3176_v63, %s10323_s25  ;;  %v3881_v63 = vsub.s32 7, %v10440_v10 }
 0xdce   : > { %v3882_v9 = vrot.slane %v10613_v45, %v3881_v63 }
 0xded   : > { %v3182_v14 = vpop.permute.xlu0 %3181 }
 0xdee   : > { %v3192_v7 = vsel %vm760_vm10, %v2675_v8, %v3182_v14 }
 0xe32   : > { %v3862_v50 = vpop.permute.xlu1 %3861 }
 0xe33   : > { %v3872_v51 = vsel %vm760_vm10, %v3355_v11, %v3862_v50  ;;  %v9808_v50 = vpack.c.bf16 %v10543_v31, %v10533_v29 }
 0xe35   : > { %9809 = vmatpush3.bf16.msra.mxu0 %v9808_v50 }
 0xe36   : > { %v3866_v18 = vpop.permute.xlu0 %3865  ;;  %9810 = vmatprep.subr.bf16.mxu0 %v11961_v1 }
 0xe37   : > { %v3873_v23 = vsel %vm1444_vm14, %v3872_v51, %v3866_v18  ;;  %v9811_v18 = vpack.c.bf16 %v10563_v35, %v10553_v33 }
 0xe39   : > { %9812 = vmatpush3.bf16.msra.mxu0 %v9811_v18 }
 0xe3a   : > { %v3870_v22 = vpop.permute.xlu1 %3869  ;;  %v3186_v58 = vpop.permute.xlu0 %3185  ;;  %9825 = vmatprep.subr.bf16.mxu0 %v11961_v1 }
 0xe3b   : > { %v3874_v61 = vsel %vm1446_vm15, %v3873_v23, %v3870_v22  ;;  %v3193_v15 = vsel %vm1444_vm14, %v3192_v7, %v3186_v58  ;;  %v3985_v22 = vrot.slane %v10618_v46, %v2428_v19  ;;  %v9817_v19 = vpack.c.bf16 %v10588_v40, %v10583_v39 }
 0xe3c   : > { %v3876_v59 = vrot.slane %v3874_v61, 7  ;;  %v3990_v61 = vrot.slane %v10618_v46, %v3881_v63  ;;  %v3995_v63 = vrot.slane %v10623_v47, %v10699_v24 }
 0xe3e   : > { %v3190_v62 = vpop.permute.xlu1 %3189 }
 0xe3f   : > { %v3194_v57 = vsel %vm1446_vm15, %v3193_v15, %v3190_v62  ;;  %v9814_v62 = vpack.c.bf16 %v10578_v38, %v10573_v37 }
 0xe40   : > { %v3878_v48 = vsel %vm421_vm8, %v3194_v57, %v3876_v59  ;;  %v9820_v57 = vpack.c.bf16 %v10598_v42, %v10593_v41 }
 0xe41   : > { %9353 = vmatmul.mubr.msk.f32.vlgmr.msra.gmra.mrb[42].mxu1 %vm452_vm9, %v3878_v48  ;;  %v9823_v48 = vpack.c.bf16 %v10608_v44, %v10603_v43 }
 0xe42   : > { %9382 = vmatprep.mubr.msk.f32.mxu1 %vm10313_vm4, %v11960_v3  ;;  %9815 = vmatpush3.bf16.msra.mxu1 %v9814_v62  ;;  %v4170_v62 = vrot.slane %v10623_v47, %v10691_v20 }
 0xe43   : > { %9816 = vmatprep.subr.bf16.mxu1 %v11961_v1 }
 0xe46   : > { %9818 = vmatpush3.bf16.msra.mxu1 %v9817_v19 }
 0xe47   : > { %9819 = vmatprep.subr.bf16.mxu1 %v11961_v1 }
 0xe4a   : > { %9821 = vmatpush3.bf16.msra.mxu1 %v9820_v57 }
 0xe4b   : > { %9822 = vmatprep.subr.bf16.mxu1 %v11961_v1 }
 0xe4e   : > { %9824 = vmatpush3.bf16.msra.mxu1 %v9823_v48  ;;  %v4175_v48 = vrot.slane %v10623_v47, %v10694_v54 }
 0xf14   : > { %v3964_v11 = vpop.f32.mrb[42].mxu1 }
 0xf15   : > { %v3965_v53 = vadd.f32 %v3964_v11, %v3882_v9  ;;  %v9354_v8 = vpop.f32.mrb[43].mxu1 }
 0xf17   : > { %v3968_v5 = vadd.f32 %v3965_v53, %v10902_v6 }
 0xf19   : > { %v3969_v55 = vsel %vm427_vm6, %v3968_v5, 0.0 }
 0xf1a   : > { %3970 = vadd.xlane.f32.xlu0 %v3969_v55 }
 0xfa7   : > { %v3971_v13 = vpop.xlane.xlu0 %3970 }
 0xfa8   : > { %v3972_v16 = vmul.f32 0.03125, %v3971_v13 }
 0xfaa   : > { %v3973_v21 = vsub.f32 %v3968_v5, %v3972_v16 }
 0xfac   : > { %v3974_v56 = vmul.f32 %v3973_v21, %v3973_v21 }
 0xfae   : > { %v3975_v14 = vsel %vm427_vm6, %v3974_v56, 0.0  ;;  %v4152_v56 = vrot.slane %v10623_v47, %v10704_v60  ;;  %v9829_v60 = vpack.c.bf16 %v10568_v36, %v10558_v34 }
 0xfaf   : > { %3976 = vadd.xlane.f32.xlu1 %v3975_v14 }
0x103c   : > { %v3977_v6 = vpop.xlane.xlu1 %3976 }
0x103d   : > { %v3978_v51 = vmul.f32 0.03125, %v3977_v6 }
0x103f   : > { %v3979_v23 = vadd.f32 1e-05, %v3978_v51 }
0x1041   : > { %10147 = vrsqrt.f32 %v3979_v23 }
0x104b   : > { %v10148_v58 = vpop.eup %10147 }
0x104c   : > { %v3981_v7 = vmul.f32 %v10148_v58, %v3973_v21 }
0x104e   : > { %v3986_v15 = vmul.f32 %v3985_v22, %v3981_v7  ;;  %v9826_v7 = vpack.c.bf16 %v10548_v32, %v10538_v30 }
0x1050   : > { %v3991_v59 = vadd.f32 %v3990_v61, %v3986_v15 }
0x1052   : > { %9364 = vmatmul.mubr.msk.f32.vlgmr.msra.gmra.mrb[38].mxu0 %vm452_vm9, %v3991_v59 }
0x1053   : > { %9393 = vmatprep.mubr.msk.f32.mxu0 %vm10313_vm4, %v11960_v3  ;;  %9827 = vmatpush3.bf16.msra.mxu0 %v9826_v7 }
0x1054   : > { %9828 = vmatprep.subr.bf16.mxu0 %v11961_v1 }
0x1057   : > { %9830 = vmatpush3.bf16.msra.mxu0 %v9829_v60  ;;  %v11964_v60 = vld [vmem:[#allocation6_spill] sm:$0xff] }
0x1058   : > { %9831 = vmatprep.subr.bf16.mxu0 %v11961_v1 }
0x1125   : > { %v4065_v9 = vpop.f32.mrb[38].mxu0 }
0x1126   : > { %v4066_v11 = vadd.f32 %v4065_v9, %v3995_v63  ;;  %v9365_v53 = vpop.f32.mrb[39].mxu0 }
0x1127   : > { %v4269_v53 = vstv %s4268_s26 }
0x1128   : > { %v4070_v8 = vmul.f32 0.70710677, %v4066_v11  ;;  %v4069_v13 = vmul.f32 0.5, %v4066_v11  ;;  %v4180_v11 = vrot.slane %v10623_v47, %v10928_v12  ;;  %vm4271_vm8 = vcmp.eq.s32.totalorder %v10473_v17, %v4269_v53 }
0x112a   : > { %10149 = verf.f32 %v4070_v8 }
0x1134   : > { %v10150_v55 = vpop.eup %10149 }
0x1135   : > { %v4072_v16 = vadd.f32 1.0, %v10150_v55 }
0x1137   : > { %v4073_v21 = vmul.f32 %v4072_v16, %v4069_v13  ;;  %v4254_v16 = vld [vmem:[%s11922_s8] sm:$0xff] }
0x1139   : > { %9383 = vmatmul.mubr.msk.f32.vlgmr.msra.gmra.mrb[44].mxu1 %vm4074_vm3, %v4073_v21 }
0x120c   : > { %v4144_v14 = vpop.f32.mrb[44].mxu1 }
0x120d   : > { %v4148_v50 = vadd.f32 %v4144_v14, %v3968_v5  ;;  %v9384_v18 = vpop.f32.mrb[45].mxu1 }
0x120f   : > { %v4153_v6 = vadd.f32 %v4152_v56, %v4148_v50 }
0x1211   : > { %v4154_v24 = vsel %vm427_vm6, %v4153_v6, 0.0 }
0x1212   : > { %4155 = vadd.xlane.f32.xlu0 %v4154_v24 }
0x129f   : > { %v4156_v51 = vpop.xlane.xlu0 %4155 }
0x12a0   : > { %v4157_v23 = vmul.f32 0.03125, %v4156_v51 }
0x12a2   : > { %v4158_v22 = vsub.f32 %v4153_v6, %v4157_v23 }
0x12a4   : > { %v4159_v58 = vmul.f32 %v4158_v22, %v4158_v22 }
0x12a6   : > { %v4160_v61 = vsel %vm427_vm6, %v4159_v58, 0.0  ;;  %v11962_v58 = vld [vmem:[#allocation4_spill] sm:$0xff] }
0x12a7   : > { %4161 = vadd.xlane.f32.xlu0 %v4160_v61  ;;  %v11963_v61 = vld [vmem:[#allocation5_spill] sm:$0xff] }
0x12a8   : > { %v9835_v7 = vpack.c.bf16 %v11963_v61, %v11962_v58  ;;  %v11978_v61 = vld [vmem:[#allocation22_spill] sm:$0xff] }
0x1334   : > { %v4162_v5 = vpop.xlane.xlu0 %4161 }
0x1335   : > { %v4163_v15 = vmul.f32 0.03125, %v4162_v5  ;;  %v11965_v5 = vld [vmem:[#allocation7_spill] sm:$0xff] }
0x1337   : > { %v4164_v59 = vadd.f32 1e-05, %v4163_v15  ;;  %v9838_v15 = vpack.c.bf16 %v11965_v5, %v11964_v60 }
0x1339   : > { %10151 = vrsqrt.f32 %v4164_v59  ;;  %v11966_v59 = vld [vmem:[#allocation8_spill] sm:$0xff] }
0x1343   : > { %v10152_v19 = vpop.eup %10151 }
0x1344   : > { %v4166_v57 = vmul.f32 %v10152_v19, %v4158_v22  ;;  %v9832_v22 = vpack.c.bf16 %v10412_v4, %v10407_v2 }
0x1346   : > { %v4171_v63 = vmul.f32 %v4170_v62, %v4166_v57  ;;  %v11967_v62 = vld [vmem:[#allocation9_spill] sm:$0xff]  ;;  %v11968_v57 = vld [vmem:[#allocation10_spill] sm:$0xff] }
0x1347   : > { %v9841_v19 = vpack.c.bf16 %v11967_v62, %v11966_v59  ;;  %v4378_v59 = vld [vmem:[#allocation2 + $0x8] sm:$0x3] }
0x1348   : > { %v4176_v9 = vadd.f32 %v4175_v48, %v4171_v63  ;;  %v11969_v48 = vld [vmem:[#allocation11_spill] sm:$0xff] }
0x1349   : > { %v9844_v63 = vpack.c.bf16 %v11969_v48, %v11968_v57 }
0x134a   : > { %9394 = vmatmul.mubr.msk.f32.vlgmr.msra.gmra.mrb[40].mxu0 %vm452_vm9, %v4176_v9  ;;  %v11970_v9 = vld [vmem:[#allocation12_spill] sm:$0xff] }
0x134b   : > { %9428 = vmatprep.mubr.msk.f32.mxu0 %vm10313_vm4, %v11960_v3  ;;  %v4255_v3 = vld [vmem:[%s11922_s8 + $0x8] sm:$0x3]  ;;  %vm4270_vm4 = vcmp.eq.s32.totalorder %v10440_v10, %v4269_v53  ;;  %9833 = vmatpush3.bf16.msra.mxu0 %v9832_v22  ;;  %v4401_v22 = vstv %s4400_s17 }
0x134c   : > { %9834 = vmatprep.subr.bf16.mxu0 %v11961_v1  ;;  %vm4402_vm0 = vcmp.eq.s32.totalorder %v10440_v10, %v4401_v22  ;;  %vm4403_vm2 = vcmp.eq.s32.totalorder %v10473_v17, %v4401_v22 }
0x134f   : > { %9836 = vmatpush3.bf16.msra.mxu0 %v9835_v7 }
0x1350   : > { %9837 = vmatprep.subr.bf16.mxu0 %v11961_v1 }
0x1353   : > { %9839 = vmatpush3.bf16.msra.mxu0 %v9838_v15  ;;  %v4377_v15 = vld [vmem:[#allocation2] sm:$0xff] }
0x1354   : > { %9840 = vmatprep.subr.bf16.mxu0 %v11961_v1 }
0x1357   : > { %9842 = vmatpush3.bf16.msra.mxu0 %v9841_v19 }
0x1358   : > { %9843 = vmatprep.subr.bf16.mxu0 %v11961_v1 }
0x135b   : > { %9845 = vmatpush3.bf16.msra.mxu0 %v9844_v63 }
0x135c   : > { %9846 = vmatprep.subr.bf16.mxu0 %v11961_v1 }
0x141d   : > { %v4250_v8 = vpop.f32.mrb[40].mxu0 }
0x141e   : > { %v4251_v55 = vadd.f32 %v4250_v8, %v4180_v11  ;;  %v9395_v13 = vpop.f32.mrb[41].mxu0  ;;  %v11971_v11 = vld [vmem:[#allocation13_spill] sm:$0xff]  ;;  %v11972_v8 = vld [vmem:[#allocation14_spill] sm:$0xff] }
0x141f   : > { %v9847_v53 = vpack.c.bf16 %v11971_v11, %v11970_v9 }
0x1420   : > { %v4265_v12 = vrot.slane %v4251_v55, %v10691_v20  ;;  %v4279_v21 = vrot.slane %v4251_v55, %v10694_v54  ;;  %v4284_v56 = vsel %vm2605_vm1, %v4251_v55, -inf }
0x1421   : > { %4285 = vmax.xlane.f32.xlu0 %v4284_v56  ;;  %9848 = vmatpush3.bf16.msra.mxu0 %v9847_v53  ;;  %v11974_v56 = vld [vmem:[#allocation16_spill] sm:$0xff] }
0x1422   : > { %v4266_v52 = vsel %vm4256_vm5, %v4265_v12, %v4254_v16  ;;  %v4267_v14 = vsel %vm4257_vm7, %v4265_v12, %v4255_v3  ;;  %9849 = vmatprep.subr.bf16.mxu0 %v11961_v1 }
0x1423   : > { %v4280_v50 = vsel %vm4270_vm4, %v4279_v21, %v4266_v52  ;;  %v4281_v18 = vsel %vm4271_vm8, %v4279_v21, %v4267_v14  ;;  %v11975_v52 = vld [vmem:[#allocation17_spill] sm:$0xff] }
0x1424   : > { %4282 = vst [vmem:[%s11922_s8] sm:$0xff] %v4280_v50  ;;  %4283 = vst [vmem:[%s11922_s8 + $0x8] sm:$0x3] %v4281_v18  ;;  %v9853_v14 = vpack.c.bf16 %v11975_v52, %v11974_v56 }
0x14ae   : > { %v4286_v6 = vpop.xlane.xlu0 %4285 }
0x14af   : > { %vm4287_vm10 = vcmp.ge.f32.partialorder %v4251_v55, %v4286_v6  ;;  %v11973_v55 = vld [vmem:[#allocation15_spill] sm:$0xff] }
0x14b0   : > { %v4288_v24 = vsel %vm4287_vm10, %v10630_v49, 128  ;;  %v9850_v13 = vpack.c.bf16 %v11973_v55, %v11972_v8 }
0x14b1   : > { %v4289_v54 = vsel %vm2605_vm1, %v4288_v24, 2147483647 }
0x14b2   : > { %v4291_v51 = vshra.s32 %v4289_v54, 16  ;;  %9851 = vmatpush3.bf16.msra.mxu0 %v9850_v13  ;;  %v4290_v16 = vand.u32 65535, %v4289_v54  ;;  %v4380_v54 = vstv %s4379_s15 }
0x14b3   : > { %9852 = vmatprep.subr.bf16.mxu0 %v11961_v1  ;;  %v10324_v1 = vmov 1.0   ;;  %vm4381_vm13 = vcmp.eq.s32.totalorder %v10440_v10, %v4380_v54  ;;  %vm4382_vm15 = vcmp.eq.s32.totalorder %v10473_v17, %v4380_v54 }
0x14b4   : > { %v4293_v23 = vcvt.s32.f32 %v4291_v51  ;;  %v4292_v12 = vcvt.s32.f32 %v4290_v16 }
0x14b6   : > { %4294 = vmin.xlane.f32.xlu1 %v4293_v23  ;;  %9854 = vmatpush3.bf16.msra.mxu0 %v9853_v14 }
0x1543   : > { %v4295_v3 = vpop.xlane.xlu1 %4294 }
0x1544   : > { %vm4296_vm11 = vcmp.eq.f32.partialorder %v4293_v23, %v4295_v3  ;;  %v4301_v50 = vcvt.f32.s32 %v4295_v3  ;;  %v4385_v23 = vstv %s4384_s16 }
0x1545   : > { %v4297_v21 = vsel %vm4296_vm11, %v4292_v12, inf  ;;  %vm4386_vm14 = vcmp.eq.s32.totalorder %v4385_v23, 1 }
0x1546   : > { %4298 = vmin.xlane.f32.xlu0 %v4297_v21  ;;  %v4302_v6 = vshll.u32 %v4301_v50, 16  ;;  %vm11237_vm1 = vmand %vm4381_vm13, %vm4386_vm14 }
0x1547   : > { %vm4388_vm3 = vmand %vm4382_vm15, %vm4386_vm14 }
0x1548   : > { %vm4404_vm5 = vmand %vm4402_vm0, %vm4386_vm14 }
0x1549   : > { %vm4405_vm7 = vmand %vm4403_vm2, %vm4386_vm14 }
0x15d3   : > { %v4299_v18 = vpop.xlane.xlu0 %4298 }
0x15d4   : > { %v4300_v24 = vcvt.f32.s32 %v4299_v18 }
0x15d6   : > { %v4303_v51 = vadd.s32 %v4302_v6, %v4300_v24 }
0x15d8   : > { %vm4304_vm12 = vcmp.eq.s32.totalorder %v10630_v49, %v4303_v51 }
0x15d9   : > { %9429 = vmatmul.mubr.msk.f32.vlgmr.msra.gmra.mrb[42].mxu0 %vm4304_vm12, %v10324_v1 }
0x16ac   : > { %v4373_v58 = vpop.f32.mrb[42].mxu0 }
0x16ad   : > { %v4389_v7 = vadd.f32 %v4373_v58, %v11978_v61  ;;  %v4407_v60 = vrot.slane %v4373_v58, 1  ;;  %v9430_v5 = vpop.f32.mrb[43].mxu0 }
0x16af   : > { %v4397_v62 = vrot.slane %v4389_v7, %v10691_v20  ;;  %v4409_v19 = vadd.f32 %v4407_v60, %v11978_v61 }
0x16b1   : > { %v4398_v57 = vsel %vm11237_vm1, %v4397_v62, %v4377_v15  ;;  %v4399_v48 = vsel %vm4388_vm3, %v4397_v62, %v4378_v59  ;;  %v4417_v17 = vrot.slane %v4409_v19, %v10691_v20 }
0x16b3   : > { %v4418_v63 = vsel %vm4404_vm5, %v4417_v17, %v4398_v57  ;;  %v4419_v9 = vsel %vm4405_vm7, %v4417_v17, %v4399_v48 }
0x16b4   : > { %4420 = vst.msk [vmem:[#allocation2] sm:$0xff] %vm452_vm9, %v4418_v63 }
0x16b5   : > { %4421 = vst.msk [vmem:[#allocation2 + $0x8] sm:$0x3] %vm427_vm6, %v4419_v9 }
0x16b6 PF: > { %p8711_p6 = scmp.lt.s32.totalorder %s10390_s28, 5 }
0x16b7   : > { %v4426_v11 = vld [vmem:[%s11922_s8] sm:$0xff] (!%p8711_p6)  ;;  %v4427_v53 = vld [vmem:[%s11922_s8 + $0x8] sm:$0x3] (!%p8711_p6)  ;;  %vm4432_vm4 = vcmask (!%p8711_p6), 1041408   ;;  %v11979_v8 = vlaneseq (!%p8711_p6)  ;;  %v9855_v18 = vpack.c.bf16 (!%p8711_p6), %v10412_v4, %v10407_v2  ;;  %v11980_v6 = vld [vmem:[#allocation4_spill] sm:$0xff] (!%p8711_p6)  ;;  %vm4647_vm11 = vcmask (!%p8711_p6), 1044480  }
0x16b8   : > { %4425 = sbr.rel (%p8711_p6) target bundleno = 11769 (0x2df9), region = 64  ;;  %4430 = vmax.xlane.f32.xlu0 (!%p8711_p6), %v4426_v11  ;;  %v4433_v20 = vsel (!%p8711_p6), %vm4432_vm4, %v4427_v53, -inf  ;;  %v11981_v24 = vld [vmem:[#allocation5_spill] sm:$0xff] (!%p8711_p6)  ;;  %v11982_v1 = vld [vmem:[#allocation6_spill] sm:$0xff] (!%p8711_p6)  ;;  %v11983_v54 = vld [vmem:[#allocation7_spill] sm:$0xff] (!%p8711_p6)  ;;  %vm4651_vm12 = vcmask (!%p8711_p6), 261120  }
0x16b9   : > { %v11262_v55 = vand.u32 (!%p8711_p6), 127, %v11979_v8  ;;  %v9859_v51 = vpack.c.bf16 (!%p8711_p6), %v11981_v24, %v11980_v6  ;;  %9856 = vmatprep.subr.bf16.mxu0 (!%p8711_p6), %v9855_v18  ;;  %v9863_v23 = vpack.c.bf16 (!%p8711_p6), %v11983_v54, %v11982_v1  ;;  %v11984_v22 = vld [vmem:[#allocation8_spill] sm:$0xff] (!%p8711_p6)  ;;  %v11985_v58 = vld [vmem:[#allocation9_spill] sm:$0xff] (!%p8711_p6)  ;;  %v11986_v61 = vld [vmem:[#allocation10_spill] sm:$0xff] (!%p8711_p6)  ;;  %vm4655_vm13 = vcmask (!%p8711_p6), 254976   ;;  %s10328_s28 = smov (!%p8711_p6), 96  }
0x16ba   : > { %9858 = vmatpush3.bf16.msra.mxu0 (!%p8711_p6), %v9855_v18  ;;  %v9867_v49 = vpack.c.bf16 (!%p8711_p6), %v11985_v58, %v11984_v22  ;;  %v11987_v7 = vld [vmem:[#allocation11_spill] sm:$0xff] (!%p8711_p6)  ;;  %v11988_v2 = vld [vmem:[#allocation12_spill] sm:$0xff] (!%p8711_p6)  ;;  %v11989_v5 = vld [vmem:[#allocation13_spill] sm:$0xff] (!%p8711_p6)  ;;  %v10326_v58 = vmov (!%p8711_p6), 1.0   ;;  %vm4558_vm0 = vcmask (!%p8711_p6), 256002   ;;  %vm4561_vm1 = vcmask (!%p8711_p6), 257024  }
0x16bb   : > { %9860 = vmatprep.subr.bf16.mxu0 (!%p8711_p6), %v9859_v51  ;;  %v9871_v60 = vpack.c.bf16 (!%p8711_p6), %v11987_v7, %v11986_v61  ;;  %v9875_v15 = vpack.c.bf16 (!%p8711_p6), %v11989_v5, %v11988_v2  ;;  %v11992_v8 = vld [vmem:[#allocation16_spill] sm:$0xff] (!%p8711_p6)  ;;  %4559 = vst.msk [vmem:[#allocation2 - $0x2] sm:$0x4] (!%p8711_p6), %vm4558_vm0, %v10412_v4  ;;  %4616 = vst.msk [vmem:[#allocation2 + $0x3] sm:$0x4] (!%p8711_p6), %vm4558_vm0, %v10412_v4  ;;  %vm4619_vm2 = vcmask (!%p8711_p6), 1042432  }
0x16bc   : > { %4434 = vmax.xlane.f32.xlu0 (!%p8711_p6), %v4433_v20  ;;  %s10329_s22 = smov (!%p8711_p6), 64   ;;  %s10330_s23 = smov (!%p8711_p6), 120   ;;  %vm10331_vm5 = vmmov (!%p8711_p6), 0   ;;  %vm5007_vm7 = vcmask (!%p8711_p6), 64512  }
0x16bd   : > { %s10332_s24 = smov (!%p8711_p6), 112   ;;  %s10333_s25 = smov (!%p8711_p6), 104  }
0x16be   : > { %9862 = vmatpush3.bf16.msra.mxu0 (!%p8711_p6), %v9859_v51  ;;  %s10334_s26 = smov (!%p8711_p6), 32   ;;  %s10335_s29 = smov (!%p8711_p6), 8  }
0x16bf   : > { %9864 = vmatprep.subr.bf16.mxu0 %v9863_v23  ;;  %s10336_s30 = smov 16   ;;  %s10337_s9 = smov 24  }
0x16c2   : > { %9866 = vmatpush3.bf16.msra.mxu0 %v9863_v23 }
0x16c3   : > { %9868 = vmatprep.subr.bf16.mxu0 %v9867_v49 }
0x16c6   : > { %9870 = vmatpush3.bf16.msra.mxu0 %v9867_v49 }
0x16c7   : > { %9872 = vmatprep.subr.bf16.mxu0 %v9871_v60 }
0x16ca   : > { %9874 = vmatpush3.bf16.msra.mxu0 %v9871_v60 }
0x16cb   : > { %9876 = vmatprep.subr.bf16.mxu0 %v9875_v15 }
0x16ce   : > { %9878 = vmatpush3.bf16.msra.mxu0 %v9875_v15 }
0x1745   : > { %v4431_v13 = vpop.xlane.xlu0 %4430 }
0x1746   : > { %vm4436_vm6 = vcmp.ge.f32.partialorder %v4426_v11, %v4431_v13  ;;  %v11990_v11 = vld [vmem:[#allocation14_spill] sm:$0xff]  ;;  %v11993_v13 = vld [vmem:[#allocation17_spill] sm:$0xff] }
0x1747   : > { %v4438_v16 = vsel %vm4436_vm6, %v11262_v55, 128  ;;  %vm4573_vm6 = vcmp.eq.s32.totalorder %v11262_v55, 2 }
0x1748   : > { %v4441_v3 = vshra.s32 %v4438_v16, 16  ;;  %v4440_v59 = vand.u32 65535, %v4438_v16  ;;  %v10325_v16 = vmov 0.0  }
0x1749   : > { %v4435_v12 = vpop.xlane.xlu0 %4434 }
0x174a   : > { %vm4437_vm9 = vcmp.ge.f32.partialorder %v4427_v53, %v4435_v12  ;;  %v4443_v21 = vcvt.s32.f32 %v4441_v3  ;;  %v4442_v19 = vcvt.s32.f32 %v4440_v59  ;;  %v11991_v53 = vld [vmem:[#allocation15_spill] sm:$0xff]  ;;  %v9883_v3 = vpack.c.bf16 %v11993_v13, %v11992_v8 }
0x174b   : > { %v4439_v56 = vsel %vm4437_vm9, %v11262_v55, 128  ;;  %v9879_v20 = vpack.c.bf16 %v11991_v53, %v11990_v11  ;;  %v11994_v12 = vld [vmem:[#allocation3_spill] sm:$0xff]  ;;  %vm4564_vm9 = vcmp.eq.s32.totalorder %v11262_v55, 1 }
0x174c   : > { %4444 = vmin.xlane.f32.xlu1 %v4443_v21  ;;  %v4454_v52 = vsel %vm4432_vm4, %v4439_v56, 2147483647 }
0x174d   : > { %v4456_v14 = vshra.s32 %v4454_v52, 16  ;;  %v4455_v57 = vand.u32 65535, %v4454_v52  ;;  %9880 = vmatprep.subr.bf16.mxu0 %v9879_v20 }
0x174e   : > { %9882 = vmatpush3.bf16.msra.mxu0 %v9879_v20 }
0x174f   : > { %v4458_v50 = vcvt.s32.f32 %v4456_v14  ;;  %v4457_v63 = vcvt.s32.f32 %v4455_v57  ;;  %9884 = vmatprep.subr.bf16.mxu0 %v9883_v3 }
0x1751   : > { %4459 = vmin.xlane.f32.xlu1 %v4458_v50 }
0x1752   : > { %9886 = vmatpush3.bf16.msra.mxu0 %v9883_v3 }
0x1753   : > { %9519 = vmatprep.subr.mxu0 %v10325_v16 }
0x17d9   : > { %v4445_v62 = vpop.xlane.xlu1 %4444 }
0x17da   : > { %vm4446_vm8 = vcmp.eq.f32.partialorder %v4443_v21, %v4445_v62  ;;  %v11285_v21 = vrot.slane %v11994_v12, 3 }
0x17db   : > { %v4447_v48 = vsel %vm4446_vm8, %v4442_v19, inf  ;;  %vm4586_vm8 = vcmp.eq.s32.totalorder %v11262_v55, 3 }
0x17dc   : > { %4448 = vmin.xlane.f32.xlu0 %v4447_v48  ;;  %v11290_v56 = vsel %vm4647_vm11, %v11994_v12, %v11285_v21  ;;  %v4656_v52 = vsel %vm4655_vm13, %v11285_v21, 0.0 }
0x17dd   : > { %v4652_v14 = vsel %vm4651_vm12, %v11290_v56, 0.0 }
0x17de   : > { %v4460_v17 = vpop.xlane.xlu1 %4459 }
0x17df   : > { %vm4461_vm10 = vcmp.eq.f32.partialorder %v4458_v50, %v4460_v17  ;;  %v4451_v50 = vcvt.f32.s32 %v4445_v62  ;;  %v4466_v51 = vcvt.f32.s32 %v4460_v17 }
0x17e0   : > { %v4462_v9 = vsel %vm4461_vm10, %v4457_v63, inf  ;;  %4653 = vadd.xlane.f32.xlu0 %v4652_v14  ;;  %vm4599_vm10 = vcmp.eq.s32.totalorder %v11262_v55, 4 }
0x17e1   : > { %4463 = vmin.xlane.f32.xlu1 %v4462_v9  ;;  %v4452_v6 = vshll.u32 %v4451_v50, 16  ;;  %v4467_v23 = vshll.u32 %v4466_v51, 16  ;;  %v11997_v50 = vld [vmem:[#allocation20_spill] sm:$0xff] }
0x17e5   : > { %4657 = vadd.xlane.f32.xlu1 %v4656_v52  ;;  %v11996_v52 = vld [vmem:[#allocation19_spill] sm:$0xff] }
0x1869   : > { %v4449_v18 = vpop.xlane.xlu0 %4448 }
0x186a   : > { %v4450_v24 = vcvt.f32.s32 %v4449_v18  ;;  %v11998_v18 = vld [vmem:[#allocation21_spill] sm:$0xff] }
0x186c   : > { %v11296_v1 = vadd.s32 %v4452_v6, %v4450_v24  ;;  %v9891_v6 = vpack.c.bf16 %v11998_v18, %v11997_v50  ;;  %v10327_v24 = vmov 0  }
0x186d   : > { %v4654_v59 = vpop.xlane.xlu0 %4653  ;;  %10173 = vset.pattern.permute.xlu0 %v10327_v24  ;;  %10174 = vset.pattern.permute.xlu1 %v10327_v24 }
0x186e   : > { %v4464_v54 = vpop.xlane.xlu1 %4463  ;;  %vm4469_vm14 = vcmp.eq.s32.totalorder %v11262_v55, %v11296_v1  ;;  %v4660_v48 = vmul.f32 0.03125, %v4654_v59  ;;  %vm4550_vm3 = vcmp.eq.s32.totalorder %v11296_v1, 0 }
0x186f   : > { %v4465_v22 = vcvt.f32.s32 %v4464_v54  ;;  %9463 = vmatprep.mubr.msk.f32.mxu0 %vm4469_vm14, %v10326_v58 }
0x1870   : > { %v4662_v17 = vsub.f32 %v11290_v56, %v4660_v48 }
0x1871   : > { %v11300_v49 = vadd.s32 %v4467_v23, %v4465_v22 }
0x1872   : > { %v4658_v15 = vpop.xlane.xlu1 %4657  ;;  %v4664_v9 = vmul.f32 %v4662_v17, %v4662_v17 }
0x1873   : > { %vm4470_vm15 = vcmp.eq.s32.totalorder %v11262_v55, %v11300_v49  ;;  %v4661_v57 = vmul.f32 0.03125, %v4658_v15 }
0x1874   : > { %9464 = vmatmul.mubr.msk.f32.vlgmr.msra.gmra.mrb[0].mxu0 %vm4470_vm15, %v10326_v58  ;;  %v4666_v3 = vsel %vm4651_vm12, %v4664_v9, 0.0  ;;  %v11333_v9 = vsub.s32 1, %v10440_v10 }
0x1875   : > { %v4663_v4 = vsub.f32 %v11285_v21, %v4661_v57  ;;  %9521 = vmatprep.mubr.msk.f32.mxu0 %vm10331_vm5, %v10325_v16 }
0x1877   : > { %v4665_v63 = vmul.f32 %v4663_v4, %v4663_v4 }
0x1879   : > { %v4669_v13 = vsel %vm4655_vm13, %v4665_v63, 0.0  ;;  %v11330_v63 = vsub.s32 0, %v10440_v10 }
0x1947   : > { %v9465_v61 = vpop.f32.mrb[0].mxu0 }
0x1948   : > { %v4621_v7 = vrot.slane %v9465_v61, 5  ;;  %v4541_v60 = vpop.f32.mrb[1].mxu0 }
0x1949   : > { %v4560_v2 = vadd.f32 %v4541_v60, %v11994_v12  ;;  %v4620_v5 = vrot.slane %v4541_v60, 5 }
0x194b   : > { %4562 = vst.msk [vmem:[#allocation2 + $0x1] sm:$0xf] %vm4561_vm1, %v4560_v2  ;;  %v4622_v62 = vsel %vm4619_vm2, %v4620_v5, %v4621_v7 }
0x194c   : > { %v4624_v19 = vadd.f32 %v4622_v62, %v11994_v12  ;;  %v11995_v12 = vld [vmem:[#allocation18_spill] sm:$0xff] }
0x194d   : > { %v9887_v14 = vpack.c.bf16 %v11996_v52, %v11995_v12 }
0x194e   : > { %4625 = vst.msk [vmem:[#allocation2 + $0x6] sm:$0xf] %vm4561_vm1, %v4624_v19  ;;  %vm5086_vm1 = vcmask 36864  }
0x194f   : > { %9888 = vmatprep.subr.bf16.mxu1 %v9887_v14 }
0x1950   : > { %9890 = vmatpush3.bf16.msra.mxu1 %v9887_v14 }
0x1951   : > { %9892 = vmatprep.subr.bf16.mxu1 %v9891_v6 }
0x1954   : > { %9894 = vmatpush3.bf16.msra.mxu1 %v9891_v6 }
0x1955   : > { %v4650_v11 = vld [vmem:[#allocation2 + $0x8] sm:$0x3]  ;;  %v4649_v53 = vld [vmem:[#allocation2] sm:$0xff] }
0x1956   : > { %v4695_v20 = vsel %vm4655_vm13, %v4650_v11, 0.0  ;;  %v4692_v8 = vsel %vm4651_vm12, %v4649_v53, 0.0 }
0x1957   : > { %4696 = vadd.xlane.f32.xlu1 %v4695_v20  ;;  %4693 = vadd.xlane.f32.xlu0 %v4692_v8 }
0x195b   : > { %4670 = vadd.xlane.f32.xlu1 %v4669_v13  ;;  %4667 = vadd.xlane.f32.xlu0 %v4666_v3  ;;  %v4689_v13 = vrot.slane %v10618_v46, %v11333_v9  ;;  %v11342_v3 = vpack.i.bf16 %v11998_v18, %v11997_v50 }
0x19e4   : > { %v4697_v51 = vpop.xlane.xlu1 %4696  ;;  %v4694_v54 = vpop.xlane.xlu0 %4693 }
0x19e5   : > { %v4699_v23 = vmul.f32 0.03125, %v4697_v51  ;;  %v4698_v22 = vmul.f32 0.03125, %v4694_v54  ;;  %v11345_v51 = vsel %vm4550_vm3, 1.0, %v10325_v16  ;;  %vm4551_vm3 = vcmp.eq.s32.totalorder %v11300_v49, 0 }
0x19e6   : > { %v4563_v1 = vmax.f32 %v11345_v51, 0.0  ;;  %v4596_v18 = vrot.slane %v11345_v51, 3 }
0x19e7   : > { %v11319_v58 = vsub.f32 %v4650_v11, %v4699_v23  ;;  %v11321_v61 = vsub.f32 %v4649_v53, %v4698_v22  ;;  %v4683_v11 = vrot.slane %v10618_v46, %v11330_v63  ;;  %v11351_v23 = vpack.i.bf16 %v11996_v52, %v11995_v12 }
0x19e8   : > { %v4671_v7 = vpop.xlane.xlu1 %4670  ;;  %v4668_v60 = vpop.xlane.xlu0 %4667  ;;  %v4583_v12 = vrot.slane %v11345_v51, 2 }
0x19e9   : > { %v4673_v2 = vmul.f32 0.03125, %v4671_v7  ;;  %v4672_v5 = vmul.f32 0.03125, %v4668_v60  ;;  %v4703_v15 = vmul.f32 %v11319_v58, %v11319_v58  ;;  %v4702_v59 = vmul.f32 %v11321_v61, %v11321_v61 }
0x19eb   : > { %v4675_v62 = vadd.f32 1e-05, %v4673_v2  ;;  %v4674_v19 = vadd.f32 1e-05, %v4672_v5  ;;  %v4707_v57 = vsel %vm4655_vm13, %v4703_v15, 0.0  ;;  %v4704_v48 = vsel %vm4651_vm12, %v4702_v59, 0.0 }
0x19ec   : > { %4708 = vadd.xlane.f32.xlu1 %v4707_v57  ;;  %4705 = vadd.xlane.f32.xlu0 %v4704_v48 }
0x19ed   : > { %10215 = vrsqrt.f32 %v4675_v62 }
0x19ee   : > { %10217 = vrsqrt.f32 %v4674_v19 }
0x19f7   : > { %v10216_v53 = vpop.eup %10215 }
0x19f8   : > { %v10218_v20 = vpop.eup %10217  ;;  %v4679_v8 = vmul.f32 %v10216_v53, %v4663_v4 }
0x19f9   : > { %v4678_v14 = vmul.f32 %v10218_v20, %v4662_v17  ;;  %v4570_v17 = vrot.slane %v11345_v51, 1 }
0x19fa   : > { %v4685_v6 = vmul.f32 %v4683_v11, %v4679_v8 }
0x19fb   : > { %v4684_v24 = vmul.f32 %v4683_v11, %v4678_v14  ;;  %v4572_v50 = vmax.f32 %v4563_v1, %v4570_v17 }
0x19fc   : > { %v4691_v54 = vadd.f32 %v4689_v13, %v4685_v6 }
0x19fd   : > { %10159 = vrot.lane.b32.xlu1 %v11342_v3, %s10328_s28  ;;  %v4690_v4 = vadd.f32 %v4689_v13, %v4684_v24  ;;  %v11366_v52 = vmax.f32 %v4572_v50, %v4583_v12  ;;  %v11372_v24 = vsub.s32 2, %v10440_v10 }
0x19ff   : > { %9474 = vmatprep.mubr.msk.f32.mxu1 %vm4651_vm12, %v4690_v4  ;;  %v4598_v22 = vmax.f32 %v11366_v52, %v4596_v18  ;;  %v4721_v17 = vrot.slane %v10618_v46, %v11372_v24 }
0x1a00   : > { %9475 = vmatmul.mubr.msk.f32.vlgmr.msra.gmra.mrb[0].mxu1 %vm4651_vm12, %v4691_v54  ;;  %v11375_v54 = vsub.s32 3, %v10440_v10 }
0x1a01   : > { %10164 = vrot.lane.b32.xlu1 %v11351_v23, %s10329_s22 }
0x1a02   : > { %10154 = vrot.lane.b32.xlu0 %v11351_v23, %s10328_s28 }
0x1a05   : > { %10169 = vrot.lane.b32.xlu1 %v11342_v3, %s10329_s22 }
0x1a06   : > { %4578 = vperm.xlu0 %10173, %v4572_v50  }
0x1a09   : > { %4591 = vperm.xlu1 %10174, %v11366_v52  }
0x1a0d   : > { %4604 = vperm.xlu1 %10174, %v4598_v22   ;;  %v4727_v22 = vrot.slane %v10618_v46, %v11375_v54 }
0x1a79   : > { %v4709_v7 = vpop.xlane.xlu1 %4708  ;;  %v4706_v60 = vpop.xlane.xlu0 %4705 }
0x1a7a   : > { %v4711_v2 = vmul.f32 0.03125, %v4709_v7  ;;  %v4710_v5 = vmul.f32 0.03125, %v4706_v60 }
0x1a7c   : > { %v4713_v15 = vadd.f32 1e-05, %v4711_v2  ;;  %v4712_v59 = vadd.f32 1e-05, %v4710_v5 }
0x1a7d   : > { %v10160_v62 = vpop.permute.xlu1 %10159  ;;  %v10155_v19 = vpop.permute.xlu0 %10154 }
0x1a7e   : > { %10219 = vrsqrt.f32 %v4713_v15  ;;  %v10162_v57 = vunpack.i.h.bf16 %v10160_v62  ;;  %v10161_v48 = vunpack.i.l.bf16 %v10160_v62  ;;  %v10157_v11 = vunpack.i.h.bf16 %v10155_v19 }
0x1a7f   : > { %10221 = vrsqrt.f32 %v4712_v59  ;;  %v10156_v53 = vunpack.i.l.bf16 %v10155_v19 }
0x1a80   : > { %v9899_v13 = vpack.c.bf16 %v10162_v57, %v10161_v48 }
0x1a81   : > { %v10165_v20 = vpop.permute.xlu1 %10164  ;;  %v9895_v8 = vpack.c.bf16 %v10157_v11, %v10156_v53 }
0x1a82   : > { %v10167_v14 = vunpack.i.h.bf16 %v10165_v20  ;;  %v10166_v6 = vunpack.i.l.bf16 %v10165_v20  ;;  %v4818_v20 = vrot.slane %v10613_v45, %v11333_v9 }
0x1a83   : > { %9896 = vmatprep.subr.bf16.mxu1 %v9895_v8 }
0x1a84   : > { %9898 = vmatpush3.bf16.msra.mxu1 %v9895_v8  ;;  %v9903_v4 = vpack.c.bf16 %v10167_v14, %v10166_v6 }
0x1a85   : > { %9900 = vmatprep.subr.bf16.mxu1 %v9899_v13  ;;  %v10170_v7 = vpop.permute.xlu1 %10169 }
0x1a86   : > { %v10172_v2 = vunpack.i.h.bf16 %v10170_v7  ;;  %v10171_v5 = vunpack.i.l.bf16 %v10170_v7  ;;  %v8719_v7 = vsel %vm4573_vm6, 1.0, %v10325_v16  ;;  %vm5098_vm6 = vcmask 39936  }
0x1a88   : > { %v10220_v50 = vpop.eup %10219  ;;  %9902 = vmatpush3.bf16.msra.mxu1 %v9899_v13  ;;  %v9907_v57 = vpack.c.bf16 %v10172_v2, %v10171_v5  ;;  %v8718_v2 = vsel %vm4564_vm9, 1.0, %v10325_v16  ;;  %v8720_v5 = vsel %vm4586_vm8, 1.0, %v10325_v16 }
0x1a89   : > { %v10222_v12 = vpop.eup %10221  ;;  %v4717_v18 = vmul.f32 %v10220_v50, %v11319_v58  ;;  %9904 = vmatprep.subr.bf16.mxu1 %v9903_v4  ;;  %v4733_v58 = vrot.slane %v10613_v45, %v11330_v63 }
0x1a8a   : > { %v4716_v60 = vmul.f32 %v10222_v12, %v11321_v61 }
0x1a8b   : > { %v4723_v15 = vmul.f32 %v4721_v17, %v4717_v18 }
0x1a8c   : > { %v4722_v59 = vmul.f32 %v4721_v17, %v4716_v60  ;;  %v4579_v60 = vpop.permute.xlu0 %4578 }
0x1a8d   : > { %v4729_v62 = vadd.f32 %v4727_v22, %v4723_v15  ;;  %v4581_v15 = vmul.f32 %v8719_v7, %v4579_v60 }
0x1a8e   : > { %v4728_v19 = vadd.f32 %v4727_v22, %v4722_v59  ;;  %v4592_v22 = vpop.permute.xlu1 %4591  ;;  %v11425_v59 = vsel %vm4599_vm10, 1.0, %v10325_v16  ;;  %vm5692_vm10 = vcmask 130048  }
0x1a90   : > { %9485 = vmatprep.mubr.msk.f32.mxu1 %vm4651_vm12, %v4728_v19 }
0x1a91   : > { %9486 = vmatmul.mubr.msk.f32.vlgmr.msra.gmra.mrb[2].mxu1 %vm4651_vm12, %v4729_v62 }
0x1a92   : > { %9906 = vmatpush3.bf16.msra.mxu1 %v9903_v4  ;;  %9496 = vmatprep.mubr.msk.f32.mxu1 %vm4651_vm12, %v4728_v19  ;;  %v4919_v4 = vrot.slane %v10613_v45, %v11372_v24  ;;  %v4567_v19 = vmul.f32 %v8718_v2, %v4563_v1 }
0x1a93   : > { %9908 = vmatprep.subr.bf16.mxu1 %v9907_v57 }
0x1a96   : > { %9910 = vmatpush3.bf16.msra.mxu1 %v9907_v57  ;;  %v4594_v57 = vmul.f32 %v8720_v5, %v4592_v22  ;;  %v8717_v5 = vsel %vm4551_vm3, 1.0, %v10325_v16 }
0x1a97   : > { %9499 = vmatprep.subr.mxu1 %v10325_v16 }
0x1a99   : > { %9497 = vmatmul.mubr.msk.f32.vlgmr.msra.gmra.mrb[4].mxu1 %vm4651_vm12, %v4729_v62  ;;  %v4605_v62 = vpop.permute.xlu1 %4604 }
0x1a9a   : > { %9501 = vmatprep.mubr.msk.f32.mxu1 %vm10331_vm5, %v10325_v16 }
0x1ad3   : > { %v9476_v61 = vpop.f32.mrb[0].mxu1 }
0x1ad4   : > { %v11390_v48 = vadd.f32 %v9476_v61, %v4733_v58  ;;  %v4806_v11 = vpop.f32.mrb[1].mxu1  ;;  %v4607_v61 = vmul.f32 %v11425_v59, %v4605_v62 }
0x1ad5   : > { %v11392_v53 = vadd.f32 %v4806_v11, %v4733_v58  ;;  %v4582_v58 = vadd.f32 %v4581_v15, %v4567_v19  ;;  %v4627_v15 = vrot.slane %v8717_v5, 3 }
0x1ad7   : > { %5175 = vrot.lane.b32.xlu1 %v11392_v53, %s10330_s23  ;;  %v11430_v11 = vadd.f32 %v4594_v57, %v4582_v58  ;;  %v4629_v62 = vmax.f32 %v11366_v52, %v4627_v15  ;;  %v5698_v52 = vrot.slane %v11390_v48, 5 }
0x1b64   : > { %v9487_v8 = vpop.f32.mrb[2].mxu1 }
0x1b65   : > { %v4913_v13 = vadd.f32 %v9487_v8, %v4818_v20  ;;  %v4907_v14 = vpop.f32.mrb[3].mxu1  ;;  %v11434_v8 = vadd.s32 1, %v10440_v10 }
0x1b66   : > { %v4908_v6 = vadd.f32 %v4907_v14, %v4818_v20  ;;  %v4608_v20 = vadd.f32 %v4607_v61, %v11430_v11 }
0x1b67   : > { %vm4557_vm14 = vcmp.eq.s32.totalorder %v11262_v55, %v11434_v8  ;;  %v5702_v7 = vrot.slane %v4913_v13, 5 }
0x1b68   : > { %9500 = vmatpush3.xpose.msk.msra.mxu1 %vm5007_vm7, %v4908_v6  ;;  %v4612_v14 = vrot.slane %v4608_v20, %v11330_v63  ;;  %v5701_v60 = vrot.slane %v4908_v6, 5  ;;  %v5697_v20 = vrot.slane %v11392_v53, 5 }
0x1b69   : > { %9504 = vmatprep.subr.mxu1 %v10325_v16 }
0x1b6a   : > { %vm4613_vm15 = vcmp.gt.f32.partialorder %v4612_v14, 0.0  ;;  %v5703_v2 = vsel %vm4619_vm2, %v5701_v60, %v5702_v7  ;;  %v5699_v14 = vsel %vm4619_vm2, %v5697_v20, %v5698_v52 }
0x1b6b   : > { %9502 = vmatmul.mubr.msk.f32.vlgmr.msra.gmra.mrb[6].mxu1 %vm5007_vm7, %v11392_v53  ;;  %vm4614_vm0 = vmor %vm4557_vm14, %vm4613_vm15  ;;  %vm6882_vm15 = vcmask 15360  }
0x1b6c   : > { %v9498_v17 = vpop.f32.mrb[4].mxu1  ;;  %9506 = vmatprep.mubr.msk.f32.mxu1 %vm10331_vm5, %v10325_v16 }
0x1b6d   : > { %v11410_v50 = vadd.f32 %v9498_v17, %v4919_v4  ;;  %v4998_v12 = vpop.f32.mrb[5].mxu1  ;;  %v11443_v17 = vsel %vm4614_vm0, -1e+09, %v10325_v16 }
0x1b6e   : > { %v11412_v18 = vadd.f32 %v4998_v12, %v4919_v4 }
0x1b70   : > { %9505 = vmatpush3.msk.msra.mxu1 %vm4647_vm11, %v11412_v18 }
0x1b71   : > { %9509 = vmatprep.subr.mxu1 %v10325_v16 }
0x1c3e   : > { %v5080_v51 = vpop.f32.mrb[6].mxu1 }
0x1c3f   : > { %v5084_v1 = vmul.f32 0.35355338, %v5080_v51  ;;  %v9503_v4 = vpop.f32.mrb[7].mxu1  ;;  %v5176_v51 = vpop.permute.xlu1 %5175 }
0x1c41   : > { %v5085_v12 = vadd.f32 %v5084_v1, %v11443_v17 }
0x1c43   : > { %v5087_v22 = vsel %vm5086_vm1, %v5085_v12, -inf }
0x1c44   : > { %5088 = vmax.xlane.f32.xlu0 %v5087_v22 }
0x1c5a   : > { %5177 = vrot.lane.b32.xlu0 %v4908_v6, %s10330_s23 }
0x1c5e   : > { %5345 = vrot.lane.b32.xlu0 %v4908_v6, %s10332_s24 }
0x1c62   : > { %5513 = vrot.lane.b32.xlu0 %v4908_v6, %s10333_s25 }
0x1c66   : > { %5872 = vrot.lane.b32.xlu0 %v5703_v2, %s10330_s23 }
0x1c6a   : > { %6040 = vrot.lane.b32.xlu0 %v5703_v2, %s10332_s24 }
0x1c6e   : > { %6208 = vrot.lane.b32.xlu0 %v5703_v2, %s10333_s25 }
0x1c72   : > { %4632 = vperm.xlu0 %10173, %v4629_v62  }
0x1cd1   : > { %v5089_v13 = vpop.xlane.xlu0 %5088 }
0x1cd2   : > { %v5090_v19 = vsub.f32 %v5085_v12, %v5089_v13 }
0x1cd4   : > { %v5091_v57 = vmul.f32 1.442695, %v5090_v19 }
0x1cd5   : > { %v5178_v6 = vpop.permute.xlu0 %5177 }
0x1cd6   : > { %10223 = vpow2.f32 %v5091_v57  ;;  %v11505_v57 = vsub.s32 5, %v10440_v10 }
0x1cd9   : > { %v5346_v58 = vpop.permute.xlu0 %5345 }
0x1cda   : > { %9520 = vmatpush3.xpose.msk.msra.mxu0 %vm5007_vm7, %v5346_v58 }
0x1cdb   : > { %9529 = vmatprep.subr.mxu0 %v10325_v16 }
0x1cdd   : > { %v5514_v4 = vpop.permute.xlu0 %5513 }
0x1ce0   : > { %v10224_v49 = vpop.eup %10223 }
0x1ce1   : > { %v5093_v61 = vsel %vm5086_vm1, %v10224_v49, 0.0 }
0x1ce2   : > { %5094 = vadd.xlane.f32.xlu1 %v5093_v61 }
0x1cf3   : > { %5343 = vrot.lane.b32.xlu1 %v11392_v53, %s10332_s24 }
0x1cf7   : > { %5511 = vrot.lane.b32.xlu1 %v11392_v53, %s10333_s25  ;;  %v5873_v53 = vpop.permute.xlu0 %5872 }
0x1cfb   : > { %5870 = vrot.lane.b32.xlu1 %v5699_v14, %s10330_s23  ;;  %v6041_v5 = vpop.permute.xlu0 %6040 }
0x1cff   : > { %6038 = vrot.lane.b32.xlu1 %v5699_v14, %s10332_s24  ;;  %v6209_v15 = vpop.permute.xlu0 %6208 }
0x1d03   : > { %6206 = vrot.lane.b32.xlu1 %v5699_v14, %s10333_s25  ;;  %v4633_v13 = vpop.permute.xlu0 %4632 }
0x1d04   : > { %v4635_v19 = vmul.f32 %v11425_v59, %v4633_v13 }
0x1d6f   : > { %v5095_v1 = vpop.xlane.xlu1 %5094 }
0x1d70   : > { %10225 = vrcp.f32 %v5095_v1 }
0x1d73   : > { %v5344_v12 = vpop.permute.xlu1 %5343 }
0x1d74   : > { %9522 = vmatmul.mubr.msk.f32.vlgmr.msra.gmra.mrb[2].mxu0 %vm5007_vm7, %v5344_v12 }
0x1d75   : > { %9530 = vmatpush3.xpose.msk.msra.mxu0 %vm5007_vm7, %v5514_v4  ;;  %9531 = vmatprep.mubr.msk.f32.mxu0 %vm10331_vm5, %v10325_v16 }
0x1d76   : > { %9539 = vmatprep.subr.mxu0 %v10325_v16 }
0x1d77   : > { %v5512_v48 = vpop.permute.xlu1 %5511 }
0x1d78   : > { %9532 = vmatmul.mubr.msk.f32.vlgmr.msra.gmra.mrb[4].mxu0 %vm5007_vm7, %v5512_v48 }
0x1d79   : > { %9540 = vmatpush3.xpose.msk.msra.mxu0 %vm5007_vm7, %v5703_v2  ;;  %9541 = vmatprep.mubr.msk.f32.mxu0 %vm10331_vm5, %v10325_v16 }
0x1d7a   : > { %v10226_v22 = vpop.eup %10225  ;;  %9549 = vmatprep.subr.mxu0 %v10325_v16 }
0x1d7b   : > { %v5097_v7 = vmul.f32 %v10226_v22, %v10224_v49  ;;  %v5871_v60 = vpop.permute.xlu1 %5870 }
0x1d7c   : > { %9542 = vmatmul.mubr.msk.f32.vlgmr.msra.gmra.mrb[6].mxu0 %vm5007_vm7, %v5699_v14 }
0x1d7d   : > { %9550 = vmatpush3.xpose.msk.msra.mxu0 %vm5007_vm7, %v5873_v53  ;;  %9507 = vmatmul.mubr.msk.f32.vlgmr.msra.gmra.mrb[8].mxu1 %vm5098_vm6, %v5097_v7 }
0x1d7e   : > { %9510 = vmatpush3.xpose.msk.msra.mxu1 %vm5007_vm7, %v5178_v6  ;;  %9551 = vmatprep.mubr.msk.f32.mxu0 %vm10331_vm5, %v10325_v16  ;;  %v4636_v6 = vadd.f32 %v4635_v19, %v11430_v11 }
0x1d7f   : > { %9559 = vmatprep.subr.mxu0 %v10325_v16  ;;  %9511 = vmatprep.mubr.msk.f32.mxu1 %vm10331_vm5, %v10325_v16  ;;  %v6039_v2 = vpop.permute.xlu1 %6038 }
0x1d80   : > { %9552 = vmatmul.mubr.msk.f32.vlgmr.msra.gmra.mrb[8].mxu0 %vm5007_vm7, %v5871_v60  ;;  %9514 = vmatprep.subr.mxu1 %v10325_v16  ;;  %v4640_v58 = vrot.slane %v4636_v6, %v11505_v57 }
0x1d81   : > { %9560 = vmatpush3.xpose.msk.msra.mxu0 %vm5007_vm7, %v6041_v5  ;;  %9512 = vmatmul.mubr.msk.f32.vlgmr.msra.gmra.mrb[10].mxu1 %vm5007_vm7, %v5176_v51 }
0x1d82   : > { %9561 = vmatprep.mubr.msk.f32.mxu0 %vm10331_vm5, %v10325_v16  ;;  %9569 = vmatprep.subr.mxu0 %v10325_v16  ;;  %vm4641_vm9 = vcmp.gt.f32.partialorder %v4640_v58, 0.0 }
0x1d83   : > { %9516 = vmatprep.mubr.msk.f32.mxu1 %vm10331_vm5, %v10325_v16  ;;  %v6207_v62 = vpop.permute.xlu1 %6206  ;;  %vm4642_vm8 = vmor %vm4557_vm14, %vm4641_vm9  ;;  %vm5694_vm14 = vcmask 195584  }
0x1d84   : > { %9562 = vmatmul.mubr.msk.f32.vlgmr.msra.gmra.mrb[10].mxu0 %vm5007_vm7, %v6039_v2  ;;  %v4643_v60 = vsel %vm4642_vm8, -1e+09, %v10325_v16 }
0x1d85   : > { %9570 = vmatpush3.xpose.msk.msra.mxu0 %vm5007_vm7, %v6209_v15  ;;  %9571 = vmatprep.mubr.msk.f32.mxu0 %vm10331_vm5, %v10325_v16 }
0x1d88   : > { %9572 = vmatmul.mubr.msk.f32.vlgmr.msra.gmra.mrb[12].mxu0 %vm5007_vm7, %v6207_v62 }
0x1e47   : > { %v5417_v49 = vpop.f32.mrb[2].mxu0 }
0x1e48   : > { %v5421_v61 = vmul.f32 0.35355338, %v5417_v49  ;;  %v9523_v52 = vpop.f32.mrb[3].mxu0 }
0x1e4a   : > { %v5422_v20 = vadd.f32 %v5421_v61, %v11443_v17 }
0x1e4b   : > { %v5585_v14 = vpop.f32.mrb[4].mxu0 }
0x1e4c   : > { %v5589_v51 = vmul.f32 0.35355338, %v5585_v14  ;;  %v9533_v1 = vpop.f32.mrb[5].mxu0  ;;  %v5423_v4 = vsel %vm5086_vm1, %v5422_v20, -inf }
0x1e4d   : > { %5424 = vmax.xlane.f32.xlu0 %v5423_v4 }
0x1e4e   : > { %v5590_v59 = vadd.f32 %v5589_v51, %v11443_v17 }
0x1e4f   : > { %v5774_v11 = vpop.f32.mrb[6].mxu0 }
0x1e50   : > { %v5778_v12 = vmul.f32 0.35355338, %v5774_v11  ;;  %v11515_v48 = vpop.f32.mrb[8].mxu1  ;;  %v9543_v53 = vpop.f32.mrb[7].mxu0  ;;  %v5591_v22 = vsel %vm5086_vm1, %v5590_v59, -inf }
0x1e51   : > { %5592 = vmax.xlane.f32.xlu0 %v5591_v22  ;;  %v9508_v7 = vpop.f32.mrb[9].mxu1 }
0x1e52   : > { %v5779_v5 = vadd.f32 %v5778_v12, %v4643_v60 }
0x1e53   : > { %v5944_v2 = vpop.f32.mrb[8].mxu0 }
0x1e54   : > { %v5249_v15 = vpop.f32.mrb[10].mxu1  ;;  %v9553_v62 = vpop.f32.mrb[9].mxu0  ;;  %v5780_v55 = vsel %vm5086_vm1, %v5779_v5, -inf  ;;  %v5948_v8 = vmul.f32 0.35355338, %v5944_v2 }
0x1e55   : > { %v5253_v13 = vmul.f32 0.35355338, %v5249_v15  ;;  %5781 = vmax.xlane.f32.xlu0 %v5780_v55  ;;  %v9513_v19 = vpop.f32.mrb[11].mxu1 }
0x1e56   : > { %v5949_v14 = vadd.f32 %v5948_v8, %v4643_v60 }
0x1e57   : > { %v6112_v6 = vpop.f32.mrb[10].mxu0  ;;  %v5254_v58 = vadd.f32 %v5253_v13, %v11443_v17 }
0x1e58   : > { %v6116_v49 = vmul.f32 0.35355338, %v6112_v6  ;;  %v9563_v61 = vpop.f32.mrb[11].mxu0  ;;  %v5950_v53 = vsel %vm5086_vm1, %v5949_v14, -inf }
0x1e59   : > { %v5255_v52 = vsel %vm5086_vm1, %v5254_v58, -inf }
0x1e5a   : > { %5256 = vmax.xlane.f32.xlu1 %v5255_v52  ;;  %v6117_v51 = vadd.f32 %v6116_v49, %v4643_v60 }
0x1e5b   : > { %v6280_v1 = vpop.f32.mrb[12].mxu0 }
0x1e5c   : > { %v6284_v4 = vmul.f32 0.35355338, %v6280_v1  ;;  %v9573_v11 = vpop.f32.mrb[13].mxu0  ;;  %v6118_v12 = vsel %vm5086_vm1, %v6117_v51, -inf }
0x1e5d   : > { %6119 = vmax.xlane.f32.xlu0 %v6118_v12 }
0x1e5e   : > { %5951 = vmax.xlane.f32.xlu1 %v5950_v53  ;;  %v6285_v22 = vadd.f32 %v6284_v4, %v4643_v60 }
0x1e60   : > { %v6286_v7 = vsel %vm5086_vm1, %v6285_v22, -inf }
0x1e62   : > { %6287 = vmax.xlane.f32.xlu1 %v6286_v7 }
0x1eda   : > { %v5425_v17 = vpop.xlane.xlu0 %5424 }
0x1edb   : > { %v5426_v2 = vsub.f32 %v5422_v20, %v5425_v17 }
0x1edd   : > { %v5427_v15 = vmul.f32 1.442695, %v5426_v2 }
0x1ede   : > { %v5593_v62 = vpop.xlane.xlu0 %5592 }
0x1edf   : > { %10227 = vpow2.f32 %v5427_v15  ;;  %v5594_v55 = vsub.f32 %v5590_v59, %v5593_v62 }
0x1ee1   : > { %v5595_v8 = vmul.f32 1.442695, %v5594_v55 }
0x1ee2   : > { %v5782_v13 = vpop.xlane.xlu0 %5781 }
0x1ee3   : > { %10229 = vpow2.f32 %v5595_v8  ;;  %v5783_v19 = vsub.f32 %v5779_v5, %v5782_v13 }
0x1ee5   : > { %v5784_v6 = vmul.f32 1.442695, %v5783_v19 }
0x1ee7   : > { %10231 = vpow2.f32 %v5784_v6  ;;  %v5257_v49 = vpop.xlane.xlu1 %5256 }
0x1ee8   : > { %v5258_v12 = vsub.f32 %v5254_v58, %v5257_v49  ;;  %v5793_v49 = vrot.slane %v11410_v50, 5 }
0x1ee9   : > { %v11525_v61 = vpop.eup %10227 }
0x1eea   : > { %v6120_v52 = vpop.xlane.xlu0 %6119  ;;  %v5429_v60 = vsel %vm5086_vm1, %v11525_v61, 0.0  ;;  %v5259_v15 = vmul.f32 1.442695, %v5258_v12 }
0x1eeb   : > { %v6121_v1 = vsub.f32 %v6117_v51, %v6120_v52  ;;  %5430 = vadd.xlane.f32.xlu1 %v5429_v60  ;;  %v5952_v20 = vpop.xlane.xlu1 %5951  ;;  %v5792_v52 = vrot.slane %v11412_v18, 5 }
0x1eec   : > { %v5953_v4 = vsub.f32 %v5949_v14, %v5952_v20 }
0x1eed   : > { %v11529_v11 = vpop.eup %10229  ;;  %v6122_v59 = vmul.f32 1.442695, %v6121_v1  ;;  %v5794_v60 = vsel %vm4619_vm2, %v5792_v52, %v5793_v49 }
0x1eee   : > { %v5954_v53 = vmul.f32 1.442695, %v5953_v4  ;;  %v5597_v5 = vsel %vm5086_vm1, %v11529_v11, 0.0 }
0x1eef   : > { %10233 = vpow2.f32 %v6122_v59  ;;  %5598 = vadd.xlane.f32.xlu0 %v5597_v5  ;;  %v6288_v7 = vpop.xlane.xlu1 %6287 }
0x1ef0   : > { %10235 = vpow2.f32 %v5954_v53  ;;  %v6289_v17 = vsub.f32 %v6285_v22, %v6288_v7 }
0x1ef1   : > { %v11533_v2 = vpop.eup %10231 }
0x1ef2   : > { %v6290_v51 = vmul.f32 1.442695, %v6289_v17  ;;  %v5786_v14 = vsel %vm5086_vm1, %v11533_v2, 0.0 }
0x1ef3   : > { %5787 = vadd.xlane.f32.xlu1 %v5786_v14 }
0x1ef4   : > { %10237 = vpow2.f32 %v6290_v51 }
0x1ef5   : > { %10239 = vpow2.f32 %v5259_v15 }
0x1ef9   : > { %v11537_v58 = vpop.eup %10233 }
0x1efa   : > { %v11539_v62 = vpop.eup %10235  ;;  %v6124_v55 = vsel %vm5086_vm1, %v11537_v58, 0.0 }
0x1efb   : > { %6125 = vadd.xlane.f32.xlu1 %v6124_v55  ;;  %v5956_v22 = vsel %vm5086_vm1, %v11539_v62, 0.0 }
0x1efc   : > { %5957 = vadd.xlane.f32.xlu0 %v5956_v22 }
0x1efe   : > { %v11545_v8 = vpop.eup %10237 }
0x1eff   : > { %v6292_v13 = vsel %vm5086_vm1, %v11545_v8, 0.0  ;;  %v10240_v19 = vpop.eup %10239 }
0x1f00   : > { %6293 = vadd.xlane.f32.xlu0 %v6292_v13  ;;  %v5261_v6 = vsel %vm5086_vm1, %v10240_v19, 0.0 }
0x1f04   : > { %5262 = vadd.xlane.f32.xlu0 %v5261_v6 }
0x1f0c   : > { %5266 = vrot.lane.b32.xlu1 %v11412_v18, %s10330_s23 }
0x1f10   : > { %5602 = vrot.lane.b32.xlu1 %v11412_v18, %s10333_s25 }
0x1f14   : > { %5961 = vrot.lane.b32.xlu1 %v5794_v60, %s10330_s23 }
0x1f18   : > { %6129 = vrot.lane.b32.xlu1 %v5794_v60, %s10332_s24 }
0x1f1a   : > { %5434 = vrot.lane.b32.xlu0 %v11412_v18, %s10332_s24 }
0x1f1c   : > { %10176 = vrot.lane.b32.xlu1 %v11351_v23, %s10334_s26 }
0x1f1e   : > { %6297 = vrot.lane.b32.xlu0 %v5794_v60, %s10333_s25 }
0x1f22   : > { %10181 = vrot.lane.b32.xlu0 %v11342_v3, %s10334_s26 }
0x1f78   : > { %v5431_v50 = vpop.xlane.xlu1 %5430 }
0x1f7c   : > { %v5599_v20 = vpop.xlane.xlu0 %5598 }
0x1f80   : > { %v5788_v1 = vpop.xlane.xlu1 %5787 }
0x1f88   : > { %v6126_v4 = vpop.xlane.xlu1 %6125 }
0x1f89   : > { %v5958_v59 = vpop.xlane.xlu0 %5957 }
0x1f8c   : > { %v5267_v12 = vpop.permute.xlu1 %5266 }
0x1f8d   : > { %v6294_v53 = vpop.xlane.xlu0 %6293  ;;  %9515 = vmatpush3.msk.msra.mxu1 %vm4647_vm11, %v5267_v12 }
0x1f8e   : > { %9524 = vmatprep.subr.mxu1 %v10325_v16 }
0x1f90   : > { %v5603_v14 = vpop.permute.xlu1 %5602 }
0x1f91   : > { %v5263_v5 = vpop.xlane.xlu0 %5262 }
0x1f92   : > { %10241 = vrcp.f32 %v5263_v5 }
0x1f93   : > { %10243 = vrcp.f32 %v5431_v50 }
0x1f94   : > { %10245 = vrcp.f32 %v5599_v20  ;;  %v5962_v13 = vpop.permute.xlu1 %5961 }
0x1f95   : > { %10247 = vrcp.f32 %v5788_v1  ;;  %v5435_v23 = vpop.permute.xlu0 %5434 }
0x1f96   : > { %10249 = vrcp.f32 %v5958_v59 }
0x1f97   : > { %10251 = vrcp.f32 %v6126_v4 }
0x1f98   : > { %10253 = vrcp.f32 %v6294_v53  ;;  %v6130_v49 = vpop.permute.xlu1 %6129 }
0x1f9c   : > { %v10242_v18 = vpop.eup %10241  ;;  %v10177_v50 = vpop.permute.xlu1 %10176 }
0x1f9d   : > { %v5265_v7 = vmul.f32 %v10242_v18, %v10240_v19  ;;  %v10244_v17 = vpop.eup %10243  ;;  %v10178_v1 = vunpack.i.l.bf16 %v10177_v50 }
0x1f9e   : > { %v5433_v15 = vmul.f32 %v10244_v17, %v11525_v61  ;;  %v10246_v51 = vpop.eup %10245 }
0x1f9f   : > { %9517 = vmatmul.mubr.msk.f32.vlgmr.msra.gmra.mrb[12].mxu1 %vm5098_vm6, %v5265_v7  ;;  %v5601_v55 = vmul.f32 %v10246_v51, %v11529_v11  ;;  %v10248_v22 = vpop.eup %10247 }
0x1fa0   : > { %9525 = vmatpush3.msk.msra.mxu1 %vm4647_vm11, %v5435_v23  ;;  %9526 = vmatprep.mubr.msk.f32.mxu1 %vm10331_vm5, %v10325_v16  ;;  %v5790_v61 = vmul.f32 %v10248_v22, %v11533_v2  ;;  %v10250_v19 = vpop.eup %10249 }
0x1fa1   : > { %9534 = vmatprep.subr.mxu1 %v10325_v16  ;;  %v5960_v11 = vmul.f32 %v10250_v19, %v11539_v62  ;;  %v10252_v6 = vpop.eup %10251 }
0x1fa2   : > { %v6128_v2 = vmul.f32 %v10252_v6, %v11537_v58  ;;  %v10254_v52 = vpop.eup %10253  ;;  %v10179_v58 = vunpack.i.h.bf16 %v10177_v50 }
0x1fa3   : > { %9527 = vmatmul.mubr.msk.f32.vlgmr.msra.gmra.mrb[14].mxu1 %vm5098_vm6, %v5433_v15  ;;  %v6296_v62 = vmul.f32 %v10254_v52, %v11545_v8 }
0x1fa4   : > { %9535 = vmatpush3.msk.msra.mxu1 %vm4647_vm11, %v5603_v14  ;;  %9536 = vmatprep.mubr.msk.f32.mxu1 %vm10331_vm5, %v10325_v16  ;;  %v9911_v20 = vpack.c.bf16 %v10179_v58, %v10178_v1 }
0x1fa5   : > { %9544 = vmatprep.subr.mxu1 %v10325_v16 }
0x1fa6   : > { %9912 = vmatprep.subr.bf16.mxu0 %v9911_v20 }
0x1fa7   : > { %9537 = vmatmul.mubr.msk.f32.vlgmr.msra.gmra.mrb[16].mxu1 %vm5098_vm6, %v5601_v55  ;;  %9914 = vmatpush3.bf16.msra.mxu0 %v9911_v20 }
0x1fa8   : > { %9545 = vmatpush3.msk.msra.mxu1 %vm4647_vm11, %v5794_v60  ;;  %9546 = vmatprep.mubr.msk.f32.mxu1 %vm10331_vm5, %v10325_v16  ;;  %v6298_v60 = vpop.permute.xlu0 %6297 }
0x1fa9   : > { %9554 = vmatprep.subr.mxu1 %v10325_v16 }
0x1fab   : > { %9547 = vmatmul.mubr.msk.f32.vlgmr.msra.gmra.mrb[18].mxu1 %vm5098_vm6, %v5790_v61 }
0x1fac   : > { %9555 = vmatpush3.msk.msra.mxu1 %vm4647_vm11, %v5962_v13  ;;  %9556 = vmatprep.mubr.msk.f32.mxu1 %vm10331_vm5, %v10325_v16  ;;  %v10182_v59 = vpop.permute.xlu0 %10181 }
0x1fad   : > { %9564 = vmatprep.subr.mxu1 %v10325_v16  ;;  %v10184_v53 = vunpack.i.h.bf16 %v10182_v59  ;;  %v10183_v5 = vunpack.i.l.bf16 %v10182_v59 }
0x1faf   : > { %9557 = vmatmul.mubr.msk.f32.vlgmr.msra.gmra.mrb[20].mxu1 %vm5098_vm6, %v5960_v11  ;;  %v9915_v8 = vpack.c.bf16 %v10184_v53, %v10183_v5 }
0x1fb0   : > { %9565 = vmatpush3.msk.msra.mxu1 %vm4647_vm11, %v6130_v49  ;;  %9566 = vmatprep.mubr.msk.f32.mxu1 %vm10331_vm5, %v10325_v16 }
0x1fb1   : > { %9574 = vmatprep.subr.mxu1 %v10325_v16  ;;  %9916 = vmatprep.subr.bf16.mxu0 %v9915_v8 }
0x1fb2   : > { %9918 = vmatpush3.bf16.msra.mxu0 %v9915_v8 }
0x1fb3   : > { %9567 = vmatmul.mubr.msk.f32.vlgmr.msra.gmra.mrb[22].mxu1 %vm5098_vm6, %v6128_v2 }
0x1fb4   : > { %9575 = vmatpush3.msk.msra.mxu1 %vm4647_vm11, %v6298_v60  ;;  %9576 = vmatprep.mubr.msk.f32.mxu1 %vm10331_vm5, %v10325_v16 }
0x1fb7   : > { %9577 = vmatmul.mubr.msk.f32.vlgmr.msra.gmra.mrb[24].mxu1 %vm5098_vm6, %v6296_v62 }
0x2072   : > { %v5339_v4 = vpop.f32.mrb[12].mxu1 }
0x2073   : > { %5680 = vrot.lane.b32.xlu1 %v5339_v4, %s10335_s29  ;;  %v9518_v12 = vpop.f32.mrb[13].mxu1 }
0x2074   : > { %v6396_v12 = vrot.slane %v10613_v45, %v11375_v54 }
0x2076   : > { %v5507_v18 = vpop.f32.mrb[14].mxu1 }
0x2077   : > { %v9528_v7 = vpop.f32.mrb[15].mxu1 }
0x207a   : > { %v5675_v3 = vpop.f32.mrb[16].mxu1 }
0x207b   : > { %v9538_v17 = vpop.f32.mrb[17].mxu1 }
0x207e   : > { %v5866_v23 = vpop.f32.mrb[18].mxu1 }
0x207f   : > { %v9548_v15 = vpop.f32.mrb[19].mxu1 }
0x2082   : > { %v6034_v51 = vpop.f32.mrb[20].mxu1 }
0x2083   : > { %6375 = vrot.lane.b32.xlu0 %v6034_v51, %s10335_s29  ;;  %v9558_v14 = vpop.f32.mrb[21].mxu1 }
0x2086   : > { %v6202_v55 = vpop.f32.mrb[22].mxu1 }
0x2087   : > { %6379 = vrot.lane.b32.xlu1 %v6202_v55, %s10336_s30  ;;  %v9568_v22 = vpop.f32.mrb[23].mxu1 }
0x208a   : > { %v6370_v61 = vpop.f32.mrb[24].mxu1 }
0x208b   : > { %5684 = vrot.lane.b32.xlu1 %v5507_v18, %s10336_s30  ;;  %6383 = vrot.lane.b32.xlu0 %v6370_v61, %s10337_s9  ;;  %v9578_v13 = vpop.f32.mrb[25].mxu1 }
0x208f   : > { %5688 = vrot.lane.b32.xlu0 %v5675_v3, %s10337_s9 }
0x20e5   : > { %v5681_v19 = vpop.permute.xlu1 %5680 }
0x20e6   : > { %v5691_v50 = vsel %vm5007_vm7, %v11515_v48, %v5681_v19 }
0x20f5   : > { %v6376_v11 = vpop.permute.xlu0 %6375 }
0x20f6   : > { %v6386_v49 = vsel %vm5007_vm7, %v5866_v23, %v6376_v11  ;;  %v11636_v23 = vpack.i.bf16 %v10518_v26, %v10513_v25  ;;  %v11646_v11 = vpack.i.bf16 %v10528_v28, %v10523_v27 }
0x20f9   : > { %v6380_v6 = vpop.permute.xlu1 %6379 }
0x20fa   : > { %v6387_v2 = vsel %vm5692_vm10, %v6386_v49, %v6380_v6 }
0x20fd   : > { %v6384_v52 = vpop.permute.xlu0 %6383  ;;  %v5685_v60 = vpop.permute.xlu1 %5684 }
0x20fe   : > { %v6388_v62 = vsel %vm5694_vm14, %v6387_v2, %v6384_v52  ;;  %v5693_v58 = vsel %vm5692_vm10, %v5691_v50, %v5685_v60  ;;  %v10338_v60 = vmov 0.0|0.0   ;;  %v9923_v50 = vpack.c.bf16 %v10528_v28, %v10523_v27 }
0x20ff   : > { %v6390_v1 = vrot.slane %v6388_v62, 3  ;;  %9927 = vmatprep.subr.bf16.mxu0 %v10338_v60  ;;  %v9919_v62 = vpack.c.bf16 %v10518_v26, %v10513_v25 }
0x2101   : > { %v5689_v20 = vpop.permute.xlu0 %5688  ;;  %9920 = vmatprep.subr.bf16.mxu1 %v9919_v62 }
0x2102   : > { %v5695_v4 = vsel %vm5694_vm14, %v5693_v58, %v5689_v20  ;;  %9922 = vmatpush3.bf16.msra.mxu1 %v9919_v62 }
0x2103   : > { %v6392_v59 = vsel %vm4647_vm11, %v5695_v4, %v6390_v1  ;;  %9924 = vmatprep.subr.bf16.mxu1 %v9923_v50 }
0x2104   : > { %9587 = vmatprep.mubr.msk.f32.mxu0 %vm4651_vm12, %v6392_v59 }
0x2105   : > { %9588 = vmatmul.mubr.msk.f32.vlgmr.msra.gmra.mrb[14].mxu0 %vm4651_vm12, %v6390_v1 }
0x2106   : > { %9609 = vmatprep.mubr.msk.f32.mxu0 %vm10331_vm5, %v10325_v16  ;;  %9926 = vmatpush3.bf16.msra.mxu1 %v9923_v50 }
0x2107   : > { %9933 = vmatprep.subr.bf16.mxu1 %v10338_v60 }
0x21d8   : > { %v9589_v53 = vpop.f32.mrb[14].mxu0 }
0x21d9   : > { %v6486_v48 = vadd.f32 %v9589_v53, %v6396_v12  ;;  %v6480_v5 = vpop.f32.mrb[15].mxu0  ;;  %v11658_v53 = vsub.s32 4, %v10440_v10 }
0x21da   : > { %v6481_v8 = vadd.f32 %v6480_v5, %v6396_v12 }
0x21db   : > { %v11625_v18 = vadd.f32 %v6486_v48, %v11285_v21 }
0x21dc   : > { %v11628_v7 = vadd.f32 %v6481_v8, %v11290_v56  ;;  %v6520_v8 = vrot.slane %v10618_v46, %v11658_v53 }
0x21dd   : > { %v6494_v3 = vsel %vm4655_vm13, %v11625_v18, 0.0 }
0x21de   : > { %6495 = vadd.xlane.f32.xlu0 %v6494_v3  ;;  %v6491_v17 = vsel %vm4651_vm12, %v11628_v7, 0.0 }
0x21df   : > { %6492 = vadd.xlane.f32.xlu1 %v6491_v17 }
0x21f0   : > { %10186 = vrot.lane.b32.xlu1 %v11636_v23, %s10328_s28 }
0x226b   : > { %v6496_v21 = vpop.xlane.xlu0 %6495 }
0x226c   : > { %v6498_v15 = vmul.f32 0.03125, %v6496_v21  ;;  %v6493_v51 = vpop.xlane.xlu1 %6492 }
0x226d   : > { %v6497_v56 = vmul.f32 0.03125, %v6493_v51 }
0x226e   : > { %v6500_v14 = vsub.f32 %v11625_v18, %v6498_v15  ;;  %v6526_v15 = vrot.slane %v10618_v46, %v11505_v57 }
0x226f   : > { %v6499_v55 = vsub.f32 %v11628_v7, %v6497_v56 }
0x2270   : > { %v6502_v22 = vmul.f32 %v6500_v14, %v6500_v14  ;;  %v10187_v6 = vpop.permute.xlu1 %10186 }
0x2271   : > { %v6501_v13 = vmul.f32 %v6499_v55, %v6499_v55  ;;  %v10189_v49 = vunpack.i.h.bf16 %v10187_v6  ;;  %v10188_v2 = vunpack.i.l.bf16 %v10187_v6 }
0x2272   : > { %v6506_v61 = vsel %vm4655_vm13, %v6502_v22, 0.0 }
0x2273   : > { %6507 = vadd.xlane.f32.xlu0 %v6506_v61  ;;  %v6503_v19 = vsel %vm4651_vm12, %v6501_v13, 0.0  ;;  %v9928_v52 = vpack.c.bf16 %v10189_v49, %v10188_v2 }
0x2275   : > { %9929 = vmatpush3.bf16.msra.mxu0 %v9928_v52 }
0x2276   : > { %9930 = vmatprep.subr.bf16.mxu0 %v10338_v60 }
0x2277   : > { %6504 = vadd.xlane.f32.xlu0 %v6503_v19  ;;  %v6532_v19 = vrot.slane %v10613_v45, %v11658_v53 }
0x228d   : > { %10191 = vrot.lane.b32.xlu0 %v11646_v11, %s10328_s28 }
0x2300   : > { %v6508_v58 = vpop.xlane.xlu0 %6507 }
0x2301   : > { %v6510_v1 = vmul.f32 0.03125, %v6508_v58 }
0x2303   : > { %v6512_v20 = vadd.f32 1e-05, %v6510_v1 }
0x2304   : > { %v6505_v4 = vpop.xlane.xlu0 %6504 }
0x2305   : > { %10255 = vrsqrt.f32 %v6512_v20  ;;  %v6509_v59 = vmul.f32 0.03125, %v6505_v4 }
0x2307   : > { %v6511_v12 = vadd.f32 1e-05, %v6509_v59 }
0x2308   : > { %v10192_v25 = vpop.permute.xlu0 %10191 }
0x2309   : > { %10257 = vrsqrt.f32 %v6511_v12  ;;  %v10194_v26 = vunpack.i.h.bf16 %v10192_v25  ;;  %v10193_v27 = vunpack.i.l.bf16 %v10192_v25 }
0x230b   : > { %v9931_v28 = vpack.c.bf16 %v10194_v26, %v10193_v27 }
0x230d   : > { %9932 = vmatpush3.bf16.msra.mxu0 %v9931_v28 }
0x230e   : > { %9623 = vmatprep.subr.mxu0 %v10325_v16 }
0x230f   : > { %v10256_v48 = vpop.eup %10255 }
0x2310   : > { %9610 = vmatmul.mubr.msk.f32.vlgmr.msra.gmra.mrb[16].mxu0 %vm4651_vm12, %v10397_v0  ;;  %v6516_v5 = vmul.f32 %v10256_v48, %v6500_v14  ;;  %v6617_v14 = vrot.slane %v10613_v45, %v11505_v57 }
0x2311   : > { %9625 = vmatprep.mubr.msk.f32.mxu0 %vm10331_vm5, %v10325_v16 }
0x2312   : > { %v6522_v21 = vmul.f32 %v6520_v8, %v6516_v5 }
0x2313   : > { %v10258_v3 = vpop.eup %10257 }
0x2314   : > { %v6515_v17 = vmul.f32 %v10258_v3, %v6499_v55  ;;  %v6528_v22 = vadd.f32 %v6526_v15, %v6522_v21 }
0x2316   : > { %v6521_v51 = vmul.f32 %v6520_v8, %v6515_v17 }
0x2318   : > { %v6527_v56 = vadd.f32 %v6526_v15, %v6521_v51 }
0x231a   : > { %9598 = vmatprep.mubr.msk.f32.mxu1 %vm4651_vm12, %v6527_v56 }
0x231b   : > { %9599 = vmatmul.mubr.msk.f32.vlgmr.msra.gmra.mrb[26].mxu1 %vm4651_vm12, %v6528_v22 }
0x231c   : > { %9620 = vmatprep.mubr.msk.f32.mxu1 %vm10331_vm5, %v10325_v16 }
0x23e3   : > { %v6703_v61 = vpop.f32.mrb[16].mxu0 }
0x23e4   : > { %v6704_v13 = vadd.f32 %v6703_v61, %v6617_v14  ;;  %v9611_v55 = vpop.f32.mrb[17].mxu0 }
0x23e6   : > { %6961 = vrot.lane.b32.xlu1 %v6704_v13, %s10330_s23  ;;  %9624 = vmatpush3.xpose.msk.msra.mxu0 %vm5007_vm7, %v6704_v13  ;;  %v7479_v58 = vrot.slane %v6704_v13, 2 }
0x23e7   : > { %9633 = vmatprep.subr.mxu0 %v10325_v16 }
0x23ee   : > { %v9600_v6 = vpop.f32.mrb[26].mxu1 }
0x23ef   : > { %v6611_v49 = vadd.f32 %v9600_v6, %v6532_v19  ;;  %v6605_v2 = vpop.f32.mrb[27].mxu1 }
0x23f0   : > { %v6606_v52 = vadd.f32 %v6605_v2, %v6532_v19 }
0x23f1   : > { %v7477_v62 = vrot.slane %v6611_v49, 5 }
0x23f2   : > { %7126 = vrot.lane.b32.xlu0 %v6606_v52, %s10332_s24  ;;  %6959 = vrot.lane.b32.xlu1 %v6606_v52, %s10330_s23  ;;  %v7476_v57 = vrot.slane %v6606_v52, 5 }
0x23f3   : > { %9626 = vmatmul.mubr.msk.f32.vlgmr.msra.gmra.mrb[18].mxu0 %vm5007_vm7, %v6606_v52 }
0x23f4   : > { %v7478_v50 = vsel %vm4619_vm2, %v7476_v57, %v7477_v62  ;;  %9635 = vmatprep.mubr.msk.f32.mxu0 %vm10331_vm5, %v10325_v16  ;;  %vm6870_vm2 = vcmask 12288  }
0x23f6   : > { %7293 = vrot.lane.b32.xlu0 %v6606_v52, %s10333_s25  ;;  %7128 = vrot.lane.b32.xlu1 %v6704_v13, %s10332_s24 }
0x23fa   : > { %7295 = vrot.lane.b32.xlu1 %v6704_v13, %s10333_s25  ;;  %7642 = vrot.lane.b32.xlu0 %v7478_v50, %s10330_s23 }
0x23fe   : > { %7644 = vrot.lane.b32.xlu1 %v7479_v58, %s10330_s23  ;;  %7809 = vrot.lane.b32.xlu0 %v7478_v50, %s10332_s24 }
0x2402   : > { %7811 = vrot.lane.b32.xlu1 %v7479_v58, %s10332_s24  ;;  %7976 = vrot.lane.b32.xlu0 %v7478_v50, %s10333_s25 }
0x2406   : > { %7978 = vrot.lane.b32.xlu1 %v7479_v58, %s10333_s25  ;;  %10201 = vrot.lane.b32.xlu0 %v11646_v11, %s10329_s22 }
0x240a   : > { %10196 = vrot.lane.b32.xlu1 %v11636_v23, %s10329_s22 }
0x2458   : > { %v6962_v1 = vpop.permute.xlu1 %6961 }
0x2459   : > { %9634 = vmatpush3.xpose.msk.msra.mxu0 %vm5007_vm7, %v6962_v1 }
0x245a   : > { %9643 = vmatprep.subr.mxu0 %v10325_v16 }
0x2464   : > { %v7127_v20 = vpop.permute.xlu0 %7126  ;;  %v6960_v4 = vpop.permute.xlu1 %6959 }
0x2465   : > { %9636 = vmatmul.mubr.msk.f32.vlgmr.msra.gmra.mrb[20].mxu0 %vm5007_vm7, %v6960_v4 }
0x2466   : > { %9645 = vmatprep.mubr.msk.f32.mxu0 %vm10331_vm5, %v10325_v16 }
0x2468   : > { %v7294_v59 = vpop.permute.xlu0 %7293  ;;  %v7129_v12 = vpop.permute.xlu1 %7128 }
0x2469   : > { %9644 = vmatpush3.xpose.msk.msra.mxu0 %vm5007_vm7, %v7129_v12 }
0x246a   : > { %9653 = vmatprep.subr.mxu0 %v10325_v16 }
0x246c   : > { %v7296_v25 = vpop.permute.xlu1 %7295  ;;  %v7643_v26 = vpop.permute.xlu0 %7642  ;;  %9646 = vmatmul.mubr.msk.f32.vlgmr.msra.gmra.mrb[22].mxu0 %vm5007_vm7, %v7127_v20 }
0x246d   : > { %9654 = vmatpush3.xpose.msk.msra.mxu0 %vm5007_vm7, %v7296_v25  ;;  %9655 = vmatprep.mubr.msk.f32.mxu0 %vm10331_vm5, %v10325_v16 }
0x246e   : > { %9663 = vmatprep.subr.mxu0 %v10325_v16 }
0x2470   : > { %v7645_v27 = vpop.permute.xlu1 %7644  ;;  %v7810_v28 = vpop.permute.xlu0 %7809  ;;  %9656 = vmatmul.mubr.msk.f32.vlgmr.msra.gmra.mrb[24].mxu0 %vm5007_vm7, %v7294_v59 }
0x2471   : > { %9664 = vmatpush3.xpose.msk.msra.mxu0 %vm5007_vm7, %v7479_v58  ;;  %9665 = vmatprep.mubr.msk.f32.mxu0 %vm10331_vm5, %v10325_v16 }
0x2472   : > { %9673 = vmatprep.subr.mxu0 %v10325_v16 }
0x2474   : > { %v7812_v48 = vpop.permute.xlu1 %7811  ;;  %9666 = vmatmul.mubr.msk.f32.vlgmr.msra.gmra.mrb[26].mxu0 %vm5007_vm7, %v7478_v50  ;;  %v7977_v5 = vpop.permute.xlu0 %7976 }
0x2475   : > { %9674 = vmatpush3.xpose.msk.msra.mxu0 %vm5007_vm7, %v7645_v27  ;;  %9675 = vmatprep.mubr.msk.f32.mxu0 %vm10331_vm5, %v10325_v16 }
0x2476   : > { %9683 = vmatprep.subr.mxu0 %v10325_v16 }
0x2478   : > { %v7979_v8 = vpop.permute.xlu1 %7978  ;;  %9676 = vmatmul.mubr.msk.f32.vlgmr.msra.gmra.mrb[28].mxu0 %vm5007_vm7, %v7643_v26  ;;  %v10202_v3 = vpop.permute.xlu0 %10201 }
0x2479   : > { %9684 = vmatpush3.xpose.msk.msra.mxu0 %vm5007_vm7, %v7812_v48  ;;  %9685 = vmatprep.mubr.msk.f32.mxu0 %vm10331_vm5, %v10325_v16  ;;  %v10204_v51 = vunpack.i.h.bf16 %v10202_v3  ;;  %v10203_v56 = vunpack.i.l.bf16 %v10202_v3 }
0x247a   : > { %9693 = vmatprep.subr.mxu0 %v10325_v16 }
0x247b   : > { %v9937_v14 = vpack.c.bf16 %v10204_v51, %v10203_v56  ;;  %v6709_v56 = vsub.s32 6, %v10440_v10 }
0x247c   : > { %9686 = vmatmul.mubr.msk.f32.vlgmr.msra.gmra.mrb[30].mxu0 %vm5007_vm7, %v7810_v28  ;;  %v10197_v17 = vpop.permute.xlu1 %10196 }
0x247d   : > { %9694 = vmatpush3.xpose.msk.msra.mxu0 %vm5007_vm7, %v7979_v8  ;;  %9695 = vmatprep.mubr.msk.f32.mxu0 %vm10331_vm5, %v10325_v16  ;;  %v10199_v21 = vunpack.i.h.bf16 %v10197_v17  ;;  %v10198_v15 = vunpack.i.l.bf16 %v10197_v17 }
0x247f   : > { %v9934_v22 = vpack.c.bf16 %v10199_v21, %v10198_v15 }
0x2480   : > { %9696 = vmatmul.mubr.msk.f32.vlgmr.msra.gmra.mrb[32].mxu0 %vm5007_vm7, %v7977_v5 }
0x2481   : > { %9935 = vmatpush3.bf16.msra.mxu1 %v9934_v22 }
0x2482   : > { %9936 = vmatprep.subr.bf16.mxu1 %v10338_v60 }
0x2485   : > { %9938 = vmatpush3.bf16.msra.mxu1 %v9937_v14  ;;  %v6710_v14 = vrot.slane %v10613_v45, %v6709_v56 }
0x2486   : > { %9628 = vmatprep.subr.mxu1 %v10325_v16 }
0x2488   : > { %9621 = vmatmul.mubr.msk.f32.vlgmr.msra.gmra.mrb[28].mxu1 %vm4651_vm12, %v10397_v0 }
0x2489   : > { %9630 = vmatprep.mubr.msk.f32.mxu1 %vm10331_vm5, %v10325_v16 }
0x24c6   : > { %v6865_v61 = vpop.f32.mrb[18].mxu0 }
0x24c7   : > { %v6869_v13 = vmul.f32 0.35355338, %v6865_v61  ;;  %v9627_v55 = vpop.f32.mrb[19].mxu0 }
0x24c9   : > { %v6871_v19 = vsel %vm6870_vm2, %v6869_v13, -inf }
0x24ca   : > { %6872 = vmax.xlane.f32.xlu1 %v6871_v19 }
0x2538   : > { %v7033_v6 = vpop.f32.mrb[20].mxu0 }
0x2539   : > { %v7037_v49 = vmul.f32 0.35355338, %v7033_v6  ;;  %v9637_v2 = vpop.f32.mrb[21].mxu0 }
0x253b   : > { %v7038_v60 = vsel %vm6870_vm2, %v7037_v49, -inf }
0x253c   : > { %7039 = vmax.xlane.f32.xlu0 %v7038_v60 }
0x253f   : > { %v7200_v52 = vpop.f32.mrb[22].mxu0 }
0x2540   : > { %v7204_v62 = vmul.f32 0.35355338, %v7200_v52  ;;  %v9647_v57 = vpop.f32.mrb[23].mxu0 }
0x2542   : > { %v7205_v0 = vsel %vm6870_vm2, %v7204_v62, -inf }
0x2543   : > { %7206 = vmax.xlane.f32.xlu0 %v7205_v0  ;;  %v7367_v50 = vpop.f32.mrb[24].mxu0 }
0x2544   : > { %v7371_v58 = vmul.f32 0.35355338, %v7367_v50  ;;  %v9657_v1 = vpop.f32.mrb[25].mxu0 }
0x2546   : > { %v7372_v20 = vsel %vm6870_vm2, %v7371_v58, -inf }
0x2547   : > { %7373 = vmax.xlane.f32.xlu0 %v7372_v20  ;;  %v7550_v4 = vpop.f32.mrb[26].mxu0 }
0x2548   : > { %v11741_v59 = vmul.f32 0.35355338, %v7550_v4  ;;  %v9667_v12 = vpop.f32.mrb[27].mxu0 }
0x254a   : > { %v7555_v25 = vsel %vm6870_vm2, %v11741_v59, -inf }
0x254b   : > { %7556 = vmax.xlane.f32.xlu1 %v7555_v25  ;;  %v7716_v26 = vpop.f32.mrb[28].mxu0 }
0x254c   : > { %v7720_v27 = vmul.f32 0.35355338, %v7716_v26  ;;  %v9677_v28 = vpop.f32.mrb[29].mxu0 }
0x254e   : > { %v7721_v48 = vsel %vm6870_vm2, %v7720_v27, -inf }
0x254f   : > { %7722 = vmax.xlane.f32.xlu0 %v7721_v48  ;;  %v7883_v5 = vpop.f32.mrb[30].mxu0 }
0x2550   : > { %v7887_v8 = vmul.f32 0.35355338, %v7883_v5  ;;  %v9687_v3 = vpop.f32.mrb[31].mxu0 }
0x2552   : > { %v7888_v17 = vsel %vm6870_vm2, %v7887_v8, -inf }
0x2553   : > { %7889 = vmax.xlane.f32.xlu1 %v7888_v17  ;;  %v8050_v21 = vpop.f32.mrb[32].mxu0 }
0x2554   : > { %v8054_v15 = vmul.f32 0.35355338, %v8050_v21  ;;  %v9697_v51 = vpop.f32.mrb[33].mxu0 }
0x2556   : > { %v8055_v22 = vsel %vm6870_vm2, %v8054_v15, -inf }
0x2557   : > { %8056 = vmax.xlane.f32.xlu0 %v8055_v22  ;;  %v6873_v6 = vpop.xlane.xlu1 %6872 }
0x2558   : > { %v6874_v2 = vsub.f32 %v6869_v13, %v6873_v6 }
0x255a   : > { %v6875_v60 = vmul.f32 1.442695, %v6874_v2 }
0x255b   : > { %v6789_v61 = vpop.f32.mrb[28].mxu1 }
0x255c   : > { %v6790_v55 = vadd.f32 %v6789_v61, %v6710_v14  ;;  %v9622_v19 = vpop.f32.mrb[29].mxu1  ;;  %10259 = vpow2.f32 %v6875_v60 }
0x255e   : > { %9629 = vmatpush3.msk.msra.mxu1 %vm4432_vm4, %v6790_v55 }
0x255f   : > { %9638 = vmatprep.subr.mxu1 %v10325_v16 }
0x2564   : > { %7049 = vrot.lane.b32.xlu1 %v6790_v55, %s10330_s23 }
0x2566   : > { %v10260_v52 = vpop.eup %10259 }
0x2567   : > { %v6877_v57 = vsel %vm6870_vm2, %v10260_v52, 0.0 }
0x2588   : > { %6878 = vadd.xlane.f32.xlu1 %v6877_v57 }
0x25c9   : > { %v7040_v0 = vpop.xlane.xlu0 %7039 }
0x25ca   : > { %v7041_v50 = vsub.f32 %v7037_v49, %v7040_v0 }
0x25cc   : > { %v7042_v1 = vmul.f32 1.442695, %v7041_v50 }
0x25ce   : > { %10261 = vpow2.f32 %v7042_v1 }
0x25d0   : > { %v7207_v20 = vpop.xlane.xlu0 %7206 }
0x25d1   : > { %v7208_v4 = vsub.f32 %v7204_v62, %v7207_v20 }
0x25d3   : > { %v7209_v12 = vmul.f32 1.442695, %v7208_v4 }
0x25d4   : > { %v7374_v25 = vpop.xlane.xlu0 %7373 }
0x25d5   : > { %10263 = vpow2.f32 %v7209_v12  ;;  %v7375_v26 = vsub.f32 %v7371_v58, %v7374_v25  ;;  %v11766_v58 = vrot.slane %v6790_v55, 2 }
0x25d7   : > { %v7376_v28 = vmul.f32 1.442695, %v7375_v26 }
0x25d8   : > { %v10262_v48 = vpop.eup %10261  ;;  %v7557_v17 = vpop.xlane.xlu1 %7556 }
0x25d9   : > { %10265 = vpow2.f32 %v7376_v28  ;;  %v7044_v13 = vsel %vm6870_vm2, %v10262_v48, 0.0  ;;  %v7558_v51 = vsub.f32 %v11741_v59, %v7557_v17 }
0x25da   : > { %7045 = vadd.xlane.f32.xlu0 %v7044_v13 }
0x25db   : > { %v7559_v19 = vmul.f32 1.442695, %v7558_v51 }
0x25dc   : > { %v7723_v21 = vpop.xlane.xlu0 %7722 }
0x25dd   : > { %v7724_v22 = vsub.f32 %v7720_v27, %v7723_v21  ;;  %10267 = vpow2.f32 %v7559_v19 }
0x25df   : > { %v11757_v5 = vpop.eup %10263  ;;  %v7725_v2 = vmul.f32 1.442695, %v7724_v22 }
0x25e0   : > { %v7211_v3 = vsel %vm6870_vm2, %v11757_v5, 0.0  ;;  %v7890_v14 = vpop.xlane.xlu1 %7889 }
0x25e1   : > { %7212 = vadd.xlane.f32.xlu1 %v7211_v3  ;;  %v7891_v6 = vsub.f32 %v7887_v8, %v7890_v14  ;;  %10269 = vpow2.f32 %v7725_v2 }
0x25e3   : > { %v11761_v49 = vpop.eup %10265  ;;  %v7892_v57 = vmul.f32 1.442695, %v7891_v6 }
0x25e4   : > { %v7378_v62 = vsel %vm6870_vm2, %v11761_v49, 0.0  ;;  %v8057_v61 = vpop.xlane.xlu0 %8056  ;;  %v7050_v50 = vpop.permute.xlu1 %7049 }
0x25e5   : > { %7379 = vadd.xlane.f32.xlu0 %v7378_v62  ;;  %v8058_v60 = vsub.f32 %v8054_v15, %v8057_v61  ;;  %10271 = vpow2.f32 %v7892_v57 }
0x25e7   : > { %v8059_v0 = vmul.f32 1.442695, %v8058_v60  ;;  %v10268_v1 = vpop.eup %10267 }
0x25e8   : > { %v7561_v27 = vsel %vm6870_vm2, %v10268_v1, 0.0 }
0x25e9   : > { %10273 = vpow2.f32 %v8059_v0 }
0x25eb   : > { %v11772_v20 = vpop.eup %10269 }
0x25ec   : > { %v7727_v8 = vsel %vm6870_vm2, %v11772_v20, 0.0 }
0x25ef   : > { %v11774_v59 = vpop.eup %10271 }
0x25f0   : > { %v7894_v4 = vsel %vm6870_vm2, %v11774_v59, 0.0 }
0x25f2   : > { %7383 = vrot.lane.b32.xlu1 %v6790_v55, %s10333_s25 }
0x25f3   : > { %v11779_v15 = vpop.eup %10273 }
0x25f4   : > { %v8061_v12 = vsel %vm6870_vm2, %v11779_v15, 0.0 }
0x25f6   : > { %7732 = vrot.lane.b32.xlu1 %v11766_v58, %s10330_s23 }
0x25fb   : > { %7216 = vrot.lane.b32.xlu0 %v6790_v55, %s10332_s24 }
0x2615   : > { %v6879_v55 = vpop.xlane.xlu1 %6878 }
0x2616   : > { %10275 = vrcp.f32 %v6879_v55 }
0x261a   : > { %7562 = vadd.xlane.f32.xlu1 %v7561_v27  ;;  %7728 = vadd.xlane.f32.xlu0 %v7727_v8 }
0x261e   : > { %7895 = vadd.xlane.f32.xlu1 %v7894_v4  ;;  %8062 = vadd.xlane.f32.xlu0 %v8061_v12 }
0x2620   : > { %v10276_v25 = vpop.eup %10275 }
0x2621   : > { %v6881_v26 = vmul.f32 %v10276_v25, %v10260_v52 }
0x2623   : > { %9631 = vmatmul.mubr.msk.f32.vlgmr.msra.gmra.mrb[30].mxu1 %vm6882_vm15, %v6881_v26 }
0x2624   : > { %9639 = vmatpush3.msk.msra.mxu1 %vm4432_vm4, %v7050_v50  ;;  %9640 = vmatprep.mubr.msk.f32.mxu1 %vm10331_vm5, %v10325_v16 }
0x2625   : > { %9648 = vmatprep.subr.mxu1 %v10325_v16 }
0x262f   : > { %7899 = vrot.lane.b32.xlu1 %v11766_v58, %s10332_s24 }
0x2633   : > { %10206 = vrot.lane.b32.xlu1 %v11636_v23, %s10334_s26 }
0x2634   : > { %8066 = vrot.lane.b32.xlu0 %v11766_v58, %s10333_s25 }
0x2638   : > { %10211 = vrot.lane.b32.xlu0 %v11646_v11, %s10334_s26 }
0x2667   : > { %v7046_v28 = vpop.xlane.xlu0 %7045 }
0x2668   : > { %10277 = vrcp.f32 %v7046_v28 }
0x266e   : > { %v7213_v13 = vpop.xlane.xlu1 %7212 }
0x266f   : > { %10279 = vrcp.f32 %v7213_v13 }
0x2672   : > { %v10278_v52 = vpop.eup %10277  ;;  %v7380_v3 = vpop.xlane.xlu0 %7379 }
0x2673   : > { %v7048_v62 = vmul.f32 %v10278_v52, %v10262_v48  ;;  %10281 = vrcp.f32 %v7380_v3  ;;  %v7384_v22 = vpop.permute.xlu1 %7383 }
0x2675   : > { %9641 = vmatmul.mubr.msk.f32.vlgmr.msra.gmra.mrb[32].mxu1 %vm6882_vm15, %v7048_v62 }
0x2676   : > { %v7217_v17 = vpop.permute.xlu0 %7216  ;;  %9650 = vmatprep.mubr.msk.f32.mxu1 %vm10331_vm5, %v10325_v16 }
0x2677   : > { %9649 = vmatpush3.msk.msra.mxu1 %vm4432_vm4, %v7217_v17  ;;  %v7733_v23 = vpop.permute.xlu1 %7732 }
0x2678   : > { %9658 = vmatprep.subr.mxu1 %v10325_v16 }
0x2679   : > { %v10280_v21 = vpop.eup %10279 }
0x267a   : > { %v7215_v51 = vmul.f32 %v10280_v21, %v11757_v5 }
0x267c   : > { %9651 = vmatmul.mubr.msk.f32.vlgmr.msra.gmra.mrb[34].mxu1 %vm6882_vm15, %v7215_v51 }
0x267d   : > { %v10282_v48 = vpop.eup %10281  ;;  %9659 = vmatpush3.msk.msra.mxu1 %vm4432_vm4, %v7384_v22  ;;  %9660 = vmatprep.mubr.msk.f32.mxu1 %vm10331_vm5, %v10325_v16 }
0x267e   : > { %v7382_v14 = vmul.f32 %v10282_v48, %v11761_v49  ;;  %9668 = vmatprep.subr.mxu1 %v10325_v16 }
0x2680   : > { %9661 = vmatmul.mubr.msk.f32.vlgmr.msra.gmra.mrb[36].mxu1 %vm6882_vm15, %v7382_v14 }
0x2681   : > { %9669 = vmatpush3.msk.msra.mxu1 %vm4432_vm4, %v11766_v58  ;;  %9670 = vmatprep.mubr.msk.f32.mxu1 %vm10331_vm5, %v10325_v16 }
0x2682   : > { %9678 = vmatprep.subr.mxu1 %v10325_v16 }
0x26a7   : > { %v7563_v5 = vpop.xlane.xlu1 %7562  ;;  %v7729_v61 = vpop.xlane.xlu0 %7728 }
0x26a8   : > { %10283 = vrcp.f32 %v7563_v5 }
0x26a9   : > { %10285 = vrcp.f32 %v7729_v61 }
0x26ab   : > { %v7896_v19 = vpop.xlane.xlu1 %7895  ;;  %v8063_v49 = vpop.xlane.xlu0 %8062 }
0x26ac   : > { %10287 = vrcp.f32 %v7896_v19 }
0x26ad   : > { %10289 = vrcp.f32 %v8063_v49 }
0x26af   : > { %v7900_v0 = vpop.permute.xlu1 %7899  ;;  %v8067_v55 = vpop.permute.xlu0 %8066 }
0x26b2   : > { %v10284_v6 = vpop.eup %10283 }
0x26b3   : > { %v7565_v2 = vmul.f32 %v10284_v6, %v10268_v1  ;;  %v10286_v60 = vpop.eup %10285  ;;  %v10212_v3 = vpop.permute.xlu0 %10211 }
0x26b4   : > { %v7731_v58 = vmul.f32 %v10286_v60, %v11772_v20  ;;  %v10214_v62 = vunpack.i.h.bf16 %v10212_v3  ;;  %v10213_v17 = vunpack.i.l.bf16 %v10212_v3 }
0x26b5   : > { %9671 = vmatmul.mubr.msk.f32.vlgmr.msra.gmra.mrb[38].mxu1 %vm6882_vm15, %v7565_v2 }
0x26b6   : > { %9679 = vmatpush3.msk.msra.mxu1 %vm4432_vm4, %v7733_v23  ;;  %9680 = vmatprep.mubr.msk.f32.mxu1 %vm10331_vm5, %v10325_v16  ;;  %v10288_v57 = vpop.eup %10287  ;;  %v9943_v21 = vpack.c.bf16 %v10214_v62, %v10213_v17 }
0x26b7   : > { %9688 = vmatprep.subr.mxu1 %v10325_v16  ;;  %v7898_v50 = vmul.f32 %v10288_v57, %v11774_v59  ;;  %v10290_v1 = vpop.eup %10289  ;;  %v10207_v59 = vpop.permute.xlu1 %10206 }
0x26b8   : > { %v8065_v20 = vmul.f32 %v10290_v1, %v11779_v15  ;;  %v10209_v4 = vunpack.i.h.bf16 %v10207_v59  ;;  %v10208_v12 = vunpack.i.l.bf16 %v10207_v59 }
0x26b9   : > { %9681 = vmatmul.mubr.msk.f32.vlgmr.msra.gmra.mrb[40].mxu1 %vm6882_vm15, %v7731_v58 }
0x26ba   : > { %9689 = vmatpush3.msk.msra.mxu1 %vm4432_vm4, %v7900_v0  ;;  %9690 = vmatprep.mubr.msk.f32.mxu1 %vm10331_vm5, %v10325_v16  ;;  %v9939_v25 = vpack.c.bf16 %v10209_v4, %v10208_v12  ;;  %v8164_v4 = vsub.s32 7, %v10440_v10  ;;  %v9959_v10 = vpack.c.bf16 %v10588_v40, %v10583_v39 }
0x26bb   : > { %9698 = vmatprep.subr.mxu1 %v10325_v16 }
0x26bc   : > { %9940 = vmatprep.subr.bf16.mxu0 %v9939_v25  ;;  %v8165_v12 = vrot.slane %v10613_v45, %v8164_v4 }
0x26bd   : > { %9691 = vmatmul.mubr.msk.f32.vlgmr.msra.gmra.mrb[42].mxu1 %vm6882_vm15, %v7898_v50  ;;  %9942 = vmatpush3.bf16.msra.mxu0 %v9939_v25 }
0x26be   : > { %9699 = vmatpush3.msk.msra.mxu1 %vm4432_vm4, %v8067_v55  ;;  %9700 = vmatprep.mubr.msk.f32.mxu1 %vm10331_vm5, %v10325_v16  ;;  %vm8393_vm4 = vcmask 523264  }
0x26bf   : > { %9944 = vmatprep.subr.bf16.mxu0 %v9943_v21 }
0x26c1   : > { %9701 = vmatmul.mubr.msk.f32.vlgmr.msra.gmra.mrb[44].mxu1 %vm6882_vm15, %v8065_v20  ;;  %9946 = vmatpush3.bf16.msra.mxu0 %v9943_v21 }
0x26f6   : > { %v6955_v27 = vpop.f32.mrb[30].mxu1 }
0x26f7   : > { %v9632_v8 = vpop.f32.mrb[31].mxu1 }
0x2748   : > { %v7122_v26 = vpop.f32.mrb[32].mxu1 }
0x2749   : > { %7461 = vrot.lane.b32.xlu1 %v7122_v26, %s10335_s29  ;;  %v9642_v28 = vpop.f32.mrb[33].mxu1 }
0x274f   : > { %v7289_v16 = vpop.f32.mrb[34].mxu1 }
0x2750   : > { %v9652_v13 = vpop.f32.mrb[35].mxu1 }
0x2753   : > { %v7456_v15 = vpop.f32.mrb[36].mxu1 }
0x2754   : > { %v9662_v52 = vpop.f32.mrb[37].mxu1 }
0x2788   : > { %v7638_v11 = vpop.f32.mrb[38].mxu1 }
0x2789   : > { %v9672_v51 = vpop.f32.mrb[39].mxu1 }
0x278c   : > { %v7805_v22 = vpop.f32.mrb[40].mxu1 }
0x278d   : > { %8144 = vrot.lane.b32.xlu0 %v7805_v22, %s10335_s29  ;;  %v9682_v48 = vpop.f32.mrb[41].mxu1 }
0x278e   : > { %v9947_v48 = vpack.c.bf16 %v10543_v31, %v10533_v29  ;;  %v8295_v31 = vrot.slane %v10618_v46, %v8164_v4 }
0x2790   : > { %v7972_v14 = vpop.f32.mrb[42].mxu1  ;;  %9948 = vmatprep.subr.bf16.mxu1 %v9947_v48 }
0x2791   : > { %8148 = vrot.lane.b32.xlu1 %v7972_v14, %s10336_s30  ;;  %v9692_v23 = vpop.f32.mrb[43].mxu1  ;;  %9950 = vmatpush3.bf16.msra.mxu1 %v9947_v48  ;;  %v9951_v14 = vpack.c.bf16 %v10563_v35, %v10553_v33  ;;  %v9971_v48 = vpack.c.bf16 %v10548_v32, %v10538_v30 }
0x2793   : > { %9952 = vmatprep.subr.bf16.mxu1 %v9951_v14 }
0x2794   : > { %v8139_v5 = vpop.f32.mrb[44].mxu1 }
0x2795   : > { %7465 = vrot.lane.b32.xlu1 %v7289_v16, %s10336_s30  ;;  %8152 = vrot.lane.b32.xlu0 %v8139_v5, %s10337_s9  ;;  %v9702_v61 = vpop.f32.mrb[45].mxu1 }
0x2796   : > { %9954 = vmatpush3.bf16.msra.mxu1 %v9951_v14  ;;  %v9975_v14 = vpack.c.bf16 %v10568_v36, %v10558_v34  ;;  %v8518_v34 = vrot.slane %v10623_v47, %v11333_v9 }
0x2797   : > { %9972 = vmatprep.subr.bf16.mxu1 %v9971_v48 }
0x2799   : > { %7469 = vrot.lane.b32.xlu0 %v7456_v15, %s10337_s9 }
0x27bb   : > { %v7462_v19 = vpop.permute.xlu1 %7461 }
0x27bc   : > { %v7472_v50 = vsel %vm5007_vm7, %v6955_v27, %v7462_v19 }
0x27ff   : > { %v8145_v49 = vpop.permute.xlu0 %8144 }
0x2800   : > { %v8155_v2 = vsel %vm5007_vm7, %v7638_v11, %v8145_v49 }
0x2803   : > { %v8149_v6 = vpop.permute.xlu1 %8148 }
0x2804   : > { %v8156_v60 = vsel %vm5692_vm10, %v8155_v2, %v8149_v6  ;;  %v8289_v2 = vrot.slane %v10618_v46, %v6709_v56  ;;  %v9963_v46 = vpack.c.bf16 %v10598_v42, %v10593_v41  ;;  %v9967_v56 = vpack.c.bf16 %v10608_v44, %v10603_v43 }
0x2807   : > { %v8153_v58 = vpop.permute.xlu0 %8152  ;;  %v7466_v57 = vpop.permute.xlu1 %7465 }
0x2808   : > { %v8157_v0 = vsel %vm5694_vm14, %v8156_v60, %v8153_v58  ;;  %v7473_v1 = vsel %vm5692_vm10, %v7472_v50, %v7466_v57 }
0x2809   : > { %v8159_v55 = vrot.slane %v8157_v0, 3 }
0x280b   : > { %v7470_v20 = vpop.permute.xlu0 %7469 }
0x280c   : > { %v7474_v8 = vsel %vm5694_vm14, %v7473_v1, %v7470_v20  ;;  %v9955_v1 = vpack.c.bf16 %v10578_v38, %v10573_v37  ;;  %v8301_v37 = vrot.slane %v10623_v47, %v11372_v24  ;;  %v8480_v24 = vrot.slane %v10623_v47, %v11375_v54 }
0x280d   : > { %v8161_v59 = vsel %vm4647_vm11, %v7474_v8, %v8159_v55 }
0x280e   : > { %9711 = vmatprep.mubr.msk.f32.mxu0 %vm4651_vm12, %v8161_v59  ;;  %9956 = vmatprep.subr.bf16.mxu0 %v9955_v1 }
0x280f   : > { %9712 = vmatmul.mubr.msk.f32.vlgmr.msra.gmra.mrb[34].mxu0 %vm4651_vm12, %v8159_v55 }
0x2810   : > { %9958 = vmatpush3.bf16.msra.mxu0 %v9955_v1 }
0x2811   : > { %9960 = vmatprep.subr.bf16.mxu0 %v9959_v10 }
0x2814   : > { %9962 = vmatpush3.bf16.msra.mxu0 %v9959_v10 }
0x2815   : > { %9964 = vmatprep.subr.bf16.mxu0 %v9963_v46 }
0x2818   : > { %9966 = vmatpush3.bf16.msra.mxu0 %v9963_v46 }
0x2819   : > { %9968 = vmatprep.subr.bf16.mxu0 %v9967_v56 }
0x281c   : > { %9970 = vmatpush3.bf16.msra.mxu0 %v9967_v56 }
0x28e2   : > { %v9713_v25 = vpop.f32.mrb[34].mxu0 }
0x28e3   : > { %v8255_v26 = vadd.f32 %v9713_v25, %v8165_v12  ;;  %v8249_v28 = vpop.f32.mrb[35].mxu0 }
0x28e4   : > { %v8250_v27 = vadd.f32 %v8249_v28, %v8165_v12 }
0x28e5   : > { %v11852_v16 = vadd.f32 %v8255_v26, %v11625_v18 }
0x28e6   : > { %v11855_v13 = vadd.f32 %v8250_v27, %v11628_v7 }
0x28e7   : > { %v8263_v15 = vsel %vm4655_vm13, %v11852_v16, 0.0 }
0x28e8   : > { %8264 = vadd.xlane.f32.xlu0 %v8263_v15  ;;  %v8260_v52 = vsel %vm4651_vm12, %v11855_v13, 0.0 }
0x28e9   : > { %8261 = vadd.xlane.f32.xlu1 %v8260_v52 }
0x2975   : > { %v8265_v3 = vpop.xlane.xlu0 %8264 }
0x2976   : > { %v8267_v45 = vmul.f32 0.03125, %v8265_v3  ;;  %v8262_v62 = vpop.xlane.xlu1 %8261 }
0x2977   : > { %v8266_v17 = vmul.f32 0.03125, %v8262_v62 }
0x2978   : > { %v8269_v21 = vsub.f32 %v11852_v16, %v8267_v45 }
0x2979   : > { %v8268_v18 = vsub.f32 %v11855_v13, %v8266_v17 }
0x297a   : > { %v8271_v51 = vmul.f32 %v8269_v21, %v8269_v21 }
0x297b   : > { %v8270_v11 = vmul.f32 %v8268_v18, %v8268_v18 }
0x297c   : > { %v8275_v22 = vsel %vm4655_vm13, %v8271_v51, 0.0 }
0x297d   : > { %v8272_v7 = vsel %vm4651_vm12, %v8270_v11, 0.0 }
0x297e   : > { %8273 = vadd.xlane.f32.xlu0 %v8272_v7 }
0x2982   : > { %8276 = vadd.xlane.f32.xlu0 %v8275_v22 }
0x2a0b   : > { %v8274_v23 = vpop.xlane.xlu0 %8273 }
0x2a0c   : > { %v8278_v5 = vmul.f32 0.03125, %v8274_v23 }
0x2a0e   : > { %v8280_v61 = vadd.f32 1e-05, %v8278_v5 }
0x2a0f   : > { %v8277_v19 = vpop.xlane.xlu0 %8276 }
0x2a10   : > { %10291 = vrsqrt.f32 %v8280_v61  ;;  %v8279_v49 = vmul.f32 0.03125, %v8277_v19 }
0x2a12   : > { %v8281_v6 = vadd.f32 1e-05, %v8279_v49 }
0x2a14   : > { %10293 = vrsqrt.f32 %v8281_v6 }
0x2a1a   : > { %v10292_v29 = vpop.eup %10291 }
0x2a1b   : > { %v8284_v60 = vmul.f32 %v10292_v29, %v8268_v18 }
0x2a1d   : > { %v8290_v58 = vmul.f32 %v8289_v2, %v8284_v60 }
0x2a1e   : > { %v10294_v33 = vpop.eup %10293 }
0x2a1f   : > { %v8285_v35 = vmul.f32 %v10294_v33, %v8269_v21  ;;  %v8296_v57 = vadd.f32 %v8295_v31, %v8290_v58 }
0x2a21   : > { %9722 = vmatprep.mubr.msk.f32.mxu1 %vm4651_vm12, %v8296_v57  ;;  %v8291_v0 = vmul.f32 %v8289_v2, %v8285_v35  ;;  %v8512_v2 = vrot.slane %v10623_v47, %v11330_v63  ;;  %v8524_v35 = vrot.slane %v10623_v47, %v11658_v53 }
0x2a23   : > { %v8297_v50 = vadd.f32 %v8295_v31, %v8291_v0 }
0x2a25   : > { %9723 = vmatmul.mubr.msk.f32.vlgmr.msra.gmra.mrb[46].mxu1 %vm4651_vm12, %v8297_v50 }
0x2a26   : > { %9974 = vmatpush3.bf16.msra.mxu1 %v9971_v48 }
0x2a27   : > { %9976 = vmatprep.subr.bf16.mxu1 %v9975_v14 }
0x2a2a   : > { %9978 = vmatpush3.bf16.msra.mxu1 %v9975_v14 }
0x2af8   : > { %v9724_v38 = vpop.f32.mrb[46].mxu1 }
0x2af9   : > { %v8380_v55 = vadd.f32 %v9724_v38, %v8301_v37  ;;  %v8374_v20 = vpop.f32.mrb[47].mxu1 }
0x2afa   : > { %v8375_v8 = vadd.f32 %v8374_v20, %v8301_v37 }
0x2afb   : > { %v8386_v39 = vmul.f32 0.70710677, %v8380_v55  ;;  %v8384_v25 = vmul.f32 0.5, %v8380_v55 }
0x2afc   : > { %v8385_v40 = vmul.f32 0.70710677, %v8375_v8  ;;  %v8383_v4 = vmul.f32 0.5, %v8375_v8 }
0x2afd   : > { %10295 = verf.f32 %v8386_v39 }
0x2afe   : > { %10297 = verf.f32 %v8385_v40 }
0x2b07   : > { %v10296_v59 = vpop.eup %10295 }
0x2b08   : > { %v10298_v41 = vpop.eup %10297  ;;  %v8390_v42 = vadd.f32 1.0, %v10296_v59 }
0x2b09   : > { %v8389_v12 = vadd.f32 1.0, %v10298_v41 }
0x2b0a   : > { %v8392_v44 = vmul.f32 %v8390_v42, %v8384_v25 }
0x2b0b   : > { %v8391_v43 = vmul.f32 %v8389_v12, %v8383_v4 }
0x2b0d   : > { %9741 = vmatprep.mubr.msk.f32.mxu0 %vm8393_vm4, %v8391_v43 }
0x2b0e   : > { %9742 = vmatmul.mubr.msk.f32.vlgmr.msra.gmra.mrb[36].mxu0 %vm8393_vm4, %v8392_v44 }
0x2be1   : > { %v9743_v26 = vpop.f32.mrb[36].mxu0 }
0x2be2   : > { %v8476_v28 = vadd.f32 %v9743_v26, %v11852_v16  ;;  %v8466_v27 = vpop.f32.mrb[37].mxu0 }
0x2be3   : > { %v8475_v15 = vadd.f32 %v8466_v27, %v11855_v13 }
0x2be4   : > { %v8482_v52 = vadd.f32 %v8480_v24, %v8476_v28 }
0x2be5   : > { %v8481_v3 = vadd.f32 %v8480_v24, %v8475_v15 }
0x2be6   : > { %v8486_v45 = vsel %vm4655_vm13, %v8482_v52, 0.0 }
0x2be7   : > { %8487 = vadd.xlane.f32.xlu0 %v8486_v45  ;;  %v8483_v62 = vsel %vm4651_vm12, %v8481_v3, 0.0 }
0x2be8   : > { %8484 = vadd.xlane.f32.xlu1 %v8483_v62 }
0x2c74   : > { %v8488_v17 = vpop.xlane.xlu0 %8487 }
0x2c75   : > { %v8490_v21 = vmul.f32 0.03125, %v8488_v17  ;;  %v8485_v18 = vpop.xlane.xlu1 %8484 }
0x2c76   : > { %v8489_v11 = vmul.f32 0.03125, %v8485_v18 }
0x2c77   : > { %v8492_v7 = vsub.f32 %v8482_v52, %v8490_v21 }
0x2c78   : > { %v8491_v54 = vsub.f32 %v8481_v3, %v8489_v11 }
0x2c79   : > { %v8494_v51 = vmul.f32 %v8492_v7, %v8492_v7 }
0x2c7a   : > { %v8493_v22 = vmul.f32 %v8491_v54, %v8491_v54 }
0x2c7b   : > { %v8498_v16 = vsel %vm4655_vm13, %v8494_v51, 0.0 }
0x2c7c   : > { %8499 = vadd.xlane.f32.xlu0 %v8498_v16  ;;  %v8495_v13 = vsel %vm4651_vm12, %v8493_v22, 0.0 }
0x2c7d   : > { %8496 = vadd.xlane.f32.xlu1 %v8495_v13 }
0x2d09   : > { %v8500_v23 = vpop.xlane.xlu0 %8499 }
0x2d0a   : > { %v8502_v5 = vmul.f32 0.03125, %v8500_v23  ;;  %v8497_v61 = vpop.xlane.xlu1 %8496 }
0x2d0b   : > { %v8501_v19 = vmul.f32 0.03125, %v8497_v61 }
0x2d0c   : > { %v8504_v49 = vadd.f32 1e-05, %v8502_v5 }
0x2d0d   : > { %v8503_v6 = vadd.f32 1e-05, %v8501_v19 }
0x2d0e   : > { %10299 = vrsqrt.f32 %v8504_v49 }
0x2d0f   : > { %10301 = vrsqrt.f32 %v8503_v6 }
0x2d18   : > { %v10300_v29 = vpop.eup %10299 }
0x2d19   : > { %v10302_v30 = vpop.eup %10301  ;;  %v8508_v32 = vmul.f32 %v10300_v29, %v8492_v7 }
0x2d1a   : > { %v8507_v31 = vmul.f32 %v10302_v30, %v8491_v54 }
0x2d1b   : > { %v8514_v36 = vmul.f32 %v8512_v2, %v8508_v32 }
0x2d1c   : > { %v8513_v60 = vmul.f32 %v8512_v2, %v8507_v31 }
0x2d1d   : > { %v8520_v33 = vadd.f32 %v8518_v34, %v8514_v36 }
0x2d1e   : > { %v8519_v58 = vadd.f32 %v8518_v34, %v8513_v60 }
0x2d20   : > { %9752 = vmatprep.mubr.msk.f32.mxu1 %vm4651_vm12, %v8519_v58 }
0x2d21   : > { %9753 = vmatmul.mubr.msk.f32.vlgmr.msra.gmra.mrb[48].mxu1 %vm4651_vm12, %v8520_v33 }
0x2df4   : > { %v9754_v57 = vpop.f32.mrb[48].mxu1 }
0x2df5   : > { %v8603_v63 = vadd.f32 %v9754_v57, %v8524_v35  ;;  %v8597_v0 = vpop.f32.mrb[49].mxu1 }
0x2df6   : > { %v8598_v50 = vadd.f32 %v8597_v0, %v8524_v35 }
0x2df7   : > { %8607 = vst [vmem:[%s11922_s8 + $0x8] sm:$0x3] %v8603_v63 }
0x2df8   : > { %8606 = vst [vmem:[%s11922_s8] sm:$0xff] %v8598_v50 }
0x2df9 PF: > { %s18_s27 = sadd.s32 1, %s10309_s27  }
0x2dfa   : > { %p15_p7 = scmp.ge.s32.totalorder %s18_s27, 9  }
0x2dfc   :  { %17 = sbr.rel (!%p15_p7) target bundleno = 1 (0x1), region = 87 }

</bundles_post_ra>
